<compile_context>
chip_gen: v6e
topology: v6e:2x2x1
jax: 0.10.0
libtpu: 0.0.40
codegen_flags: <defaults>
</compile_context>

<pallas_src>
import functools

import jax
import jax.numpy as jnp
import numpy as np
from jax.experimental import pallas as pl
from jax.experimental.pallas import tpu as pltpu

BN_EPS = 1.001e-05                 # module uses eps=1.001e-5 for every BatchNorm2d
ROW_TILE = 512                     # M-tile for the row-parallel head grid
VMEM_LIMIT = 48 * 1024 * 1024      # safe on v5e/v6e (128 MiB) and v7x (64 MiB)

# (in_channels, filters, downsampling, conv_shortcut) for the 8 residual blocks
BLOCK_CFGS = (
    (64, 16, 1, True),
    (64, 16, 2, False),
    (64, 32, 1, True),
    (128, 32, 2, False),
    (128, 64, 1, True),
    (256, 64, 2, False),
    (256, 128, 1, True),
    (512, 128, 1, False),
)


# ----------------------------- Pallas kernels -------------------------------

def _stem_pool_kernel(p_ref, w_ref, s_ref, o_ref):
    # One image per grid step: 7x7/s2 conv (im2col matmul) fused with
    # ZeroPad2d(1)+MaxPool2d(3,2).  s_ref[t] are 0/1 selection matrices; all-zero rows
    # contribute 0.0 to the max, which is exactly the zero-padding value.
    c = jnp.dot(p_ref[0], w_ref[...], preferred_element_type=jnp.float32)
    cb = c.astype(jnp.bfloat16)
    m = jnp.dot(s_ref[0], cb, preferred_element_type=jnp.float32)
    for t in range(1, s_ref.shape[0]):
        m = jnp.maximum(m, jnp.dot(s_ref[t], cb, preferred_element_type=jnp.float32))
    o_ref[0] = m.astype(o_ref.dtype)


def _block_kernel(x_ref, s1_ref, b1_ref, w1_ref, t2_ref, S_ref, w2_ref, t3_ref,
                  w3_ref, bias_ref, sc_ref, o_ref, *, conv_sc, select):
    # Whole pre-activation residual block for one image, fully fused.
    x = x_ref[0].astype(jnp.float32)                                   # (HW, Cin)
    y = jnp.maximum(x * s1_ref[...] + b1_ref[...], 0.0)                # relu(bn1(x))
    yb = y.astype(jnp.bfloat16)

    # Conv_1 (1x1) with BN_2 folded into w1 columns, then ReLU.
    h = jnp.dot(yb, w1_ref[...], preferred_element_type=jnp.float32) + t2_ref[...]
    h = jnp.maximum(h, 0.0).astype(jnp.bfloat16)                       # (HW, f)

    # ZeroPad(1) + Conv_2 (3x3, stride=ds) as a sum of per-tap matmuls; S_t does the
    # (exact) padded/strided row selection, BN_3 scale is folded into w2 columns.
    g = None
    for t in range(w2_ref.shape[0]):
        if select:
            tap = jnp.dot(S_ref[t], h,
                          preferred_element_type=jnp.float32).astype(jnp.bfloat16)
        else:       # 1x1 spatial: only the centre tap survives the zero padding
            tap = h
        d = jnp.dot(tap, w2_ref[t], preferred_element_type=jnp.float32)
        g = d if g is None else g + d
    g = jnp.maximum(g + t3_ref[...], 0.0).astype(jnp.bfloat16)         # (OHOW, f)

    # Conv_3 (1x1, bias merged with shortcut bias) + shortcut + residual add.
    main = jnp.dot(g, w3_ref[...], preferred_element_type=jnp.float32) + bias_ref[...]
    if conv_sc:                       # Conv2d(Cin, 4f, k=1, s=1) on relu(bn1(x))
        res = jnp.dot(yb, sc_ref[...], preferred_element_type=jnp.float32)
    elif select:                      # MaxPool(k=1, s=ds) == strided row selection
        res = jnp.dot(sc_ref[...], yb, preferred_element_type=jnp.float32)
    else:                             # MaxPool(k=1, s=1) == identity
        res = y
    o_ref[0] = (main + res).astype(o_ref.dtype)


def _head_kernel(x_ref, s_ref, b_ref, w_ref, bias_ref, o_ref):
    # logits = relu(bn(x)) @ fc_w + fc_b   (AvgPool2d(1) + Flatten are identity/reshape)
    y = jnp.maximum(x_ref[...].astype(jnp.float32) * s_ref[...] + b_ref[...], 0.0)
    o_ref[...] = jnp.dot(y.astype(jnp.bfloat16), w_ref[...],
                         preferred_element_type=jnp.float32) + bias_ref[...]


# ----------------------------- Pallas wrappers -------------------------------

def _compiler_params():
    return pltpu.CompilerParams(dimension_semantics=("parallel",),
                                vmem_limit_bytes=VMEM_LIMIT)


def _fixed_spec(a):
    nd = a.ndim
    return pl.BlockSpec(a.shape, lambda i, _nd=nd: (0,) * _nd)


def _row_partition(m):
    """Row tiling that never falls back to a single full-m block."""
    if m <= ROW_TILE:
        return m, 1
    if m % ROW_TILE == 0:
        return ROW_TILE, m // ROW_TILE
    for tm in range(ROW_TILE, 7, -8):       # largest 8-aligned divisor <= ROW_TILE
        if m % tm == 0:
            return tm, m // tm
    return ROW_TILE, pl.cdiv(m, ROW_TILE)   # ragged last tile (masked by Pallas)


def _stem_pool_call(patches, stem_w, pool_s):
    n, p_rows, kkc = patches.shape
    cout = stem_w.shape[1]
    po = pool_s.shape[1]
    return pl.pallas_call(
        _stem_pool_kernel,
        out_shape=jax.ShapeDtypeStruct((n, po, cout), jnp.bfloat16),
        grid=(n,),
        in_specs=[pl.BlockSpec((1, p_rows, kkc), lambda i: (i, 0, 0)),
                  _fixed_spec(stem_w), _fixed_spec(pool_s)],
        out_specs=pl.BlockSpec((1, po, cout), lambda i: (i, 0, 0)),
        compiler_params=_compiler_params(),
    )(patches, stem_w, pool_s)


def _block_call(xb, bp, cfg):
    cin, f, ds, conv_sc = cfg
    n, hw, _ = xb.shape
    ohow = bp["S"].shape[1]
    fout = bp["w3"].shape[1]
    kernel = functools.partial(_block_kernel, conv_sc=conv_sc, select=hw > 1)
    fixed = (bp["s1"], bp["b1"], bp["w1f"], bp["t2"], bp["S"], bp["w2f"],
             bp["t3"], bp["w3"], bp["bias"], bp["sc"])
    return pl.pallas_call(
        kernel,
        out_shape=jax.ShapeDtypeStruct((n, ohow, fout), jnp.bfloat16),
        grid=(n,),
        in_specs=[pl.BlockSpec((1, hw, cin), lambda i: (i, 0, 0))]
                 + [_fixed_spec(a) for a in fixed],
        out_specs=pl.BlockSpec((1, ohow, fout), lambda i: (i, 0, 0)),
        compiler_params=_compiler_params(),
    )(xb, *fixed)


def _head_call(x2d, s, b, w, bias):
    m, k = x2d.shape
    ncol = w.shape[1]
    tm, steps = _row_partition(m)
    return pl.pallas_call(
        _head_kernel,
        out_shape=jax.ShapeDtypeStruct((m, ncol), jnp.float32),
        grid=(steps,),
        in_specs=[pl.BlockSpec((tm, k), lambda i: (i, 0)),
                  _fixed_spec(s), _fixed_spec(b), _fixed_spec(w), _fixed_spec(bias)],
        out_specs=pl.BlockSpec((tm, ncol), lambda i: (i, 0)),
        compiler_params=_compiler_params(),
    )(x2d, s, b, w, bias)


# ----------------------------- init-time prep helpers ------------------------

def _fold_bn(bn):
    gamma, beta, mean, var = bn
    scale = gamma / jnp.sqrt(var + BN_EPS)
    shift = beta - mean * scale
    c = gamma.shape[0]
    return (scale.reshape(1, c).astype(jnp.float32),
            shift.reshape(1, c).astype(jnp.float32))


def _conv3x3_selectors(h, w, ds):
    """0/1 selection matrices for a 3x3 conv on ZeroPad2d(1) input with stride ds.
    Returns kept (kh, kw, S[(OH*OW, H*W)]) taps (all-zero taps dropped) and OH, OW."""
    oh = (h - 1) // ds + 1
    ow = (w - 1) // ds + 1
    kept = []
    for kh in range(3):
        for kw in range(3):
            s = np.zeros((oh * ow, h * w), np.float32)
            for r in range(oh):
                for c in range(ow):
                    ir, ic = r * ds + kh - 1, c * ds + kw - 1
                    if 0 <= ir < h and 0 <= ic < w:
                        s[r * ow + c, ir * w + ic] = 1.0
            if s.any():
                kept.append((kh, kw, s))
    return kept, oh, ow


def _subsample_selector(h, w, ds):
    """MaxPool2d(kernel_size=1, stride=ds) == row subsample, as a 0/1 matrix."""
    oh = (h - 1) // ds + 1
    ow = (w - 1) // ds + 1
    s = np.zeros((oh * ow, h * w), np.float32)
    for r in range(oh):
        for c in range(ow):
            s[r * ow + c, (r * ds) * w + c * ds] = 1.0
    return s


def _pool3x3s2_selectors(h, w):
    """ZeroPad2d(1)+MaxPool2d(3,2) tap selectors; zero rows == zero-pad contribution."""
    oh = (h - 1) // 2 + 1
    ow = (w - 1) // 2 + 1
    sels = []
    for kh in range(3):
        for kw in range(3):
            s = np.zeros((oh * ow, h * w), np.float32)
            for r in range(oh):
                for c in range(ow):
                    ir, ic = r * 2 + kh - 1, c * 2 + kw - 1
                    if 0 <= ir < h and 0 <= ic < w:
                        s[r * ow + c, ir * w + ic] = 1.0
            sels.append(s)
    return np.stack(sels), oh, ow


def _im2col(x, ksize, stride):
    """x: (N, Hp, Wp, C) already zero-padded -> patches (N, OH*OW, K*K*C). Indexing only."""
    n, hp, wp, c = x.shape
    oh = (hp - ksize) // stride + 1
    ow = (wp - ksize) // stride + 1
    taps = []
    for kh in range(ksize):
        for kw in range(ksize):
            taps.append(x[:, kh:kh + stride * (oh - 1) + 1:stride,
                          kw:kw + stride * (ow - 1) + 1:stride, :])
    p = jnp.stack(taps, axis=3)                     # (N, OH, OW, K*K, C)
    return p.reshape(n, oh * ow, ksize * ksize * c), oh, ow


def prepare_params(params, input_hw=32):
    """One-time prep: bf16 weights, BN folding into weight columns, merged biases,
    precomputed selection matrices.  Output pytree contains arrays only."""
    prep = {"stem_w": params["stem_w"].reshape(-1, params["stem_w"].shape[-1])
                                      .astype(jnp.bfloat16)}
    h = (input_hw - 1) // 2 + 1                     # spatial after stem conv (pad3,k7,s2)
    pool_s, h, _ = _pool3x3s2_selectors(h, h)
    prep["pool_S"] = jnp.asarray(pool_s, jnp.bfloat16)

    blocks = []
    for bp, (cin, f, ds, csc) in zip(params["blocks"], BLOCK_CFGS):
        s1, b1 = _fold_bn(bp["bn1"])
        s2, t2 = _fold_bn(bp["bn2"])
        s3, t3 = _fold_bn(bp["bn3"])
        taps, oh, _ = _conv3x3_selectors(h, h, ds)
        S = jnp.asarray(np.stack([s for (_, _, s) in taps]), jnp.bfloat16)
        w2f = jnp.stack([bp["w2"][kh, kw] * s3 for (kh, kw, _) in taps]
                        ).astype(jnp.bfloat16)
        bias = bp["b3"].astype(jnp.float32)
        if csc:
            bias = bias + bp["sc_b"].astype(jnp.float32)
            sc = bp["sc_w"].astype(jnp.bfloat16)
        else:
            sc = jnp.asarray(_subsample_selector(h, h, ds), jnp.bfloat16)
        blocks.append({
            "s1": s1, "b1": b1,
            "w1f": (bp["w1"] * s2).astype(jnp.bfloat16), "t2": t2,
            "S": S, "w2f": w2f, "t3": t3,
            "w3": bp["w3"].astype(jnp.bfloat16),
            "bias": bias.reshape(1, -1), "sc": sc})
        h = oh
    prep["blocks"] = blocks
    assert h == 1, "head expects 1x1 spatial (needs 32x32 CIFAR input)"

    s_f, b_f = _fold_bn(params["bn_final"])
    prep["head_s"], prep["head_b"] = s_f, b_f
    classes = params["fc_w"].shape[1]
    npad = max(128, classes)                        # lane-dense padded classifier
    prep["fc_w"] = jnp.pad(params["fc_w"], ((0, 0), (0, npad - classes))
                           ).astype(jnp.bfloat16)
    prep["fc_b"] = jnp.pad(params["fc_b"], ((0, npad - classes),)
                           ).reshape(1, -1).astype(jnp.float32)
    return prep


# ----------------------------- model forward --------------------------------

def resnet18v2_forward(x_nchw, params, classes=10):
    # NCHW (PyTorch) -> NHWC; activations bf16 between kernels.
    x = jnp.transpose(x_nchw, (0, 2, 3, 1)).astype(jnp.bfloat16)
    n = x.shape[0]

    # Stem: ZeroPad2d(3) + Conv2d(3,64,k=7,s=2) + ZeroPad2d(1) + MaxPool2d(3,2), one kernel.
    xp = jnp.pad(x, ((0, 0), (3, 3), (3, 3), (0, 0)))
    pat, _, _ = _im2col(xp, 7, 2)                   # (N, 256, 147)  indexing glue
    x = _stem_pool_call(pat, params["stem_w"], params["pool_S"])   # (N, 64, 64)

    # 8 residual blocks, one fused pallas_call each; shapes chain with no glue.
    for bp, cfg in zip(params["blocks"], BLOCK_CFGS):
        x = _block_call(x, bp, cfg)

    # Final BN + ReLU + AvgPool2d(1) + Flatten + Linear, one fused kernel.
    x2d = x.reshape(n, -1)                          # (N, 512)
    logits = _head_call(x2d, params["head_s"], params["head_b"],
                        params["fc_w"], params["fc_b"])
    return logits[:, :classes]


# ----------------------------- parameter init --------------------------------

def init_params(key, classes=10):
    keys = iter(jax.random.split(key, 64))

    def nrm(shape, scale=0.05):
        return scale * jax.random.normal(next(keys), shape, dtype=jnp.float32)

    def bn_params(cch):
        # PyTorch defaults: gamma=1, beta=0, running_mean=0, running_var=1
        return (jnp.ones((cch,), jnp.float32), jnp.zeros((cch,), jnp.float32),
                jnp.zeros((cch,), jnp.float32), jnp.ones((cch,), jnp.float32))

    params = {"stem_w": nrm((7, 7, 3, 64))}
    blocks = []
    for (cin, f, ds, csc) in BLOCK_CFGS:
        p = {"bn1": bn_params(cin)}
        if csc:
            p["sc_w"] = nrm((cin, 4 * f))
            p["sc_b"] = nrm((4 * f,))
        p["w1"] = nrm((cin, f))
        p["bn2"] = bn_params(f)
        p["w2"] = nrm((3, 3, f, f))                 # HWIO
        p["bn3"] = bn_params(f)
        p["w3"] = nrm((f, 4 * f))
        p["b3"] = nrm((4 * f,))
        blocks.append(p)
    params["blocks"] = blocks
    params["bn_final"] = bn_params(512)
    params["fc_w"] = nrm((512, classes))
    params["fc_b"] = nrm((classes,))
    return params


# ----------------------------------- main ------------------------------------

if __name__ == "__main__":
    key = jax.random.PRNGKey(0)
    pkey, xkey = jax.random.split(key)
    raw_params = init_params(pkey)
    params = prepare_params(raw_params)             # one-time: folding / bf16 / selectors

    # CIFAR-10 shaped input (batch=2, 3 channels, 32x32) — required so spatial collapses
    # to 1x1 before Flatten -> Linear(512, 10).
    x = jax.random.normal(xkey, (2, 3, 32, 32), dtype=jnp.float32)

    fwd = jax.jit(resnet18v2_forward)
    out = jax.block_until_ready(fwd(x, params))
    assert out.shape == (2, 10), out.shape
    assert jnp.all(jnp.isfinite(out))
    print("KERNEL_OK")
</pallas_src>

<mosaic_0001>
module attributes {stable_mosaic.version = 11 : i64} {
  func.func @_stem_pool_kernel(%arg0: i32, %arg1: memref<1x256x147xbf16, #tpu.memory_space<vmem>>, %arg2: memref<147x64xbf16, #tpu.memory_space<vmem>>, %arg3: memref<9x64x256xbf16, #tpu.memory_space<vmem>>, %arg4: memref<1x64x64xbf16, #tpu.memory_space<vmem>>) attributes {dimension_semantics = [#tpu.dimension_semantics<parallel>], iteration_bounds = array<i64: 2>, scalar_prefetch = 0 : i64, scratch_operands = 0 : i64, tpu.core_type = #tpu.core_type<tc>, window_params = [{transform_indices = @transform_0, window_bounds = array<i64: 1, 256, 147>}, {pipeline_mode = #tpu.pipeline_mode<synchronous>, transform_indices = @transform_1, window_bounds = array<i64: 147, 64>}, {pipeline_mode = #tpu.pipeline_mode<synchronous>, transform_indices = @transform_2, window_bounds = array<i64: 9, 64, 256>}, {transform_indices = @transform_3, window_bounds = array<i64: 1, 64, 64>}]} {
    %c0 = arith.constant 0 : index
    %c0_0 = arith.constant 0 : index
    %c0_1 = arith.constant 0 : index
    %0 = vector.load %arg1[%c0, %c0_0, %c0_1] : memref<1x256x147xbf16, #tpu.memory_space<vmem>>, vector<1x256x147xbf16>
    %1 = vector.shape_cast %0 : vector<1x256x147xbf16> to vector<256x147xbf16>
    %c0_2 = arith.constant 0 : index
    %c0_3 = arith.constant 0 : index
    %2 = vector.load %arg2[%c0_2, %c0_3] : memref<147x64xbf16, #tpu.memory_space<vmem>>, vector<147x64xbf16>
    %cst = arith.constant dense<0.000000e+00> : vector<256x64xf32>
    %3 = tpu.matmul %1, %2, %cst {dimension_numbers = #tpu.dot_dimension_numbers<[1], [0], [0], [1], [0, 0, 1, 1], [], []>} : vector<256x147xbf16>, vector<147x64xbf16>, vector<256x64xf32> -> vector<256x64xf32>
    %4 = arith.truncf %3 : vector<256x64xf32> to vector<256x64xbf16>
    %c0_4 = arith.constant 0 : index
    %c0_5 = arith.constant 0 : index
    %c0_6 = arith.constant 0 : index
    %5 = vector.load %arg3[%c0_4, %c0_5, %c0_6] : memref<9x64x256xbf16, #tpu.memory_space<vmem>>, vector<1x64x256xbf16>
    %6 = vector.shape_cast %5 : vector<1x64x256xbf16> to vector<64x256xbf16>
    %cst_7 = arith.constant dense<0.000000e+00> : vector<64x64xf32>
    %7 = tpu.matmul %6, %4, %cst_7 {dimension_numbers = #tpu.dot_dimension_numbers<[1], [0], [0], [1], [0, 0, 1, 1], [], []>} : vector<64x256xbf16>, vector<256x64xbf16>, vector<64x64xf32> -> vector<64x64xf32>
    %c1 = arith.constant 1 : index
    %c0_8 = arith.constant 0 : index
    %c0_9 = arith.constant 0 : index
    %8 = vector.load %arg3[%c1, %c0_8, %c0_9] : memref<9x64x256xbf16, #tpu.memory_space<vmem>>, vector<1x64x256xbf16>
    %9 = vector.shape_cast %8 : vector<1x64x256xbf16> to vector<64x256xbf16>
    %cst_10 = arith.constant dense<0.000000e+00> : vector<64x64xf32>
    %10 = tpu.matmul %9, %4, %cst_10 {dimension_numbers = #tpu.dot_dimension_numbers<[1], [0], [0], [1], [0, 0, 1, 1], [], []>} : vector<64x256xbf16>, vector<256x64xbf16>, vector<64x64xf32> -> vector<64x64xf32>
    %11 = arith.maximumf %7, %10 : vector<64x64xf32>
    %c2 = arith.constant 2 : index
    %c0_11 = arith.constant 0 : index
    %c0_12 = arith.constant 0 : index
    %12 = vector.load %arg3[%c2, %c0_11, %c0_12] : memref<9x64x256xbf16, #tpu.memory_space<vmem>>, vector<1x64x256xbf16>
    %13 = vector.shape_cast %12 : vector<1x64x256xbf16> to vector<64x256xbf16>
    %cst_13 = arith.constant dense<0.000000e+00> : vector<64x64xf32>
    %14 = tpu.matmul %13, %4, %cst_13 {dimension_numbers = #tpu.dot_dimension_numbers<[1], [0], [0], [1], [0, 0, 1, 1], [], []>} : vector<64x256xbf16>, vector<256x64xbf16>, vector<64x64xf32> -> vector<64x64xf32>
    %15 = arith.maximumf %11, %14 : vector<64x64xf32>
    %c3 = arith.constant 3 : index
    %c0_14 = arith.constant 0 : index
    %c0_15 = arith.constant 0 : index
    %16 = vector.load %arg3[%c3, %c0_14, %c0_15] : memref<9x64x256xbf16, #tpu.memory_space<vmem>>, vector<1x64x256xbf16>
    %17 = vector.shape_cast %16 : vector<1x64x256xbf16> to vector<64x256xbf16>
    %cst_16 = arith.constant dense<0.000000e+00> : vector<64x64xf32>
    %18 = tpu.matmul %17, %4, %cst_16 {dimension_numbers = #tpu.dot_dimension_numbers<[1], [0], [0], [1], [0, 0, 1, 1], [], []>} : vector<64x256xbf16>, vector<256x64xbf16>, vector<64x64xf32> -> vector<64x64xf32>
    %19 = arith.maximumf %15, %18 : vector<64x64xf32>
    %c4 = arith.constant 4 : index
    %c0_17 = arith.constant 0 : index
    %c0_18 = arith.constant 0 : index
    %20 = vector.load %arg3[%c4, %c0_17, %c0_18] : memref<9x64x256xbf16, #tpu.memory_space<vmem>>, vector<1x64x256xbf16>
    %21 = vector.shape_cast %20 : vector<1x64x256xbf16> to vector<64x256xbf16>
    %cst_19 = arith.constant dense<0.000000e+00> : vector<64x64xf32>
    %22 = tpu.matmul %21, %4, %cst_19 {dimension_numbers = #tpu.dot_dimension_numbers<[1], [0], [0], [1], [0, 0, 1, 1], [], []>} : vector<64x256xbf16>, vector<256x64xbf16>, vector<64x64xf32> -> vector<64x64xf32>
    %23 = arith.maximumf %19, %22 : vector<64x64xf32>
    %c5 = arith.constant 5 : index
    %c0_20 = arith.constant 0 : index
    %c0_21 = arith.constant 0 : index
    %24 = vector.load %arg3[%c5, %c0_20, %c0_21] : memref<9x64x256xbf16, #tpu.memory_space<vmem>>, vector<1x64x256xbf16>
    %25 = vector.shape_cast %24 : vector<1x64x256xbf16> to vector<64x256xbf16>
    %cst_22 = arith.constant dense<0.000000e+00> : vector<64x64xf32>
    %26 = tpu.matmul %25, %4, %cst_22 {dimension_numbers = #tpu.dot_dimension_numbers<[1], [0], [0], [1], [0, 0, 1, 1], [], []>} : vector<64x256xbf16>, vector<256x64xbf16>, vector<64x64xf32> -> vector<64x64xf32>
    %27 = arith.maximumf %23, %26 : vector<64x64xf32>
    %c6 = arith.constant 6 : index
    %c0_23 = arith.constant 0 : index
    %c0_24 = arith.constant 0 : index
    %28 = vector.load %arg3[%c6, %c0_23, %c0_24] : memref<9x64x256xbf16, #tpu.memory_space<vmem>>, vector<1x64x256xbf16>
    %29 = vector.shape_cast %28 : vector<1x64x256xbf16> to vector<64x256xbf16>
    %cst_25 = arith.constant dense<0.000000e+00> : vector<64x64xf32>
    %30 = tpu.matmul %29, %4, %cst_25 {dimension_numbers = #tpu.dot_dimension_numbers<[1], [0], [0], [1], [0, 0, 1, 1], [], []>} : vector<64x256xbf16>, vector<256x64xbf16>, vector<64x64xf32> -> vector<64x64xf32>
    %31 = arith.maximumf %27, %30 : vector<64x64xf32>
    %c7 = arith.constant 7 : index
    %c0_26 = arith.constant 0 : index
    %c0_27 = arith.constant 0 : index
    %32 = vector.load %arg3[%c7, %c0_26, %c0_27] : memref<9x64x256xbf16, #tpu.memory_space<vmem>>, vector<1x64x256xbf16>
    %33 = vector.shape_cast %32 : vector<1x64x256xbf16> to vector<64x256xbf16>
    %cst_28 = arith.constant dense<0.000000e+00> : vector<64x64xf32>
    %34 = tpu.matmul %33, %4, %cst_28 {dimension_numbers = #tpu.dot_dimension_numbers<[1], [0], [0], [1], [0, 0, 1, 1], [], []>} : vector<64x256xbf16>, vector<256x64xbf16>, vector<64x64xf32> -> vector<64x64xf32>
    %35 = arith.maximumf %31, %34 : vector<64x64xf32>
    %c8 = arith.constant 8 : index
    %c0_29 = arith.constant 0 : index
    %c0_30 = arith.constant 0 : index
    %36 = vector.load %arg3[%c8, %c0_29, %c0_30] : memref<9x64x256xbf16, #tpu.memory_space<vmem>>, vector<1x64x256xbf16>
    %37 = vector.shape_cast %36 : vector<1x64x256xbf16> to vector<64x256xbf16>
    %cst_31 = arith.constant dense<0.000000e+00> : vector<64x64xf32>
    %38 = tpu.matmul %37, %4, %cst_31 {dimension_numbers = #tpu.dot_dimension_numbers<[1], [0], [0], [1], [0, 0, 1, 1], [], []>} : vector<64x256xbf16>, vector<256x64xbf16>, vector<64x64xf32> -> vector<64x64xf32>
    %39 = arith.maximumf %35, %38 : vector<64x64xf32>
    %40 = arith.truncf %39 : vector<64x64xf32> to vector<64x64xbf16>
    %c0_32 = arith.constant 0 : index
    %c0_33 = arith.constant 0 : index
    %c0_34 = arith.constant 0 : index
    %41 = vector.load %arg4[%c0_32, %c0_33, %c0_34] : memref<1x64x64xbf16, #tpu.memory_space<vmem>>, vector<1x64x64xbf16>
    %42 = vector.shape_cast %41 : vector<1x64x64xbf16> to vector<64x64xbf16>
    %43 = vector.shape_cast %40 : vector<64x64xbf16> to vector<1x64x64xbf16>
    tpu.vector_store %arg4[%c0_32, %c0_33, %c0_34], %43 {strides = array<i32>} : memref<1x64x64xbf16, #tpu.memory_space<vmem>>, vector<1x64x64xbf16>,
    return
  }
  func.func @transform_0(%arg0: i32) -> (i32, i32, i32) {
    %c0_i32 = arith.constant 0 : i32
    %c0_i32_0 = arith.constant 0 : i32
    %c0_i32_1 = arith.constant 0 : i32
    return %arg0, %c0_i32, %c0_i32_0 : i32, i32, i32
  }
  func.func @transform_1(%arg0: i32) -> (i32, i32) {
    %c0_i32 = arith.constant 0 : i32
    %c0_i32_0 = arith.constant 0 : i32
    %c0_i32_1 = arith.constant 0 : i32
    return %c0_i32, %c0_i32_0 : i32, i32
  }
  func.func @transform_2(%arg0: i32) -> (i32, i32, i32) {
    %c0_i32 = arith.constant 0 : i32
    %c0_i32_0 = arith.constant 0 : i32
    %c0_i32_1 = arith.constant 0 : i32
    %c0_i32_2 = arith.constant 0 : i32
    return %c0_i32, %c0_i32_0, %c0_i32_1 : i32, i32, i32
  }
  func.func @transform_3(%arg0: i32) -> (i32, i32, i32) {
    %c0_i32 = arith.constant 0 : i32
    %c0_i32_0 = arith.constant 0 : i32
    %c0_i32_1 = arith.constant 0 : i32
    return %arg0, %c0_i32, %c0_i32_0 : i32, i32, i32
  }
}

module attributes {stable_mosaic.version = 11 : i64} {
  func.func @_block_kernel(%arg0: i32, %arg1: memref<1x64x64xbf16, #tpu.memory_space<vmem>>, %arg2: memref<1x64xf32, #tpu.memory_space<vmem>>, %arg3: memref<1x64xf32, #tpu.memory_space<vmem>>, %arg4: memref<64x16xbf16, #tpu.memory_space<vmem>>, %arg5: memref<1x16xf32, #tpu.memory_space<vmem>>, %arg6: memref<9x64x64xbf16, #tpu.memory_space<vmem>>, %arg7: memref<9x16x16xbf16, #tpu.memory_space<vmem>>, %arg8: memref<1x16xf32, #tpu.memory_space<vmem>>, %arg9: memref<16x64xbf16, #tpu.memory_space<vmem>>, %arg10: memref<1x64xf32, #tpu.memory_space<vmem>>, %arg11: memref<64x64xbf16, #tpu.memory_space<vmem>>, %arg12: memref<1x64x64xbf16, #tpu.memory_space<vmem>>) attributes {dimension_semantics = [#tpu.dimension_semantics<parallel>], iteration_bounds = array<i64: 2>, scalar_prefetch = 0 : i64, scratch_operands = 0 : i64, tpu.core_type = #tpu.core_type<tc>, window_params = [{transform_indices = @transform_0, window_bounds = array<i64: 1, 64, 64>}, {pipeline_mode = #tpu.pipeline_mode<synchronous>, transform_indices = @transform_1, window_bounds = array<i64: 1, 64>}, {pipeline_mode = #tpu.pipeline_mode<synchronous>, transform_indices = @transform_2, window_bounds = array<i64: 1, 64>}, {pipeline_mode = #tpu.pipeline_mode<synchronous>, transform_indices = @transform_3, window_bounds = array<i64: 64, 16>}, {pipeline_mode = #tpu.pipeline_mode<synchronous>, transform_indices = @transform_4, window_bounds = array<i64: 1, 16>}, {pipeline_mode = #tpu.pipeline_mode<synchronous>, transform_indices = @transform_5, window_bounds = array<i64: 9, 64, 64>}, {pipeline_mode = #tpu.pipeline_mode<synchronous>, transform_indices = @transform_6, window_bounds = array<i64: 9, 16, 16>}, {pipeline_mode = #tpu.pipeline_mode<synchronous>, transform_indices = @transform_7, window_bounds = array<i64: 1, 16>}, {pipeline_mode = #tpu.pipeline_mode<synchronous>, transform_indices = @transform_8, window_bounds = array<i64: 16, 64>}, {pipeline_mode = #tpu.pipeline_mode<synchronous>, transform_indices = @transform_9, window_bounds = array<i64: 1, 64>}, {pipeline_mode = #tpu.pipeline_mode<synchronous>, transform_indices = @transform_10, window_bounds = array<i64: 64, 64>}, {transform_indices = @transform_11, window_bounds = array<i64: 1, 64, 64>}]} {
    %c0 = arith.constant 0 : index
    %c0_0 = arith.constant 0 : index
    %c0_1 = arith.constant 0 : index
    %0 = vector.load %arg1[%c0, %c0_0, %c0_1] : memref<1x64x64xbf16, #tpu.memory_space<vmem>>, vector<1x64x64xbf16>
    %1 = vector.shape_cast %0 : vector<1x64x64xbf16> to vector<64x64xbf16>
    %2 = arith.extf %1 : vector<64x64xbf16> to vector<64x64xf32>
    %c0_2 = arith.constant 0 : index
    %c0_3 = arith.constant 0 : index
    %3 = vector.load %arg2[%c0_2, %c0_3] : memref<1x64xf32, #tpu.memory_space<vmem>>, vector<1x64xf32>
    %4 = vector.broadcast %3 : vector<1x64xf32> to vector<64x64xf32>
    %5 = arith.mulf %2, %4 : vector<64x64xf32>
    %c0_4 = arith.constant 0 : index
    %c0_5 = arith.constant 0 : index
    %6 = vector.load %arg3[%c0_4, %c0_5] : memref<1x64xf32, #tpu.memory_space<vmem>>, vector<1x64xf32>
    %7 = vector.broadcast %6 : vector<1x64xf32> to vector<64x64xf32>
    %8 = arith.addf %5, %7 : vector<64x64xf32>
    %cst = arith.constant 0.000000e+00 : f32
    %9 = vector.broadcast %cst : f32 to vector<64x64xf32>
    %10 = arith.maximumf %8, %9 : vector<64x64xf32>
    %11 = arith.truncf %10 : vector<64x64xf32> to vector<64x64xbf16>
    %c0_6 = arith.constant 0 : index
    %c0_7 = arith.constant 0 : index
    %12 = vector.load %arg4[%c0_6, %c0_7] : memref<64x16xbf16, #tpu.memory_space<vmem>>, vector<64x16xbf16>
    %cst_8 = arith.constant dense<0.000000e+00> : vector<64x16xf32>
    %13 = tpu.matmul %11, %12, %cst_8 {dimension_numbers = #tpu.dot_dimension_numbers<[1], [0], [0], [1], [0, 0, 1, 1], [], []>} : vector<64x64xbf16>, vector<64x16xbf16>, vector<64x16xf32> -> vector<64x16xf32>
    %c0_9 = arith.constant 0 : index
    %c0_10 = arith.constant 0 : index
    %14 = vector.load %arg5[%c0_9, %c0_10] : memref<1x16xf32, #tpu.memory_space<vmem>>, vector<1x16xf32>
    %15 = vector.broadcast %14 : vector<1x16xf32> to vector<64x16xf32>
    %16 = arith.addf %13, %15 : vector<64x16xf32>
    %cst_11 = arith.constant 0.000000e+00 : f32
    %17 = vector.broadcast %cst_11 : f32 to vector<64x16xf32>
    %18 = arith.maximumf %16, %17 : vector<64x16xf32>
    %19 = arith.truncf %18 : vector<64x16xf32> to vector<64x16xbf16>
    %c0_12 = arith.constant 0 : index
    %c0_13 = arith.constant 0 : index
    %c0_14 = arith.constant 0 : index
    %20 = vector.load %arg6[%c0_12, %c0_13, %c0_14] : memref<9x64x64xbf16, #tpu.memory_space<vmem>>, vector<1x64x64xbf16>
    %21 = vector.shape_cast %20 : vector<1x64x64xbf16> to vector<64x64xbf16>
    %cst_15 = arith.constant dense<0.000000e+00> : vector<64x16xf32>
    %22 = tpu.matmul %21, %19, %cst_15 {dimension_numbers = #tpu.dot_dimension_numbers<[1], [0], [0], [1], [0, 0, 1, 1], [], []>} : vector<64x64xbf16>, vector<64x16xbf16>, vector<64x16xf32> -> vector<64x16xf32>
    %23 = arith.truncf %22 : vector<64x16xf32> to vector<64x16xbf16>
    %c0_16 = arith.constant 0 : index
    %c0_17 = arith.constant 0 : index
    %c0_18 = arith.constant 0 : index
    %24 = vector.load %arg7[%c0_16, %c0_17, %c0_18] : memref<9x16x16xbf16, #tpu.memory_space<vmem>>, vector<1x16x16xbf16>
    %25 = vector.shape_cast %24 : vector<1x16x16xbf16> to vector<16x16xbf16>
    %cst_19 = arith.constant dense<0.000000e+00> : vector<64x16xf32>
    %26 = tpu.matmul %23, %25, %cst_19 {dimension_numbers = #tpu.dot_dimension_numbers<[1], [0], [0], [1], [0, 0, 1, 1], [], []>} : vector<64x16xbf16>, vector<16x16xbf16>, vector<64x16xf32> -> vector<64x16xf32>
    %c1 = arith.constant 1 : index
    %c0_20 = arith.constant 0 : index
    %c0_21 = arith.constant 0 : index
    %27 = vector.load %arg6[%c1, %c0_20, %c0_21] : memref<9x64x64xbf16, #tpu.memory_space<vmem>>, vector<1x64x64xbf16>
    %28 = vector.shape_cast %27 : vector<1x64x64xbf16> to vector<64x64xbf16>
    %cst_22 = arith.constant dense<0.000000e+00> : vector<64x16xf32>
    %29 = tpu.matmul %28, %19, %cst_22 {dimension_numbers = #tpu.dot_dimension_numbers<[1], [0], [0], [1], [0, 0, 1, 1], [], []>} : vector<64x64xbf16>, vector<64x16xbf16>, vector<64x16xf32> -> vector<64x16xf32>
    %30 = arith.truncf %29 : vector<64x16xf32> to vector<64x16xbf16>
    %c1_23 = arith.constant 1 : index
    %c0_24 = arith.constant 0 : index
    %c0_25 = arith.constant 0 : index
    %31 = vector.load %arg7[%c1_23, %c0_24, %c0_25] : memref<9x16x16xbf16, #tpu.memory_space<vmem>>, vector<1x16x16xbf16>
    %32 = vector.shape_cast %31 : vector<1x16x16xbf16> to vector<16x16xbf16>
    %cst_26 = arith.constant dense<0.000000e+00> : vector<64x16xf32>
    %33 = tpu.matmul %30, %32, %cst_26 {dimension_numbers = #tpu.dot_dimension_numbers<[1], [0], [0], [1], [0, 0, 1, 1], [], []>} : vector<64x16xbf16>, vector<16x16xbf16>, vector<64x16xf32> -> vector<64x16xf32>
    %34 = arith.addf %26, %33 : vector<64x16xf32>
    %c2 = arith.constant 2 : index
    %c0_27 = arith.constant 0 : index
    %c0_28 = arith.constant 0 : index
    %35 = vector.load %arg6[%c2, %c0_27, %c0_28] : memref<9x64x64xbf16, #tpu.memory_space<vmem>>, vector<1x64x64xbf16>
    %36 = vector.shape_cast %35 : vector<1x64x64xbf16> to vector<64x64xbf16>
    %cst_29 = arith.constant dense<0.000000e+00> : vector<64x16xf32>
    %37 = tpu.matmul %36, %19, %cst_29 {dimension_numbers = #tpu.dot_dimension_numbers<[1], [0], [0], [1], [0, 0, 1, 1], [], []>} : vector<64x64xbf16>, vector<64x16xbf16>, vector<64x16xf32> -> vector<64x16xf32>
    %38 = arith.truncf %37 : vector<64x16xf32> to vector<64x16xbf16>
    %c2_30 = arith.constant 2 : index
    %c0_31 = arith.constant 0 : index
    %c0_32 = arith.constant 0 : index
    %39 = vector.load %arg7[%c2_30, %c0_31, %c0_32] : memref<9x16x16xbf16, #tpu.memory_space<vmem>>, vector<1x16x16xbf16>
    %40 = vector.shape_cast %39 : vector<1x16x16xbf16> to vector<16x16xbf16>
    %cst_33 = arith.constant dense<0.000000e+00> : vector<64x16xf32>
    %41 = tpu.matmul %38, %40, %cst_33 {dimension_numbers = #tpu.dot_dimension_numbers<[1], [0], [0], [1], [0, 0, 1, 1], [], []>} : vector<64x16xbf16>, vector<16x16xbf16>, vector<64x16xf32> -> vector<64x16xf32>
    %42 = arith.addf %34, %41 : vector<64x16xf32>
    %c3 = arith.constant 3 : index
    %c0_34 = arith.constant 0 : index
    %c0_35 = arith.constant 0 : index
    %43 = vector.load %arg6[%c3, %c0_34, %c0_35] : memref<9x64x64xbf16, #tpu.memory_space<vmem>>, vector<1x64x64xbf16>
    %44 = vector.shape_cast %43 : vector<1x64x64xbf16> to vector<64x64xbf16>
    %cst_36 = arith.constant dense<0.000000e+00> : vector<64x16xf32>
    %45 = tpu.matmul %44, %19, %cst_36 {dimension_numbers = #tpu.dot_dimension_numbers<[1], [0], [0], [1], [0, 0, 1, 1], [], []>} : vector<64x64xbf16>, vector<64x16xbf16>, vector<64x16xf32> -> vector<64x16xf32>
    %46 = arith.truncf %45 : vector<64x16xf32> to vector<64x16xbf16>
    %c3_37 = arith.constant 3 : index
    %c0_38 = arith.constant 0 : index
    %c0_39 = arith.constant 0 : index
    %47 = vector.load %arg7[%c3_37, %c0_38, %c0_39] : memref<9x16x16xbf16, #tpu.memory_space<vmem>>, vector<1x16x16xbf16>
    %48 = vector.shape_cast %47 : vector<1x16x16xbf16> to vector<16x16xbf16>
    %cst_40 = arith.constant dense<0.000000e+00> : vector<64x16xf32>
    %49 = tpu.matmul %46, %48, %cst_40 {dimension_numbers = #tpu.dot_dimension_numbers<[1], [0], [0], [1], [0, 0, 1, 1], [], []>} : vector<64x16xbf16>, vector<16x16xbf16>, vector<64x16xf32> -> vector<64x16xf32>
    %50 = arith.addf %42, %49 : vector<64x16xf32>
    %c4 = arith.constant 4 : index
    %c0_41 = arith.constant 0 : index
    %c0_42 = arith.constant 0 : index
    %51 = vector.load %arg6[%c4, %c0_41, %c0_42] : memref<9x64x64xbf16, #tpu.memory_space<vmem>>, vector<1x64x64xbf16>
    %52 = vector.shape_cast %51 : vector<1x64x64xbf16> to vector<64x64xbf16>
    %cst_43 = arith.constant dense<0.000000e+00> : vector<64x16xf32>
    %53 = tpu.matmul %52, %19, %cst_43 {dimension_numbers = #tpu.dot_dimension_numbers<[1], [0], [0], [1], [0, 0, 1, 1], [], []>} : vector<64x64xbf16>, vector<64x16xbf16>, vector<64x16xf32> -> vector<64x16xf32>
    %54 = arith.truncf %53 : vector<64x16xf32> to vector<64x16xbf16>
    %c4_44 = arith.constant 4 : index
    %c0_45 = arith.constant 0 : index
    %c0_46 = arith.constant 0 : index
    %55 = vector.load %arg7[%c4_44, %c0_45, %c0_46] : memref<9x16x16xbf16, #tpu.memory_space<vmem>>, vector<1x16x16xbf16>
    %56 = vector.shape_cast %55 : vector<1x16x16xbf16> to vector<16x16xbf16>
    %cst_47 = arith.constant dense<0.000000e+00> : vector<64x16xf32>
    %57 = tpu.matmul %54, %56, %cst_47 {dimension_numbers = #tpu.dot_dimension_numbers<[1], [0], [0], [1], [0, 0, 1, 1], [], []>} : vector<64x16xbf16>, vector<16x16xbf16>, vector<64x16xf32> -> vector<64x16xf32>
    %58 = arith.addf %50, %57 : vector<64x16xf32>
    %c5 = arith.constant 5 : index
    %c0_48 = arith.constant 0 : index
    %c0_49 = arith.constant 0 : index
    %59 = vector.load %arg6[%c5, %c0_48, %c0_49] : memref<9x64x64xbf16, #tpu.memory_space<vmem>>, vector<1x64x64xbf16>
    %60 = vector.shape_cast %59 : vector<1x64x64xbf16> to vector<64x64xbf16>
    %cst_50 = arith.constant dense<0.000000e+00> : vector<64x16xf32>
    %61 = tpu.matmul %60, %19, %cst_50 {dimension_numbers = #tpu.dot_dimension_numbers<[1], [0], [0], [1], [0, 0, 1, 1], [], []>} : vector<64x64xbf16>, vector<64x16xbf16>, vector<64x16xf32> -> vector<64x16xf32>
    %62 = arith.truncf %61 : vector<64x16xf32> to vector<64x16xbf16>
    %c5_51 = arith.constant 5 : index
    %c0_52 = arith.constant 0 : index
    %c0_53 = arith.constant 0 : index
    %63 = vector.load %arg7[%c5_51, %c0_52, %c0_53] : memref<9x16x16xbf16, #tpu.memory_space<vmem>>, vector<1x16x16xbf16>
    %64 = vector.shape_cast %63 : vector<1x16x16xbf16> to vector<16x16xbf16>
    %cst_54 = arith.constant dense<0.000000e+00> : vector<64x16xf32>
    %65 = tpu.matmul %62, %64, %cst_54 {dimension_numbers = #tpu.dot_dimension_numbers<[1], [0], [0], [1], [0, 0, 1, 1], [], []>} : vector<64x16xbf16>, vector<16x16xbf16>, vector<64x16xf32> -> vector<64x16xf32>
    %66 = arith.addf %58, %65 : vector<64x16xf32>
    %c6 = arith.constant 6 : index
    %c0_55 = arith.constant 0 : index
    %c0_56 = arith.constant 0 : index
    %67 = vector.load %arg6[%c6, %c0_55, %c0_56] : memref<9x64x64xbf16, #tpu.memory_space<vmem>>, vector<1x64x64xbf16>
    %68 = vector.shape_cast %67 : vector<1x64x64xbf16> to vector<64x64xbf16>
    %cst_57 = arith.constant dense<0.000000e+00> : vector<64x16xf32>
    %69 = tpu.matmul %68, %19, %cst_57 {dimension_numbers = #tpu.dot_dimension_numbers<[1], [0], [0], [1], [0, 0, 1, 1], [], []>} : vector<64x64xbf16>, vector<64x16xbf16>, vector<64x16xf32> -> vector<64x16xf32>
    %70 = arith.truncf %69 : vector<64x16xf32> to vector<64x16xbf16>
    %c6_58 = arith.constant 6 : index
    %c0_59 = arith.constant 0 : index
    %c0_60 = arith.constant 0 : index
    %71 = vector.load %arg7[%c6_58, %c0_59, %c0_60] : memref<9x16x16xbf16, #tpu.memory_space<vmem>>, vector<1x16x16xbf16>
    %72 = vector.shape_cast %71 : vector<1x16x16xbf16> to vector<16x16xbf16>
    %cst_61 = arith.constant dense<0.000000e+00> : vector<64x16xf32>
    %73 = tpu.matmul %70, %72, %cst_61 {dimension_numbers = #tpu.dot_dimension_numbers<[1], [0], [0], [1], [0, 0, 1, 1], [], []>} : vector<64x16xbf16>, vector<16x16xbf16>, vector<64x16xf32> -> vector<64x16xf32>
    %74 = arith.addf %66, %73 : vector<64x16xf32>
    %c7 = arith.constant 7 : index
    %c0_62 = arith.constant 0 : index
    %c0_63 = arith.constant 0 : index
    %75 = vector.load %arg6[%c7, %c0_62, %c0_63] : memref<9x64x64xbf16, #tpu.memory_space<vmem>>, vector<1x64x64xbf16>
    %76 = vector.shape_cast %75 : vector<1x64x64xbf16> to vector<64x64xbf16>
    %cst_64 = arith.constant dense<0.000000e+00> : vector<64x16xf32>
    %77 = tpu.matmul %76, %19, %cst_64 {dimension_numbers = #tpu.dot_dimension_numbers<[1], [0], [0], [1], [0, 0, 1, 1], [], []>} : vector<64x64xbf16>, vector<64x16xbf16>, vector<64x16xf32> -> vector<64x16xf32>
    %78 = arith.truncf %77 : vector<64x16xf32> to vector<64x16xbf16>
    %c7_65 = arith.constant 7 : index
    %c0_66 = arith.constant 0 : index
    %c0_67 = arith.constant 0 : index
    %79 = vector.load %arg7[%c7_65, %c0_66, %c0_67] : memref<9x16x16xbf16, #tpu.memory_space<vmem>>, vector<1x16x16xbf16>
    %80 = vector.shape_cast %79 : vector<1x16x16xbf16> to vector<16x16xbf16>
    %cst_68 = arith.constant dense<0.000000e+00> : vector<64x16xf32>
    %81 = tpu.matmul %78, %80, %cst_68 {dimension_numbers = #tpu.dot_dimension_numbers<[1], [0], [0], [1], [0, 0, 1, 1], [], []>} : vector<64x16xbf16>, vector<16x16xbf16>, vector<64x16xf32> -> vector<64x16xf32>
    %82 = arith.addf %74, %81 : vector<64x16xf32>
    %c8 = arith.constant 8 : index
    %c0_69 = arith.constant 0 : index
    %c0_70 = arith.constant 0 : index
    %83 = vector.load %arg6[%c8, %c0_69, %c0_70] : memref<9x64x64xbf16, #tpu.memory_space<vmem>>, vector<1x64x64xbf16>
    %84 = vector.shape_cast %83 : vector<1x64x64xbf16> to vector<64x64xbf16>
    %cst_71 = arith.constant dense<0.000000e+00> : vector<64x16xf32>
    %85 = tpu.matmul %84, %19, %cst_71 {dimension_numbers = #tpu.dot_dimension_numbers<[1], [0], [0], [1], [0, 0, 1, 1], [], []>} : vector<64x64xbf16>, vector<64x16xbf16>, vector<64x16xf32> -> vector<64x16xf32>
    %86 = arith.truncf %85 : vector<64x16xf32> to vector<64x16xbf16>
    %c8_72 = arith.constant 8 : index
    %c0_73 = arith.constant 0 : index
    %c0_74 = arith.constant 0 : index
    %87 = vector.load %arg7[%c8_72, %c0_73, %c0_74] : memref<9x16x16xbf16, #tpu.memory_space<vmem>>, vector<1x16x16xbf16>
    %88 = vector.shape_cast %87 : vector<1x16x16xbf16> to vector<16x16xbf16>
    %cst_75 = arith.constant dense<0.000000e+00> : vector<64x16xf32>
    %89 = tpu.matmul %86, %88, %cst_75 {dimension_numbers = #tpu.dot_dimension_numbers<[1], [0], [0], [1], [0, 0, 1, 1], [], []>} : vector<64x16xbf16>, vector<16x16xbf16>, vector<64x16xf32> -> vector<64x16xf32>
    %90 = arith.addf %82, %89 : vector<64x16xf32>
    %c0_76 = arith.constant 0 : index
    %c0_77 = arith.constant 0 : index
    %91 = vector.load %arg8[%c0_76, %c0_77] : memref<1x16xf32, #tpu.memory_space<vmem>>, vector<1x16xf32>
    %92 = vector.broadcast %91 : vector<1x16xf32> to vector<64x16xf32>
    %93 = arith.addf %90, %92 : vector<64x16xf32>
    %cst_78 = arith.constant 0.000000e+00 : f32
    %94 = vector.broadcast %cst_78 : f32 to vector<64x16xf32>
    %95 = arith.maximumf %93, %94 : vector<64x16xf32>
    %96 = arith.truncf %95 : vector<64x16xf32> to vector<64x16xbf16>
    %c0_79 = arith.constant 0 : index
    %c0_80 = arith.constant 0 : index
    %97 = vector.load %arg9[%c0_79, %c0_80] : memref<16x64xbf16, #tpu.memory_space<vmem>>, vector<16x64xbf16>
    %cst_81 = arith.constant dense<0.000000e+00> : vector<64x64xf32>
    %98 = tpu.matmul %96, %97, %cst_81 {dimension_numbers = #tpu.dot_dimension_numbers<[1], [0], [0], [1], [0, 0, 1, 1], [], []>} : vector<64x16xbf16>, vector<16x64xbf16>, vector<64x64xf32> -> vector<64x64xf32>
    %c0_82 = arith.constant 0 : index
    %c0_83 = arith.constant 0 : index
    %99 = vector.load %arg10[%c0_82, %c0_83] : memref<1x64xf32, #tpu.memory_space<vmem>>, vector<1x64xf32>
    %100 = vector.broadcast %99 : vector<1x64xf32> to vector<64x64xf32>
    %101 = arith.addf %98, %100 : vector<64x64xf32>
    %c0_84 = arith.constant 0 : index
    %c0_85 = arith.constant 0 : index
    %102 = vector.load %arg11[%c0_84, %c0_85] : memref<64x64xbf16, #tpu.memory_space<vmem>>, vector<64x64xbf16>
    %cst_86 = arith.constant dense<0.000000e+00> : vector<64x64xf32>
    %103 = tpu.matmul %11, %102, %cst_86 {dimension_numbers = #tpu.dot_dimension_numbers<[1], [0], [0], [1], [0, 0, 1, 1], [], []>} : vector<64x64xbf16>, vector<64x64xbf16>, vector<64x64xf32> -> vector<64x64xf32>
    %104 = arith.addf %101, %103 : vector<64x64xf32>
    %105 = arith.truncf %104 : vector<64x64xf32> to vector<64x64xbf16>
    %c0_87 = arith.constant 0 : index
    %c0_88 = arith.constant 0 : index
    %c0_89 = arith.constant 0 : index
    %106 = vector.load %arg12[%c0_87, %c0_88, %c0_89] : memref<1x64x64xbf16, #tpu.memory_space<vmem>>, vector<1x64x64xbf16>
    %107 = vector.shape_cast %106 : vector<1x64x64xbf16> to vector<64x64xbf16>
    %108 = vector.shape_cast %105 : vector<64x64xbf16> to vector<1x64x64xbf16>
    tpu.vector_store %arg12[%c0_87, %c0_88, %c0_89], %108 {strides = array<i32>} : memref<1x64x64xbf16, #tpu.memory_space<vmem>>, vector<1x64x64xbf16>,
    return
  }
  func.func @transform_0(%arg0: i32) -> (i32, i32, i32) {
    %c0_i32 = arith.constant 0 : i32
    %c0_i32_0 = arith.constant 0 : i32
    %c0_i32_1 = arith.constant 0 : i32
    return %arg0, %c0_i32, %c0_i32_0 : i32, i32, i32
  }
  func.func @transform_1(%arg0: i32) -> (i32, i32) {
    %c0_i32 = arith.constant 0 : i32
    %c0_i32_0 = arith.constant 0 : i32
    %c0_i32_1 = arith.constant 0 : i32
    return %c0_i32, %c0_i32_0 : i32, i32
  }
  func.func @transform_2(%arg0: i32) -> (i32, i32) {
    %c0_i32 = arith.constant 0 : i32
    %c0_i32_0 = arith.constant 0 : i32
    %c0_i32_1 = arith.constant 0 : i32
    return %c0_i32, %c0_i32_0 : i32, i32
  }
  func.func @transform_3(%arg0: i32) -> (i32, i32) {
    %c0_i32 = arith.constant 0 : i32
    %c0_i32_0 = arith.constant 0 : i32
    %c0_i32_1 = arith.constant 0 : i32
    return %c0_i32, %c0_i32_0 : i32, i32
  }
  func.func @transform_4(%arg0: i32) -> (i32, i32) {
    %c0_i32 = arith.constant 0 : i32
    %c0_i32_0 = arith.constant 0 : i32
    %c0_i32_1 = arith.constant 0 : i32
    return %c0_i32, %c0_i32_0 : i32, i32
  }
  func.func @transform_5(%arg0: i32) -> (i32, i32, i32) {
    %c0_i32 = arith.constant 0 : i32
    %c0_i32_0 = arith.constant 0 : i32
    %c0_i32_1 = arith.constant 0 : i32
    %c0_i32_2 = arith.constant 0 : i32
    return %c0_i32, %c0_i32_0, %c0_i32_1 : i32, i32, i32
  }
  func.func @transform_6(%arg0: i32) -> (i32, i32, i32) {
    %c0_i32 = arith.constant 0 : i32
    %c0_i32_0 = arith.constant 0 : i32
    %c0_i32_1 = arith.constant 0 : i32
    %c0_i32_2 = arith.constant 0 : i32
    return %c0_i32, %c0_i32_0, %c0_i32_1 : i32, i32, i32
  }
  func.func @transform_7(%arg0: i32) -> (i32, i32) {
    %c0_i32 = arith.constant 0 : i32
    %c0_i32_0 = arith.constant 0 : i32
    %c0_i32_1 = arith.constant 0 : i32
    return %c0_i32, %c0_i32_0 : i32, i32
  }
  func.func @transform_8(%arg0: i32) -> (i32, i32) {
    %c0_i32 = arith.constant 0 : i32
    %c0_i32_0 = arith.constant 0 : i32
    %c0_i32_1 = arith.constant 0 : i32
    return %c0_i32, %c0_i32_0 : i32, i32
  }
  func.func @transform_9(%arg0: i32) -> (i32, i32) {
    %c0_i32 = arith.constant 0 : i32
    %c0_i32_0 = arith.constant 0 : i32
    %c0_i32_1 = arith.constant 0 : i32
    return %c0_i32, %c0_i32_0 : i32, i32
  }
  func.func @transform_10(%arg0: i32) -> (i32, i32) {
    %c0_i32 = arith.constant 0 : i32
    %c0_i32_0 = arith.constant 0 : i32
    %c0_i32_1 = arith.constant 0 : i32
    return %c0_i32, %c0_i32_0 : i32, i32
  }
  func.func @transform_11(%arg0: i32) -> (i32, i32, i32) {
    %c0_i32 = arith.constant 0 : i32
    %c0_i32_0 = arith.constant 0 : i32
    %c0_i32_1 = arith.constant 0 : i32
    return %arg0, %c0_i32, %c0_i32_0 : i32, i32, i32
  }
}

module attributes {stable_mosaic.version = 11 : i64} {
  func.func @_block_kernel(%arg0: i32, %arg1: memref<1x64x64xbf16, #tpu.memory_space<vmem>>, %arg2: memref<1x64xf32, #tpu.memory_space<vmem>>, %arg3: memref<1x64xf32, #tpu.memory_space<vmem>>, %arg4: memref<64x16xbf16, #tpu.memory_space<vmem>>, %arg5: memref<1x16xf32, #tpu.memory_space<vmem>>, %arg6: memref<9x16x64xbf16, #tpu.memory_space<vmem>>, %arg7: memref<9x16x16xbf16, #tpu.memory_space<vmem>>, %arg8: memref<1x16xf32, #tpu.memory_space<vmem>>, %arg9: memref<16x64xbf16, #tpu.memory_space<vmem>>, %arg10: memref<1x64xf32, #tpu.memory_space<vmem>>, %arg11: memref<16x64xbf16, #tpu.memory_space<vmem>>, %arg12: memref<1x16x64xbf16, #tpu.memory_space<vmem>>) attributes {dimension_semantics = [#tpu.dimension_semantics<parallel>], iteration_bounds = array<i64: 2>, scalar_prefetch = 0 : i64, scratch_operands = 0 : i64, tpu.core_type = #tpu.core_type<tc>, window_params = [{transform_indices = @transform_0, window_bounds = array<i64: 1, 64, 64>}, {pipeline_mode = #tpu.pipeline_mode<synchronous>, transform_indices = @transform_1, window_bounds = array<i64: 1, 64>}, {pipeline_mode = #tpu.pipeline_mode<synchronous>, transform_indices = @transform_2, window_bounds = array<i64: 1, 64>}, {pipeline_mode = #tpu.pipeline_mode<synchronous>, transform_indices = @transform_3, window_bounds = array<i64: 64, 16>}, {pipeline_mode = #tpu.pipeline_mode<synchronous>, transform_indices = @transform_4, window_bounds = array<i64: 1, 16>}, {pipeline_mode = #tpu.pipeline_mode<synchronous>, transform_indices = @transform_5, window_bounds = array<i64: 9, 16, 64>}, {pipeline_mode = #tpu.pipeline_mode<synchronous>, transform_indices = @transform_6, window_bounds = array<i64: 9, 16, 16>}, {pipeline_mode = #tpu.pipeline_mode<synchronous>, transform_indices = @transform_7, window_bounds = array<i64: 1, 16>}, {pipeline_mode = #tpu.pipeline_mode<synchronous>, transform_indices = @transform_8, window_bounds = array<i64: 16, 64>}, {pipeline_mode = #tpu.pipeline_mode<synchronous>, transform_indices = @transform_9, window_bounds = array<i64: 1, 64>}, {pipeline_mode = #tpu.pipeline_mode<synchronous>, transform_indices = @transform_10, window_bounds = array<i64: 16, 64>}, {transform_indices = @transform_11, window_bounds = array<i64: 1, 16, 64>}]} {
    %c0 = arith.constant 0 : index
    %c0_0 = arith.constant 0 : index
    %c0_1 = arith.constant 0 : index
    %0 = vector.load %arg1[%c0, %c0_0, %c0_1] : memref<1x64x64xbf16, #tpu.memory_space<vmem>>, vector<1x64x64xbf16>
    %1 = vector.shape_cast %0 : vector<1x64x64xbf16> to vector<64x64xbf16>
    %2 = arith.extf %1 : vector<64x64xbf16> to vector<64x64xf32>
    %c0_2 = arith.constant 0 : index
    %c0_3 = arith.constant 0 : index
    %3 = vector.load %arg2[%c0_2, %c0_3] : memref<1x64xf32, #tpu.memory_space<vmem>>, vector<1x64xf32>
    %4 = vector.broadcast %3 : vector<1x64xf32> to vector<64x64xf32>
    %5 = arith.mulf %2, %4 : vector<64x64xf32>
    %c0_4 = arith.constant 0 : index
    %c0_5 = arith.constant 0 : index
    %6 = vector.load %arg3[%c0_4, %c0_5] : memref<1x64xf32, #tpu.memory_space<vmem>>, vector<1x64xf32>
    %7 = vector.broadcast %6 : vector<1x64xf32> to vector<64x64xf32>
    %8 = arith.addf %5, %7 : vector<64x64xf32>
    %cst = arith.constant 0.000000e+00 : f32
    %9 = vector.broadcast %cst : f32 to vector<64x64xf32>
    %10 = arith.maximumf %8, %9 : vector<64x64xf32>
    %11 = arith.truncf %10 : vector<64x64xf32> to vector<64x64xbf16>
    %c0_6 = arith.constant 0 : index
    %c0_7 = arith.constant 0 : index
    %12 = vector.load %arg4[%c0_6, %c0_7] : memref<64x16xbf16, #tpu.memory_space<vmem>>, vector<64x16xbf16>
    %cst_8 = arith.constant dense<0.000000e+00> : vector<64x16xf32>
    %13 = tpu.matmul %11, %12, %cst_8 {dimension_numbers = #tpu.dot_dimension_numbers<[1], [0], [0], [1], [0, 0, 1, 1], [], []>} : vector<64x64xbf16>, vector<64x16xbf16>, vector<64x16xf32> -> vector<64x16xf32>
    %c0_9 = arith.constant 0 : index
    %c0_10 = arith.constant 0 : index
    %14 = vector.load %arg5[%c0_9, %c0_10] : memref<1x16xf32, #tpu.memory_space<vmem>>, vector<1x16xf32>
    %15 = vector.broadcast %14 : vector<1x16xf32> to vector<64x16xf32>
    %16 = arith.addf %13, %15 : vector<64x16xf32>
    %cst_11 = arith.constant 0.000000e+00 : f32
    %17 = vector.broadcast %cst_11 : f32 to vector<64x16xf32>
    %18 = arith.maximumf %16, %17 : vector<64x16xf32>
    %19 = arith.truncf %18 : vector<64x16xf32> to vector<64x16xbf16>
    %c0_12 = arith.constant 0 : index
    %c0_13 = arith.constant 0 : index
    %c0_14 = arith.constant 0 : index
    %20 = vector.load %arg6[%c0_12, %c0_13, %c0_14] : memref<9x16x64xbf16, #tpu.memory_space<vmem>>, vector<1x16x64xbf16>
    %21 = vector.shape_cast %20 : vector<1x16x64xbf16> to vector<16x64xbf16>
    %cst_15 = arith.constant dense<0.000000e+00> : vector<16x16xf32>
    %22 = tpu.matmul %21, %19, %cst_15 {dimension_numbers = #tpu.dot_dimension_numbers<[1], [0], [0], [1], [0, 0, 1, 1], [], []>} : vector<16x64xbf16>, vector<64x16xbf16>, vector<16x16xf32> -> vector<16x16xf32>
    %23 = arith.truncf %22 : vector<16x16xf32> to vector<16x16xbf16>
    %c0_16 = arith.constant 0 : index
    %c0_17 = arith.constant 0 : index
    %c0_18 = arith.constant 0 : index
    %24 = vector.load %arg7[%c0_16, %c0_17, %c0_18] : memref<9x16x16xbf16, #tpu.memory_space<vmem>>, vector<1x16x16xbf16>
    %25 = vector.shape_cast %24 : vector<1x16x16xbf16> to vector<16x16xbf16>
    %cst_19 = arith.constant dense<0.000000e+00> : vector<16x16xf32>
    %26 = tpu.matmul %23, %25, %cst_19 {dimension_numbers = #tpu.dot_dimension_numbers<[1], [0], [0], [1], [0, 0, 1, 1], [], []>} : vector<16x16xbf16>, vector<16x16xbf16>, vector<16x16xf32> -> vector<16x16xf32>
    %c1 = arith.constant 1 : index
    %c0_20 = arith.constant 0 : index
    %c0_21 = arith.constant 0 : index
    %27 = vector.load %arg6[%c1, %c0_20, %c0_21] : memref<9x16x64xbf16, #tpu.memory_space<vmem>>, vector<1x16x64xbf16>
    %28 = vector.shape_cast %27 : vector<1x16x64xbf16> to vector<16x64xbf16>
    %cst_22 = arith.constant dense<0.000000e+00> : vector<16x16xf32>
    %29 = tpu.matmul %28, %19, %cst_22 {dimension_numbers = #tpu.dot_dimension_numbers<[1], [0], [0], [1], [0, 0, 1, 1], [], []>} : vector<16x64xbf16>, vector<64x16xbf16>, vector<16x16xf32> -> vector<16x16xf32>
    %30 = arith.truncf %29 : vector<16x16xf32> to vector<16x16xbf16>
    %c1_23 = arith.constant 1 : index
    %c0_24 = arith.constant 0 : index
    %c0_25 = arith.constant 0 : index
    %31 = vector.load %arg7[%c1_23, %c0_24, %c0_25] : memref<9x16x16xbf16, #tpu.memory_space<vmem>>, vector<1x16x16xbf16>
    %32 = vector.shape_cast %31 : vector<1x16x16xbf16> to vector<16x16xbf16>
    %cst_26 = arith.constant dense<0.000000e+00> : vector<16x16xf32>
    %33 = tpu.matmul %30, %32, %cst_26 {dimension_numbers = #tpu.dot_dimension_numbers<[1], [0], [0], [1], [0, 0, 1, 1], [], []>} : vector<16x16xbf16>, vector<16x16xbf16>, vector<16x16xf32> -> vector<16x16xf32>
    %34 = arith.addf %26, %33 : vector<16x16xf32>
    %c2 = arith.constant 2 : index
    %c0_27 = arith.constant 0 : index
    %c0_28 = arith.constant 0 : index
    %35 = vector.load %arg6[%c2, %c0_27, %c0_28] : memref<9x16x64xbf16, #tpu.memory_space<vmem>>, vector<1x16x64xbf16>
    %36 = vector.shape_cast %35 : vector<1x16x64xbf16> to vector<16x64xbf16>
    %cst_29 = arith.constant dense<0.000000e+00> : vector<16x16xf32>
    %37 = tpu.matmul %36, %19, %cst_29 {dimension_numbers = #tpu.dot_dimension_numbers<[1], [0], [0], [1], [0, 0, 1, 1], [], []>} : vector<16x64xbf16>, vector<64x16xbf16>, vector<16x16xf32> -> vector<16x16xf32>
    %38 = arith.truncf %37 : vector<16x16xf32> to vector<16x16xbf16>
    %c2_30 = arith.constant 2 : index
    %c0_31 = arith.constant 0 : index
    %c0_32 = arith.constant 0 : index
    %39 = vector.load %arg7[%c2_30, %c0_31, %c0_32] : memref<9x16x16xbf16, #tpu.memory_space<vmem>>, vector<1x16x16xbf16>
    %40 = vector.shape_cast %39 : vector<1x16x16xbf16> to vector<16x16xbf16>
    %cst_33 = arith.constant dense<0.000000e+00> : vector<16x16xf32>
    %41 = tpu.matmul %38, %40, %cst_33 {dimension_numbers = #tpu.dot_dimension_numbers<[1], [0], [0], [1], [0, 0, 1, 1], [], []>} : vector<16x16xbf16>, vector<16x16xbf16>, vector<16x16xf32> -> vector<16x16xf32>
    %42 = arith.addf %34, %41 : vector<16x16xf32>
    %c3 = arith.constant 3 : index
    %c0_34 = arith.constant 0 : index
    %c0_35 = arith.constant 0 : index
    %43 = vector.load %arg6[%c3, %c0_34, %c0_35] : memref<9x16x64xbf16, #tpu.memory_space<vmem>>, vector<1x16x64xbf16>
    %44 = vector.shape_cast %43 : vector<1x16x64xbf16> to vector<16x64xbf16>
    %cst_36 = arith.constant dense<0.000000e+00> : vector<16x16xf32>
    %45 = tpu.matmul %44, %19, %cst_36 {dimension_numbers = #tpu.dot_dimension_numbers<[1], [0], [0], [1], [0, 0, 1, 1], [], []>} : vector<16x64xbf16>, vector<64x16xbf16>, vector<16x16xf32> -> vector<16x16xf32>
    %46 = arith.truncf %45 : vector<16x16xf32> to vector<16x16xbf16>
    %c3_37 = arith.constant 3 : index
    %c0_38 = arith.constant 0 : index
    %c0_39 = arith.constant 0 : index
    %47 = vector.load %arg7[%c3_37, %c0_38, %c0_39] : memref<9x16x16xbf16, #tpu.memory_space<vmem>>, vector<1x16x16xbf16>
    %48 = vector.shape_cast %47 : vector<1x16x16xbf16> to vector<16x16xbf16>
    %cst_40 = arith.constant dense<0.000000e+00> : vector<16x16xf32>
    %49 = tpu.matmul %46, %48, %cst_40 {dimension_numbers = #tpu.dot_dimension_numbers<[1], [0], [0], [1], [0, 0, 1, 1], [], []>} : vector<16x16xbf16>, vector<16x16xbf16>, vector<16x16xf32> -> vector<16x16xf32>
    %50 = arith.addf %42, %49 : vector<16x16xf32>
    %c4 = arith.constant 4 : index
    %c0_41 = arith.constant 0 : index
    %c0_42 = arith.constant 0 : index
    %51 = vector.load %arg6[%c4, %c0_41, %c0_42] : memref<9x16x64xbf16, #tpu.memory_space<vmem>>, vector<1x16x64xbf16>
    %52 = vector.shape_cast %51 : vector<1x16x64xbf16> to vector<16x64xbf16>
    %cst_43 = arith.constant dense<0.000000e+00> : vector<16x16xf32>
    %53 = tpu.matmul %52, %19, %cst_43 {dimension_numbers = #tpu.dot_dimension_numbers<[1], [0], [0], [1], [0, 0, 1, 1], [], []>} : vector<16x64xbf16>, vector<64x16xbf16>, vector<16x16xf32> -> vector<16x16xf32>
    %54 = arith.truncf %53 : vector<16x16xf32> to vector<16x16xbf16>
    %c4_44 = arith.constant 4 : index
    %c0_45 = arith.constant 0 : index
    %c0_46 = arith.constant 0 : index
    %55 = vector.load %arg7[%c4_44, %c0_45, %c0_46] : memref<9x16x16xbf16, #tpu.memory_space<vmem>>, vector<1x16x16xbf16>
    %56 = vector.shape_cast %55 : vector<1x16x16xbf16> to vector<16x16xbf16>
    %cst_47 = arith.constant dense<0.000000e+00> : vector<16x16xf32>
    %57 = tpu.matmul %54, %56, %cst_47 {dimension_numbers = #tpu.dot_dimension_numbers<[1], [0], [0], [1], [0, 0, 1, 1], [], []>} : vector<16x16xbf16>, vector<16x16xbf16>, vector<16x16xf32> -> vector<16x16xf32>
    %58 = arith.addf %50, %57 : vector<16x16xf32>
    %c5 = arith.constant 5 : index
    %c0_48 = arith.constant 0 : index
    %c0_49 = arith.constant 0 : index
    %59 = vector.load %arg6[%c5, %c0_48, %c0_49] : memref<9x16x64xbf16, #tpu.memory_space<vmem>>, vector<1x16x64xbf16>
    %60 = vector.shape_cast %59 : vector<1x16x64xbf16> to vector<16x64xbf16>
    %cst_50 = arith.constant dense<0.000000e+00> : vector<16x16xf32>
    %61 = tpu.matmul %60, %19, %cst_50 {dimension_numbers = #tpu.dot_dimension_numbers<[1], [0], [0], [1], [0, 0, 1, 1], [], []>} : vector<16x64xbf16>, vector<64x16xbf16>, vector<16x16xf32> -> vector<16x16xf32>
    %62 = arith.truncf %61 : vector<16x16xf32> to vector<16x16xbf16>
    %c5_51 = arith.constant 5 : index
    %c0_52 = arith.constant 0 : index
    %c0_53 = arith.constant 0 : index
    %63 = vector.load %arg7[%c5_51, %c0_52, %c0_53] : memref<9x16x16xbf16, #tpu.memory_space<vmem>>, vector<1x16x16xbf16>
    %64 = vector.shape_cast %63 : vector<1x16x16xbf16> to vector<16x16xbf16>
    %cst_54 = arith.constant dense<0.000000e+00> : vector<16x16xf32>
    %65 = tpu.matmul %62, %64, %cst_54 {dimension_numbers = #tpu.dot_dimension_numbers<[1], [0], [0], [1], [0, 0, 1, 1], [], []>} : vector<16x16xbf16>, vector<16x16xbf16>, vector<16x16xf32> -> vector<16x16xf32>
    %66 = arith.addf %58, %65 : vector<16x16xf32>
    %c6 = arith.constant 6 : index
    %c0_55 = arith.constant 0 : index
    %c0_56 = arith.constant 0 : index
    %67 = vector.load %arg6[%c6, %c0_55, %c0_56] : memref<9x16x64xbf16, #tpu.memory_space<vmem>>, vector<1x16x64xbf16>
    %68 = vector.shape_cast %67 : vector<1x16x64xbf16> to vector<16x64xbf16>
    %cst_57 = arith.constant dense<0.000000e+00> : vector<16x16xf32>
    %69 = tpu.matmul %68, %19, %cst_57 {dimension_numbers = #tpu.dot_dimension_numbers<[1], [0], [0], [1], [0, 0, 1, 1], [], []>} : vector<16x64xbf16>, vector<64x16xbf16>, vector<16x16xf32> -> vector<16x16xf32>
    %70 = arith.truncf %69 : vector<16x16xf32> to vector<16x16xbf16>
    %c6_58 = arith.constant 6 : index
    %c0_59 = arith.constant 0 : index
    %c0_60 = arith.constant 0 : index
    %71 = vector.load %arg7[%c6_58, %c0_59, %c0_60] : memref<9x16x16xbf16, #tpu.memory_space<vmem>>, vector<1x16x16xbf16>
    %72 = vector.shape_cast %71 : vector<1x16x16xbf16> to vector<16x16xbf16>
    %cst_61 = arith.constant dense<0.000000e+00> : vector<16x16xf32>
    %73 = tpu.matmul %70, %72, %cst_61 {dimension_numbers = #tpu.dot_dimension_numbers<[1], [0], [0], [1], [0, 0, 1, 1], [], []>} : vector<16x16xbf16>, vector<16x16xbf16>, vector<16x16xf32> -> vector<16x16xf32>
    %74 = arith.addf %66, %73 : vector<16x16xf32>
    %c7 = arith.constant 7 : index
    %c0_62 = arith.constant 0 : index
    %c0_63 = arith.constant 0 : index
    %75 = vector.load %arg6[%c7, %c0_62, %c0_63] : memref<9x16x64xbf16, #tpu.memory_space<vmem>>, vector<1x16x64xbf16>
    %76 = vector.shape_cast %75 : vector<1x16x64xbf16> to vector<16x64xbf16>
    %cst_64 = arith.constant dense<0.000000e+00> : vector<16x16xf32>
    %77 = tpu.matmul %76, %19, %cst_64 {dimension_numbers = #tpu.dot_dimension_numbers<[1], [0], [0], [1], [0, 0, 1, 1], [], []>} : vector<16x64xbf16>, vector<64x16xbf16>, vector<16x16xf32> -> vector<16x16xf32>
    %78 = arith.truncf %77 : vector<16x16xf32> to vector<16x16xbf16>
    %c7_65 = arith.constant 7 : index
    %c0_66 = arith.constant 0 : index
    %c0_67 = arith.constant 0 : index
    %79 = vector.load %arg7[%c7_65, %c0_66, %c0_67] : memref<9x16x16xbf16, #tpu.memory_space<vmem>>, vector<1x16x16xbf16>
    %80 = vector.shape_cast %79 : vector<1x16x16xbf16> to vector<16x16xbf16>
    %cst_68 = arith.constant dense<0.000000e+00> : vector<16x16xf32>
    %81 = tpu.matmul %78, %80, %cst_68 {dimension_numbers = #tpu.dot_dimension_numbers<[1], [0], [0], [1], [0, 0, 1, 1], [], []>} : vector<16x16xbf16>, vector<16x16xbf16>, vector<16x16xf32> -> vector<16x16xf32>
    %82 = arith.addf %74, %81 : vector<16x16xf32>
    %c8 = arith.constant 8 : index
    %c0_69 = arith.constant 0 : index
    %c0_70 = arith.constant 0 : index
    %83 = vector.load %arg6[%c8, %c0_69, %c0_70] : memref<9x16x64xbf16, #tpu.memory_space<vmem>>, vector<1x16x64xbf16>
    %84 = vector.shape_cast %83 : vector<1x16x64xbf16> to vector<16x64xbf16>
    %cst_71 = arith.constant dense<0.000000e+00> : vector<16x16xf32>
    %85 = tpu.matmul %84, %19, %cst_71 {dimension_numbers = #tpu.dot_dimension_numbers<[1], [0], [0], [1], [0, 0, 1, 1], [], []>} : vector<16x64xbf16>, vector<64x16xbf16>, vector<16x16xf32> -> vector<16x16xf32>
    %86 = arith.truncf %85 : vector<16x16xf32> to vector<16x16xbf16>
    %c8_72 = arith.constant 8 : index
    %c0_73 = arith.constant 0 : index
    %c0_74 = arith.constant 0 : index
    %87 = vector.load %arg7[%c8_72, %c0_73, %c0_74] : memref<9x16x16xbf16, #tpu.memory_space<vmem>>, vector<1x16x16xbf16>
    %88 = vector.shape_cast %87 : vector<1x16x16xbf16> to vector<16x16xbf16>
    %cst_75 = arith.constant dense<0.000000e+00> : vector<16x16xf32>
    %89 = tpu.matmul %86, %88, %cst_75 {dimension_numbers = #tpu.dot_dimension_numbers<[1], [0], [0], [1], [0, 0, 1, 1], [], []>} : vector<16x16xbf16>, vector<16x16xbf16>, vector<16x16xf32> -> vector<16x16xf32>
    %90 = arith.addf %82, %89 : vector<16x16xf32>
    %c0_76 = arith.constant 0 : index
    %c0_77 = arith.constant 0 : index
    %91 = vector.load %arg8[%c0_76, %c0_77] : memref<1x16xf32, #tpu.memory_space<vmem>>, vector<1x16xf32>
    %92 = vector.broadcast %91 : vector<1x16xf32> to vector<16x16xf32>
    %93 = arith.addf %90, %92 : vector<16x16xf32>
    %cst_78 = arith.constant 0.000000e+00 : f32
    %94 = vector.broadcast %cst_78 : f32 to vector<16x16xf32>
    %95 = arith.maximumf %93, %94 : vector<16x16xf32>
    %96 = arith.truncf %95 : vector<16x16xf32> to vector<16x16xbf16>
    %c0_79 = arith.constant 0 : index
    %c0_80 = arith.constant 0 : index
    %97 = vector.load %arg9[%c0_79, %c0_80] : memref<16x64xbf16, #tpu.memory_space<vmem>>, vector<16x64xbf16>
    %cst_81 = arith.constant dense<0.000000e+00> : vector<16x64xf32>
    %98 = tpu.matmul %96, %97, %cst_81 {dimension_numbers = #tpu.dot_dimension_numbers<[1], [0], [0], [1], [0, 0, 1, 1], [], []>} : vector<16x16xbf16>, vector<16x64xbf16>, vector<16x64xf32> -> vector<16x64xf32>
    %c0_82 = arith.constant 0 : index
    %c0_83 = arith.constant 0 : index
    %99 = vector.load %arg10[%c0_82, %c0_83] : memref<1x64xf32, #tpu.memory_space<vmem>>, vector<1x64xf32>
    %100 = vector.broadcast %99 : vector<1x64xf32> to vector<16x64xf32>
    %101 = arith.addf %98, %100 : vector<16x64xf32>
    %c0_84 = arith.constant 0 : index
    %c0_85 = arith.constant 0 : index
    %102 = vector.load %arg11[%c0_84, %c0_85] : memref<16x64xbf16, #tpu.memory_space<vmem>>, vector<16x64xbf16>
    %cst_86 = arith.constant dense<0.000000e+00> : vector<16x64xf32>
    %103 = tpu.matmul %102, %11, %cst_86 {dimension_numbers = #tpu.dot_dimension_numbers<[1], [0], [0], [1], [0, 0, 1, 1], [], []>} : vector<16x64xbf16>, vector<64x64xbf16>, vector<16x64xf32> -> vector<16x64xf32>
    %104 = arith.addf %101, %103 : vector<16x64xf32>
    %105 = arith.truncf %104 : vector<16x64xf32> to vector<16x64xbf16>
    %c0_87 = arith.constant 0 : index
    %c0_88 = arith.constant 0 : index
    %c0_89 = arith.constant 0 : index
    %106 = vector.load %arg12[%c0_87, %c0_88, %c0_89] : memref<1x16x64xbf16, #tpu.memory_space<vmem>>, vector<1x16x64xbf16>
    %107 = vector.shape_cast %106 : vector<1x16x64xbf16> to vector<16x64xbf16>
    %108 = vector.shape_cast %105 : vector<16x64xbf16> to vector<1x16x64xbf16>
    tpu.vector_store %arg12[%c0_87, %c0_88, %c0_89], %108 {strides = array<i32>} : memref<1x16x64xbf16, #tpu.memory_space<vmem>>, vector<1x16x64xbf16>,
    return
  }
  func.func @transform_0(%arg0: i32) -> (i32, i32, i32) {
    %c0_i32 = arith.constant 0 : i32
    %c0_i32_0 = arith.constant 0 : i32
    %c0_i32_1 = arith.constant 0 : i32
    return %arg0, %c0_i32, %c0_i32_0 : i32, i32, i32
  }
  func.func @transform_1(%arg0: i32) -> (i32, i32) {
    %c0_i32 = arith.constant 0 : i32
    %c0_i32_0 = arith.constant 0 : i32
    %c0_i32_1 = arith.constant 0 : i32
    return %c0_i32, %c0_i32_0 : i32, i32
  }
  func.func @transform_2(%arg0: i32) -> (i32, i32) {
    %c0_i32 = arith.constant 0 : i32
    %c0_i32_0 = arith.constant 0 : i32
    %c0_i32_1 = arith.constant 0 : i32
    return %c0_i32, %c0_i32_0 : i32, i32
  }
  func.func @transform_3(%arg0: i32) -> (i32, i32) {
    %c0_i32 = arith.constant 0 : i32
    %c0_i32_0 = arith.constant 0 : i32
    %c0_i32_1 = arith.constant 0 : i32
    return %c0_i32, %c0_i32_0 : i32, i32
  }
  func.func @transform_4(%arg0: i32) -> (i32, i32) {
    %c0_i32 = arith.constant 0 : i32
    %c0_i32_0 = arith.constant 0 : i32
    %c0_i32_1 = arith.constant 0 : i32
    return %c0_i32, %c0_i32_0 : i32, i32
  }
  func.func @transform_5(%arg0: i32) -> (i32, i32, i32) {
    %c0_i32 = arith.constant 0 : i32
    %c0_i32_0 = arith.constant 0 : i32
    %c0_i32_1 = arith.constant 0 : i32
    %c0_i32_2 = arith.constant 0 : i32
    return %c0_i32, %c0_i32_0, %c0_i32_1 : i32, i32, i32
  }
  func.func @transform_6(%arg0: i32) -> (i32, i32, i32) {
    %c0_i32 = arith.constant 0 : i32
    %c0_i32_0 = arith.constant 0 : i32
    %c0_i32_1 = arith.constant 0 : i32
    %c0_i32_2 = arith.constant 0 : i32
    return %c0_i32, %c0_i32_0, %c0_i32_1 : i32, i32, i32
  }
  func.func @transform_7(%arg0: i32) -> (i32, i32) {
    %c0_i32 = arith.constant 0 : i32
    %c0_i32_0 = arith.constant 0 : i32
    %c0_i32_1 = arith.constant 0 : i32
    return %c0_i32, %c0_i32_0 : i32, i32
  }
  func.func @transform_8(%arg0: i32) -> (i32, i32) {
    %c0_i32 = arith.constant 0 : i32
    %c0_i32_0 = arith.constant 0 : i32
    %c0_i32_1 = arith.constant 0 : i32
    return %c0_i32, %c0_i32_0 : i32, i32
  }
  func.func @transform_9(%arg0: i32) -> (i32, i32) {
    %c0_i32 = arith.constant 0 : i32
    %c0_i32_0 = arith.constant 0 : i32
    %c0_i32_1 = arith.constant 0 : i32
    return %c0_i32, %c0_i32_0 : i32, i32
  }
  func.func @transform_10(%arg0: i32) -> (i32, i32) {
    %c0_i32 = arith.constant 0 : i32
    %c0_i32_0 = arith.constant 0 : i32
    %c0_i32_1 = arith.constant 0 : i32
    return %c0_i32, %c0_i32_0 : i32, i32
  }
  func.func @transform_11(%arg0: i32) -> (i32, i32, i32) {
    %c0_i32 = arith.constant 0 : i32
    %c0_i32_0 = arith.constant 0 : i32
    %c0_i32_1 = arith.constant 0 : i32
    return %arg0, %c0_i32, %c0_i32_0 : i32, i32, i32
  }
}

module attributes {stable_mosaic.version = 11 : i64} {
  func.func @_block_kernel(%arg0: i32, %arg1: memref<1x16x128xbf16, #tpu.memory_space<vmem>>, %arg2: memref<1x128xf32, #tpu.memory_space<vmem>>, %arg3: memref<1x128xf32, #tpu.memory_space<vmem>>, %arg4: memref<128x32xbf16, #tpu.memory_space<vmem>>, %arg5: memref<1x32xf32, #tpu.memory_space<vmem>>, %arg6: memref<9x4x16xbf16, #tpu.memory_space<vmem>>, %arg7: memref<9x32x32xbf16, #tpu.memory_space<vmem>>, %arg8: memref<1x32xf32, #tpu.memory_space<vmem>>, %arg9: memref<32x128xbf16, #tpu.memory_space<vmem>>, %arg10: memref<1x128xf32, #tpu.memory_space<vmem>>, %arg11: memref<4x16xbf16, #tpu.memory_space<vmem>>, %arg12: memref<1x4x128xbf16, #tpu.memory_space<vmem>>) attributes {dimension_semantics = [#tpu.dimension_semantics<parallel>], iteration_bounds = array<i64: 2>, scalar_prefetch = 0 : i64, scratch_operands = 0 : i64, tpu.core_type = #tpu.core_type<tc>, window_params = [{transform_indices = @transform_0, window_bounds = array<i64: 1, 16, 128>}, {pipeline_mode = #tpu.pipeline_mode<synchronous>, transform_indices = @transform_1, window_bounds = array<i64: 1, 128>}, {pipeline_mode = #tpu.pipeline_mode<synchronous>, transform_indices = @transform_2, window_bounds = array<i64: 1, 128>}, {pipeline_mode = #tpu.pipeline_mode<synchronous>, transform_indices = @transform_3, window_bounds = array<i64: 128, 32>}, {pipeline_mode = #tpu.pipeline_mode<synchronous>, transform_indices = @transform_4, window_bounds = array<i64: 1, 32>}, {pipeline_mode = #tpu.pipeline_mode<synchronous>, transform_indices = @transform_5, window_bounds = array<i64: 9, 4, 16>}, {pipeline_mode = #tpu.pipeline_mode<synchronous>, transform_indices = @transform_6, window_bounds = array<i64: 9, 32, 32>}, {pipeline_mode = #tpu.pipeline_mode<synchronous>, transform_indices = @transform_7, window_bounds = array<i64: 1, 32>}, {pipeline_mode = #tpu.pipeline_mode<synchronous>, transform_indices = @transform_8, window_bounds = array<i64: 32, 128>}, {pipeline_mode = #tpu.pipeline_mode<synchronous>, transform_indices = @transform_9, window_bounds = array<i64: 1, 128>}, {pipeline_mode = #tpu.pipeline_mode<synchronous>, transform_indices = @transform_10, window_bounds = array<i64: 4, 16>}, {transform_indices = @transform_11, window_bounds = array<i64: 1, 4, 128>}]} {
    %c0 = arith.constant 0 : index
    %c0_0 = arith.constant 0 : index
    %c0_1 = arith.constant 0 : index
    %0 = vector.load %arg1[%c0, %c0_0, %c0_1] : memref<1x16x128xbf16, #tpu.memory_space<vmem>>, vector<1x16x128xbf16>
    %1 = vector.shape_cast %0 : vector<1x16x128xbf16> to vector<16x128xbf16>
    %2 = arith.extf %1 : vector<16x128xbf16> to vector<16x128xf32>
    %c0_2 = arith.constant 0 : index
    %c0_3 = arith.constant 0 : index
    %3 = vector.load %arg2[%c0_2, %c0_3] : memref<1x128xf32, #tpu.memory_space<vmem>>, vector<1x128xf32>
    %4 = vector.broadcast %3 : vector<1x128xf32> to vector<16x128xf32>
    %5 = arith.mulf %2, %4 : vector<16x128xf32>
    %c0_4 = arith.constant 0 : index
    %c0_5 = arith.constant 0 : index
    %6 = vector.load %arg3[%c0_4, %c0_5] : memref<1x128xf32, #tpu.memory_space<vmem>>, vector<1x128xf32>
    %7 = vector.broadcast %6 : vector<1x128xf32> to vector<16x128xf32>
    %8 = arith.addf %5, %7 : vector<16x128xf32>
    %cst = arith.constant 0.000000e+00 : f32
    %9 = vector.broadcast %cst : f32 to vector<16x128xf32>
    %10 = arith.maximumf %8, %9 : vector<16x128xf32>
    %11 = arith.truncf %10 : vector<16x128xf32> to vector<16x128xbf16>
    %c0_6 = arith.constant 0 : index
    %c0_7 = arith.constant 0 : index
    %12 = vector.load %arg4[%c0_6, %c0_7] : memref<128x32xbf16, #tpu.memory_space<vmem>>, vector<128x32xbf16>
    %cst_8 = arith.constant dense<0.000000e+00> : vector<16x32xf32>
    %13 = tpu.matmul %11, %12, %cst_8 {dimension_numbers = #tpu.dot_dimension_numbers<[1], [0], [0], [1], [0, 0, 1, 1], [], []>} : vector<16x128xbf16>, vector<128x32xbf16>, vector<16x32xf32> -> vector<16x32xf32>
    %c0_9 = arith.constant 0 : index
    %c0_10 = arith.constant 0 : index
    %14 = vector.load %arg5[%c0_9, %c0_10] : memref<1x32xf32, #tpu.memory_space<vmem>>, vector<1x32xf32>
    %15 = vector.broadcast %14 : vector<1x32xf32> to vector<16x32xf32>
    %16 = arith.addf %13, %15 : vector<16x32xf32>
    %cst_11 = arith.constant 0.000000e+00 : f32
    %17 = vector.broadcast %cst_11 : f32 to vector<16x32xf32>
    %18 = arith.maximumf %16, %17 : vector<16x32xf32>
    %19 = arith.truncf %18 : vector<16x32xf32> to vector<16x32xbf16>
    %c0_12 = arith.constant 0 : index
    %c0_13 = arith.constant 0 : index
    %c0_14 = arith.constant 0 : index
    %20 = vector.load %arg6[%c0_12, %c0_13, %c0_14] : memref<9x4x16xbf16, #tpu.memory_space<vmem>>, vector<1x4x16xbf16>
    %21 = vector.shape_cast %20 : vector<1x4x16xbf16> to vector<4x16xbf16>
    %cst_15 = arith.constant dense<0.000000e+00> : vector<4x32xf32>
    %22 = tpu.matmul %21, %19, %cst_15 {dimension_numbers = #tpu.dot_dimension_numbers<[1], [0], [0], [1], [0, 0, 1, 1], [], []>} : vector<4x16xbf16>, vector<16x32xbf16>, vector<4x32xf32> -> vector<4x32xf32>
    %23 = arith.truncf %22 : vector<4x32xf32> to vector<4x32xbf16>
    %c0_16 = arith.constant 0 : index
    %c0_17 = arith.constant 0 : index
    %c0_18 = arith.constant 0 : index
    %24 = vector.load %arg7[%c0_16, %c0_17, %c0_18] : memref<9x32x32xbf16, #tpu.memory_space<vmem>>, vector<1x32x32xbf16>
    %25 = vector.shape_cast %24 : vector<1x32x32xbf16> to vector<32x32xbf16>
    %cst_19 = arith.constant dense<0.000000e+00> : vector<4x32xf32>
    %26 = tpu.matmul %23, %25, %cst_19 {dimension_numbers = #tpu.dot_dimension_numbers<[1], [0], [0], [1], [0, 0, 1, 1], [], []>} : vector<4x32xbf16>, vector<32x32xbf16>, vector<4x32xf32> -> vector<4x32xf32>
    %c1 = arith.constant 1 : index
    %c0_20 = arith.constant 0 : index
    %c0_21 = arith.constant 0 : index
    %27 = vector.load %arg6[%c1, %c0_20, %c0_21] : memref<9x4x16xbf16, #tpu.memory_space<vmem>>, vector<1x4x16xbf16>
    %28 = vector.shape_cast %27 : vector<1x4x16xbf16> to vector<4x16xbf16>
    %cst_22 = arith.constant dense<0.000000e+00> : vector<4x32xf32>
    %29 = tpu.matmul %28, %19, %cst_22 {dimension_numbers = #tpu.dot_dimension_numbers<[1], [0], [0], [1], [0, 0, 1, 1], [], []>} : vector<4x16xbf16>, vector<16x32xbf16>, vector<4x32xf32> -> vector<4x32xf32>
    %30 = arith.truncf %29 : vector<4x32xf32> to vector<4x32xbf16>
    %c1_23 = arith.constant 1 : index
    %c0_24 = arith.constant 0 : index
    %c0_25 = arith.constant 0 : index
    %31 = vector.load %arg7[%c1_23, %c0_24, %c0_25] : memref<9x32x32xbf16, #tpu.memory_space<vmem>>, vector<1x32x32xbf16>
    %32 = vector.shape_cast %31 : vector<1x32x32xbf16> to vector<32x32xbf16>
    %cst_26 = arith.constant dense<0.000000e+00> : vector<4x32xf32>
    %33 = tpu.matmul %30, %32, %cst_26 {dimension_numbers = #tpu.dot_dimension_numbers<[1], [0], [0], [1], [0, 0, 1, 1], [], []>} : vector<4x32xbf16>, vector<32x32xbf16>, vector<4x32xf32> -> vector<4x32xf32>
    %34 = arith.addf %26, %33 : vector<4x32xf32>
    %c2 = arith.constant 2 : index
    %c0_27 = arith.constant 0 : index
    %c0_28 = arith.constant 0 : index
    %35 = vector.load %arg6[%c2, %c0_27, %c0_28] : memref<9x4x16xbf16, #tpu.memory_space<vmem>>, vector<1x4x16xbf16>
    %36 = vector.shape_cast %35 : vector<1x4x16xbf16> to vector<4x16xbf16>
    %cst_29 = arith.constant dense<0.000000e+00> : vector<4x32xf32>
    %37 = tpu.matmul %36, %19, %cst_29 {dimension_numbers = #tpu.dot_dimension_numbers<[1], [0], [0], [1], [0, 0, 1, 1], [], []>} : vector<4x16xbf16>, vector<16x32xbf16>, vector<4x32xf32> -> vector<4x32xf32>
    %38 = arith.truncf %37 : vector<4x32xf32> to vector<4x32xbf16>
    %c2_30 = arith.constant 2 : index
    %c0_31 = arith.constant 0 : index
    %c0_32 = arith.constant 0 : index
    %39 = vector.load %arg7[%c2_30, %c0_31, %c0_32] : memref<9x32x32xbf16, #tpu.memory_space<vmem>>, vector<1x32x32xbf16>
    %40 = vector.shape_cast %39 : vector<1x32x32xbf16> to vector<32x32xbf16>
    %cst_33 = arith.constant dense<0.000000e+00> : vector<4x32xf32>
    %41 = tpu.matmul %38, %40, %cst_33 {dimension_numbers = #tpu.dot_dimension_numbers<[1], [0], [0], [1], [0, 0, 1, 1], [], []>} : vector<4x32xbf16>, vector<32x32xbf16>, vector<4x32xf32> -> vector<4x32xf32>
    %42 = arith.addf %34, %41 : vector<4x32xf32>
    %c3 = arith.constant 3 : index
    %c0_34 = arith.constant 0 : index
    %c0_35 = arith.constant 0 : index
    %43 = vector.load %arg6[%c3, %c0_34, %c0_35] : memref<9x4x16xbf16, #tpu.memory_space<vmem>>, vector<1x4x16xbf16>
    %44 = vector.shape_cast %43 : vector<1x4x16xbf16> to vector<4x16xbf16>
    %cst_36 = arith.constant dense<0.000000e+00> : vector<4x32xf32>
    %45 = tpu.matmul %44, %19, %cst_36 {dimension_numbers = #tpu.dot_dimension_numbers<[1], [0], [0], [1], [0, 0, 1, 1], [], []>} : vector<4x16xbf16>, vector<16x32xbf16>, vector<4x32xf32> -> vector<4x32xf32>
    %46 = arith.truncf %45 : vector<4x32xf32> to vector<4x32xbf16>
    %c3_37 = arith.constant 3 : index
    %c0_38 = arith.constant 0 : index
    %c0_39 = arith.constant 0 : index
    %47 = vector.load %arg7[%c3_37, %c0_38, %c0_39] : memref<9x32x32xbf16, #tpu.memory_space<vmem>>, vector<1x32x32xbf16>
    %48 = vector.shape_cast %47 : vector<1x32x32xbf16> to vector<32x32xbf16>
    %cst_40 = arith.constant dense<0.000000e+00> : vector<4x32xf32>
    %49 = tpu.matmul %46, %48, %cst_40 {dimension_numbers = #tpu.dot_dimension_numbers<[1], [0], [0], [1], [0, 0, 1, 1], [], []>} : vector<4x32xbf16>, vector<32x32xbf16>, vector<4x32xf32> -> vector<4x32xf32>
    %50 = arith.addf %42, %49 : vector<4x32xf32>
    %c4 = arith.constant 4 : index
    %c0_41 = arith.constant 0 : index
    %c0_42 = arith.constant 0 : index
    %51 = vector.load %arg6[%c4, %c0_41, %c0_42] : memref<9x4x16xbf16, #tpu.memory_space<vmem>>, vector<1x4x16xbf16>
    %52 = vector.shape_cast %51 : vector<1x4x16xbf16> to vector<4x16xbf16>
    %cst_43 = arith.constant dense<0.000000e+00> : vector<4x32xf32>
    %53 = tpu.matmul %52, %19, %cst_43 {dimension_numbers = #tpu.dot_dimension_numbers<[1], [0], [0], [1], [0, 0, 1, 1], [], []>} : vector<4x16xbf16>, vector<16x32xbf16>, vector<4x32xf32> -> vector<4x32xf32>
    %54 = arith.truncf %53 : vector<4x32xf32> to vector<4x32xbf16>
    %c4_44 = arith.constant 4 : index
    %c0_45 = arith.constant 0 : index
    %c0_46 = arith.constant 0 : index
    %55 = vector.load %arg7[%c4_44, %c0_45, %c0_46] : memref<9x32x32xbf16, #tpu.memory_space<vmem>>, vector<1x32x32xbf16>
    %56 = vector.shape_cast %55 : vector<1x32x32xbf16> to vector<32x32xbf16>
    %cst_47 = arith.constant dense<0.000000e+00> : vector<4x32xf32>
    %57 = tpu.matmul %54, %56, %cst_47 {dimension_numbers = #tpu.dot_dimension_numbers<[1], [0], [0], [1], [0, 0, 1, 1], [], []>} : vector<4x32xbf16>, vector<32x32xbf16>, vector<4x32xf32> -> vector<4x32xf32>
    %58 = arith.addf %50, %57 : vector<4x32xf32>
    %c5 = arith.constant 5 : index
    %c0_48 = arith.constant 0 : index
    %c0_49 = arith.constant 0 : index
    %59 = vector.load %arg6[%c5, %c0_48, %c0_49] : memref<9x4x16xbf16, #tpu.memory_space<vmem>>, vector<1x4x16xbf16>
    %60 = vector.shape_cast %59 : vector<1x4x16xbf16> to vector<4x16xbf16>
    %cst_50 = arith.constant dense<0.000000e+00> : vector<4x32xf32>
    %61 = tpu.matmul %60, %19, %cst_50 {dimension_numbers = #tpu.dot_dimension_numbers<[1], [0], [0], [1], [0, 0, 1, 1], [], []>} : vector<4x16xbf16>, vector<16x32xbf16>, vector<4x32xf32> -> vector<4x32xf32>
    %62 = arith.truncf %61 : vector<4x32xf32> to vector<4x32xbf16>
    %c5_51 = arith.constant 5 : index
    %c0_52 = arith.constant 0 : index
    %c0_53 = arith.constant 0 : index
    %63 = vector.load %arg7[%c5_51, %c0_52, %c0_53] : memref<9x32x32xbf16, #tpu.memory_space<vmem>>, vector<1x32x32xbf16>
    %64 = vector.shape_cast %63 : vector<1x32x32xbf16> to vector<32x32xbf16>
    %cst_54 = arith.constant dense<0.000000e+00> : vector<4x32xf32>
    %65 = tpu.matmul %62, %64, %cst_54 {dimension_numbers = #tpu.dot_dimension_numbers<[1], [0], [0], [1], [0, 0, 1, 1], [], []>} : vector<4x32xbf16>, vector<32x32xbf16>, vector<4x32xf32> -> vector<4x32xf32>
    %66 = arith.addf %58, %65 : vector<4x32xf32>
    %c6 = arith.constant 6 : index
    %c0_55 = arith.constant 0 : index
    %c0_56 = arith.constant 0 : index
    %67 = vector.load %arg6[%c6, %c0_55, %c0_56] : memref<9x4x16xbf16, #tpu.memory_space<vmem>>, vector<1x4x16xbf16>
    %68 = vector.shape_cast %67 : vector<1x4x16xbf16> to vector<4x16xbf16>
    %cst_57 = arith.constant dense<0.000000e+00> : vector<4x32xf32>
    %69 = tpu.matmul %68, %19, %cst_57 {dimension_numbers = #tpu.dot_dimension_numbers<[1], [0], [0], [1], [0, 0, 1, 1], [], []>} : vector<4x16xbf16>, vector<16x32xbf16>, vector<4x32xf32> -> vector<4x32xf32>
    %70 = arith.truncf %69 : vector<4x32xf32> to vector<4x32xbf16>
    %c6_58 = arith.constant 6 : index
    %c0_59 = arith.constant 0 : index
    %c0_60 = arith.constant 0 : index
    %71 = vector.load %arg7[%c6_58, %c0_59, %c0_60] : memref<9x32x32xbf16, #tpu.memory_space<vmem>>, vector<1x32x32xbf16>
    %72 = vector.shape_cast %71 : vector<1x32x32xbf16> to vector<32x32xbf16>
    %cst_61 = arith.constant dense<0.000000e+00> : vector<4x32xf32>
    %73 = tpu.matmul %70, %72, %cst_61 {dimension_numbers = #tpu.dot_dimension_numbers<[1], [0], [0], [1], [0, 0, 1, 1], [], []>} : vector<4x32xbf16>, vector<32x32xbf16>, vector<4x32xf32> -> vector<4x32xf32>
    %74 = arith.addf %66, %73 : vector<4x32xf32>
    %c7 = arith.constant 7 : index
    %c0_62 = arith.constant 0 : index
    %c0_63 = arith.constant 0 : index
    %75 = vector.load %arg6[%c7, %c0_62, %c0_63] : memref<9x4x16xbf16, #tpu.memory_space<vmem>>, vector<1x4x16xbf16>
    %76 = vector.shape_cast %75 : vector<1x4x16xbf16> to vector<4x16xbf16>
    %cst_64 = arith.constant dense<0.000000e+00> : vector<4x32xf32>
    %77 = tpu.matmul %76, %19, %cst_64 {dimension_numbers = #tpu.dot_dimension_numbers<[1], [0], [0], [1], [0, 0, 1, 1], [], []>} : vector<4x16xbf16>, vector<16x32xbf16>, vector<4x32xf32> -> vector<4x32xf32>
    %78 = arith.truncf %77 : vector<4x32xf32> to vector<4x32xbf16>
    %c7_65 = arith.constant 7 : index
    %c0_66 = arith.constant 0 : index
    %c0_67 = arith.constant 0 : index
    %79 = vector.load %arg7[%c7_65, %c0_66, %c0_67] : memref<9x32x32xbf16, #tpu.memory_space<vmem>>, vector<1x32x32xbf16>
    %80 = vector.shape_cast %79 : vector<1x32x32xbf16> to vector<32x32xbf16>
    %cst_68 = arith.constant dense<0.000000e+00> : vector<4x32xf32>
    %81 = tpu.matmul %78, %80, %cst_68 {dimension_numbers = #tpu.dot_dimension_numbers<[1], [0], [0], [1], [0, 0, 1, 1], [], []>} : vector<4x32xbf16>, vector<32x32xbf16>, vector<4x32xf32> -> vector<4x32xf32>
    %82 = arith.addf %74, %81 : vector<4x32xf32>
    %c8 = arith.constant 8 : index
    %c0_69 = arith.constant 0 : index
    %c0_70 = arith.constant 0 : index
    %83 = vector.load %arg6[%c8, %c0_69, %c0_70] : memref<9x4x16xbf16, #tpu.memory_space<vmem>>, vector<1x4x16xbf16>
    %84 = vector.shape_cast %83 : vector<1x4x16xbf16> to vector<4x16xbf16>
    %cst_71 = arith.constant dense<0.000000e+00> : vector<4x32xf32>
    %85 = tpu.matmul %84, %19, %cst_71 {dimension_numbers = #tpu.dot_dimension_numbers<[1], [0], [0], [1], [0, 0, 1, 1], [], []>} : vector<4x16xbf16>, vector<16x32xbf16>, vector<4x32xf32> -> vector<4x32xf32>
    %86 = arith.truncf %85 : vector<4x32xf32> to vector<4x32xbf16>
    %c8_72 = arith.constant 8 : index
    %c0_73 = arith.constant 0 : index
    %c0_74 = arith.constant 0 : index
    %87 = vector.load %arg7[%c8_72, %c0_73, %c0_74] : memref<9x32x32xbf16, #tpu.memory_space<vmem>>, vector<1x32x32xbf16>
    %88 = vector.shape_cast %87 : vector<1x32x32xbf16> to vector<32x32xbf16>
    %cst_75 = arith.constant dense<0.000000e+00> : vector<4x32xf32>
    %89 = tpu.matmul %86, %88, %cst_75 {dimension_numbers = #tpu.dot_dimension_numbers<[1], [0], [0], [1], [0, 0, 1, 1], [], []>} : vector<4x32xbf16>, vector<32x32xbf16>, vector<4x32xf32> -> vector<4x32xf32>
    %90 = arith.addf %82, %89 : vector<4x32xf32>
    %c0_76 = arith.constant 0 : index
    %c0_77 = arith.constant 0 : index
    %91 = vector.load %arg8[%c0_76, %c0_77] : memref<1x32xf32, #tpu.memory_space<vmem>>, vector<1x32xf32>
    %92 = vector.broadcast %91 : vector<1x32xf32> to vector<4x32xf32>
    %93 = arith.addf %90, %92 : vector<4x32xf32>
    %cst_78 = arith.constant 0.000000e+00 : f32
    %94 = vector.broadcast %cst_78 : f32 to vector<4x32xf32>
    %95 = arith.maximumf %93, %94 : vector<4x32xf32>
    %96 = arith.truncf %95 : vector<4x32xf32> to vector<4x32xbf16>
    %c0_79 = arith.constant 0 : index
    %c0_80 = arith.constant 0 : index
    %97 = vector.load %arg9[%c0_79, %c0_80] : memref<32x128xbf16, #tpu.memory_space<vmem>>, vector<32x128xbf16>
    %cst_81 = arith.constant dense<0.000000e+00> : vector<4x128xf32>
    %98 = tpu.matmul %96, %97, %cst_81 {dimension_numbers = #tpu.dot_dimension_numbers<[1], [0], [0], [1], [0, 0, 1, 1], [], []>} : vector<4x32xbf16>, vector<32x128xbf16>, vector<4x128xf32> -> vector<4x128xf32>
    %c0_82 = arith.constant 0 : index
    %c0_83 = arith.constant 0 : index
    %99 = vector.load %arg10[%c0_82, %c0_83] : memref<1x128xf32, #tpu.memory_space<vmem>>, vector<1x128xf32>
    %100 = vector.broadcast %99 : vector<1x128xf32> to vector<4x128xf32>
    %101 = arith.addf %98, %100 : vector<4x128xf32>
    %c0_84 = arith.constant 0 : index
    %c0_85 = arith.constant 0 : index
    %102 = vector.load %arg11[%c0_84, %c0_85] : memref<4x16xbf16, #tpu.memory_space<vmem>>, vector<4x16xbf16>
    %cst_86 = arith.constant dense<0.000000e+00> : vector<4x128xf32>
    %103 = tpu.matmul %102, %11, %cst_86 {dimension_numbers = #tpu.dot_dimension_numbers<[1], [0], [0], [1], [0, 0, 1, 1], [], []>} : vector<4x16xbf16>, vector<16x128xbf16>, vector<4x128xf32> -> vector<4x128xf32>
    %104 = arith.addf %101, %103 : vector<4x128xf32>
    %105 = arith.truncf %104 : vector<4x128xf32> to vector<4x128xbf16>
    %c0_87 = arith.constant 0 : index
    %c0_88 = arith.constant 0 : index
    %c0_89 = arith.constant 0 : index
    %106 = vector.load %arg12[%c0_87, %c0_88, %c0_89] : memref<1x4x128xbf16, #tpu.memory_space<vmem>>, vector<1x4x128xbf16>
    %107 = vector.shape_cast %106 : vector<1x4x128xbf16> to vector<4x128xbf16>
    %108 = vector.shape_cast %105 : vector<4x128xbf16> to vector<1x4x128xbf16>
    tpu.vector_store %arg12[%c0_87, %c0_88, %c0_89], %108 {strides = array<i32>} : memref<1x4x128xbf16, #tpu.memory_space<vmem>>, vector<1x4x128xbf16>,
    return
  }
  func.func @transform_0(%arg0: i32) -> (i32, i32, i32) {
    %c0_i32 = arith.constant 0 : i32
    %c0_i32_0 = arith.constant 0 : i32
    %c0_i32_1 = arith.constant 0 : i32
    return %arg0, %c0_i32, %c0_i32_0 : i32, i32, i32
  }
  func.func @transform_1(%arg0: i32) -> (i32, i32) {
    %c0_i32 = arith.constant 0 : i32
    %c0_i32_0 = arith.constant 0 : i32
    %c0_i32_1 = arith.constant 0 : i32
    return %c0_i32, %c0_i32_0 : i32, i32
  }
  func.func @transform_2(%arg0: i32) -> (i32, i32) {
    %c0_i32 = arith.constant 0 : i32
    %c0_i32_0 = arith.constant 0 : i32
    %c0_i32_1 = arith.constant 0 : i32
    return %c0_i32, %c0_i32_0 : i32, i32
  }
  func.func @transform_3(%arg0: i32) -> (i32, i32) {
    %c0_i32 = arith.constant 0 : i32
    %c0_i32_0 = arith.constant 0 : i32
    %c0_i32_1 = arith.constant 0 : i32
    return %c0_i32, %c0_i32_0 : i32, i32
  }
  func.func @transform_4(%arg0: i32) -> (i32, i32) {
    %c0_i32 = arith.constant 0 : i32
    %c0_i32_0 = arith.constant 0 : i32
    %c0_i32_1 = arith.constant 0 : i32
    return %c0_i32, %c0_i32_0 : i32, i32
  }
  func.func @transform_5(%arg0: i32) -> (i32, i32, i32) {
    %c0_i32 = arith.constant 0 : i32
    %c0_i32_0 = arith.constant 0 : i32
    %c0_i32_1 = arith.constant 0 : i32
    %c0_i32_2 = arith.constant 0 : i32
    return %c0_i32, %c0_i32_0, %c0_i32_1 : i32, i32, i32
  }
  func.func @transform_6(%arg0: i32) -> (i32, i32, i32) {
    %c0_i32 = arith.constant 0 : i32
    %c0_i32_0 = arith.constant 0 : i32
    %c0_i32_1 = arith.constant 0 : i32
    %c0_i32_2 = arith.constant 0 : i32
    return %c0_i32, %c0_i32_0, %c0_i32_1 : i32, i32, i32
  }
  func.func @transform_7(%arg0: i32) -> (i32, i32) {
    %c0_i32 = arith.constant 0 : i32
    %c0_i32_0 = arith.constant 0 : i32
    %c0_i32_1 = arith.constant 0 : i32
    return %c0_i32, %c0_i32_0 : i32, i32
  }
  func.func @transform_8(%arg0: i32) -> (i32, i32) {
    %c0_i32 = arith.constant 0 : i32
    %c0_i32_0 = arith.constant 0 : i32
    %c0_i32_1 = arith.constant 0 : i32
    return %c0_i32, %c0_i32_0 : i32, i32
  }
  func.func @transform_9(%arg0: i32) -> (i32, i32) {
    %c0_i32 = arith.constant 0 : i32
    %c0_i32_0 = arith.constant 0 : i32
    %c0_i32_1 = arith.constant 0 : i32
    return %c0_i32, %c0_i32_0 : i32, i32
  }
  func.func @transform_10(%arg0: i32) -> (i32, i32) {
    %c0_i32 = arith.constant 0 : i32
    %c0_i32_0 = arith.constant 0 : i32
    %c0_i32_1 = arith.constant 0 : i32
    return %c0_i32, %c0_i32_0 : i32, i32
  }
  func.func @transform_11(%arg0: i32) -> (i32, i32, i32) {
    %c0_i32 = arith.constant 0 : i32
    %c0_i32_0 = arith.constant 0 : i32
    %c0_i32_1 = arith.constant 0 : i32
    return %arg0, %c0_i32, %c0_i32_0 : i32, i32, i32
  }
}

module attributes {stable_mosaic.version = 11 : i64} {
  func.func @_block_kernel(%arg0: i32, %arg1: memref<1x16x64xbf16, #tpu.memory_space<vmem>>, %arg2: memref<1x64xf32, #tpu.memory_space<vmem>>, %arg3: memref<1x64xf32, #tpu.memory_space<vmem>>, %arg4: memref<64x32xbf16, #tpu.memory_space<vmem>>, %arg5: memref<1x32xf32, #tpu.memory_space<vmem>>, %arg6: memref<9x16x16xbf16, #tpu.memory_space<vmem>>, %arg7: memref<9x32x32xbf16, #tpu.memory_space<vmem>>, %arg8: memref<1x32xf32, #tpu.memory_space<vmem>>, %arg9: memref<32x128xbf16, #tpu.memory_space<vmem>>, %arg10: memref<1x128xf32, #tpu.memory_space<vmem>>, %arg11: memref<64x128xbf16, #tpu.memory_space<vmem>>, %arg12: memref<1x16x128xbf16, #tpu.memory_space<vmem>>) attributes {dimension_semantics = [#tpu.dimension_semantics<parallel>], iteration_bounds = array<i64: 2>, scalar_prefetch = 0 : i64, scratch_operands = 0 : i64, tpu.core_type = #tpu.core_type<tc>, window_params = [{transform_indices = @transform_0, window_bounds = array<i64: 1, 16, 64>}, {pipeline_mode = #tpu.pipeline_mode<synchronous>, transform_indices = @transform_1, window_bounds = array<i64: 1, 64>}, {pipeline_mode = #tpu.pipeline_mode<synchronous>, transform_indices = @transform_2, window_bounds = array<i64: 1, 64>}, {pipeline_mode = #tpu.pipeline_mode<synchronous>, transform_indices = @transform_3, window_bounds = array<i64: 64, 32>}, {pipeline_mode = #tpu.pipeline_mode<synchronous>, transform_indices = @transform_4, window_bounds = array<i64: 1, 32>}, {pipeline_mode = #tpu.pipeline_mode<synchronous>, transform_indices = @transform_5, window_bounds = array<i64: 9, 16, 16>}, {pipeline_mode = #tpu.pipeline_mode<synchronous>, transform_indices = @transform_6, window_bounds = array<i64: 9, 32, 32>}, {pipeline_mode = #tpu.pipeline_mode<synchronous>, transform_indices = @transform_7, window_bounds = array<i64: 1, 32>}, {pipeline_mode = #tpu.pipeline_mode<synchronous>, transform_indices = @transform_8, window_bounds = array<i64: 32, 128>}, {pipeline_mode = #tpu.pipeline_mode<synchronous>, transform_indices = @transform_9, window_bounds = array<i64: 1, 128>}, {pipeline_mode = #tpu.pipeline_mode<synchronous>, transform_indices = @transform_10, window_bounds = array<i64: 64, 128>}, {transform_indices = @transform_11, window_bounds = array<i64: 1, 16, 128>}]} {
    %c0 = arith.constant 0 : index
    %c0_0 = arith.constant 0 : index
    %c0_1 = arith.constant 0 : index
    %0 = vector.load %arg1[%c0, %c0_0, %c0_1] : memref<1x16x64xbf16, #tpu.memory_space<vmem>>, vector<1x16x64xbf16>
    %1 = vector.shape_cast %0 : vector<1x16x64xbf16> to vector<16x64xbf16>
    %2 = arith.extf %1 : vector<16x64xbf16> to vector<16x64xf32>
    %c0_2 = arith.constant 0 : index
    %c0_3 = arith.constant 0 : index
    %3 = vector.load %arg2[%c0_2, %c0_3] : memref<1x64xf32, #tpu.memory_space<vmem>>, vector<1x64xf32>
    %4 = vector.broadcast %3 : vector<1x64xf32> to vector<16x64xf32>
    %5 = arith.mulf %2, %4 : vector<16x64xf32>
    %c0_4 = arith.constant 0 : index
    %c0_5 = arith.constant 0 : index
    %6 = vector.load %arg3[%c0_4, %c0_5] : memref<1x64xf32, #tpu.memory_space<vmem>>, vector<1x64xf32>
    %7 = vector.broadcast %6 : vector<1x64xf32> to vector<16x64xf32>
    %8 = arith.addf %5, %7 : vector<16x64xf32>
    %cst = arith.constant 0.000000e+00 : f32
    %9 = vector.broadcast %cst : f32 to vector<16x64xf32>
    %10 = arith.maximumf %8, %9 : vector<16x64xf32>
    %11 = arith.truncf %10 : vector<16x64xf32> to vector<16x64xbf16>
    %c0_6 = arith.constant 0 : index
    %c0_7 = arith.constant 0 : index
    %12 = vector.load %arg4[%c0_6, %c0_7] : memref<64x32xbf16, #tpu.memory_space<vmem>>, vector<64x32xbf16>
    %cst_8 = arith.constant dense<0.000000e+00> : vector<16x32xf32>
    %13 = tpu.matmul %11, %12, %cst_8 {dimension_numbers = #tpu.dot_dimension_numbers<[1], [0], [0], [1], [0, 0, 1, 1], [], []>} : vector<16x64xbf16>, vector<64x32xbf16>, vector<16x32xf32> -> vector<16x32xf32>
    %c0_9 = arith.constant 0 : index
    %c0_10 = arith.constant 0 : index
    %14 = vector.load %arg5[%c0_9, %c0_10] : memref<1x32xf32, #tpu.memory_space<vmem>>, vector<1x32xf32>
    %15 = vector.broadcast %14 : vector<1x32xf32> to vector<16x32xf32>
    %16 = arith.addf %13, %15 : vector<16x32xf32>
    %cst_11 = arith.constant 0.000000e+00 : f32
    %17 = vector.broadcast %cst_11 : f32 to vector<16x32xf32>
    %18 = arith.maximumf %16, %17 : vector<16x32xf32>
    %19 = arith.truncf %18 : vector<16x32xf32> to vector<16x32xbf16>
    %c0_12 = arith.constant 0 : index
    %c0_13 = arith.constant 0 : index
    %c0_14 = arith.constant 0 : index
    %20 = vector.load %arg6[%c0_12, %c0_13, %c0_14] : memref<9x16x16xbf16, #tpu.memory_space<vmem>>, vector<1x16x16xbf16>
    %21 = vector.shape_cast %20 : vector<1x16x16xbf16> to vector<16x16xbf16>
    %cst_15 = arith.constant dense<0.000000e+00> : vector<16x32xf32>
    %22 = tpu.matmul %21, %19, %cst_15 {dimension_numbers = #tpu.dot_dimension_numbers<[1], [0], [0], [1], [0, 0, 1, 1], [], []>} : vector<16x16xbf16>, vector<16x32xbf16>, vector<16x32xf32> -> vector<16x32xf32>
    %23 = arith.truncf %22 : vector<16x32xf32> to vector<16x32xbf16>
    %c0_16 = arith.constant 0 : index
    %c0_17 = arith.constant 0 : index
    %c0_18 = arith.constant 0 : index
    %24 = vector.load %arg7[%c0_16, %c0_17, %c0_18] : memref<9x32x32xbf16, #tpu.memory_space<vmem>>, vector<1x32x32xbf16>
    %25 = vector.shape_cast %24 : vector<1x32x32xbf16> to vector<32x32xbf16>
    %cst_19 = arith.constant dense<0.000000e+00> : vector<16x32xf32>
    %26 = tpu.matmul %23, %25, %cst_19 {dimension_numbers = #tpu.dot_dimension_numbers<[1], [0], [0], [1], [0, 0, 1, 1], [], []>} : vector<16x32xbf16>, vector<32x32xbf16>, vector<16x32xf32> -> vector<16x32xf32>
    %c1 = arith.constant 1 : index
    %c0_20 = arith.constant 0 : index
    %c0_21 = arith.constant 0 : index
    %27 = vector.load %arg6[%c1, %c0_20, %c0_21] : memref<9x16x16xbf16, #tpu.memory_space<vmem>>, vector<1x16x16xbf16>
    %28 = vector.shape_cast %27 : vector<1x16x16xbf16> to vector<16x16xbf16>
    %cst_22 = arith.constant dense<0.000000e+00> : vector<16x32xf32>
    %29 = tpu.matmul %28, %19, %cst_22 {dimension_numbers = #tpu.dot_dimension_numbers<[1], [0], [0], [1], [0, 0, 1, 1], [], []>} : vector<16x16xbf16>, vector<16x32xbf16>, vector<16x32xf32> -> vector<16x32xf32>
    %30 = arith.truncf %29 : vector<16x32xf32> to vector<16x32xbf16>
    %c1_23 = arith.constant 1 : index
    %c0_24 = arith.constant 0 : index
    %c0_25 = arith.constant 0 : index
    %31 = vector.load %arg7[%c1_23, %c0_24, %c0_25] : memref<9x32x32xbf16, #tpu.memory_space<vmem>>, vector<1x32x32xbf16>
    %32 = vector.shape_cast %31 : vector<1x32x32xbf16> to vector<32x32xbf16>
    %cst_26 = arith.constant dense<0.000000e+00> : vector<16x32xf32>
    %33 = tpu.matmul %30, %32, %cst_26 {dimension_numbers = #tpu.dot_dimension_numbers<[1], [0], [0], [1], [0, 0, 1, 1], [], []>} : vector<16x32xbf16>, vector<32x32xbf16>, vector<16x32xf32> -> vector<16x32xf32>
    %34 = arith.addf %26, %33 : vector<16x32xf32>
    %c2 = arith.constant 2 : index
    %c0_27 = arith.constant 0 : index
    %c0_28 = arith.constant 0 : index
    %35 = vector.load %arg6[%c2, %c0_27, %c0_28] : memref<9x16x16xbf16, #tpu.memory_space<vmem>>, vector<1x16x16xbf16>
    %36 = vector.shape_cast %35 : vector<1x16x16xbf16> to vector<16x16xbf16>
    %cst_29 = arith.constant dense<0.000000e+00> : vector<16x32xf32>
    %37 = tpu.matmul %36, %19, %cst_29 {dimension_numbers = #tpu.dot_dimension_numbers<[1], [0], [0], [1], [0, 0, 1, 1], [], []>} : vector<16x16xbf16>, vector<16x32xbf16>, vector<16x32xf32> -> vector<16x32xf32>
    %38 = arith.truncf %37 : vector<16x32xf32> to vector<16x32xbf16>
    %c2_30 = arith.constant 2 : index
    %c0_31 = arith.constant 0 : index
    %c0_32 = arith.constant 0 : index
    %39 = vector.load %arg7[%c2_30, %c0_31, %c0_32] : memref<9x32x32xbf16, #tpu.memory_space<vmem>>, vector<1x32x32xbf16>
    %40 = vector.shape_cast %39 : vector<1x32x32xbf16> to vector<32x32xbf16>
    %cst_33 = arith.constant dense<0.000000e+00> : vector<16x32xf32>
    %41 = tpu.matmul %38, %40, %cst_33 {dimension_numbers = #tpu.dot_dimension_numbers<[1], [0], [0], [1], [0, 0, 1, 1], [], []>} : vector<16x32xbf16>, vector<32x32xbf16>, vector<16x32xf32> -> vector<16x32xf32>
    %42 = arith.addf %34, %41 : vector<16x32xf32>
    %c3 = arith.constant 3 : index
    %c0_34 = arith.constant 0 : index
    %c0_35 = arith.constant 0 : index
    %43 = vector.load %arg6[%c3, %c0_34, %c0_35] : memref<9x16x16xbf16, #tpu.memory_space<vmem>>, vector<1x16x16xbf16>
    %44 = vector.shape_cast %43 : vector<1x16x16xbf16> to vector<16x16xbf16>
    %cst_36 = arith.constant dense<0.000000e+00> : vector<16x32xf32>
    %45 = tpu.matmul %44, %19, %cst_36 {dimension_numbers = #tpu.dot_dimension_numbers<[1], [0], [0], [1], [0, 0, 1, 1], [], []>} : vector<16x16xbf16>, vector<16x32xbf16>, vector<16x32xf32> -> vector<16x32xf32>
    %46 = arith.truncf %45 : vector<16x32xf32> to vector<16x32xbf16>
    %c3_37 = arith.constant 3 : index
    %c0_38 = arith.constant 0 : index
    %c0_39 = arith.constant 0 : index
    %47 = vector.load %arg7[%c3_37, %c0_38, %c0_39] : memref<9x32x32xbf16, #tpu.memory_space<vmem>>, vector<1x32x32xbf16>
    %48 = vector.shape_cast %47 : vector<1x32x32xbf16> to vector<32x32xbf16>
    %cst_40 = arith.constant dense<0.000000e+00> : vector<16x32xf32>
    %49 = tpu.matmul %46, %48, %cst_40 {dimension_numbers = #tpu.dot_dimension_numbers<[1], [0], [0], [1], [0, 0, 1, 1], [], []>} : vector<16x32xbf16>, vector<32x32xbf16>, vector<16x32xf32> -> vector<16x32xf32>
    %50 = arith.addf %42, %49 : vector<16x32xf32>
    %c4 = arith.constant 4 : index
    %c0_41 = arith.constant 0 : index
    %c0_42 = arith.constant 0 : index
    %51 = vector.load %arg6[%c4, %c0_41, %c0_42] : memref<9x16x16xbf16, #tpu.memory_space<vmem>>, vector<1x16x16xbf16>
    %52 = vector.shape_cast %51 : vector<1x16x16xbf16> to vector<16x16xbf16>
    %cst_43 = arith.constant dense<0.000000e+00> : vector<16x32xf32>
    %53 = tpu.matmul %52, %19, %cst_43 {dimension_numbers = #tpu.dot_dimension_numbers<[1], [0], [0], [1], [0, 0, 1, 1], [], []>} : vector<16x16xbf16>, vector<16x32xbf16>, vector<16x32xf32> -> vector<16x32xf32>
    %54 = arith.truncf %53 : vector<16x32xf32> to vector<16x32xbf16>
    %c4_44 = arith.constant 4 : index
    %c0_45 = arith.constant 0 : index
    %c0_46 = arith.constant 0 : index
    %55 = vector.load %arg7[%c4_44, %c0_45, %c0_46] : memref<9x32x32xbf16, #tpu.memory_space<vmem>>, vector<1x32x32xbf16>
    %56 = vector.shape_cast %55 : vector<1x32x32xbf16> to vector<32x32xbf16>
    %cst_47 = arith.constant dense<0.000000e+00> : vector<16x32xf32>
    %57 = tpu.matmul %54, %56, %cst_47 {dimension_numbers = #tpu.dot_dimension_numbers<[1], [0], [0], [1], [0, 0, 1, 1], [], []>} : vector<16x32xbf16>, vector<32x32xbf16>, vector<16x32xf32> -> vector<16x32xf32>
    %58 = arith.addf %50, %57 : vector<16x32xf32>
    %c5 = arith.constant 5 : index
    %c0_48 = arith.constant 0 : index
    %c0_49 = arith.constant 0 : index
    %59 = vector.load %arg6[%c5, %c0_48, %c0_49] : memref<9x16x16xbf16, #tpu.memory_space<vmem>>, vector<1x16x16xbf16>
    %60 = vector.shape_cast %59 : vector<1x16x16xbf16> to vector<16x16xbf16>
    %cst_50 = arith.constant dense<0.000000e+00> : vector<16x32xf32>
    %61 = tpu.matmul %60, %19, %cst_50 {dimension_numbers = #tpu.dot_dimension_numbers<[1], [0], [0], [1], [0, 0, 1, 1], [], []>} : vector<16x16xbf16>, vector<16x32xbf16>, vector<16x32xf32> -> vector<16x32xf32>
    %62 = arith.truncf %61 : vector<16x32xf32> to vector<16x32xbf16>
    %c5_51 = arith.constant 5 : index
    %c0_52 = arith.constant 0 : index
    %c0_53 = arith.constant 0 : index
    %63 = vector.load %arg7[%c5_51, %c0_52, %c0_53] : memref<9x32x32xbf16, #tpu.memory_space<vmem>>, vector<1x32x32xbf16>
    %64 = vector.shape_cast %63 : vector<1x32x32xbf16> to vector<32x32xbf16>
    %cst_54 = arith.constant dense<0.000000e+00> : vector<16x32xf32>
    %65 = tpu.matmul %62, %64, %cst_54 {dimension_numbers = #tpu.dot_dimension_numbers<[1], [0], [0], [1], [0, 0, 1, 1], [], []>} : vector<16x32xbf16>, vector<32x32xbf16>, vector<16x32xf32> -> vector<16x32xf32>
    %66 = arith.addf %58, %65 : vector<16x32xf32>
    %c6 = arith.constant 6 : index
    %c0_55 = arith.constant 0 : index
    %c0_56 = arith.constant 0 : index
    %67 = vector.load %arg6[%c6, %c0_55, %c0_56] : memref<9x16x16xbf16, #tpu.memory_space<vmem>>, vector<1x16x16xbf16>
    %68 = vector.shape_cast %67 : vector<1x16x16xbf16> to vector<16x16xbf16>
    %cst_57 = arith.constant dense<0.000000e+00> : vector<16x32xf32>
    %69 = tpu.matmul %68, %19, %cst_57 {dimension_numbers = #tpu.dot_dimension_numbers<[1], [0], [0], [1], [0, 0, 1, 1], [], []>} : vector<16x16xbf16>, vector<16x32xbf16>, vector<16x32xf32> -> vector<16x32xf32>
    %70 = arith.truncf %69 : vector<16x32xf32> to vector<16x32xbf16>
    %c6_58 = arith.constant 6 : index
    %c0_59 = arith.constant 0 : index
    %c0_60 = arith.constant 0 : index
    %71 = vector.load %arg7[%c6_58, %c0_59, %c0_60] : memref<9x32x32xbf16, #tpu.memory_space<vmem>>, vector<1x32x32xbf16>
    %72 = vector.shape_cast %71 : vector<1x32x32xbf16> to vector<32x32xbf16>
    %cst_61 = arith.constant dense<0.000000e+00> : vector<16x32xf32>
    %73 = tpu.matmul %70, %72, %cst_61 {dimension_numbers = #tpu.dot_dimension_numbers<[1], [0], [0], [1], [0, 0, 1, 1], [], []>} : vector<16x32xbf16>, vector<32x32xbf16>, vector<16x32xf32> -> vector<16x32xf32>
    %74 = arith.addf %66, %73 : vector<16x32xf32>
    %c7 = arith.constant 7 : index
    %c0_62 = arith.constant 0 : index
    %c0_63 = arith.constant 0 : index
    %75 = vector.load %arg6[%c7, %c0_62, %c0_63] : memref<9x16x16xbf16, #tpu.memory_space<vmem>>, vector<1x16x16xbf16>
    %76 = vector.shape_cast %75 : vector<1x16x16xbf16> to vector<16x16xbf16>
    %cst_64 = arith.constant dense<0.000000e+00> : vector<16x32xf32>
    %77 = tpu.matmul %76, %19, %cst_64 {dimension_numbers = #tpu.dot_dimension_numbers<[1], [0], [0], [1], [0, 0, 1, 1], [], []>} : vector<16x16xbf16>, vector<16x32xbf16>, vector<16x32xf32> -> vector<16x32xf32>
    %78 = arith.truncf %77 : vector<16x32xf32> to vector<16x32xbf16>
    %c7_65 = arith.constant 7 : index
    %c0_66 = arith.constant 0 : index
    %c0_67 = arith.constant 0 : index
    %79 = vector.load %arg7[%c7_65, %c0_66, %c0_67] : memref<9x32x32xbf16, #tpu.memory_space<vmem>>, vector<1x32x32xbf16>
    %80 = vector.shape_cast %79 : vector<1x32x32xbf16> to vector<32x32xbf16>
    %cst_68 = arith.constant dense<0.000000e+00> : vector<16x32xf32>
    %81 = tpu.matmul %78, %80, %cst_68 {dimension_numbers = #tpu.dot_dimension_numbers<[1], [0], [0], [1], [0, 0, 1, 1], [], []>} : vector<16x32xbf16>, vector<32x32xbf16>, vector<16x32xf32> -> vector<16x32xf32>
    %82 = arith.addf %74, %81 : vector<16x32xf32>
    %c8 = arith.constant 8 : index
    %c0_69 = arith.constant 0 : index
    %c0_70 = arith.constant 0 : index
    %83 = vector.load %arg6[%c8, %c0_69, %c0_70] : memref<9x16x16xbf16, #tpu.memory_space<vmem>>, vector<1x16x16xbf16>
    %84 = vector.shape_cast %83 : vector<1x16x16xbf16> to vector<16x16xbf16>
    %cst_71 = arith.constant dense<0.000000e+00> : vector<16x32xf32>
    %85 = tpu.matmul %84, %19, %cst_71 {dimension_numbers = #tpu.dot_dimension_numbers<[1], [0], [0], [1], [0, 0, 1, 1], [], []>} : vector<16x16xbf16>, vector<16x32xbf16>, vector<16x32xf32> -> vector<16x32xf32>
    %86 = arith.truncf %85 : vector<16x32xf32> to vector<16x32xbf16>
    %c8_72 = arith.constant 8 : index
    %c0_73 = arith.constant 0 : index
    %c0_74 = arith.constant 0 : index
    %87 = vector.load %arg7[%c8_72, %c0_73, %c0_74] : memref<9x32x32xbf16, #tpu.memory_space<vmem>>, vector<1x32x32xbf16>
    %88 = vector.shape_cast %87 : vector<1x32x32xbf16> to vector<32x32xbf16>
    %cst_75 = arith.constant dense<0.000000e+00> : vector<16x32xf32>
    %89 = tpu.matmul %86, %88, %cst_75 {dimension_numbers = #tpu.dot_dimension_numbers<[1], [0], [0], [1], [0, 0, 1, 1], [], []>} : vector<16x32xbf16>, vector<32x32xbf16>, vector<16x32xf32> -> vector<16x32xf32>
    %90 = arith.addf %82, %89 : vector<16x32xf32>
    %c0_76 = arith.constant 0 : index
    %c0_77 = arith.constant 0 : index
    %91 = vector.load %arg8[%c0_76, %c0_77] : memref<1x32xf32, #tpu.memory_space<vmem>>, vector<1x32xf32>
    %92 = vector.broadcast %91 : vector<1x32xf32> to vector<16x32xf32>
    %93 = arith.addf %90, %92 : vector<16x32xf32>
    %cst_78 = arith.constant 0.000000e+00 : f32
    %94 = vector.broadcast %cst_78 : f32 to vector<16x32xf32>
    %95 = arith.maximumf %93, %94 : vector<16x32xf32>
    %96 = arith.truncf %95 : vector<16x32xf32> to vector<16x32xbf16>
    %c0_79 = arith.constant 0 : index
    %c0_80 = arith.constant 0 : index
    %97 = vector.load %arg9[%c0_79, %c0_80] : memref<32x128xbf16, #tpu.memory_space<vmem>>, vector<32x128xbf16>
    %cst_81 = arith.constant dense<0.000000e+00> : vector<16x128xf32>
    %98 = tpu.matmul %96, %97, %cst_81 {dimension_numbers = #tpu.dot_dimension_numbers<[1], [0], [0], [1], [0, 0, 1, 1], [], []>} : vector<16x32xbf16>, vector<32x128xbf16>, vector<16x128xf32> -> vector<16x128xf32>
    %c0_82 = arith.constant 0 : index
    %c0_83 = arith.constant 0 : index
    %99 = vector.load %arg10[%c0_82, %c0_83] : memref<1x128xf32, #tpu.memory_space<vmem>>, vector<1x128xf32>
    %100 = vector.broadcast %99 : vector<1x128xf32> to vector<16x128xf32>
    %101 = arith.addf %98, %100 : vector<16x128xf32>
    %c0_84 = arith.constant 0 : index
    %c0_85 = arith.constant 0 : index
    %102 = vector.load %arg11[%c0_84, %c0_85] : memref<64x128xbf16, #tpu.memory_space<vmem>>, vector<64x128xbf16>
    %cst_86 = arith.constant dense<0.000000e+00> : vector<16x128xf32>
    %103 = tpu.matmul %11, %102, %cst_86 {dimension_numbers = #tpu.dot_dimension_numbers<[1], [0], [0], [1], [0, 0, 1, 1], [], []>} : vector<16x64xbf16>, vector<64x128xbf16>, vector<16x128xf32> -> vector<16x128xf32>
    %104 = arith.addf %101, %103 : vector<16x128xf32>
    %105 = arith.truncf %104 : vector<16x128xf32> to vector<16x128xbf16>
    %c0_87 = arith.constant 0 : index
    %c0_88 = arith.constant 0 : index
    %c0_89 = arith.constant 0 : index
    %106 = vector.load %arg12[%c0_87, %c0_88, %c0_89] : memref<1x16x128xbf16, #tpu.memory_space<vmem>>, vector<1x16x128xbf16>
    %107 = vector.shape_cast %106 : vector<1x16x128xbf16> to vector<16x128xbf16>
    %108 = vector.shape_cast %105 : vector<16x128xbf16> to vector<1x16x128xbf16>
    tpu.vector_store %arg12[%c0_87, %c0_88, %c0_89], %108 {strides = array<i32>} : memref<1x16x128xbf16, #tpu.memory_space<vmem>>, vector<1x16x128xbf16>,
    return
  }
  func.func @transform_0(%arg0: i32) -> (i32, i32, i32) {
    %c0_i32 = arith.constant 0 : i32
    %c0_i32_0 = arith.constant 0 : i32
    %c0_i32_1 = arith.constant 0 : i32
    return %arg0, %c0_i32, %c0_i32_0 : i32, i32, i32
  }
  func.func @transform_1(%arg0: i32) -> (i32, i32) {
    %c0_i32 = arith.constant 0 : i32
    %c0_i32_0 = arith.constant 0 : i32
    %c0_i32_1 = arith.constant 0 : i32
    return %c0_i32, %c0_i32_0 : i32, i32
  }
  func.func @transform_2(%arg0: i32) -> (i32, i32) {
    %c0_i32 = arith.constant 0 : i32
    %c0_i32_0 = arith.constant 0 : i32
    %c0_i32_1 = arith.constant 0 : i32
    return %c0_i32, %c0_i32_0 : i32, i32
  }
  func.func @transform_3(%arg0: i32) -> (i32, i32) {
    %c0_i32 = arith.constant 0 : i32
    %c0_i32_0 = arith.constant 0 : i32
    %c0_i32_1 = arith.constant 0 : i32
    return %c0_i32, %c0_i32_0 : i32, i32
  }
  func.func @transform_4(%arg0: i32) -> (i32, i32) {
    %c0_i32 = arith.constant 0 : i32
    %c0_i32_0 = arith.constant 0 : i32
    %c0_i32_1 = arith.constant 0 : i32
    return %c0_i32, %c0_i32_0 : i32, i32
  }
  func.func @transform_5(%arg0: i32) -> (i32, i32, i32) {
    %c0_i32 = arith.constant 0 : i32
    %c0_i32_0 = arith.constant 0 : i32
    %c0_i32_1 = arith.constant 0 : i32
    %c0_i32_2 = arith.constant 0 : i32
    return %c0_i32, %c0_i32_0, %c0_i32_1 : i32, i32, i32
  }
  func.func @transform_6(%arg0: i32) -> (i32, i32, i32) {
    %c0_i32 = arith.constant 0 : i32
    %c0_i32_0 = arith.constant 0 : i32
    %c0_i32_1 = arith.constant 0 : i32
    %c0_i32_2 = arith.constant 0 : i32
    return %c0_i32, %c0_i32_0, %c0_i32_1 : i32, i32, i32
  }
  func.func @transform_7(%arg0: i32) -> (i32, i32) {
    %c0_i32 = arith.constant 0 : i32
    %c0_i32_0 = arith.constant 0 : i32
    %c0_i32_1 = arith.constant 0 : i32
    return %c0_i32, %c0_i32_0 : i32, i32
  }
  func.func @transform_8(%arg0: i32) -> (i32, i32) {
    %c0_i32 = arith.constant 0 : i32
    %c0_i32_0 = arith.constant 0 : i32
    %c0_i32_1 = arith.constant 0 : i32
    return %c0_i32, %c0_i32_0 : i32, i32
  }
  func.func @transform_9(%arg0: i32) -> (i32, i32) {
    %c0_i32 = arith.constant 0 : i32
    %c0_i32_0 = arith.constant 0 : i32
    %c0_i32_1 = arith.constant 0 : i32
    return %c0_i32, %c0_i32_0 : i32, i32
  }
  func.func @transform_10(%arg0: i32) -> (i32, i32) {
    %c0_i32 = arith.constant 0 : i32
    %c0_i32_0 = arith.constant 0 : i32
    %c0_i32_1 = arith.constant 0 : i32
    return %c0_i32, %c0_i32_0 : i32, i32
  }
  func.func @transform_11(%arg0: i32) -> (i32, i32, i32) {
    %c0_i32 = arith.constant 0 : i32
    %c0_i32_0 = arith.constant 0 : i32
    %c0_i32_1 = arith.constant 0 : i32
    return %arg0, %c0_i32, %c0_i32_0 : i32, i32, i32
  }
}

module attributes {stable_mosaic.version = 11 : i64} {
  func.func @_block_kernel(%arg0: i32, %arg1: memref<1x4x128xbf16, #tpu.memory_space<vmem>>, %arg2: memref<1x128xf32, #tpu.memory_space<vmem>>, %arg3: memref<1x128xf32, #tpu.memory_space<vmem>>, %arg4: memref<128x64xbf16, #tpu.memory_space<vmem>>, %arg5: memref<1x64xf32, #tpu.memory_space<vmem>>, %arg6: memref<9x4x4xbf16, #tpu.memory_space<vmem>>, %arg7: memref<9x64x64xbf16, #tpu.memory_space<vmem>>, %arg8: memref<1x64xf32, #tpu.memory_space<vmem>>, %arg9: memref<64x256xbf16, #tpu.memory_space<vmem>>, %arg10: memref<1x256xf32, #tpu.memory_space<vmem>>, %arg11: memref<128x256xbf16, #tpu.memory_space<vmem>>, %arg12: memref<1x4x256xbf16, #tpu.memory_space<vmem>>) attributes {dimension_semantics = [#tpu.dimension_semantics<parallel>], iteration_bounds = array<i64: 2>, scalar_prefetch = 0 : i64, scratch_operands = 0 : i64, tpu.core_type = #tpu.core_type<tc>, window_params = [{transform_indices = @transform_0, window_bounds = array<i64: 1, 4, 128>}, {pipeline_mode = #tpu.pipeline_mode<synchronous>, transform_indices = @transform_1, window_bounds = array<i64: 1, 128>}, {pipeline_mode = #tpu.pipeline_mode<synchronous>, transform_indices = @transform_2, window_bounds = array<i64: 1, 128>}, {pipeline_mode = #tpu.pipeline_mode<synchronous>, transform_indices = @transform_3, window_bounds = array<i64: 128, 64>}, {pipeline_mode = #tpu.pipeline_mode<synchronous>, transform_indices = @transform_4, window_bounds = array<i64: 1, 64>}, {pipeline_mode = #tpu.pipeline_mode<synchronous>, transform_indices = @transform_5, window_bounds = array<i64: 9, 4, 4>}, {pipeline_mode = #tpu.pipeline_mode<synchronous>, transform_indices = @transform_6, window_bounds = array<i64: 9, 64, 64>}, {pipeline_mode = #tpu.pipeline_mode<synchronous>, transform_indices = @transform_7, window_bounds = array<i64: 1, 64>}, {pipeline_mode = #tpu.pipeline_mode<synchronous>, transform_indices = @transform_8, window_bounds = array<i64: 64, 256>}, {pipeline_mode = #tpu.pipeline_mode<synchronous>, transform_indices = @transform_9, window_bounds = array<i64: 1, 256>}, {pipeline_mode = #tpu.pipeline_mode<synchronous>, transform_indices = @transform_10, window_bounds = array<i64: 128, 256>}, {transform_indices = @transform_11, window_bounds = array<i64: 1, 4, 256>}]} {
    %c0 = arith.constant 0 : index
    %c0_0 = arith.constant 0 : index
    %c0_1 = arith.constant 0 : index
    %0 = vector.load %arg1[%c0, %c0_0, %c0_1] : memref<1x4x128xbf16, #tpu.memory_space<vmem>>, vector<1x4x128xbf16>
    %1 = vector.shape_cast %0 : vector<1x4x128xbf16> to vector<4x128xbf16>
    %2 = arith.extf %1 : vector<4x128xbf16> to vector<4x128xf32>
    %c0_2 = arith.constant 0 : index
    %c0_3 = arith.constant 0 : index
    %3 = vector.load %arg2[%c0_2, %c0_3] : memref<1x128xf32, #tpu.memory_space<vmem>>, vector<1x128xf32>
    %4 = vector.broadcast %3 : vector<1x128xf32> to vector<4x128xf32>
    %5 = arith.mulf %2, %4 : vector<4x128xf32>
    %c0_4 = arith.constant 0 : index
    %c0_5 = arith.constant 0 : index
    %6 = vector.load %arg3[%c0_4, %c0_5] : memref<1x128xf32, #tpu.memory_space<vmem>>, vector<1x128xf32>
    %7 = vector.broadcast %6 : vector<1x128xf32> to vector<4x128xf32>
    %8 = arith.addf %5, %7 : vector<4x128xf32>
    %cst = arith.constant 0.000000e+00 : f32
    %9 = vector.broadcast %cst : f32 to vector<4x128xf32>
    %10 = arith.maximumf %8, %9 : vector<4x128xf32>
    %11 = arith.truncf %10 : vector<4x128xf32> to vector<4x128xbf16>
    %c0_6 = arith.constant 0 : index
    %c0_7 = arith.constant 0 : index
    %12 = vector.load %arg4[%c0_6, %c0_7] : memref<128x64xbf16, #tpu.memory_space<vmem>>, vector<128x64xbf16>
    %cst_8 = arith.constant dense<0.000000e+00> : vector<4x64xf32>
    %13 = tpu.matmul %11, %12, %cst_8 {dimension_numbers = #tpu.dot_dimension_numbers<[1], [0], [0], [1], [0, 0, 1, 1], [], []>} : vector<4x128xbf16>, vector<128x64xbf16>, vector<4x64xf32> -> vector<4x64xf32>
    %c0_9 = arith.constant 0 : index
    %c0_10 = arith.constant 0 : index
    %14 = vector.load %arg5[%c0_9, %c0_10] : memref<1x64xf32, #tpu.memory_space<vmem>>, vector<1x64xf32>
    %15 = vector.broadcast %14 : vector<1x64xf32> to vector<4x64xf32>
    %16 = arith.addf %13, %15 : vector<4x64xf32>
    %cst_11 = arith.constant 0.000000e+00 : f32
    %17 = vector.broadcast %cst_11 : f32 to vector<4x64xf32>
    %18 = arith.maximumf %16, %17 : vector<4x64xf32>
    %19 = arith.truncf %18 : vector<4x64xf32> to vector<4x64xbf16>
    %c0_12 = arith.constant 0 : index
    %c0_13 = arith.constant 0 : index
    %c0_14 = arith.constant 0 : index
    %20 = vector.load %arg6[%c0_12, %c0_13, %c0_14] : memref<9x4x4xbf16, #tpu.memory_space<vmem>>, vector<1x4x4xbf16>
    %21 = vector.shape_cast %20 : vector<1x4x4xbf16> to vector<4x4xbf16>
    %cst_15 = arith.constant dense<0.000000e+00> : vector<4x64xf32>
    %22 = tpu.matmul %21, %19, %cst_15 {dimension_numbers = #tpu.dot_dimension_numbers<[1], [0], [0], [1], [0, 0, 1, 1], [], []>} : vector<4x4xbf16>, vector<4x64xbf16>, vector<4x64xf32> -> vector<4x64xf32>
    %23 = arith.truncf %22 : vector<4x64xf32> to vector<4x64xbf16>
    %c0_16 = arith.constant 0 : index
    %c0_17 = arith.constant 0 : index
    %c0_18 = arith.constant 0 : index
    %24 = vector.load %arg7[%c0_16, %c0_17, %c0_18] : memref<9x64x64xbf16, #tpu.memory_space<vmem>>, vector<1x64x64xbf16>
    %25 = vector.shape_cast %24 : vector<1x64x64xbf16> to vector<64x64xbf16>
    %cst_19 = arith.constant dense<0.000000e+00> : vector<4x64xf32>
    %26 = tpu.matmul %23, %25, %cst_19 {dimension_numbers = #tpu.dot_dimension_numbers<[1], [0], [0], [1], [0, 0, 1, 1], [], []>} : vector<4x64xbf16>, vector<64x64xbf16>, vector<4x64xf32> -> vector<4x64xf32>
    %c1 = arith.constant 1 : index
    %c0_20 = arith.constant 0 : index
    %c0_21 = arith.constant 0 : index
    %27 = vector.load %arg6[%c1, %c0_20, %c0_21] : memref<9x4x4xbf16, #tpu.memory_space<vmem>>, vector<1x4x4xbf16>
    %28 = vector.shape_cast %27 : vector<1x4x4xbf16> to vector<4x4xbf16>
    %cst_22 = arith.constant dense<0.000000e+00> : vector<4x64xf32>
    %29 = tpu.matmul %28, %19, %cst_22 {dimension_numbers = #tpu.dot_dimension_numbers<[1], [0], [0], [1], [0, 0, 1, 1], [], []>} : vector<4x4xbf16>, vector<4x64xbf16>, vector<4x64xf32> -> vector<4x64xf32>
    %30 = arith.truncf %29 : vector<4x64xf32> to vector<4x64xbf16>
    %c1_23 = arith.constant 1 : index
    %c0_24 = arith.constant 0 : index
    %c0_25 = arith.constant 0 : index
    %31 = vector.load %arg7[%c1_23, %c0_24, %c0_25] : memref<9x64x64xbf16, #tpu.memory_space<vmem>>, vector<1x64x64xbf16>
    %32 = vector.shape_cast %31 : vector<1x64x64xbf16> to vector<64x64xbf16>
    %cst_26 = arith.constant dense<0.000000e+00> : vector<4x64xf32>
    %33 = tpu.matmul %30, %32, %cst_26 {dimension_numbers = #tpu.dot_dimension_numbers<[1], [0], [0], [1], [0, 0, 1, 1], [], []>} : vector<4x64xbf16>, vector<64x64xbf16>, vector<4x64xf32> -> vector<4x64xf32>
    %34 = arith.addf %26, %33 : vector<4x64xf32>
    %c2 = arith.constant 2 : index
    %c0_27 = arith.constant 0 : index
    %c0_28 = arith.constant 0 : index
    %35 = vector.load %arg6[%c2, %c0_27, %c0_28] : memref<9x4x4xbf16, #tpu.memory_space<vmem>>, vector<1x4x4xbf16>
    %36 = vector.shape_cast %35 : vector<1x4x4xbf16> to vector<4x4xbf16>
    %cst_29 = arith.constant dense<0.000000e+00> : vector<4x64xf32>
    %37 = tpu.matmul %36, %19, %cst_29 {dimension_numbers = #tpu.dot_dimension_numbers<[1], [0], [0], [1], [0, 0, 1, 1], [], []>} : vector<4x4xbf16>, vector<4x64xbf16>, vector<4x64xf32> -> vector<4x64xf32>
    %38 = arith.truncf %37 : vector<4x64xf32> to vector<4x64xbf16>
    %c2_30 = arith.constant 2 : index
    %c0_31 = arith.constant 0 : index
    %c0_32 = arith.constant 0 : index
    %39 = vector.load %arg7[%c2_30, %c0_31, %c0_32] : memref<9x64x64xbf16, #tpu.memory_space<vmem>>, vector<1x64x64xbf16>
    %40 = vector.shape_cast %39 : vector<1x64x64xbf16> to vector<64x64xbf16>
    %cst_33 = arith.constant dense<0.000000e+00> : vector<4x64xf32>
    %41 = tpu.matmul %38, %40, %cst_33 {dimension_numbers = #tpu.dot_dimension_numbers<[1], [0], [0], [1], [0, 0, 1, 1], [], []>} : vector<4x64xbf16>, vector<64x64xbf16>, vector<4x64xf32> -> vector<4x64xf32>
    %42 = arith.addf %34, %41 : vector<4x64xf32>
    %c3 = arith.constant 3 : index
    %c0_34 = arith.constant 0 : index
    %c0_35 = arith.constant 0 : index
    %43 = vector.load %arg6[%c3, %c0_34, %c0_35] : memref<9x4x4xbf16, #tpu.memory_space<vmem>>, vector<1x4x4xbf16>
    %44 = vector.shape_cast %43 : vector<1x4x4xbf16> to vector<4x4xbf16>
    %cst_36 = arith.constant dense<0.000000e+00> : vector<4x64xf32>
    %45 = tpu.matmul %44, %19, %cst_36 {dimension_numbers = #tpu.dot_dimension_numbers<[1], [0], [0], [1], [0, 0, 1, 1], [], []>} : vector<4x4xbf16>, vector<4x64xbf16>, vector<4x64xf32> -> vector<4x64xf32>
    %46 = arith.truncf %45 : vector<4x64xf32> to vector<4x64xbf16>
    %c3_37 = arith.constant 3 : index
    %c0_38 = arith.constant 0 : index
    %c0_39 = arith.constant 0 : index
    %47 = vector.load %arg7[%c3_37, %c0_38, %c0_39] : memref<9x64x64xbf16, #tpu.memory_space<vmem>>, vector<1x64x64xbf16>
    %48 = vector.shape_cast %47 : vector<1x64x64xbf16> to vector<64x64xbf16>
    %cst_40 = arith.constant dense<0.000000e+00> : vector<4x64xf32>
    %49 = tpu.matmul %46, %48, %cst_40 {dimension_numbers = #tpu.dot_dimension_numbers<[1], [0], [0], [1], [0, 0, 1, 1], [], []>} : vector<4x64xbf16>, vector<64x64xbf16>, vector<4x64xf32> -> vector<4x64xf32>
    %50 = arith.addf %42, %49 : vector<4x64xf32>
    %c4 = arith.constant 4 : index
    %c0_41 = arith.constant 0 : index
    %c0_42 = arith.constant 0 : index
    %51 = vector.load %arg6[%c4, %c0_41, %c0_42] : memref<9x4x4xbf16, #tpu.memory_space<vmem>>, vector<1x4x4xbf16>
    %52 = vector.shape_cast %51 : vector<1x4x4xbf16> to vector<4x4xbf16>
    %cst_43 = arith.constant dense<0.000000e+00> : vector<4x64xf32>
    %53 = tpu.matmul %52, %19, %cst_43 {dimension_numbers = #tpu.dot_dimension_numbers<[1], [0], [0], [1], [0, 0, 1, 1], [], []>} : vector<4x4xbf16>, vector<4x64xbf16>, vector<4x64xf32> -> vector<4x64xf32>
    %54 = arith.truncf %53 : vector<4x64xf32> to vector<4x64xbf16>
    %c4_44 = arith.constant 4 : index
    %c0_45 = arith.constant 0 : index
    %c0_46 = arith.constant 0 : index
    %55 = vector.load %arg7[%c4_44, %c0_45, %c0_46] : memref<9x64x64xbf16, #tpu.memory_space<vmem>>, vector<1x64x64xbf16>
    %56 = vector.shape_cast %55 : vector<1x64x64xbf16> to vector<64x64xbf16>
    %cst_47 = arith.constant dense<0.000000e+00> : vector<4x64xf32>
    %57 = tpu.matmul %54, %56, %cst_47 {dimension_numbers = #tpu.dot_dimension_numbers<[1], [0], [0], [1], [0, 0, 1, 1], [], []>} : vector<4x64xbf16>, vector<64x64xbf16>, vector<4x64xf32> -> vector<4x64xf32>
    %58 = arith.addf %50, %57 : vector<4x64xf32>
    %c5 = arith.constant 5 : index
    %c0_48 = arith.constant 0 : index
    %c0_49 = arith.constant 0 : index
    %59 = vector.load %arg6[%c5, %c0_48, %c0_49] : memref<9x4x4xbf16, #tpu.memory_space<vmem>>, vector<1x4x4xbf16>
    %60 = vector.shape_cast %59 : vector<1x4x4xbf16> to vector<4x4xbf16>
    %cst_50 = arith.constant dense<0.000000e+00> : vector<4x64xf32>
    %61 = tpu.matmul %60, %19, %cst_50 {dimension_numbers = #tpu.dot_dimension_numbers<[1], [0], [0], [1], [0, 0, 1, 1], [], []>} : vector<4x4xbf16>, vector<4x64xbf16>, vector<4x64xf32> -> vector<4x64xf32>
    %62 = arith.truncf %61 : vector<4x64xf32> to vector<4x64xbf16>
    %c5_51 = arith.constant 5 : index
    %c0_52 = arith.constant 0 : index
    %c0_53 = arith.constant 0 : index
    %63 = vector.load %arg7[%c5_51, %c0_52, %c0_53] : memref<9x64x64xbf16, #tpu.memory_space<vmem>>, vector<1x64x64xbf16>
    %64 = vector.shape_cast %63 : vector<1x64x64xbf16> to vector<64x64xbf16>
    %cst_54 = arith.constant dense<0.000000e+00> : vector<4x64xf32>
    %65 = tpu.matmul %62, %64, %cst_54 {dimension_numbers = #tpu.dot_dimension_numbers<[1], [0], [0], [1], [0, 0, 1, 1], [], []>} : vector<4x64xbf16>, vector<64x64xbf16>, vector<4x64xf32> -> vector<4x64xf32>
    %66 = arith.addf %58, %65 : vector<4x64xf32>
    %c6 = arith.constant 6 : index
    %c0_55 = arith.constant 0 : index
    %c0_56 = arith.constant 0 : index
    %67 = vector.load %arg6[%c6, %c0_55, %c0_56] : memref<9x4x4xbf16, #tpu.memory_space<vmem>>, vector<1x4x4xbf16>
    %68 = vector.shape_cast %67 : vector<1x4x4xbf16> to vector<4x4xbf16>
    %cst_57 = arith.constant dense<0.000000e+00> : vector<4x64xf32>
    %69 = tpu.matmul %68, %19, %cst_57 {dimension_numbers = #tpu.dot_dimension_numbers<[1], [0], [0], [1], [0, 0, 1, 1], [], []>} : vector<4x4xbf16>, vector<4x64xbf16>, vector<4x64xf32> -> vector<4x64xf32>
    %70 = arith.truncf %69 : vector<4x64xf32> to vector<4x64xbf16>
    %c6_58 = arith.constant 6 : index
    %c0_59 = arith.constant 0 : index
    %c0_60 = arith.constant 0 : index
    %71 = vector.load %arg7[%c6_58, %c0_59, %c0_60] : memref<9x64x64xbf16, #tpu.memory_space<vmem>>, vector<1x64x64xbf16>
    %72 = vector.shape_cast %71 : vector<1x64x64xbf16> to vector<64x64xbf16>
    %cst_61 = arith.constant dense<0.000000e+00> : vector<4x64xf32>
    %73 = tpu.matmul %70, %72, %cst_61 {dimension_numbers = #tpu.dot_dimension_numbers<[1], [0], [0], [1], [0, 0, 1, 1], [], []>} : vector<4x64xbf16>, vector<64x64xbf16>, vector<4x64xf32> -> vector<4x64xf32>
    %74 = arith.addf %66, %73 : vector<4x64xf32>
    %c7 = arith.constant 7 : index
    %c0_62 = arith.constant 0 : index
    %c0_63 = arith.constant 0 : index
    %75 = vector.load %arg6[%c7, %c0_62, %c0_63] : memref<9x4x4xbf16, #tpu.memory_space<vmem>>, vector<1x4x4xbf16>
    %76 = vector.shape_cast %75 : vector<1x4x4xbf16> to vector<4x4xbf16>
    %cst_64 = arith.constant dense<0.000000e+00> : vector<4x64xf32>
    %77 = tpu.matmul %76, %19, %cst_64 {dimension_numbers = #tpu.dot_dimension_numbers<[1], [0], [0], [1], [0, 0, 1, 1], [], []>} : vector<4x4xbf16>, vector<4x64xbf16>, vector<4x64xf32> -> vector<4x64xf32>
    %78 = arith.truncf %77 : vector<4x64xf32> to vector<4x64xbf16>
    %c7_65 = arith.constant 7 : index
    %c0_66 = arith.constant 0 : index
    %c0_67 = arith.constant 0 : index
    %79 = vector.load %arg7[%c7_65, %c0_66, %c0_67] : memref<9x64x64xbf16, #tpu.memory_space<vmem>>, vector<1x64x64xbf16>
    %80 = vector.shape_cast %79 : vector<1x64x64xbf16> to vector<64x64xbf16>
    %cst_68 = arith.constant dense<0.000000e+00> : vector<4x64xf32>
    %81 = tpu.matmul %78, %80, %cst_68 {dimension_numbers = #tpu.dot_dimension_numbers<[1], [0], [0], [1], [0, 0, 1, 1], [], []>} : vector<4x64xbf16>, vector<64x64xbf16>, vector<4x64xf32> -> vector<4x64xf32>
    %82 = arith.addf %74, %81 : vector<4x64xf32>
    %c8 = arith.constant 8 : index
    %c0_69 = arith.constant 0 : index
    %c0_70 = arith.constant 0 : index
    %83 = vector.load %arg6[%c8, %c0_69, %c0_70] : memref<9x4x4xbf16, #tpu.memory_space<vmem>>, vector<1x4x4xbf16>
    %84 = vector.shape_cast %83 : vector<1x4x4xbf16> to vector<4x4xbf16>
    %cst_71 = arith.constant dense<0.000000e+00> : vector<4x64xf32>
    %85 = tpu.matmul %84, %19, %cst_71 {dimension_numbers = #tpu.dot_dimension_numbers<[1], [0], [0], [1], [0, 0, 1, 1], [], []>} : vector<4x4xbf16>, vector<4x64xbf16>, vector<4x64xf32> -> vector<4x64xf32>
    %86 = arith.truncf %85 : vector<4x64xf32> to vector<4x64xbf16>
    %c8_72 = arith.constant 8 : index
    %c0_73 = arith.constant 0 : index
    %c0_74 = arith.constant 0 : index
    %87 = vector.load %arg7[%c8_72, %c0_73, %c0_74] : memref<9x64x64xbf16, #tpu.memory_space<vmem>>, vector<1x64x64xbf16>
    %88 = vector.shape_cast %87 : vector<1x64x64xbf16> to vector<64x64xbf16>
    %cst_75 = arith.constant dense<0.000000e+00> : vector<4x64xf32>
    %89 = tpu.matmul %86, %88, %cst_75 {dimension_numbers = #tpu.dot_dimension_numbers<[1], [0], [0], [1], [0, 0, 1, 1], [], []>} : vector<4x64xbf16>, vector<64x64xbf16>, vector<4x64xf32> -> vector<4x64xf32>
    %90 = arith.addf %82, %89 : vector<4x64xf32>
    %c0_76 = arith.constant 0 : index
    %c0_77 = arith.constant 0 : index
    %91 = vector.load %arg8[%c0_76, %c0_77] : memref<1x64xf32, #tpu.memory_space<vmem>>, vector<1x64xf32>
    %92 = vector.broadcast %91 : vector<1x64xf32> to vector<4x64xf32>
    %93 = arith.addf %90, %92 : vector<4x64xf32>
    %cst_78 = arith.constant 0.000000e+00 : f32
    %94 = vector.broadcast %cst_78 : f32 to vector<4x64xf32>
    %95 = arith.maximumf %93, %94 : vector<4x64xf32>
    %96 = arith.truncf %95 : vector<4x64xf32> to vector<4x64xbf16>
    %c0_79 = arith.constant 0 : index
    %c0_80 = arith.constant 0 : index
    %97 = vector.load %arg9[%c0_79, %c0_80] : memref<64x256xbf16, #tpu.memory_space<vmem>>, vector<64x256xbf16>
    %cst_81 = arith.constant dense<0.000000e+00> : vector<4x256xf32>
    %98 = tpu.matmul %96, %97, %cst_81 {dimension_numbers = #tpu.dot_dimension_numbers<[1], [0], [0], [1], [0, 0, 1, 1], [], []>} : vector<4x64xbf16>, vector<64x256xbf16>, vector<4x256xf32> -> vector<4x256xf32>
    %c0_82 = arith.constant 0 : index
    %c0_83 = arith.constant 0 : index
    %99 = vector.load %arg10[%c0_82, %c0_83] : memref<1x256xf32, #tpu.memory_space<vmem>>, vector<1x256xf32>
    %100 = vector.broadcast %99 : vector<1x256xf32> to vector<4x256xf32>
    %101 = arith.addf %98, %100 : vector<4x256xf32>
    %c0_84 = arith.constant 0 : index
    %c0_85 = arith.constant 0 : index
    %102 = vector.load %arg11[%c0_84, %c0_85] : memref<128x256xbf16, #tpu.memory_space<vmem>>, vector<128x256xbf16>
    %cst_86 = arith.constant dense<0.000000e+00> : vector<4x256xf32>
    %103 = tpu.matmul %11, %102, %cst_86 {dimension_numbers = #tpu.dot_dimension_numbers<[1], [0], [0], [1], [0, 0, 1, 1], [], []>} : vector<4x128xbf16>, vector<128x256xbf16>, vector<4x256xf32> -> vector<4x256xf32>
    %104 = arith.addf %101, %103 : vector<4x256xf32>
    %105 = arith.truncf %104 : vector<4x256xf32> to vector<4x256xbf16>
    %c0_87 = arith.constant 0 : index
    %c0_88 = arith.constant 0 : index
    %c0_89 = arith.constant 0 : index
    %106 = vector.load %arg12[%c0_87, %c0_88, %c0_89] : memref<1x4x256xbf16, #tpu.memory_space<vmem>>, vector<1x4x256xbf16>
    %107 = vector.shape_cast %106 : vector<1x4x256xbf16> to vector<4x256xbf16>
    %108 = vector.shape_cast %105 : vector<4x256xbf16> to vector<1x4x256xbf16>
    tpu.vector_store %arg12[%c0_87, %c0_88, %c0_89], %108 {strides = array<i32>} : memref<1x4x256xbf16, #tpu.memory_space<vmem>>, vector<1x4x256xbf16>,
    return
  }
  func.func @transform_0(%arg0: i32) -> (i32, i32, i32) {
    %c0_i32 = arith.constant 0 : i32
    %c0_i32_0 = arith.constant 0 : i32
    %c0_i32_1 = arith.constant 0 : i32
    return %arg0, %c0_i32, %c0_i32_0 : i32, i32, i32
  }
  func.func @transform_1(%arg0: i32) -> (i32, i32) {
    %c0_i32 = arith.constant 0 : i32
    %c0_i32_0 = arith.constant 0 : i32
    %c0_i32_1 = arith.constant 0 : i32
    return %c0_i32, %c0_i32_0 : i32, i32
  }
  func.func @transform_2(%arg0: i32) -> (i32, i32) {
    %c0_i32 = arith.constant 0 : i32
    %c0_i32_0 = arith.constant 0 : i32
    %c0_i32_1 = arith.constant 0 : i32
    return %c0_i32, %c0_i32_0 : i32, i32
  }
  func.func @transform_3(%arg0: i32) -> (i32, i32) {
    %c0_i32 = arith.constant 0 : i32
    %c0_i32_0 = arith.constant 0 : i32
    %c0_i32_1 = arith.constant 0 : i32
    return %c0_i32, %c0_i32_0 : i32, i32
  }
  func.func @transform_4(%arg0: i32) -> (i32, i32) {
    %c0_i32 = arith.constant 0 : i32
    %c0_i32_0 = arith.constant 0 : i32
    %c0_i32_1 = arith.constant 0 : i32
    return %c0_i32, %c0_i32_0 : i32, i32
  }
  func.func @transform_5(%arg0: i32) -> (i32, i32, i32) {
    %c0_i32 = arith.constant 0 : i32
    %c0_i32_0 = arith.constant 0 : i32
    %c0_i32_1 = arith.constant 0 : i32
    %c0_i32_2 = arith.constant 0 : i32
    return %c0_i32, %c0_i32_0, %c0_i32_1 : i32, i32, i32
  }
  func.func @transform_6(%arg0: i32) -> (i32, i32, i32) {
    %c0_i32 = arith.constant 0 : i32
    %c0_i32_0 = arith.constant 0 : i32
    %c0_i32_1 = arith.constant 0 : i32
    %c0_i32_2 = arith.constant 0 : i32
    return %c0_i32, %c0_i32_0, %c0_i32_1 : i32, i32, i32
  }
  func.func @transform_7(%arg0: i32) -> (i32, i32) {
    %c0_i32 = arith.constant 0 : i32
    %c0_i32_0 = arith.constant 0 : i32
    %c0_i32_1 = arith.constant 0 : i32
    return %c0_i32, %c0_i32_0 : i32, i32
  }
  func.func @transform_8(%arg0: i32) -> (i32, i32) {
    %c0_i32 = arith.constant 0 : i32
    %c0_i32_0 = arith.constant 0 : i32
    %c0_i32_1 = arith.constant 0 : i32
    return %c0_i32, %c0_i32_0 : i32, i32
  }
  func.func @transform_9(%arg0: i32) -> (i32, i32) {
    %c0_i32 = arith.constant 0 : i32
    %c0_i32_0 = arith.constant 0 : i32
    %c0_i32_1 = arith.constant 0 : i32
    return %c0_i32, %c0_i32_0 : i32, i32
  }
  func.func @transform_10(%arg0: i32) -> (i32, i32) {
    %c0_i32 = arith.constant 0 : i32
    %c0_i32_0 = arith.constant 0 : i32
    %c0_i32_1 = arith.constant 0 : i32
    return %c0_i32, %c0_i32_0 : i32, i32
  }
  func.func @transform_11(%arg0: i32) -> (i32, i32, i32) {
    %c0_i32 = arith.constant 0 : i32
    %c0_i32_0 = arith.constant 0 : i32
    %c0_i32_1 = arith.constant 0 : i32
    return %arg0, %c0_i32, %c0_i32_0 : i32, i32, i32
  }
}

module attributes {stable_mosaic.version = 11 : i64} {
  func.func @_block_kernel(%arg0: i32, %arg1: memref<1x4x256xbf16, #tpu.memory_space<vmem>>, %arg2: memref<1x256xf32, #tpu.memory_space<vmem>>, %arg3: memref<1x256xf32, #tpu.memory_space<vmem>>, %arg4: memref<256x64xbf16, #tpu.memory_space<vmem>>, %arg5: memref<1x64xf32, #tpu.memory_space<vmem>>, %arg6: memref<4x1x4xbf16, #tpu.memory_space<vmem>>, %arg7: memref<4x64x64xbf16, #tpu.memory_space<vmem>>, %arg8: memref<1x64xf32, #tpu.memory_space<vmem>>, %arg9: memref<64x256xbf16, #tpu.memory_space<vmem>>, %arg10: memref<1x256xf32, #tpu.memory_space<vmem>>, %arg11: memref<1x4xbf16, #tpu.memory_space<vmem>>, %arg12: memref<1x1x256xbf16, #tpu.memory_space<vmem>>) attributes {dimension_semantics = [#tpu.dimension_semantics<parallel>], iteration_bounds = array<i64: 2>, scalar_prefetch = 0 : i64, scratch_operands = 0 : i64, tpu.core_type = #tpu.core_type<tc>, window_params = [{transform_indices = @transform_0, window_bounds = array<i64: 1, 4, 256>}, {pipeline_mode = #tpu.pipeline_mode<synchronous>, transform_indices = @transform_1, window_bounds = array<i64: 1, 256>}, {pipeline_mode = #tpu.pipeline_mode<synchronous>, transform_indices = @transform_2, window_bounds = array<i64: 1, 256>}, {pipeline_mode = #tpu.pipeline_mode<synchronous>, transform_indices = @transform_3, window_bounds = array<i64: 256, 64>}, {pipeline_mode = #tpu.pipeline_mode<synchronous>, transform_indices = @transform_4, window_bounds = array<i64: 1, 64>}, {pipeline_mode = #tpu.pipeline_mode<synchronous>, transform_indices = @transform_5, window_bounds = array<i64: 4, 1, 4>}, {pipeline_mode = #tpu.pipeline_mode<synchronous>, transform_indices = @transform_6, window_bounds = array<i64: 4, 64, 64>}, {pipeline_mode = #tpu.pipeline_mode<synchronous>, transform_indices = @transform_7, window_bounds = array<i64: 1, 64>}, {pipeline_mode = #tpu.pipeline_mode<synchronous>, transform_indices = @transform_8, window_bounds = array<i64: 64, 256>}, {pipeline_mode = #tpu.pipeline_mode<synchronous>, transform_indices = @transform_9, window_bounds = array<i64: 1, 256>}, {pipeline_mode = #tpu.pipeline_mode<synchronous>, transform_indices = @transform_10, window_bounds = array<i64: 1, 4>}, {transform_indices = @transform_11, window_bounds = array<i64: 1, 1, 256>}]} {
    %c0 = arith.constant 0 : index
    %c0_0 = arith.constant 0 : index
    %c0_1 = arith.constant 0 : index
    %0 = vector.load %arg1[%c0, %c0_0, %c0_1] : memref<1x4x256xbf16, #tpu.memory_space<vmem>>, vector<1x4x256xbf16>
    %1 = vector.shape_cast %0 : vector<1x4x256xbf16> to vector<4x256xbf16>
    %2 = arith.extf %1 : vector<4x256xbf16> to vector<4x256xf32>
    %c0_2 = arith.constant 0 : index
    %c0_3 = arith.constant 0 : index
    %3 = vector.load %arg2[%c0_2, %c0_3] : memref<1x256xf32, #tpu.memory_space<vmem>>, vector<1x256xf32>
    %4 = vector.broadcast %3 : vector<1x256xf32> to vector<4x256xf32>
    %5 = arith.mulf %2, %4 : vector<4x256xf32>
    %c0_4 = arith.constant 0 : index
    %c0_5 = arith.constant 0 : index
    %6 = vector.load %arg3[%c0_4, %c0_5] : memref<1x256xf32, #tpu.memory_space<vmem>>, vector<1x256xf32>
    %7 = vector.broadcast %6 : vector<1x256xf32> to vector<4x256xf32>
    %8 = arith.addf %5, %7 : vector<4x256xf32>
    %cst = arith.constant 0.000000e+00 : f32
    %9 = vector.broadcast %cst : f32 to vector<4x256xf32>
    %10 = arith.maximumf %8, %9 : vector<4x256xf32>
    %11 = arith.truncf %10 : vector<4x256xf32> to vector<4x256xbf16>
    %c0_6 = arith.constant 0 : index
    %c0_7 = arith.constant 0 : index
    %12 = vector.load %arg4[%c0_6, %c0_7] : memref<256x64xbf16, #tpu.memory_space<vmem>>, vector<256x64xbf16>
    %cst_8 = arith.constant dense<0.000000e+00> : vector<4x64xf32>
    %13 = tpu.matmul %11, %12, %cst_8 {dimension_numbers = #tpu.dot_dimension_numbers<[1], [0], [0], [1], [0, 0, 1, 1], [], []>} : vector<4x256xbf16>, vector<256x64xbf16>, vector<4x64xf32> -> vector<4x64xf32>
    %c0_9 = arith.constant 0 : index
    %c0_10 = arith.constant 0 : index
    %14 = vector.load %arg5[%c0_9, %c0_10] : memref<1x64xf32, #tpu.memory_space<vmem>>, vector<1x64xf32>
    %15 = vector.broadcast %14 : vector<1x64xf32> to vector<4x64xf32>
    %16 = arith.addf %13, %15 : vector<4x64xf32>
    %cst_11 = arith.constant 0.000000e+00 : f32
    %17 = vector.broadcast %cst_11 : f32 to vector<4x64xf32>
    %18 = arith.maximumf %16, %17 : vector<4x64xf32>
    %19 = arith.truncf %18 : vector<4x64xf32> to vector<4x64xbf16>
    %c0_12 = arith.constant 0 : index
    %c0_13 = arith.constant 0 : index
    %c0_14 = arith.constant 0 : index
    %20 = vector.load %arg6[%c0_12, %c0_13, %c0_14] : memref<4x1x4xbf16, #tpu.memory_space<vmem>>, vector<1x1x4xbf16>
    %21 = vector.shape_cast %20 : vector<1x1x4xbf16> to vector<1x4xbf16>
    %cst_15 = arith.constant dense<0.000000e+00> : vector<1x64xf32>
    %22 = tpu.matmul %21, %19, %cst_15 {dimension_numbers = #tpu.dot_dimension_numbers<[1], [0], [0], [1], [0, 0, 1, 1], [], []>} : vector<1x4xbf16>, vector<4x64xbf16>, vector<1x64xf32> -> vector<1x64xf32>
    %23 = arith.truncf %22 : vector<1x64xf32> to vector<1x64xbf16>
    %c0_16 = arith.constant 0 : index
    %c0_17 = arith.constant 0 : index
    %c0_18 = arith.constant 0 : index
    %24 = vector.load %arg7[%c0_16, %c0_17, %c0_18] : memref<4x64x64xbf16, #tpu.memory_space<vmem>>, vector<1x64x64xbf16>
    %25 = vector.shape_cast %24 : vector<1x64x64xbf16> to vector<64x64xbf16>
    %cst_19 = arith.constant dense<0.000000e+00> : vector<1x64xf32>
    %26 = tpu.matmul %23, %25, %cst_19 {dimension_numbers = #tpu.dot_dimension_numbers<[1], [0], [0], [1], [0, 0, 1, 1], [], []>} : vector<1x64xbf16>, vector<64x64xbf16>, vector<1x64xf32> -> vector<1x64xf32>
    %c1 = arith.constant 1 : index
    %c0_20 = arith.constant 0 : index
    %c0_21 = arith.constant 0 : index
    %27 = vector.load %arg6[%c1, %c0_20, %c0_21] : memref<4x1x4xbf16, #tpu.memory_space<vmem>>, vector<1x1x4xbf16>
    %28 = vector.shape_cast %27 : vector<1x1x4xbf16> to vector<1x4xbf16>
    %cst_22 = arith.constant dense<0.000000e+00> : vector<1x64xf32>
    %29 = tpu.matmul %28, %19, %cst_22 {dimension_numbers = #tpu.dot_dimension_numbers<[1], [0], [0], [1], [0, 0, 1, 1], [], []>} : vector<1x4xbf16>, vector<4x64xbf16>, vector<1x64xf32> -> vector<1x64xf32>
    %30 = arith.truncf %29 : vector<1x64xf32> to vector<1x64xbf16>
    %c1_23 = arith.constant 1 : index
    %c0_24 = arith.constant 0 : index
    %c0_25 = arith.constant 0 : index
    %31 = vector.load %arg7[%c1_23, %c0_24, %c0_25] : memref<4x64x64xbf16, #tpu.memory_space<vmem>>, vector<1x64x64xbf16>
    %32 = vector.shape_cast %31 : vector<1x64x64xbf16> to vector<64x64xbf16>
    %cst_26 = arith.constant dense<0.000000e+00> : vector<1x64xf32>
    %33 = tpu.matmul %30, %32, %cst_26 {dimension_numbers = #tpu.dot_dimension_numbers<[1], [0], [0], [1], [0, 0, 1, 1], [], []>} : vector<1x64xbf16>, vector<64x64xbf16>, vector<1x64xf32> -> vector<1x64xf32>
    %34 = arith.addf %26, %33 : vector<1x64xf32>
    %c2 = arith.constant 2 : index
    %c0_27 = arith.constant 0 : index
    %c0_28 = arith.constant 0 : index
    %35 = vector.load %arg6[%c2, %c0_27, %c0_28] : memref<4x1x4xbf16, #tpu.memory_space<vmem>>, vector<1x1x4xbf16>
    %36 = vector.shape_cast %35 : vector<1x1x4xbf16> to vector<1x4xbf16>
    %cst_29 = arith.constant dense<0.000000e+00> : vector<1x64xf32>
    %37 = tpu.matmul %36, %19, %cst_29 {dimension_numbers = #tpu.dot_dimension_numbers<[1], [0], [0], [1], [0, 0, 1, 1], [], []>} : vector<1x4xbf16>, vector<4x64xbf16>, vector<1x64xf32> -> vector<1x64xf32>
    %38 = arith.truncf %37 : vector<1x64xf32> to vector<1x64xbf16>
    %c2_30 = arith.constant 2 : index
    %c0_31 = arith.constant 0 : index
    %c0_32 = arith.constant 0 : index
    %39 = vector.load %arg7[%c2_30, %c0_31, %c0_32] : memref<4x64x64xbf16, #tpu.memory_space<vmem>>, vector<1x64x64xbf16>
    %40 = vector.shape_cast %39 : vector<1x64x64xbf16> to vector<64x64xbf16>
    %cst_33 = arith.constant dense<0.000000e+00> : vector<1x64xf32>
    %41 = tpu.matmul %38, %40, %cst_33 {dimension_numbers = #tpu.dot_dimension_numbers<[1], [0], [0], [1], [0, 0, 1, 1], [], []>} : vector<1x64xbf16>, vector<64x64xbf16>, vector<1x64xf32> -> vector<1x64xf32>
    %42 = arith.addf %34, %41 : vector<1x64xf32>
    %c3 = arith.constant 3 : index
    %c0_34 = arith.constant 0 : index
    %c0_35 = arith.constant 0 : index
    %43 = vector.load %arg6[%c3, %c0_34, %c0_35] : memref<4x1x4xbf16, #tpu.memory_space<vmem>>, vector<1x1x4xbf16>
    %44 = vector.shape_cast %43 : vector<1x1x4xbf16> to vector<1x4xbf16>
    %cst_36 = arith.constant dense<0.000000e+00> : vector<1x64xf32>
    %45 = tpu.matmul %44, %19, %cst_36 {dimension_numbers = #tpu.dot_dimension_numbers<[1], [0], [0], [1], [0, 0, 1, 1], [], []>} : vector<1x4xbf16>, vector<4x64xbf16>, vector<1x64xf32> -> vector<1x64xf32>
    %46 = arith.truncf %45 : vector<1x64xf32> to vector<1x64xbf16>
    %c3_37 = arith.constant 3 : index
    %c0_38 = arith.constant 0 : index
    %c0_39 = arith.constant 0 : index
    %47 = vector.load %arg7[%c3_37, %c0_38, %c0_39] : memref<4x64x64xbf16, #tpu.memory_space<vmem>>, vector<1x64x64xbf16>
    %48 = vector.shape_cast %47 : vector<1x64x64xbf16> to vector<64x64xbf16>
    %cst_40 = arith.constant dense<0.000000e+00> : vector<1x64xf32>
    %49 = tpu.matmul %46, %48, %cst_40 {dimension_numbers = #tpu.dot_dimension_numbers<[1], [0], [0], [1], [0, 0, 1, 1], [], []>} : vector<1x64xbf16>, vector<64x64xbf16>, vector<1x64xf32> -> vector<1x64xf32>
    %50 = arith.addf %42, %49 : vector<1x64xf32>
    %c0_41 = arith.constant 0 : index
    %c0_42 = arith.constant 0 : index
    %51 = vector.load %arg8[%c0_41, %c0_42] : memref<1x64xf32, #tpu.memory_space<vmem>>, vector<1x64xf32>
    %52 = arith.addf %50, %51 : vector<1x64xf32>
    %cst_43 = arith.constant 0.000000e+00 : f32
    %53 = vector.broadcast %cst_43 : f32 to vector<1x64xf32>
    %54 = arith.maximumf %52, %53 : vector<1x64xf32>
    %55 = arith.truncf %54 : vector<1x64xf32> to vector<1x64xbf16>
    %c0_44 = arith.constant 0 : index
    %c0_45 = arith.constant 0 : index
    %56 = vector.load %arg9[%c0_44, %c0_45] : memref<64x256xbf16, #tpu.memory_space<vmem>>, vector<64x256xbf16>
    %cst_46 = arith.constant dense<0.000000e+00> : vector<1x256xf32>
    %57 = tpu.matmul %55, %56, %cst_46 {dimension_numbers = #tpu.dot_dimension_numbers<[1], [0], [0], [1], [0, 0, 1, 1], [], []>} : vector<1x64xbf16>, vector<64x256xbf16>, vector<1x256xf32> -> vector<1x256xf32>
    %c0_47 = arith.constant 0 : index
    %c0_48 = arith.constant 0 : index
    %58 = vector.load %arg10[%c0_47, %c0_48] : memref<1x256xf32, #tpu.memory_space<vmem>>, vector<1x256xf32>
    %59 = arith.addf %57, %58 : vector<1x256xf32>
    %c0_49 = arith.constant 0 : index
    %c0_50 = arith.constant 0 : index
    %60 = vector.load %arg11[%c0_49, %c0_50] : memref<1x4xbf16, #tpu.memory_space<vmem>>, vector<1x4xbf16>
    %cst_51 = arith.constant dense<0.000000e+00> : vector<1x256xf32>
    %61 = tpu.matmul %60, %11, %cst_51 {dimension_numbers = #tpu.dot_dimension_numbers<[1], [0], [0], [1], [0, 0, 1, 1], [], []>} : vector<1x4xbf16>, vector<4x256xbf16>, vector<1x256xf32> -> vector<1x256xf32>
    %62 = arith.addf %59, %61 : vector<1x256xf32>
    %63 = arith.truncf %62 : vector<1x256xf32> to vector<1x256xbf16>
    %c0_52 = arith.constant 0 : index
    %c0_53 = arith.constant 0 : index
    %c0_54 = arith.constant 0 : index
    %64 = vector.load %arg12[%c0_52, %c0_53, %c0_54] : memref<1x1x256xbf16, #tpu.memory_space<vmem>>, vector<1x1x256xbf16>
    %65 = vector.shape_cast %64 : vector<1x1x256xbf16> to vector<1x256xbf16>
    %66 = vector.shape_cast %63 : vector<1x256xbf16> to vector<1x1x256xbf16>
    tpu.vector_store %arg12[%c0_52, %c0_53, %c0_54], %66 {strides = array<i32>} : memref<1x1x256xbf16, #tpu.memory_space<vmem>>, vector<1x1x256xbf16>,
    return
  }
  func.func @transform_0(%arg0: i32) -> (i32, i32, i32) {
    %c0_i32 = arith.constant 0 : i32
    %c0_i32_0 = arith.constant 0 : i32
    %c0_i32_1 = arith.constant 0 : i32
    return %arg0, %c0_i32, %c0_i32_0 : i32, i32, i32
  }
  func.func @transform_1(%arg0: i32) -> (i32, i32) {
    %c0_i32 = arith.constant 0 : i32
    %c0_i32_0 = arith.constant 0 : i32
    %c0_i32_1 = arith.constant 0 : i32
    return %c0_i32, %c0_i32_0 : i32, i32
  }
  func.func @transform_2(%arg0: i32) -> (i32, i32) {
    %c0_i32 = arith.constant 0 : i32
    %c0_i32_0 = arith.constant 0 : i32
    %c0_i32_1 = arith.constant 0 : i32
    return %c0_i32, %c0_i32_0 : i32, i32
  }
  func.func @transform_3(%arg0: i32) -> (i32, i32) {
    %c0_i32 = arith.constant 0 : i32
    %c0_i32_0 = arith.constant 0 : i32
    %c0_i32_1 = arith.constant 0 : i32
    return %c0_i32, %c0_i32_0 : i32, i32
  }
  func.func @transform_4(%arg0: i32) -> (i32, i32) {
    %c0_i32 = arith.constant 0 : i32
    %c0_i32_0 = arith.constant 0 : i32
    %c0_i32_1 = arith.constant 0 : i32
    return %c0_i32, %c0_i32_0 : i32, i32
  }
  func.func @transform_5(%arg0: i32) -> (i32, i32, i32) {
    %c0_i32 = arith.constant 0 : i32
    %c0_i32_0 = arith.constant 0 : i32
    %c0_i32_1 = arith.constant 0 : i32
    %c0_i32_2 = arith.constant 0 : i32
    return %c0_i32, %c0_i32_0, %c0_i32_1 : i32, i32, i32
  }
  func.func @transform_6(%arg0: i32) -> (i32, i32, i32) {
    %c0_i32 = arith.constant 0 : i32
    %c0_i32_0 = arith.constant 0 : i32
    %c0_i32_1 = arith.constant 0 : i32
    %c0_i32_2 = arith.constant 0 : i32
    return %c0_i32, %c0_i32_0, %c0_i32_1 : i32, i32, i32
  }
  func.func @transform_7(%arg0: i32) -> (i32, i32) {
    %c0_i32 = arith.constant 0 : i32
    %c0_i32_0 = arith.constant 0 : i32
    %c0_i32_1 = arith.constant 0 : i32
    return %c0_i32, %c0_i32_0 : i32, i32
  }
  func.func @transform_8(%arg0: i32) -> (i32, i32) {
    %c0_i32 = arith.constant 0 : i32
    %c0_i32_0 = arith.constant 0 : i32
    %c0_i32_1 = arith.constant 0 : i32
    return %c0_i32, %c0_i32_0 : i32, i32
  }
  func.func @transform_9(%arg0: i32) -> (i32, i32) {
    %c0_i32 = arith.constant 0 : i32
    %c0_i32_0 = arith.constant 0 : i32
    %c0_i32_1 = arith.constant 0 : i32
    return %c0_i32, %c0_i32_0 : i32, i32
  }
  func.func @transform_10(%arg0: i32) -> (i32, i32) {
    %c0_i32 = arith.constant 0 : i32
    %c0_i32_0 = arith.constant 0 : i32
    %c0_i32_1 = arith.constant 0 : i32
    return %c0_i32, %c0_i32_0 : i32, i32
  }
  func.func @transform_11(%arg0: i32) -> (i32, i32, i32) {
    %c0_i32 = arith.constant 0 : i32
    %c0_i32_0 = arith.constant 0 : i32
    %c0_i32_1 = arith.constant 0 : i32
    return %arg0, %c0_i32, %c0_i32_0 : i32, i32, i32
  }
}

module attributes {stable_mosaic.version = 11 : i64} {
  func.func @_block_kernel(%arg0: i32, %arg1: memref<1x1x256xbf16, #tpu.memory_space<vmem>>, %arg2: memref<1x256xf32, #tpu.memory_space<vmem>>, %arg3: memref<1x256xf32, #tpu.memory_space<vmem>>, %arg4: memref<256x128xbf16, #tpu.memory_space<vmem>>, %arg5: memref<1x128xf32, #tpu.memory_space<vmem>>, %arg6: memref<1x1x1xbf16, #tpu.memory_space<vmem>>, %arg7: memref<1x128x128xbf16, #tpu.memory_space<vmem>>, %arg8: memref<1x128xf32, #tpu.memory_space<vmem>>, %arg9: memref<128x512xbf16, #tpu.memory_space<vmem>>, %arg10: memref<1x512xf32, #tpu.memory_space<vmem>>, %arg11: memref<256x512xbf16, #tpu.memory_space<vmem>>, %arg12: memref<1x1x512xbf16, #tpu.memory_space<vmem>>) attributes {dimension_semantics = [#tpu.dimension_semantics<parallel>], iteration_bounds = array<i64: 2>, scalar_prefetch = 0 : i64, scratch_operands = 0 : i64, tpu.core_type = #tpu.core_type<tc>, window_params = [{transform_indices = @transform_0, window_bounds = array<i64: 1, 1, 256>}, {pipeline_mode = #tpu.pipeline_mode<synchronous>, transform_indices = @transform_1, window_bounds = array<i64: 1, 256>}, {pipeline_mode = #tpu.pipeline_mode<synchronous>, transform_indices = @transform_2, window_bounds = array<i64: 1, 256>}, {pipeline_mode = #tpu.pipeline_mode<synchronous>, transform_indices = @transform_3, window_bounds = array<i64: 256, 128>}, {pipeline_mode = #tpu.pipeline_mode<synchronous>, transform_indices = @transform_4, window_bounds = array<i64: 1, 128>}, {pipeline_mode = #tpu.pipeline_mode<synchronous>, transform_indices = @transform_5, window_bounds = array<i64: 1, 1, 1>}, {pipeline_mode = #tpu.pipeline_mode<synchronous>, transform_indices = @transform_6, window_bounds = array<i64: 1, 128, 128>}, {pipeline_mode = #tpu.pipeline_mode<synchronous>, transform_indices = @transform_7, window_bounds = array<i64: 1, 128>}, {pipeline_mode = #tpu.pipeline_mode<synchronous>, transform_indices = @transform_8, window_bounds = array<i64: 128, 512>}, {pipeline_mode = #tpu.pipeline_mode<synchronous>, transform_indices = @transform_9, window_bounds = array<i64: 1, 512>}, {pipeline_mode = #tpu.pipeline_mode<synchronous>, transform_indices = @transform_10, window_bounds = array<i64: 256, 512>}, {transform_indices = @transform_11, window_bounds = array<i64: 1, 1, 512>}]} {
    %c0 = arith.constant 0 : index
    %c0_0 = arith.constant 0 : index
    %c0_1 = arith.constant 0 : index
    %0 = vector.load %arg1[%c0, %c0_0, %c0_1] : memref<1x1x256xbf16, #tpu.memory_space<vmem>>, vector<1x1x256xbf16>
    %1 = vector.shape_cast %0 : vector<1x1x256xbf16> to vector<1x256xbf16>
    %2 = arith.extf %1 : vector<1x256xbf16> to vector<1x256xf32>
    %c0_2 = arith.constant 0 : index
    %c0_3 = arith.constant 0 : index
    %3 = vector.load %arg2[%c0_2, %c0_3] : memref<1x256xf32, #tpu.memory_space<vmem>>, vector<1x256xf32>
    %4 = arith.mulf %2, %3 : vector<1x256xf32>
    %c0_4 = arith.constant 0 : index
    %c0_5 = arith.constant 0 : index
    %5 = vector.load %arg3[%c0_4, %c0_5] : memref<1x256xf32, #tpu.memory_space<vmem>>, vector<1x256xf32>
    %6 = arith.addf %4, %5 : vector<1x256xf32>
    %cst = arith.constant 0.000000e+00 : f32
    %7 = vector.broadcast %cst : f32 to vector<1x256xf32>
    %8 = arith.maximumf %6, %7 : vector<1x256xf32>
    %9 = arith.truncf %8 : vector<1x256xf32> to vector<1x256xbf16>
    %c0_6 = arith.constant 0 : index
    %c0_7 = arith.constant 0 : index
    %10 = vector.load %arg4[%c0_6, %c0_7] : memref<256x128xbf16, #tpu.memory_space<vmem>>, vector<256x128xbf16>
    %cst_8 = arith.constant dense<0.000000e+00> : vector<1x128xf32>
    %11 = tpu.matmul %9, %10, %cst_8 {dimension_numbers = #tpu.dot_dimension_numbers<[1], [0], [0], [1], [0, 0, 1, 1], [], []>} : vector<1x256xbf16>, vector<256x128xbf16>, vector<1x128xf32> -> vector<1x128xf32>
    %c0_9 = arith.constant 0 : index
    %c0_10 = arith.constant 0 : index
    %12 = vector.load %arg5[%c0_9, %c0_10] : memref<1x128xf32, #tpu.memory_space<vmem>>, vector<1x128xf32>
    %13 = arith.addf %11, %12 : vector<1x128xf32>
    %cst_11 = arith.constant 0.000000e+00 : f32
    %14 = vector.broadcast %cst_11 : f32 to vector<1x128xf32>
    %15 = arith.maximumf %13, %14 : vector<1x128xf32>
    %16 = arith.truncf %15 : vector<1x128xf32> to vector<1x128xbf16>
    %c0_12 = arith.constant 0 : index
    %c0_13 = arith.constant 0 : index
    %c0_14 = arith.constant 0 : index
    %17 = vector.load %arg7[%c0_12, %c0_13, %c0_14] : memref<1x128x128xbf16, #tpu.memory_space<vmem>>, vector<1x128x128xbf16>
    %18 = vector.shape_cast %17 : vector<1x128x128xbf16> to vector<128x128xbf16>
    %cst_15 = arith.constant dense<0.000000e+00> : vector<1x128xf32>
    %19 = tpu.matmul %16, %18, %cst_15 {dimension_numbers = #tpu.dot_dimension_numbers<[1], [0], [0], [1], [0, 0, 1, 1], [], []>} : vector<1x128xbf16>, vector<128x128xbf16>, vector<1x128xf32> -> vector<1x128xf32>
    %c0_16 = arith.constant 0 : index
    %c0_17 = arith.constant 0 : index
    %20 = vector.load %arg8[%c0_16, %c0_17] : memref<1x128xf32, #tpu.memory_space<vmem>>, vector<1x128xf32>
    %21 = arith.addf %19, %20 : vector<1x128xf32>
    %cst_18 = arith.constant 0.000000e+00 : f32
    %22 = vector.broadcast %cst_18 : f32 to vector<1x128xf32>
    %23 = arith.maximumf %21, %22 : vector<1x128xf32>
    %24 = arith.truncf %23 : vector<1x128xf32> to vector<1x128xbf16>
    %c0_19 = arith.constant 0 : index
    %c0_20 = arith.constant 0 : index
    %25 = vector.load %arg9[%c0_19, %c0_20] : memref<128x512xbf16, #tpu.memory_space<vmem>>, vector<128x512xbf16>
    %cst_21 = arith.constant dense<0.000000e+00> : vector<1x512xf32>
    %26 = tpu.matmul %24, %25, %cst_21 {dimension_numbers = #tpu.dot_dimension_numbers<[1], [0], [0], [1], [0, 0, 1, 1], [], []>} : vector<1x128xbf16>, vector<128x512xbf16>, vector<1x512xf32> -> vector<1x512xf32>
    %c0_22 = arith.constant 0 : index
    %c0_23 = arith.constant 0 : index
    %27 = vector.load %arg10[%c0_22, %c0_23] : memref<1x512xf32, #tpu.memory_space<vmem>>, vector<1x512xf32>
    %28 = arith.addf %26, %27 : vector<1x512xf32>
    %c0_24 = arith.constant 0 : index
    %c0_25 = arith.constant 0 : index
    %29 = vector.load %arg11[%c0_24, %c0_25] : memref<256x512xbf16, #tpu.memory_space<vmem>>, vector<256x512xbf16>
    %cst_26 = arith.constant dense<0.000000e+00> : vector<1x512xf32>
    %30 = tpu.matmul %9, %29, %cst_26 {dimension_numbers = #tpu.dot_dimension_numbers<[1], [0], [0], [1], [0, 0, 1, 1], [], []>} : vector<1x256xbf16>, vector<256x512xbf16>, vector<1x512xf32> -> vector<1x512xf32>
    %31 = arith.addf %28, %30 : vector<1x512xf32>
    %32 = arith.truncf %31 : vector<1x512xf32> to vector<1x512xbf16>
    %c0_27 = arith.constant 0 : index
    %c0_28 = arith.constant 0 : index
    %c0_29 = arith.constant 0 : index
    %33 = vector.load %arg12[%c0_27, %c0_28, %c0_29] : memref<1x1x512xbf16, #tpu.memory_space<vmem>>, vector<1x1x512xbf16>
    %34 = vector.shape_cast %33 : vector<1x1x512xbf16> to vector<1x512xbf16>
    %35 = vector.shape_cast %32 : vector<1x512xbf16> to vector<1x1x512xbf16>
    tpu.vector_store %arg12[%c0_27, %c0_28, %c0_29], %35 {strides = array<i32>} : memref<1x1x512xbf16, #tpu.memory_space<vmem>>, vector<1x1x512xbf16>,
    return
  }
  func.func @transform_0(%arg0: i32) -> (i32, i32, i32) {
    %c0_i32 = arith.constant 0 : i32
    %c0_i32_0 = arith.constant 0 : i32
    %c0_i32_1 = arith.constant 0 : i32
    return %arg0, %c0_i32, %c0_i32_0 : i32, i32, i32
  }
  func.func @transform_1(%arg0: i32) -> (i32, i32) {
    %c0_i32 = arith.constant 0 : i32
    %c0_i32_0 = arith.constant 0 : i32
    %c0_i32_1 = arith.constant 0 : i32
    return %c0_i32, %c0_i32_0 : i32, i32
  }
  func.func @transform_2(%arg0: i32) -> (i32, i32) {
    %c0_i32 = arith.constant 0 : i32
    %c0_i32_0 = arith.constant 0 : i32
    %c0_i32_1 = arith.constant 0 : i32
    return %c0_i32, %c0_i32_0 : i32, i32
  }
  func.func @transform_3(%arg0: i32) -> (i32, i32) {
    %c0_i32 = arith.constant 0 : i32
    %c0_i32_0 = arith.constant 0 : i32
    %c0_i32_1 = arith.constant 0 : i32
    return %c0_i32, %c0_i32_0 : i32, i32
  }
  func.func @transform_4(%arg0: i32) -> (i32, i32) {
    %c0_i32 = arith.constant 0 : i32
    %c0_i32_0 = arith.constant 0 : i32
    %c0_i32_1 = arith.constant 0 : i32
    return %c0_i32, %c0_i32_0 : i32, i32
  }
  func.func @transform_5(%arg0: i32) -> (i32, i32, i32) {
    %c0_i32 = arith.constant 0 : i32
    %c0_i32_0 = arith.constant 0 : i32
    %c0_i32_1 = arith.constant 0 : i32
    %c0_i32_2 = arith.constant 0 : i32
    return %c0_i32, %c0_i32_0, %c0_i32_1 : i32, i32, i32
  }
  func.func @transform_6(%arg0: i32) -> (i32, i32, i32) {
    %c0_i32 = arith.constant 0 : i32
    %c0_i32_0 = arith.constant 0 : i32
    %c0_i32_1 = arith.constant 0 : i32
    %c0_i32_2 = arith.constant 0 : i32
    return %c0_i32, %c0_i32_0, %c0_i32_1 : i32, i32, i32
  }
  func.func @transform_7(%arg0: i32) -> (i32, i32) {
    %c0_i32 = arith.constant 0 : i32
    %c0_i32_0 = arith.constant 0 : i32
    %c0_i32_1 = arith.constant 0 : i32
    return %c0_i32, %c0_i32_0 : i32, i32
  }
  func.func @transform_8(%arg0: i32) -> (i32, i32) {
    %c0_i32 = arith.constant 0 : i32
    %c0_i32_0 = arith.constant 0 : i32
    %c0_i32_1 = arith.constant 0 : i32
    return %c0_i32, %c0_i32_0 : i32, i32
  }
  func.func @transform_9(%arg0: i32) -> (i32, i32) {
    %c0_i32 = arith.constant 0 : i32
    %c0_i32_0 = arith.constant 0 : i32
    %c0_i32_1 = arith.constant 0 : i32
    return %c0_i32, %c0_i32_0 : i32, i32
  }
  func.func @transform_10(%arg0: i32) -> (i32, i32) {
    %c0_i32 = arith.constant 0 : i32
    %c0_i32_0 = arith.constant 0 : i32
    %c0_i32_1 = arith.constant 0 : i32
    return %c0_i32, %c0_i32_0 : i32, i32
  }
  func.func @transform_11(%arg0: i32) -> (i32, i32, i32) {
    %c0_i32 = arith.constant 0 : i32
    %c0_i32_0 = arith.constant 0 : i32
    %c0_i32_1 = arith.constant 0 : i32
    return %arg0, %c0_i32, %c0_i32_0 : i32, i32, i32
  }
}

module attributes {stable_mosaic.version = 11 : i64} {
  func.func @_block_kernel(%arg0: i32, %arg1: memref<1x1x512xbf16, #tpu.memory_space<vmem>>, %arg2: memref<1x512xf32, #tpu.memory_space<vmem>>, %arg3: memref<1x512xf32, #tpu.memory_space<vmem>>, %arg4: memref<512x128xbf16, #tpu.memory_space<vmem>>, %arg5: memref<1x128xf32, #tpu.memory_space<vmem>>, %arg6: memref<1x1x1xbf16, #tpu.memory_space<vmem>>, %arg7: memref<1x128x128xbf16, #tpu.memory_space<vmem>>, %arg8: memref<1x128xf32, #tpu.memory_space<vmem>>, %arg9: memref<128x512xbf16, #tpu.memory_space<vmem>>, %arg10: memref<1x512xf32, #tpu.memory_space<vmem>>, %arg11: memref<1x1xbf16, #tpu.memory_space<vmem>>, %arg12: memref<1x1x512xbf16, #tpu.memory_space<vmem>>) attributes {dimension_semantics = [#tpu.dimension_semantics<parallel>], iteration_bounds = array<i64: 2>, scalar_prefetch = 0 : i64, scratch_operands = 0 : i64, tpu.core_type = #tpu.core_type<tc>, window_params = [{transform_indices = @transform_0, window_bounds = array<i64: 1, 1, 512>}, {pipeline_mode = #tpu.pipeline_mode<synchronous>, transform_indices = @transform_1, window_bounds = array<i64: 1, 512>}, {pipeline_mode = #tpu.pipeline_mode<synchronous>, transform_indices = @transform_2, window_bounds = array<i64: 1, 512>}, {pipeline_mode = #tpu.pipeline_mode<synchronous>, transform_indices = @transform_3, window_bounds = array<i64: 512, 128>}, {pipeline_mode = #tpu.pipeline_mode<synchronous>, transform_indices = @transform_4, window_bounds = array<i64: 1, 128>}, {pipeline_mode = #tpu.pipeline_mode<synchronous>, transform_indices = @transform_5, window_bounds = array<i64: 1, 1, 1>}, {pipeline_mode = #tpu.pipeline_mode<synchronous>, transform_indices = @transform_6, window_bounds = array<i64: 1, 128, 128>}, {pipeline_mode = #tpu.pipeline_mode<synchronous>, transform_indices = @transform_7, window_bounds = array<i64: 1, 128>}, {pipeline_mode = #tpu.pipeline_mode<synchronous>, transform_indices = @transform_8, window_bounds = array<i64: 128, 512>}, {pipeline_mode = #tpu.pipeline_mode<synchronous>, transform_indices = @transform_9, window_bounds = array<i64: 1, 512>}, {pipeline_mode = #tpu.pipeline_mode<synchronous>, transform_indices = @transform_10, window_bounds = array<i64: 1, 1>}, {transform_indices = @transform_11, window_bounds = array<i64: 1, 1, 512>}]} {
    %c0 = arith.constant 0 : index
    %c0_0 = arith.constant 0 : index
    %c0_1 = arith.constant 0 : index
    %0 = vector.load %arg1[%c0, %c0_0, %c0_1] : memref<1x1x512xbf16, #tpu.memory_space<vmem>>, vector<1x1x512xbf16>
    %1 = vector.shape_cast %0 : vector<1x1x512xbf16> to vector<1x512xbf16>
    %2 = arith.extf %1 : vector<1x512xbf16> to vector<1x512xf32>
    %c0_2 = arith.constant 0 : index
    %c0_3 = arith.constant 0 : index
    %3 = vector.load %arg2[%c0_2, %c0_3] : memref<1x512xf32, #tpu.memory_space<vmem>>, vector<1x512xf32>
    %4 = arith.mulf %2, %3 : vector<1x512xf32>
    %c0_4 = arith.constant 0 : index
    %c0_5 = arith.constant 0 : index
    %5 = vector.load %arg3[%c0_4, %c0_5] : memref<1x512xf32, #tpu.memory_space<vmem>>, vector<1x512xf32>
    %6 = arith.addf %4, %5 : vector<1x512xf32>
    %cst = arith.constant 0.000000e+00 : f32
    %7 = vector.broadcast %cst : f32 to vector<1x512xf32>
    %8 = arith.maximumf %6, %7 : vector<1x512xf32>
    %9 = arith.truncf %8 : vector<1x512xf32> to vector<1x512xbf16>
    %c0_6 = arith.constant 0 : index
    %c0_7 = arith.constant 0 : index
    %10 = vector.load %arg4[%c0_6, %c0_7] : memref<512x128xbf16, #tpu.memory_space<vmem>>, vector<512x128xbf16>
    %cst_8 = arith.constant dense<0.000000e+00> : vector<1x128xf32>
    %11 = tpu.matmul %9, %10, %cst_8 {dimension_numbers = #tpu.dot_dimension_numbers<[1], [0], [0], [1], [0, 0, 1, 1], [], []>} : vector<1x512xbf16>, vector<512x128xbf16>, vector<1x128xf32> -> vector<1x128xf32>
    %c0_9 = arith.constant 0 : index
    %c0_10 = arith.constant 0 : index
    %12 = vector.load %arg5[%c0_9, %c0_10] : memref<1x128xf32, #tpu.memory_space<vmem>>, vector<1x128xf32>
    %13 = arith.addf %11, %12 : vector<1x128xf32>
    %cst_11 = arith.constant 0.000000e+00 : f32
    %14 = vector.broadcast %cst_11 : f32 to vector<1x128xf32>
    %15 = arith.maximumf %13, %14 : vector<1x128xf32>
    %16 = arith.truncf %15 : vector<1x128xf32> to vector<1x128xbf16>
    %c0_12 = arith.constant 0 : index
    %c0_13 = arith.constant 0 : index
    %c0_14 = arith.constant 0 : index
    %17 = vector.load %arg7[%c0_12, %c0_13, %c0_14] : memref<1x128x128xbf16, #tpu.memory_space<vmem>>, vector<1x128x128xbf16>
    %18 = vector.shape_cast %17 : vector<1x128x128xbf16> to vector<128x128xbf16>
    %cst_15 = arith.constant dense<0.000000e+00> : vector<1x128xf32>
    %19 = tpu.matmul %16, %18, %cst_15 {dimension_numbers = #tpu.dot_dimension_numbers<[1], [0], [0], [1], [0, 0, 1, 1], [], []>} : vector<1x128xbf16>, vector<128x128xbf16>, vector<1x128xf32> -> vector<1x128xf32>
    %c0_16 = arith.constant 0 : index
    %c0_17 = arith.constant 0 : index
    %20 = vector.load %arg8[%c0_16, %c0_17] : memref<1x128xf32, #tpu.memory_space<vmem>>, vector<1x128xf32>
    %21 = arith.addf %19, %20 : vector<1x128xf32>
    %cst_18 = arith.constant 0.000000e+00 : f32
    %22 = vector.broadcast %cst_18 : f32 to vector<1x128xf32>
    %23 = arith.maximumf %21, %22 : vector<1x128xf32>
    %24 = arith.truncf %23 : vector<1x128xf32> to vector<1x128xbf16>
    %c0_19 = arith.constant 0 : index
    %c0_20 = arith.constant 0 : index
    %25 = vector.load %arg9[%c0_19, %c0_20] : memref<128x512xbf16, #tpu.memory_space<vmem>>, vector<128x512xbf16>
    %cst_21 = arith.constant dense<0.000000e+00> : vector<1x512xf32>
    %26 = tpu.matmul %24, %25, %cst_21 {dimension_numbers = #tpu.dot_dimension_numbers<[1], [0], [0], [1], [0, 0, 1, 1], [], []>} : vector<1x128xbf16>, vector<128x512xbf16>, vector<1x512xf32> -> vector<1x512xf32>
    %c0_22 = arith.constant 0 : index
    %c0_23 = arith.constant 0 : index
    %27 = vector.load %arg10[%c0_22, %c0_23] : memref<1x512xf32, #tpu.memory_space<vmem>>, vector<1x512xf32>
    %28 = arith.addf %26, %27 : vector<1x512xf32>
    %29 = arith.addf %28, %8 : vector<1x512xf32>
    %30 = arith.truncf %29 : vector<1x512xf32> to vector<1x512xbf16>
    %c0_24 = arith.constant 0 : index
    %c0_25 = arith.constant 0 : index
    %c0_26 = arith.constant 0 : index
    %31 = vector.load %arg12[%c0_24, %c0_25, %c0_26] : memref<1x1x512xbf16, #tpu.memory_space<vmem>>, vector<1x1x512xbf16>
    %32 = vector.shape_cast %31 : vector<1x1x512xbf16> to vector<1x512xbf16>
    %33 = vector.shape_cast %30 : vector<1x512xbf16> to vector<1x1x512xbf16>
    tpu.vector_store %arg12[%c0_24, %c0_25, %c0_26], %33 {strides = array<i32>} : memref<1x1x512xbf16, #tpu.memory_space<vmem>>, vector<1x1x512xbf16>,
    return
  }
  func.func @transform_0(%arg0: i32) -> (i32, i32, i32) {
    %c0_i32 = arith.constant 0 : i32
    %c0_i32_0 = arith.constant 0 : i32
    %c0_i32_1 = arith.constant 0 : i32
    return %arg0, %c0_i32, %c0_i32_0 : i32, i32, i32
  }
  func.func @transform_1(%arg0: i32) -> (i32, i32) {
    %c0_i32 = arith.constant 0 : i32
    %c0_i32_0 = arith.constant 0 : i32
    %c0_i32_1 = arith.constant 0 : i32
    return %c0_i32, %c0_i32_0 : i32, i32
  }
  func.func @transform_2(%arg0: i32) -> (i32, i32) {
    %c0_i32 = arith.constant 0 : i32
    %c0_i32_0 = arith.constant 0 : i32
    %c0_i32_1 = arith.constant 0 : i32
    return %c0_i32, %c0_i32_0 : i32, i32
  }
  func.func @transform_3(%arg0: i32) -> (i32, i32) {
    %c0_i32 = arith.constant 0 : i32
    %c0_i32_0 = arith.constant 0 : i32
    %c0_i32_1 = arith.constant 0 : i32
    return %c0_i32, %c0_i32_0 : i32, i32
  }
  func.func @transform_4(%arg0: i32) -> (i32, i32) {
    %c0_i32 = arith.constant 0 : i32
    %c0_i32_0 = arith.constant 0 : i32
    %c0_i32_1 = arith.constant 0 : i32
    return %c0_i32, %c0_i32_0 : i32, i32
  }
  func.func @transform_5(%arg0: i32) -> (i32, i32, i32) {
    %c0_i32 = arith.constant 0 : i32
    %c0_i32_0 = arith.constant 0 : i32
    %c0_i32_1 = arith.constant 0 : i32
    %c0_i32_2 = arith.constant 0 : i32
    return %c0_i32, %c0_i32_0, %c0_i32_1 : i32, i32, i32
  }
  func.func @transform_6(%arg0: i32) -> (i32, i32, i32) {
    %c0_i32 = arith.constant 0 : i32
    %c0_i32_0 = arith.constant 0 : i32
    %c0_i32_1 = arith.constant 0 : i32
    %c0_i32_2 = arith.constant 0 : i32
    return %c0_i32, %c0_i32_0, %c0_i32_1 : i32, i32, i32
  }
  func.func @transform_7(%arg0: i32) -> (i32, i32) {
    %c0_i32 = arith.constant 0 : i32
    %c0_i32_0 = arith.constant 0 : i32
    %c0_i32_1 = arith.constant 0 : i32
    return %c0_i32, %c0_i32_0 : i32, i32
  }
  func.func @transform_8(%arg0: i32) -> (i32, i32) {
    %c0_i32 = arith.constant 0 : i32
    %c0_i32_0 = arith.constant 0 : i32
    %c0_i32_1 = arith.constant 0 : i32
    return %c0_i32, %c0_i32_0 : i32, i32
  }
  func.func @transform_9(%arg0: i32) -> (i32, i32) {
    %c0_i32 = arith.constant 0 : i32
    %c0_i32_0 = arith.constant 0 : i32
    %c0_i32_1 = arith.constant 0 : i32
    return %c0_i32, %c0_i32_0 : i32, i32
  }
  func.func @transform_10(%arg0: i32) -> (i32, i32) {
    %c0_i32 = arith.constant 0 : i32
    %c0_i32_0 = arith.constant 0 : i32
    %c0_i32_1 = arith.constant 0 : i32
    return %c0_i32, %c0_i32_0 : i32, i32
  }
  func.func @transform_11(%arg0: i32) -> (i32, i32, i32) {
    %c0_i32 = arith.constant 0 : i32
    %c0_i32_0 = arith.constant 0 : i32
    %c0_i32_1 = arith.constant 0 : i32
    return %arg0, %c0_i32, %c0_i32_0 : i32, i32, i32
  }
}

module attributes {stable_mosaic.version = 11 : i64} {
  func.func @_head_kernel(%arg0: i32, %arg1: memref<2x512xbf16, #tpu.memory_space<vmem>>, %arg2: memref<1x512xf32, #tpu.memory_space<vmem>>, %arg3: memref<1x512xf32, #tpu.memory_space<vmem>>, %arg4: memref<512x128xbf16, #tpu.memory_space<vmem>>, %arg5: memref<1x128xf32, #tpu.memory_space<vmem>>, %arg6: memref<2x128xf32, #tpu.memory_space<vmem>>) attributes {dimension_semantics = [#tpu.dimension_semantics<parallel>], iteration_bounds = array<i64: 1>, scalar_prefetch = 0 : i64, scratch_operands = 0 : i64, tpu.core_type = #tpu.core_type<tc>, window_params = [{transform_indices = @transform_0, window_bounds = array<i64: 2, 512>}, {pipeline_mode = #tpu.pipeline_mode<synchronous>, transform_indices = @transform_1, window_bounds = array<i64: 1, 512>}, {pipeline_mode = #tpu.pipeline_mode<synchronous>, transform_indices = @transform_2, window_bounds = array<i64: 1, 512>}, {pipeline_mode = #tpu.pipeline_mode<synchronous>, transform_indices = @transform_3, window_bounds = array<i64: 512, 128>}, {pipeline_mode = #tpu.pipeline_mode<synchronous>, transform_indices = @transform_4, window_bounds = array<i64: 1, 128>}, {transform_indices = @transform_5, window_bounds = array<i64: 2, 128>}]} {
    %c0 = arith.constant 0 : index
    %c0_0 = arith.constant 0 : index
    %0 = vector.load %arg1[%c0, %c0_0] : memref<2x512xbf16, #tpu.memory_space<vmem>>, vector<2x512xbf16>
    %1 = arith.extf %0 : vector<2x512xbf16> to vector<2x512xf32>
    %c0_1 = arith.constant 0 : index
    %c0_2 = arith.constant 0 : index
    %2 = vector.load %arg2[%c0_1, %c0_2] : memref<1x512xf32, #tpu.memory_space<vmem>>, vector<1x512xf32>
    %3 = vector.broadcast %2 : vector<1x512xf32> to vector<2x512xf32>
    %4 = arith.mulf %1, %3 : vector<2x512xf32>
    %c0_3 = arith.constant 0 : index
    %c0_4 = arith.constant 0 : index
    %5 = vector.load %arg3[%c0_3, %c0_4] : memref<1x512xf32, #tpu.memory_space<vmem>>, vector<1x512xf32>
    %6 = vector.broadcast %5 : vector<1x512xf32> to vector<2x512xf32>
    %7 = arith.addf %4, %6 : vector<2x512xf32>
    %cst = arith.constant 0.000000e+00 : f32
    %8 = vector.broadcast %cst : f32 to vector<2x512xf32>
    %9 = arith.maximumf %7, %8 : vector<2x512xf32>
    %10 = arith.truncf %9 : vector<2x512xf32> to vector<2x512xbf16>
    %c0_5 = arith.constant 0 : index
    %c0_6 = arith.constant 0 : index
    %11 = vector.load %arg4[%c0_5, %c0_6] : memref<512x128xbf16, #tpu.memory_space<vmem>>, vector<512x128xbf16>
    %cst_7 = arith.constant dense<0.000000e+00> : vector<2x128xf32>
    %12 = tpu.matmul %10, %11, %cst_7 {dimension_numbers = #tpu.dot_dimension_numbers<[1], [0], [0], [1], [0, 0, 1, 1], [], []>} : vector<2x512xbf16>, vector<512x128xbf16>, vector<2x128xf32> -> vector<2x128xf32>
    %c0_8 = arith.constant 0 : index
    %c0_9 = arith.constant 0 : index
    %13 = vector.load %arg5[%c0_8, %c0_9] : memref<1x128xf32, #tpu.memory_space<vmem>>, vector<1x128xf32>
    %14 = vector.broadcast %13 : vector<1x128xf32> to vector<2x128xf32>
    %15 = arith.addf %12, %14 : vector<2x128xf32>
    %c0_10 = arith.constant 0 : index
    %c0_11 = arith.constant 0 : index
    %16 = vector.load %arg6[%c0_10, %c0_11] : memref<2x128xf32, #tpu.memory_space<vmem>>, vector<2x128xf32>
    tpu.vector_store %arg6[%c0_10, %c0_11], %15 {strides = array<i32>} : memref<2x128xf32, #tpu.memory_space<vmem>>, vector<2x128xf32>,
    return
  }
  func.func @transform_0(%arg0: i32) -> (i32, i32) {
    %c0_i32 = arith.constant 0 : i32
    %c0_i32_0 = arith.constant 0 : i32
    return %arg0, %c0_i32 : i32, i32
  }
  func.func @transform_1(%arg0: i32) -> (i32, i32) {
    %c0_i32 = arith.constant 0 : i32
    %c0_i32_0 = arith.constant 0 : i32
    %c0_i32_1 = arith.constant 0 : i32
    return %c0_i32, %c0_i32_0 : i32, i32
  }
  func.func @transform_2(%arg0: i32) -> (i32, i32) {
    %c0_i32 = arith.constant 0 : i32
    %c0_i32_0 = arith.constant 0 : i32
    %c0_i32_1 = arith.constant 0 : i32
    return %c0_i32, %c0_i32_0 : i32, i32
  }
  func.func @transform_3(%arg0: i32) -> (i32, i32) {
    %c0_i32 = arith.constant 0 : i32
    %c0_i32_0 = arith.constant 0 : i32
    %c0_i32_1 = arith.constant 0 : i32
    return %c0_i32, %c0_i32_0 : i32, i32
  }
  func.func @transform_4(%arg0: i32) -> (i32, i32) {
    %c0_i32 = arith.constant 0 : i32
    %c0_i32_0 = arith.constant 0 : i32
    %c0_i32_1 = arith.constant 0 : i32
    return %c0_i32, %c0_i32_0 : i32, i32
  }
  func.func @transform_5(%arg0: i32) -> (i32, i32) {
    %c0_i32 = arith.constant 0 : i32
    %c0_i32_0 = arith.constant 0 : i32
    return %arg0, %c0_i32 : i32, i32
  }
}

</mosaic_0001>

<bundles_post_ra>
// kernel: resnet18v2_forward.10
= control target key start
LH: loop header
LB: loop body
LE: loop exit
PB: predicated region body
PF: predicated region fallthrough
CT: control target
= control target key end

     0   :  { %s2647_s12 = smov 0   ;;  %s3348_s0 = inlined_call_operand.vmem [shape: bf16[2,256,147], index: 0, kind: input, shape index: {}]   ;;  %s3349_s1 = inlined_call_operand.vmem [shape: bf16[147,64], index: 1, kind: input, shape index: {}]   ;;  %s3350_s2 = inlined_call_operand.vmem [shape: bf16[9,64,256], index: 2, kind: input, shape index: {}]   ;;  %s3351_s3 = inlined_call_operand.vmem [shape: bf16[2,64,64], index: 3, kind: output, shape index: {}]  }
   0x1 LB: > { %s1842_s13 = sadd.s32 4294967295, %s2623_s12   ;;  %p1846_p0 = scmp.ge.s32.totalorder %s2623_s12, 1  ;;  %s2623_s12 = sphi %s2647_s12, %s13_s12  }
   0x2   : > { %p137_p1 = scmp.lt.s32.totalorder %s2623_s12, 3 }
   0x4   : > { %p138_p2 = pnand %p1846_p0, %p137_p1 }
   0x5   : > { %p161_p3 = scmp.lt.s32.totalorder (!%p138_p2), %s1842_s13, 1 }
   0x6   : > { %141 = sbr.rel (%p138_p2) target bundleno = 817 (0x331), region = 32 }
   0xb   : > { %v2451_v0 = vld [vmem:[%s3349_s1 + $0x38] sm:$0xff]   ;;  %v2625_v1 = vmov 0   ;;  %v2452_v2 = vld [vmem:[%s3349_s1 + $0x30] sm:$0xff]   ;;  %v2453_v3 = vld [vmem:[%s3349_s1 + $0x28] sm:$0xff]   ;;  %s3353_s13 = smov (!%p161_p3, %s1842_s13), 1  ;;  %vm424_vm0 = vcmask 154624  }
   0xc   : > { %480 = vmatprep.subr.bf16.mxu0 %v2625_v1  ;;  %v2454_v4 = vld [vmem:[%s3349_s1 + $0x20] sm:$0xff]   ;;  %s2055_s22 = sshll.u32 %s3353_s13, 8  ;;  %v2455_v5 = vld [vmem:[%s3349_s1 + $0x18] sm:$0xff]   ;;  %v2456_v7 = vld [vmem:[%s3349_s1 + $0x10] sm:$0xff]   ;;  %vm473_vm1 = vcmask 1040384   ;;  %vm474_vm2 = vcmask 1041408  }
   0xd   : > { %481 = vmatpush1.bf16.msra.mxu0 %v2451_v0  ;;  %s2673_s25 = scalar_lea.vmem %s3348_s0, %s2055_s22  ;;  %v2457_v8 = vld [vmem:[%s3349_s1 + $0x8] sm:$0xff]   ;;  %v2626_v9 = vmov 65535   ;;  %v2458_v11 = vld [vmem:[%s3349_s1] sm:$0xff]   ;;  %s2056_s5 = sshll.u32 %s3353_s13, 5  ;;  %vm1778_vm3 = vcmask 519168  }
   0xe   : > { %482 = vmatprep.subr.bf16.mxu0 %v2625_v1  ;;  %v2463_v6 = vld [vmem:[%s2673_s25 + $0x4] ss:$8 sps:$4 sm:$0xff]   ;;  %v475_v10 = vsel %vm473_vm1, 4294967295, %v2626_v9  ;;  %v2459_v12 = vld [vmem:[%s3349_s1 + $0x48] ss:$0 sps:$4 sm:$0x33]   ;;  %s3297_s8 = scalar_lea.vmem %s3351_s3, %s2056_s5 }
   0xf   : > { %1893 = vmatprep.mubr.msk.bf16.mxu0 %vm424_vm0, %v2463_v6  ;;  %v476_v13 = vsel %vm474_vm2, %v475_v10, 0  ;;  %v2460_v15 = vld [vmem:[%s3349_s1 + $0x40] sm:$0xff]   ;;  %v2464_v17 = vld [vmem:[%s2673_s25 + $0x14] ss:$8 sps:$4 sm:$0xff]   ;;  %v2466_v18 = vld [vmem:[%s2673_s25 + $0x10] ss:$8 sps:$4 sm:$0xff]  }
  0x10   : > { %v478_v14 = vand.u32 %v2459_v12, %v476_v13  ;;  %v2461_v16 = vld [vmem:[%s2673_s25] ss:$8 sps:$4 sm:$0xff]   ;;  %v2467_v19 = vld [vmem:[%s2673_s25 + $0x24] ss:$8 sps:$4 sm:$0xff]   ;;  %v2470_v21 = vld [vmem:[%s2673_s25 + $0x34] ss:$8 sps:$4 sm:$0xff]  }
  0x11   : > { %483 = vmatpush1.bf16.msra.mxu0 %v2452_v2  ;;  %v2469_v20 = vld [vmem:[%s2673_s25 + $0x20] ss:$8 sps:$4 sm:$0xff]   ;;  %v2472_v22 = vld [vmem:[%s2673_s25 + $0x30] ss:$8 sps:$4 sm:$0xff]   ;;  %v2473_v23 = vld [vmem:[%s2673_s25 + $0x44] ss:$8 sps:$4 sm:$0xff]  }
  0x12   : > { %484 = vmatprep.subr.bf16.mxu0 %v2625_v1  ;;  %v2475_v24 = vld [vmem:[%s2673_s25 + $0x40] ss:$8 sps:$4 sm:$0xff]   ;;  %v2476_v25 = vld [vmem:[%s2673_s25 + $0x54] ss:$8 sps:$4 sm:$0xff]   ;;  %v2478_v26 = vld [vmem:[%s2673_s25 + $0x50] ss:$8 sps:$4 sm:$0xff]  }
  0x13   : > { %v2479_v27 = vld [vmem:[%s2673_s25 + $0x64] ss:$8 sps:$4 sm:$0xff]   ;;  %v2481_v28 = vld [vmem:[%s2673_s25 + $0x60] ss:$8 sps:$4 sm:$0xff]   ;;  %v2482_v29 = vld [vmem:[%s2673_s25 + $0x74] ss:$8 sps:$4 sm:$0xff]  }
  0x14   : > { %v2484_v30 = vld [vmem:[%s2673_s25 + $0x70] ss:$8 sps:$4 sm:$0xff]   ;;  %v2485_v31 = vld [vmem:[%s2673_s25 + $0x84] ss:$8 sps:$4 sm:$0xff]   ;;  %v2487_v32 = vld [vmem:[%s2673_s25 + $0x80] ss:$8 sps:$4 sm:$0xff]  }
  0x15   : > { %485 = vmatpush1.bf16.msra.mxu0 %v2453_v3  ;;  %v2488_v33 = vld [vmem:[%s2673_s25 + $0x94] ss:$8 sps:$4 sm:$0xff]   ;;  %v2490_v34 = vld [vmem:[%s2673_s25 + $0x90] ss:$8 sps:$4 sm:$0xff]   ;;  %v2491_v35 = vld [vmem:[%s2673_s25 + $0xa4] ss:$8 sps:$4 sm:$0xff]  }
  0x16   : > { %486 = vmatprep.subr.bf16.mxu0 %v2625_v1  ;;  %v2493_v36 = vld [vmem:[%s2673_s25 + $0xa0] ss:$8 sps:$4 sm:$0xff]   ;;  %v2494_v37 = vld [vmem:[%s2673_s25 + $0xb4] ss:$8 sps:$4 sm:$0xff]   ;;  %v2496_v38 = vld [vmem:[%s2673_s25 + $0xb0] ss:$8 sps:$4 sm:$0xff]  }
  0x17   : > { %v2497_v39 = vld [vmem:[%s2673_s25 + $0xc4] ss:$8 sps:$4 sm:$0xff]   ;;  %v2499_v40 = vld [vmem:[%s2673_s25 + $0xc0] ss:$8 sps:$4 sm:$0xff]   ;;  %v2500_v41 = vld [vmem:[%s2673_s25 + $0xd4] ss:$8 sps:$4 sm:$0xff]  }
  0x18   : > { %v2502_v42 = vld [vmem:[%s2673_s25 + $0xd0] ss:$8 sps:$4 sm:$0xff]   ;;  %v2503_v43 = vld [vmem:[%s2673_s25 + $0xe4] ss:$8 sps:$4 sm:$0xff]   ;;  %v2505_v44 = vld [vmem:[%s2673_s25 + $0xe0] ss:$8 sps:$4 sm:$0xff]  }
  0x19   : > { %487 = vmatpush1.bf16.msra.mxu0 %v2454_v4  ;;  %v2506_v45 = vld [vmem:[%s2673_s25 + $0xf4] ss:$8 sps:$4 sm:$0xff]   ;;  %v2508_v46 = vld [vmem:[%s2673_s25 + $0xf0] ss:$8 sps:$4 sm:$0xff]   ;;  %v2514_v3 = vld [vmem:[%s3350_s2 + $0x144] ss:$8 sps:$4 sm:$0xff]  }
  0x1a   : > { %488 = vmatprep.subr.bf16.mxu0 %v2625_v1 }
  0x1d   : > { %489 = vmatpush1.bf16.msra.mxu0 %v2455_v5 }
  0x1e   : > { %490 = vmatprep.subr.bf16.mxu0 %v2625_v1 }
  0x21   : > { %491 = vmatpush1.bf16.msra.mxu0 %v2456_v7 }
  0x22   : > { %492 = vmatprep.subr.bf16.mxu0 %v2625_v1 }
  0x25   : > { %493 = vmatpush1.bf16.msra.mxu0 %v2457_v8 }
  0x26   : > { %494 = vmatprep.subr.bf16.mxu0 %v2625_v1 }
  0x29   : > { %495 = vmatpush1.bf16.msra.mxu0 %v2458_v11 }
  0x2a   : > { %508 = vmatprep.subr.bf16.mxu0 %v2625_v1 }
  0x2d   : > { %509 = vmatpush2.bf16.msra.mxu0 %v478_v14 }
  0x2e   : > { %510 = vmatprep.subr.bf16.mxu0 %v2625_v1  ;;  %v2511_v1 = vld [vmem:[%s3350_s2 + $0x4] ss:$8 sps:$4 sm:$0xff]  }
  0x2f   : > { %737 = vmatprep.mubr.bf16.mxu1 %v2511_v1 }
  0x31   : > { %511 = vmatpush2.bf16.msra.mxu0 %v2460_v15 }
  0x34   : > { %513 = vmatmul.mubr.bf16.vlgmr.msra.gmra.mxu0 %v2461_v16 }
  0x35   : > { %1894 = vmatprep.mubr.msk.bf16.mxu0 %vm424_vm0, %v2464_v17 }
  0x3c   : > { %521 = vmatmul.mubr.bf16.gmra.mxu0 %v2466_v18 }
  0x3d   : > { %1895 = vmatprep.mubr.msk.bf16.mxu0 %vm424_vm0, %v2467_v19 }
  0x44   : > { %529 = vmatmul.mubr.bf16.gmra.mxu0 %v2469_v20 }
  0x45   : > { %1896 = vmatprep.mubr.msk.bf16.mxu0 %vm424_vm0, %v2470_v21 }
  0x4c   : > { %537 = vmatmul.mubr.bf16.gmra.mxu0 %v2472_v22 }
  0x4d   : > { %1897 = vmatprep.mubr.msk.bf16.mxu0 %vm424_vm0, %v2473_v23 }
  0x54   : > { %545 = vmatmul.mubr.bf16.gmra.mxu0 %v2475_v24 }
  0x55   : > { %1898 = vmatprep.mubr.msk.bf16.mxu0 %vm424_vm0, %v2476_v25 }
  0x5c   : > { %553 = vmatmul.mubr.bf16.gmra.mxu0 %v2478_v26 }
  0x5d   : > { %1899 = vmatprep.mubr.msk.bf16.mxu0 %vm424_vm0, %v2479_v27 }
  0x64   : > { %561 = vmatmul.mubr.bf16.gmra.mxu0 %v2481_v28 }
  0x65   : > { %1900 = vmatprep.mubr.msk.bf16.mxu0 %vm424_vm0, %v2482_v29 }
  0x6c   : > { %569 = vmatmul.mubr.bf16.gmra.mxu0 %v2484_v30 }
  0x6d   : > { %1901 = vmatprep.mubr.msk.bf16.mxu0 %vm424_vm0, %v2485_v31 }
  0x74   : > { %577 = vmatmul.mubr.bf16.gmra.mxu0 %v2487_v32 }
  0x75   : > { %1902 = vmatprep.mubr.msk.bf16.mxu0 %vm424_vm0, %v2488_v33 }
  0x7c   : > { %585 = vmatmul.mubr.bf16.gmra.mxu0 %v2490_v34 }
  0x7d   : > { %1903 = vmatprep.mubr.msk.bf16.mxu0 %vm424_vm0, %v2491_v35 }
  0x84   : > { %593 = vmatmul.mubr.bf16.gmra.mxu0 %v2493_v36 }
  0x85   : > { %1904 = vmatprep.mubr.msk.bf16.mxu0 %vm424_vm0, %v2494_v37 }
  0x8c   : > { %601 = vmatmul.mubr.bf16.gmra.mxu0 %v2496_v38 }
  0x8d   : > { %1905 = vmatprep.mubr.msk.bf16.mxu0 %vm424_vm0, %v2497_v39 }
  0x94   : > { %609 = vmatmul.mubr.bf16.gmra.mxu0 %v2499_v40 }
  0x95   : > { %1906 = vmatprep.mubr.msk.bf16.mxu0 %vm424_vm0, %v2500_v41 }
  0x9c   : > { %617 = vmatmul.mubr.bf16.gmra.mxu0 %v2502_v42 }
  0x9d   : > { %1907 = vmatprep.mubr.msk.bf16.mxu0 %vm424_vm0, %v2503_v43 }
  0xa4   : > { %625 = vmatmul.mubr.bf16.gmra.mxu0 %v2505_v44 }
  0xa5   : > { %1908 = vmatprep.mubr.msk.bf16.mxu0 %vm424_vm0, %v2506_v45 }
  0xac   : > { %633 = vmatmul.mubr.bf16.gmra.mxu0 %v2508_v46 }
  0xad   : > { %1339 = vmatprep.mubr.bf16.mxu0 %v2514_v3 }
  0xf4   : > { %v514_v47 = vpop.f32.mrf.mxu0 }
  0xf6   : > { %v516_v48 = vpop.f32.mrf.mxu0 }
  0xf8   : > { %v517_v49 = vpop.f32.mrf.mxu0 }
  0xf9   : > { %v2741_v50 = vpack.c.bf16 %v517_v49, %v514_v47 }
  0xfa   : > { %v519_v51 = vpop.f32.mrf.mxu0 }
  0xfc   : > { %v522_v52 = vpop.f32.mrf.mxu0 }
  0xfe   : > { %v524_v53 = vpop.f32.mrf.mxu0 }
 0x100   : > { %v525_v54 = vpop.f32.mrf.mxu0 }
 0x101   : > { %v2743_v55 = vpack.c.bf16 %v525_v54, %v522_v52 }
 0x102   : > { %v527_v56 = vpop.f32.mrf.mxu0 }
 0x104   : > { %v530_v57 = vpop.f32.mrf.mxu0 }
 0x106   : > { %v532_v58 = vpop.f32.mrf.mxu0 }
 0x108   : > { %v533_v59 = vpop.f32.mrf.mxu0 }
 0x109   : > { %v2745_v60 = vpack.c.bf16 %v533_v59, %v530_v57 }
 0x10a   : > { %v535_v61 = vpop.f32.mrf.mxu0 }
 0x10c   : > { %v538_v62 = vpop.f32.mrf.mxu0 }
 0x10e   : > { %v540_v63 = vpop.f32.mrf.mxu0 }
 0x110   : > { %v541_v0 = vpop.f32.mrf.mxu0 }
 0x111   : > { %v2750_v2 = vpack.c.bf16 %v541_v0, %v538_v62 }
 0x112   : > { %v543_v4 = vpop.f32.mrf.mxu0 }
 0x114   : > { %v546_v5 = vpop.f32.mrf.mxu0 }
 0x116   : > { %v548_v6 = vpop.f32.mrf.mxu0 }
 0x117   : > { %v2512_v6 = vld [vmem:[%s3350_s2 + $0x140] ss:$8 sps:$4 sm:$0xff]  }
 0x118   : > { %v549_v7 = vpop.f32.mrf.mxu0 }
 0x119   : > { %v2755_v8 = vpack.c.bf16 %v549_v7, %v546_v5  ;;  %v2509_v5 = vld [vmem:[%s3350_s2] ss:$8 sps:$4 sm:$0xff]   ;;  %v2515_v7 = vld [vmem:[%s3350_s2 + $0x14] ss:$8 sps:$4 sm:$0xff]  }
 0x11a   : > { %v551_v9 = vpop.f32.mrf.mxu0 }
 0x11b   : > { %v2518_v9 = vld [vmem:[%s3350_s2 + $0x154] ss:$8 sps:$4 sm:$0xff]  }
 0x11c   : > { %v554_v10 = vpop.f32.mrf.mxu0 }
 0x11e   : > { %v556_v11 = vpop.f32.mrf.mxu0 }
 0x11f   : > { %v2520_v11 = vld [vmem:[%s3350_s2 + $0x150] ss:$8 sps:$4 sm:$0xff]  }
 0x120   : > { %v557_v12 = vpop.f32.mrf.mxu0 }
 0x121   : > { %v2757_v13 = vpack.c.bf16 %v557_v12, %v554_v10  ;;  %v2517_v10 = vld [vmem:[%s3350_s2 + $0x10] ss:$8 sps:$4 sm:$0xff]   ;;  %v2521_v12 = vld [vmem:[%s3350_s2 + $0x24] ss:$8 sps:$4 sm:$0xff]  }
 0x122   : > { %v559_v14 = vpop.f32.mrf.mxu0 }
 0x123   : > { %v2524_v14 = vld [vmem:[%s3350_s2 + $0x164] ss:$8 sps:$4 sm:$0xff]  }
 0x124   : > { %v562_v15 = vpop.f32.mrf.mxu0 }
 0x126   : > { %v564_v16 = vpop.f32.mrf.mxu0 }
 0x127   : > { %v2526_v16 = vld [vmem:[%s3350_s2 + $0x160] ss:$8 sps:$4 sm:$0xff]  }
 0x128   : > { %v565_v17 = vpop.f32.mrf.mxu0 }
 0x129   : > { %v2759_v18 = vpack.c.bf16 %v565_v17, %v562_v15  ;;  %v2523_v15 = vld [vmem:[%s3350_s2 + $0x20] ss:$8 sps:$4 sm:$0xff]   ;;  %v2527_v17 = vld [vmem:[%s3350_s2 + $0x34] ss:$8 sps:$4 sm:$0xff]  }
 0x12a   : > { %v567_v19 = vpop.f32.mrf.mxu0 }
 0x12b   : > { %v2530_v19 = vld [vmem:[%s3350_s2 + $0x174] ss:$8 sps:$4 sm:$0xff]  }
 0x12c   : > { %v570_v20 = vpop.f32.mrf.mxu0 }
 0x12e   : > { %v572_v21 = vpop.f32.mrf.mxu0 }
 0x12f   : > { %v2532_v21 = vld [vmem:[%s3350_s2 + $0x170] ss:$8 sps:$4 sm:$0xff]  }
 0x130   : > { %v573_v22 = vpop.f32.mrf.mxu0 }
 0x131   : > { %v2761_v23 = vpack.c.bf16 %v573_v22, %v570_v20  ;;  %v2529_v20 = vld [vmem:[%s3350_s2 + $0x30] ss:$8 sps:$4 sm:$0xff]   ;;  %v2535_v22 = vld [vmem:[%s3350_s2 + $0x44] ss:$8 sps:$4 sm:$0xff]  }
 0x132   : > { %v575_v24 = vpop.f32.mrf.mxu0 }
 0x133   : > { %v2538_v24 = vld [vmem:[%s3350_s2 + $0x1c4] ss:$8 sps:$4 sm:$0xff]  }
 0x134   : > { %v578_v25 = vpop.f32.mrf.mxu0 }
 0x136   : > { %v580_v26 = vpop.f32.mrf.mxu0 }
 0x137   : > { %v2536_v26 = vld [vmem:[%s3350_s2 + $0x1c0] ss:$8 sps:$4 sm:$0xff]  }
 0x138   : > { %v581_v27 = vpop.f32.mrf.mxu0 }
 0x139   : > { %v2763_v28 = vpack.c.bf16 %v581_v27, %v578_v25  ;;  %v2533_v25 = vld [vmem:[%s3350_s2 + $0x40] ss:$8 sps:$4 sm:$0xff]   ;;  %v2539_v27 = vld [vmem:[%s3350_s2 + $0x54] ss:$8 sps:$4 sm:$0xff]  }
 0x13a   : > { %v583_v29 = vpop.f32.mrf.mxu0 }
 0x13b   : > { %v2578_v29 = vld [vmem:[%s3350_s2 + $0x1d4] ss:$8 sps:$4 sm:$0xff]  }
 0x13c   : > { %v586_v30 = vpop.f32.mrf.mxu0 }
 0x13e   : > { %v588_v31 = vpop.f32.mrf.mxu0 }
 0x13f   : > { %v2580_v31 = vld [vmem:[%s3350_s2 + $0x1d0] ss:$8 sps:$4 sm:$0xff]  }
 0x140   : > { %v589_v32 = vpop.f32.mrf.mxu0 }
 0x141   : > { %v2765_v33 = vpack.c.bf16 %v589_v32, %v586_v30  ;;  %v2541_v30 = vld [vmem:[%s3350_s2 + $0x50] ss:$8 sps:$4 sm:$0xff]   ;;  %v2542_v32 = vld [vmem:[%s3350_s2 + $0x64] ss:$8 sps:$4 sm:$0xff]  }
 0x142   : > { %v591_v34 = vpop.f32.mrf.mxu0 }
 0x143   : > { %v2584_v34 = vld [vmem:[%s3350_s2 + $0x1e4] ss:$8 sps:$4 sm:$0xff]  }
 0x144   : > { %v594_v35 = vpop.f32.mrf.mxu0 }
 0x146   : > { %v596_v36 = vpop.f32.mrf.mxu0 }
 0x147   : > { %v2586_v36 = vld [vmem:[%s3350_s2 + $0x1e0] ss:$8 sps:$4 sm:$0xff]  }
 0x148   : > { %v597_v37 = vpop.f32.mrf.mxu0 }
 0x149   : > { %v2795_v4 = vpack.c.bf16 %v597_v37, %v594_v35  ;;  %v2544_v35 = vld [vmem:[%s3350_s2 + $0x60] ss:$8 sps:$4 sm:$0xff]   ;;  %v2545_v37 = vld [vmem:[%s3350_s2 + $0x74] ss:$8 sps:$4 sm:$0xff]  }
 0x14a   : > { %v599_v38 = vpop.f32.mrf.mxu0 }
 0x14b   : > { %v2590_v38 = vld [vmem:[%s3350_s2 + $0x1f4] ss:$8 sps:$4 sm:$0xff]  }
 0x14c   : > { %v602_v39 = vpop.f32.mrf.mxu0 }
 0x14e   : > { %v604_v40 = vpop.f32.mrf.mxu0 }
 0x14f   : > { %v2592_v40 = vld [vmem:[%s3350_s2 + $0x1f0] ss:$8 sps:$4 sm:$0xff]  }
 0x150   : > { %v605_v41 = vpop.f32.mrf.mxu0 }
 0x151   : > { %v2789_v3 = vpack.c.bf16 %v605_v41, %v602_v39  ;;  %v2547_v39 = vld [vmem:[%s3350_s2 + $0x70] ss:$8 sps:$4 sm:$0xff]   ;;  %v2550_v41 = vld [vmem:[%s3350_s2 + $0x84] ss:$8 sps:$4 sm:$0xff]  }
 0x152   : > { %v607_v42 = vpop.f32.mrf.mxu0 }
 0x153   : > { %v2598_v42 = vld [vmem:[%s3350_s2 + $0x204] ss:$8 sps:$4 sm:$0xff]  }
 0x154   : > { %v610_v43 = vpop.f32.mrf.mxu0 }
 0x156   : > { %v612_v44 = vpop.f32.mrf.mxu0 }
 0x157   : > { %v2596_v44 = vld [vmem:[%s3350_s2 + $0x200] ss:$8 sps:$4 sm:$0xff]  }
 0x158   : > { %v613_v45 = vpop.f32.mrf.mxu0 }
 0x159   : > { %v2783_v1 = vpack.c.bf16 %v613_v45, %v610_v43  ;;  %v2548_v43 = vld [vmem:[%s3350_s2 + $0x80] ss:$8 sps:$4 sm:$0xff]   ;;  %v2551_v45 = vld [vmem:[%s3350_s2 + $0x94] ss:$8 sps:$4 sm:$0xff]  }
 0x15a   : > { %v615_v46 = vpop.f32.mrf.mxu0 }
 0x15b   : > { %v2553_v46 = vld [vmem:[%s3350_s2 + $0x90] ss:$8 sps:$4 sm:$0xff]  }
 0x15c   : > { %v618_v47 = vpop.f32.mrf.mxu0 }
 0x15e   : > { %v620_v48 = vpop.f32.mrf.mxu0 }
 0x15f   : > { %v2556_v48 = vld [vmem:[%s3350_s2 + $0xa0] ss:$8 sps:$4 sm:$0xff]  }
 0x160   : > { %v621_v49 = vpop.f32.mrf.mxu0 }
 0x161   : > { %v2777_v0 = vpack.c.bf16 %v621_v49, %v618_v47  ;;  %v2554_v47 = vld [vmem:[%s3350_s2 + $0xa4] ss:$8 sps:$4 sm:$0xff]   ;;  %v2557_v49 = vld [vmem:[%s3350_s2 + $0xb4] ss:$8 sps:$4 sm:$0xff]  }
 0x162   : > { %v623_v51 = vpop.f32.mrf.mxu0 }
 0x163   : > { %v2559_v51 = vld [vmem:[%s3350_s2 + $0xb0] ss:$8 sps:$4 sm:$0xff]  }
 0x164   : > { %v626_v52 = vpop.f32.mrf.mxu0 }
 0x166   : > { %v628_v53 = vpop.f32.mrf.mxu0 }
 0x167   : > { %v2560_v53 = vld [vmem:[%s3350_s2 + $0xc0] ss:$8 sps:$4 sm:$0xff]  }
 0x168   : > { %v629_v54 = vpop.f32.mrf.mxu0 }
 0x169   : > { %v2769_v63 = vpack.c.bf16 %v629_v54, %v626_v52  ;;  %v2562_v52 = vld [vmem:[%s3350_s2 + $0xc4] ss:$8 sps:$4 sm:$0xff]   ;;  %v2563_v54 = vld [vmem:[%s3350_s2 + $0xd4] ss:$8 sps:$4 sm:$0xff]  }
 0x16a   : > { %v631_v56 = vpop.f32.mrf.mxu0 }
 0x16b   : > { %v2565_v56 = vld [vmem:[%s3350_s2 + $0xd0] ss:$8 sps:$4 sm:$0xff]  }
 0x16c   : > { %v634_v57 = vpop.f32.mrf.mxu0 }
 0x16e   : > { %v636_v58 = vpop.f32.mrf.mxu0 }
 0x16f   : > { %v2568_v58 = vld [vmem:[%s3350_s2 + $0xe0] ss:$8 sps:$4 sm:$0xff]  }
 0x170   : > { %v637_v59 = vpop.f32.mrf.mxu0 }
 0x171   : > { %v2767_v61 = vpack.c.bf16 %v637_v59, %v634_v57  ;;  %v2566_v57 = vld [vmem:[%s3350_s2 + $0xe4] ss:$8 sps:$4 sm:$0xff]   ;;  %v2569_v59 = vld [vmem:[%s3350_s2 + $0xf4] ss:$8 sps:$4 sm:$0xff]  }
 0x172   : > { %v639_v62 = vpop.f32.mrf.mxu0 }
 0x173   : > { %2065 = vmatprep.subr.bf16.mxu1 %v2767_v61  ;;  %2265 = vmatprep.subr.bf16.mxu0 %v2767_v61  ;;  %v2571_v62 = vld [vmem:[%s3350_s2 + $0xf0] ss:$8 sps:$4 sm:$0xff]  }
 0x174   : > { %2066 = vmatpush3.bf16.msra.mxu1 %v2761_v23  ;;  %2266 = vmatpush3.bf16.msra.mxu0 %v2761_v23 }
 0x175   : > { %2067 = vmatprep.subr.bf16.mxu1 %v2769_v63  ;;  %2267 = vmatprep.subr.bf16.mxu0 %v2769_v63 }
 0x178   : > { %2068 = vmatpush3.bf16.msra.mxu1 %v2759_v18  ;;  %2268 = vmatpush3.bf16.msra.mxu0 %v2759_v18 }
 0x179   : > { %2069 = vmatprep.subr.bf16.mxu1 %v2777_v0  ;;  %2269 = vmatprep.subr.bf16.mxu0 %v2777_v0 }
 0x17c   : > { %2070 = vmatpush3.bf16.msra.mxu1 %v2757_v13  ;;  %2270 = vmatpush3.bf16.msra.mxu0 %v2757_v13 }
 0x17d   : > { %2071 = vmatprep.subr.bf16.mxu1 %v2783_v1  ;;  %2271 = vmatprep.subr.bf16.mxu0 %v2783_v1 }
 0x180   : > { %2072 = vmatpush3.bf16.msra.mxu1 %v2755_v8  ;;  %2272 = vmatpush3.bf16.msra.mxu0 %v2755_v8 }
 0x181   : > { %2073 = vmatprep.subr.bf16.mxu1 %v2789_v3  ;;  %2273 = vmatprep.subr.bf16.mxu0 %v2789_v3 }
 0x184   : > { %2074 = vmatpush3.bf16.msra.mxu1 %v2750_v2  ;;  %2274 = vmatpush3.bf16.msra.mxu0 %v2750_v2 }
 0x185   : > { %2075 = vmatprep.subr.bf16.mxu1 %v2795_v4  ;;  %2275 = vmatprep.subr.bf16.mxu0 %v2795_v4 }
 0x188   : > { %2076 = vmatpush3.bf16.msra.mxu1 %v2745_v60  ;;  %2276 = vmatpush3.bf16.msra.mxu0 %v2745_v60 }
 0x189   : > { %2077 = vmatprep.subr.bf16.mxu1 %v2765_v33  ;;  %2277 = vmatprep.subr.bf16.mxu0 %v2765_v33 }
 0x18c   : > { %2078 = vmatpush3.bf16.msra.mxu1 %v2743_v55  ;;  %2278 = vmatpush3.bf16.msra.mxu0 %v2743_v55 }
 0x18d   : > { %2079 = vmatprep.subr.bf16.mxu1 %v2763_v28  ;;  %2279 = vmatprep.subr.bf16.mxu0 %v2763_v28 }
 0x190   : > { %2080 = vmatpush3.bf16.msra.mxu1 %v2741_v50  ;;  %2280 = vmatpush3.bf16.msra.mxu0 %v2741_v50 }
 0x191   : > { %2105 = vmatprep.subr.bf16.mxu1 %v2767_v61  ;;  %2345 = vmatprep.subr.bf16.mxu0 %v2767_v61 }
 0x193   : > { %738 = vmatmul.mubr.bf16.vlgmr.msra.gmra.mxu1 %v2509_v5  ;;  %1340 = vmatmul.mubr.bf16.vlgmr.msra.gmra.mxu0 %v2512_v6  ;;  %v2574_v5 = vld [vmem:[%s3350_s2 + $0x104] ss:$8 sps:$4 sm:$0xff]   ;;  %v2572_v6 = vld [vmem:[%s3350_s2 + $0x100] ss:$8 sps:$4 sm:$0xff]  }
 0x194   : > { %2106 = vmatpush3.bf16.msra.mxu1 %v2761_v23  ;;  %2346 = vmatpush3.bf16.msra.mxu0 %v2761_v23 }
 0x195   : > { %2107 = vmatprep.subr.bf16.mxu1 %v2769_v63  ;;  %2347 = vmatprep.subr.bf16.mxu0 %v2769_v63 }
 0x196   : > { %745 = vmatprep.mubr.bf16.mxu1 %v2515_v7  ;;  %1347 = vmatprep.mubr.bf16.mxu0 %v2518_v9  ;;  %v2575_v7 = vld [vmem:[%s3350_s2 + $0x114] ss:$8 sps:$4 sm:$0xff]   ;;  %v2577_v9 = vld [vmem:[%s3350_s2 + $0x110] ss:$8 sps:$4 sm:$0xff]  }
 0x198   : > { %2108 = vmatpush3.bf16.msra.mxu1 %v2759_v18  ;;  %2348 = vmatpush3.bf16.msra.mxu0 %v2759_v18 }
 0x199   : > { %2109 = vmatprep.subr.bf16.mxu1 %v2777_v0  ;;  %2349 = vmatprep.subr.bf16.mxu0 %v2777_v0 }
 0x19b   : > { %746 = vmatmul.mubr.bf16.gmra.mxu1 %v2517_v10  ;;  %1348 = vmatmul.mubr.bf16.gmra.mxu0 %v2520_v11  ;;  %v2581_v10 = vld [vmem:[%s3350_s2 + $0x124] ss:$8 sps:$4 sm:$0xff]   ;;  %v2583_v11 = vld [vmem:[%s3350_s2 + $0x120] ss:$8 sps:$4 sm:$0xff]  }
 0x19c   : > { %2110 = vmatpush3.bf16.msra.mxu1 %v2757_v13  ;;  %2350 = vmatpush3.bf16.msra.mxu0 %v2757_v13 }
 0x19d   : > { %2111 = vmatprep.subr.bf16.mxu1 %v2783_v1  ;;  %2351 = vmatprep.subr.bf16.mxu0 %v2783_v1 }
 0x19e   : > { %753 = vmatprep.mubr.bf16.mxu1 %v2521_v12  ;;  %1355 = vmatprep.mubr.bf16.mxu0 %v2524_v14  ;;  %v2587_v12 = vld [vmem:[%s3350_s2 + $0x134] ss:$8 sps:$4 sm:$0xff]   ;;  %v2589_v14 = vld [vmem:[%s3350_s2 + $0x130] ss:$8 sps:$4 sm:$0xff]  }
 0x1a0   : > { %2112 = vmatpush3.bf16.msra.mxu1 %v2755_v8  ;;  %2352 = vmatpush3.bf16.msra.mxu0 %v2755_v8 }
 0x1a1   : > { %2113 = vmatprep.subr.bf16.mxu1 %v2789_v3  ;;  %2353 = vmatprep.subr.bf16.mxu0 %v2789_v3 }
 0x1a3   : > { %754 = vmatmul.mubr.bf16.gmra.mxu1 %v2523_v15  ;;  %1356 = vmatmul.mubr.bf16.gmra.mxu0 %v2526_v16  ;;  %v2595_v15 = vld [vmem:[%s3350_s2 + $0x184] ss:$8 sps:$4 sm:$0xff]   ;;  %v2593_v16 = vld [vmem:[%s3350_s2 + $0x180] ss:$8 sps:$4 sm:$0xff]  }
 0x1a4   : > { %2114 = vmatpush3.bf16.msra.mxu1 %v2750_v2  ;;  %2354 = vmatpush3.bf16.msra.mxu0 %v2750_v2 }
 0x1a5   : > { %2115 = vmatprep.subr.bf16.mxu1 %v2795_v4  ;;  %2355 = vmatprep.subr.bf16.mxu0 %v2795_v4 }
 0x1a6   : > { %761 = vmatprep.mubr.bf16.mxu1 %v2527_v17  ;;  %1363 = vmatprep.mubr.bf16.mxu0 %v2530_v19  ;;  %v2599_v17 = vld [vmem:[%s3350_s2 + $0x194] ss:$8 sps:$4 sm:$0xff]   ;;  %v2601_v19 = vld [vmem:[%s3350_s2 + $0x190] ss:$8 sps:$4 sm:$0xff]  }
 0x1a8   : > { %2116 = vmatpush3.bf16.msra.mxu1 %v2745_v60  ;;  %2356 = vmatpush3.bf16.msra.mxu0 %v2745_v60 }
 0x1a9   : > { %2117 = vmatprep.subr.bf16.mxu1 %v2765_v33  ;;  %2357 = vmatprep.subr.bf16.mxu0 %v2765_v33 }
 0x1ab   : > { %762 = vmatmul.mubr.bf16.gmra.mxu1 %v2529_v20  ;;  %1364 = vmatmul.mubr.bf16.gmra.mxu0 %v2532_v21  ;;  %v2602_v20 = vld [vmem:[%s3350_s2 + $0x1a4] ss:$8 sps:$4 sm:$0xff]  }
 0x1ac   : > { %2118 = vmatpush3.bf16.msra.mxu1 %v2743_v55  ;;  %2358 = vmatpush3.bf16.msra.mxu0 %v2743_v55 }
 0x1ad   : > { %2119 = vmatprep.subr.bf16.mxu1 %v2763_v28  ;;  %2359 = vmatprep.subr.bf16.mxu0 %v2763_v28 }
 0x1ae   : > { %851 = vmatprep.mubr.bf16.mxu1 %v2535_v22  ;;  %1583 = vmatprep.mubr.bf16.mxu0 %v2538_v24 }
 0x1b0   : > { %2120 = vmatpush3.bf16.msra.mxu1 %v2741_v50  ;;  %2360 = vmatpush3.bf16.msra.mxu0 %v2741_v50 }
 0x1b1   : > { %2145 = vmatprep.subr.bf16.mxu1 %v2767_v61  ;;  %2385 = vmatprep.subr.bf16.mxu0 %v2767_v61 }
 0x1b3   : > { %852 = vmatmul.mubr.bf16.vlgmr.msra.gmra.mxu1 %v2533_v25  ;;  %1584 = vmatmul.mubr.bf16.vlgmr.msra.gmra.mxu0 %v2536_v26 }
 0x1b4   : > { %2146 = vmatpush3.bf16.msra.mxu1 %v2761_v23  ;;  %2386 = vmatpush3.bf16.msra.mxu0 %v2761_v23 }
 0x1b5   : > { %2147 = vmatprep.subr.bf16.mxu1 %v2769_v63  ;;  %2387 = vmatprep.subr.bf16.mxu0 %v2769_v63 }
 0x1b6   : > { %859 = vmatprep.mubr.bf16.mxu1 %v2539_v27  ;;  %1591 = vmatprep.mubr.bf16.mxu0 %v2578_v29 }
 0x1b8   : > { %2148 = vmatpush3.bf16.msra.mxu1 %v2759_v18  ;;  %2388 = vmatpush3.bf16.msra.mxu0 %v2759_v18 }
 0x1b9   : > { %2149 = vmatprep.subr.bf16.mxu1 %v2777_v0  ;;  %2389 = vmatprep.subr.bf16.mxu0 %v2777_v0 }
 0x1bb   : > { %860 = vmatmul.mubr.bf16.gmra.mxu1 %v2541_v30  ;;  %1592 = vmatmul.mubr.bf16.gmra.mxu0 %v2580_v31 }
 0x1bc   : > { %2150 = vmatpush3.bf16.msra.mxu1 %v2757_v13  ;;  %2390 = vmatpush3.bf16.msra.mxu0 %v2757_v13 }
 0x1bd   : > { %2151 = vmatprep.subr.bf16.mxu1 %v2783_v1  ;;  %2391 = vmatprep.subr.bf16.mxu0 %v2783_v1 }
 0x1be   : > { %867 = vmatprep.mubr.bf16.mxu1 %v2542_v32  ;;  %1599 = vmatprep.mubr.bf16.mxu0 %v2584_v34  ;;  %v2616_v32 = vld [vmem:[%s3350_s2 + $0x230] ss:$8 sps:$4 sm:$0xff]  }
 0x1c0   : > { %2152 = vmatpush3.bf16.msra.mxu1 %v2755_v8  ;;  %2392 = vmatpush3.bf16.msra.mxu0 %v2755_v8 }
 0x1c1   : > { %2153 = vmatprep.subr.bf16.mxu1 %v2789_v3  ;;  %2393 = vmatprep.subr.bf16.mxu0 %v2789_v3 }
 0x1c3   : > { %868 = vmatmul.mubr.bf16.gmra.mxu1 %v2544_v35  ;;  %1600 = vmatmul.mubr.bf16.gmra.mxu0 %v2586_v36 }
 0x1c4   : > { %2154 = vmatpush3.bf16.msra.mxu1 %v2750_v2  ;;  %2394 = vmatpush3.bf16.msra.mxu0 %v2750_v2 }
 0x1c5   : > { %2155 = vmatprep.subr.bf16.mxu1 %v2795_v4  ;;  %2395 = vmatprep.subr.bf16.mxu0 %v2795_v4 }
 0x1c6   : > { %875 = vmatprep.mubr.bf16.mxu1 %v2545_v37  ;;  %1607 = vmatprep.mubr.bf16.mxu0 %v2590_v38 }
 0x1c8   : > { %2156 = vmatpush3.bf16.msra.mxu1 %v2745_v60  ;;  %2396 = vmatpush3.bf16.msra.mxu0 %v2745_v60 }
 0x1c9   : > { %2157 = vmatprep.subr.bf16.mxu1 %v2765_v33  ;;  %2397 = vmatprep.subr.bf16.mxu0 %v2765_v33 }
 0x1cb   : > { %876 = vmatmul.mubr.bf16.gmra.mxu1 %v2547_v39  ;;  %1608 = vmatmul.mubr.bf16.gmra.mxu0 %v2592_v40 }
 0x1cc   : > { %2158 = vmatpush3.bf16.msra.mxu1 %v2743_v55  ;;  %2398 = vmatpush3.bf16.msra.mxu0 %v2743_v55 }
 0x1cd   : > { %2159 = vmatprep.subr.bf16.mxu1 %v2763_v28  ;;  %2399 = vmatprep.subr.bf16.mxu0 %v2763_v28 }
 0x1ce   : > { %973 = vmatprep.mubr.bf16.mxu1 %v2550_v41  ;;  %1705 = vmatprep.mubr.bf16.mxu0 %v2598_v42 }
 0x1d0   : > { %2160 = vmatpush3.bf16.msra.mxu1 %v2741_v50  ;;  %2400 = vmatpush3.bf16.msra.mxu0 %v2741_v50 }
 0x1d1   : > { %2185 = vmatprep.subr.bf16.mxu1 %v2767_v61 }
 0x1d3   : > { %974 = vmatmul.mubr.bf16.vlgmr.msra.gmra.mxu1 %v2548_v43  ;;  %1706 = vmatmul.mubr.bf16.vlgmr.msra.gmra.mxu0 %v2596_v44 }
 0x1d4   : > { %2186 = vmatpush3.bf16.msra.mxu1 %v2761_v23  ;;  %981 = vmatprep.mubr.bf16.mxu1 %v2551_v45 }
 0x1d5   : > { %2187 = vmatprep.subr.bf16.mxu1 %v2769_v63 }
 0x1d8   : > { %2188 = vmatpush3.bf16.msra.mxu1 %v2759_v18 }
 0x1d9   : > { %2189 = vmatprep.subr.bf16.mxu1 %v2777_v0 }
 0x1db   : > { %982 = vmatmul.mubr.bf16.gmra.mxu1 %v2553_v46 }
 0x1dc   : > { %2190 = vmatpush3.bf16.msra.mxu1 %v2757_v13  ;;  %989 = vmatprep.mubr.bf16.mxu1 %v2554_v47 }
 0x1dd   : > { %2191 = vmatprep.subr.bf16.mxu1 %v2783_v1 }
 0x1e0   : > { %2192 = vmatpush3.bf16.msra.mxu1 %v2755_v8 }
 0x1e1   : > { %2193 = vmatprep.subr.bf16.mxu1 %v2789_v3 }
 0x1e3   : > { %990 = vmatmul.mubr.bf16.gmra.mxu1 %v2556_v48 }
 0x1e4   : > { %2194 = vmatpush3.bf16.msra.mxu1 %v2750_v2  ;;  %997 = vmatprep.mubr.bf16.mxu1 %v2557_v49 }
 0x1e5   : > { %2195 = vmatprep.subr.bf16.mxu1 %v2795_v4 }
 0x1e8   : > { %2196 = vmatpush3.bf16.msra.mxu1 %v2745_v60 }
 0x1e9   : > { %2197 = vmatprep.subr.bf16.mxu1 %v2765_v33 }
 0x1eb   : > { %998 = vmatmul.mubr.bf16.gmra.mxu1 %v2559_v51 }
 0x1ec   : > { %2198 = vmatpush3.bf16.msra.mxu1 %v2743_v55  ;;  %1095 = vmatprep.mubr.bf16.mxu1 %v2562_v52 }
 0x1ed   : > { %2199 = vmatprep.subr.bf16.mxu1 %v2763_v28 }
 0x1f0   : > { %2200 = vmatpush3.bf16.msra.mxu1 %v2741_v50 }
 0x1f1   : > { %2225 = vmatprep.subr.bf16.mxu1 %v2767_v61 }
 0x1f3   : > { %1096 = vmatmul.mubr.bf16.vlgmr.msra.gmra.mxu1 %v2560_v53 }
 0x1f4   : > { %2226 = vmatpush3.bf16.msra.mxu1 %v2761_v23  ;;  %1103 = vmatprep.mubr.bf16.mxu1 %v2563_v54 }
 0x1f5   : > { %2227 = vmatprep.subr.bf16.mxu1 %v2769_v63 }
 0x1f8   : > { %2228 = vmatpush3.bf16.msra.mxu1 %v2759_v18 }
 0x1f9   : > { %2229 = vmatprep.subr.bf16.mxu1 %v2777_v0 }
 0x1fb   : > { %1104 = vmatmul.mubr.bf16.gmra.mxu1 %v2565_v56 }
 0x1fc   : > { %2230 = vmatpush3.bf16.msra.mxu1 %v2757_v13  ;;  %1111 = vmatprep.mubr.bf16.mxu1 %v2566_v57 }
 0x1fd   : > { %2231 = vmatprep.subr.bf16.mxu1 %v2783_v1 }
 0x200   : > { %2232 = vmatpush3.bf16.msra.mxu1 %v2755_v8 }
 0x201   : > { %2233 = vmatprep.subr.bf16.mxu1 %v2789_v3 }
 0x203   : > { %1112 = vmatmul.mubr.bf16.gmra.mxu1 %v2568_v58 }
 0x204   : > { %2234 = vmatpush3.bf16.msra.mxu1 %v2750_v2  ;;  %1119 = vmatprep.mubr.bf16.mxu1 %v2569_v59 }
 0x205   : > { %2235 = vmatprep.subr.bf16.mxu1 %v2795_v4 }
 0x208   : > { %2236 = vmatpush3.bf16.msra.mxu1 %v2745_v60 }
 0x209   : > { %2237 = vmatprep.subr.bf16.mxu1 %v2765_v33 }
 0x20b   : > { %1120 = vmatmul.mubr.bf16.gmra.mxu1 %v2571_v62 }
 0x20c   : > { %2238 = vmatpush3.bf16.msra.mxu1 %v2743_v55  ;;  %1217 = vmatprep.mubr.bf16.mxu1 %v2574_v5 }
 0x20d   : > { %2239 = vmatprep.subr.bf16.mxu1 %v2763_v28 }
 0x210   : > { %2240 = vmatpush3.bf16.msra.mxu1 %v2741_v50 }
 0x211   : > { %2305 = vmatprep.subr.bf16.mxu1 %v2767_v61 }
 0x213   : > { %1218 = vmatmul.mubr.bf16.vlgmr.msra.gmra.mxu1 %v2572_v6 }
 0x214   : > { %2306 = vmatpush3.bf16.msra.mxu1 %v2761_v23  ;;  %1225 = vmatprep.mubr.bf16.mxu1 %v2575_v7 }
 0x215   : > { %2307 = vmatprep.subr.bf16.mxu1 %v2769_v63 }
 0x218   : > { %2308 = vmatpush3.bf16.msra.mxu1 %v2759_v18 }
 0x219   : > { %2309 = vmatprep.subr.bf16.mxu1 %v2777_v0 }
 0x21b   : > { %1226 = vmatmul.mubr.bf16.gmra.mxu1 %v2577_v9 }
 0x21c   : > { %2310 = vmatpush3.bf16.msra.mxu1 %v2757_v13  ;;  %1233 = vmatprep.mubr.bf16.mxu1 %v2581_v10 }
 0x21d   : > { %2311 = vmatprep.subr.bf16.mxu1 %v2783_v1 }
 0x220   : > { %2312 = vmatpush3.bf16.msra.mxu1 %v2755_v8 }
 0x221   : > { %2313 = vmatprep.subr.bf16.mxu1 %v2789_v3 }
 0x223   : > { %1234 = vmatmul.mubr.bf16.gmra.mxu1 %v2583_v11 }
 0x224   : > { %2314 = vmatpush3.bf16.msra.mxu1 %v2750_v2  ;;  %1241 = vmatprep.mubr.bf16.mxu1 %v2587_v12 }
 0x225   : > { %2315 = vmatprep.subr.bf16.mxu1 %v2795_v4 }
 0x228   : > { %2316 = vmatpush3.bf16.msra.mxu1 %v2745_v60 }
 0x229   : > { %2317 = vmatprep.subr.bf16.mxu1 %v2765_v33 }
 0x22b   : > { %1242 = vmatmul.mubr.bf16.gmra.mxu1 %v2589_v14 }
 0x22c   : > { %2318 = vmatpush3.bf16.msra.mxu1 %v2743_v55  ;;  %1461 = vmatprep.mubr.bf16.mxu1 %v2595_v15 }
 0x22d   : > { %2319 = vmatprep.subr.bf16.mxu1 %v2763_v28 }
 0x230   : > { %2320 = vmatpush3.bf16.msra.mxu1 %v2741_v50 }
 0x231   : > { %2425 = vmatprep.subr.bf16.mxu1 %v2767_v61 }
 0x233   : > { %1462 = vmatmul.mubr.bf16.vlgmr.msra.gmra.mxu1 %v2593_v16 }
 0x234   : > { %2433 = vmatpush3.bf16.msra.mxu1 %v2761_v23  ;;  %1469 = vmatprep.mubr.bf16.mxu1 %v2599_v17  ;;  %v2604_v23 = vld [vmem:[%s3350_s2 + $0x1a0] ss:$8 sps:$4 sm:$0xff]  }
 0x235   : > { %2426 = vmatprep.subr.bf16.mxu1 %v2769_v63 }
 0x238   : > { %2434 = vmatpush3.bf16.msra.mxu1 %v2759_v18  ;;  %v2605_v18 = vld [vmem:[%s3350_s2 + $0x1b4] ss:$8 sps:$4 sm:$0xff]  }
 0x239   : > { %2427 = vmatprep.subr.bf16.mxu1 %v2777_v0 }
 0x23b   : > { %1470 = vmatmul.mubr.bf16.gmra.mxu1 %v2601_v19 }
 0x23c   : > { %2435 = vmatpush3.bf16.msra.mxu1 %v2757_v13  ;;  %1477 = vmatprep.mubr.bf16.mxu1 %v2602_v20  ;;  %v2607_v13 = vld [vmem:[%s3350_s2 + $0x1b0] ss:$8 sps:$4 sm:$0xff]  }
 0x23d   : > { %2428 = vmatprep.subr.bf16.mxu1 %v2783_v1  ;;  %v2613_v1 = vld [vmem:[%s3350_s2 + $0x220] ss:$8 sps:$4 sm:$0xff]  }
 0x240   : > { %2436 = vmatpush3.bf16.msra.mxu1 %v2755_v8  ;;  %v2610_v8 = vld [vmem:[%s3350_s2 + $0x214] ss:$8 sps:$4 sm:$0xff]  }
 0x241   : > { %2429 = vmatprep.subr.bf16.mxu1 %v2789_v3  ;;  %v2614_v3 = vld [vmem:[%s3350_s2 + $0x234] ss:$8 sps:$4 sm:$0xff]  }
 0x243   : > { %1478 = vmatmul.mubr.bf16.gmra.mxu1 %v2604_v23 }
 0x244   : > { %2437 = vmatpush3.bf16.msra.mxu1 %v2750_v2  ;;  %1485 = vmatprep.mubr.bf16.mxu1 %v2605_v18  ;;  %v2608_v2 = vld [vmem:[%s3350_s2 + $0x210] ss:$8 sps:$4 sm:$0xff]  }
 0x245   : > { %2430 = vmatprep.subr.bf16.mxu1 %v2795_v4 }
 0x248   : > { %2438 = vmatpush3.bf16.msra.mxu1 %v2745_v60  ;;  %v2611_v60 = vld [vmem:[%s3350_s2 + $0x224] ss:$8 sps:$4 sm:$0xff]  }
 0x249   : > { %2431 = vmatprep.subr.bf16.mxu1 %v2765_v33 }
 0x24b   : > { %1486 = vmatmul.mubr.bf16.gmra.mxu1 %v2607_v13 }
 0x24c   : > { %2439 = vmatpush3.bf16.msra.mxu1 %v2743_v55  ;;  %1713 = vmatprep.mubr.bf16.mxu1 %v2610_v8 }
 0x24d   : > { %2432 = vmatprep.subr.bf16.mxu1 %v2763_v28 }
 0x250   : > { %2440 = vmatpush3.bf16.msra.mxu1 %v2741_v50 }
 0x253   : > { %v2081_v61 = vpop.f32.mrf.mxu1  ;;  %1714 = vmatmul.mubr.bf16.vlgmr.msra.gmra.mxu1 %v2608_v2  ;;  %v3140_v63 = vpop.f32.mrf.mxu0 }
 0x254   : > { %1721 = vmatprep.mubr.bf16.mxu1 %v2611_v60 }
 0x255   : > { %v2082_v33 = vpop.f32.mrf.mxu1  ;;  %v3142_v55 = vpop.f32.mrf.mxu0 }
 0x256   : > { %v3144_v0 = vadd.f32 %v2082_v33, %v2081_v61 }
 0x257   : > { %v2084_v28 = vpop.f32.mrf.mxu1  ;;  %v3149_v50 = vpop.f32.mrf.mxu0 }
 0x259   : > { %v2085_v4 = vpop.f32.mrf.mxu1  ;;  %v3154_v21 = vpop.f32.mrf.mxu0 }
 0x25a   : > { %v3156_v22 = vadd.f32 %v2085_v4, %v2084_v28 }
 0x25b   : > { %v2087_v24 = vpop.f32.mrf.mxu1  ;;  %1722 = vmatmul.mubr.bf16.gmra.mxu1 %v2613_v1  ;;  %v2287_v25 = vpop.f32.mrf.mxu0 }
 0x25c   : > { %1729 = vmatprep.mubr.bf16.mxu1 %v2614_v3 }
 0x25d   : > { %v2088_v26 = vpop.f32.mrf.mxu1  ;;  %v2288_v27 = vpop.f32.mrf.mxu0 }
 0x25e   : > { %v3158_v29 = vadd.f32 %v2088_v26, %v2087_v24  ;;  %v3160_v30 = vadd.f32 %v2288_v27, %v2287_v25 }
 0x25f   : > { %v2090_v31 = vpop.f32.mrf.mxu1  ;;  %v2290_v34 = vpop.f32.mrf.mxu0 }
 0x261   : > { %v2091_v35 = vpop.f32.mrf.mxu1  ;;  %v2291_v36 = vpop.f32.mrf.mxu0 }
 0x262   : > { %v3165_v37 = vadd.f32 %v2091_v35, %v2090_v31  ;;  %v3167_v38 = vadd.f32 %v2291_v36, %v2290_v34 }
 0x263   : > { %v2093_v39 = vpop.f32.mrf.mxu1  ;;  %1730 = vmatmul.mubr.bf16.gmra.mxu1 %v2616_v32  ;;  %v2293_v40 = vpop.f32.mrf.mxu0 }
 0x265   : > { %v2094_v41 = vpop.f32.mrf.mxu1  ;;  %v2294_v42 = vpop.f32.mrf.mxu0 }
 0x266   : > { %v3169_v43 = vadd.f32 %v2094_v41, %v2093_v39  ;;  %v3171_v44 = vadd.f32 %v2294_v42, %v2293_v40 }
 0x267   : > { %v2096_v45 = vpop.f32.mrf.mxu1  ;;  %v2296_v46 = vpop.f32.mrf.mxu0 }
 0x269   : > { %v2097_v47 = vpop.f32.mrf.mxu1  ;;  %v2297_v48 = vpop.f32.mrf.mxu0 }
 0x26a   : > { %v3173_v49 = vadd.f32 %v2097_v47, %v2096_v45  ;;  %v3175_v51 = vadd.f32 %v2297_v48, %v2296_v46 }
 0x26b   : > { %v2099_v52 = vpop.f32.mrf.mxu1  ;;  %v2299_v53 = vpop.f32.mrf.mxu0 }
 0x26d   : > { %v2100_v54 = vpop.f32.mrf.mxu1  ;;  %v2300_v56 = vpop.f32.mrf.mxu0 }
 0x26e   : > { %v3177_v57 = vadd.f32 %v2100_v54, %v2099_v52  ;;  %v3179_v58 = vadd.f32 %v2300_v56, %v2299_v53 }
 0x26f   : > { %v2102_v59 = vpop.f32.mrf.mxu1  ;;  %v2302_v62 = vpop.f32.mrf.mxu0 }
 0x271   : > { %v2103_v5 = vpop.f32.mrf.mxu1  ;;  %v2303_v6 = vpop.f32.mrf.mxu0 }
 0x272   : > { %v3181_v7 = vadd.f32 %v2103_v5, %v2102_v59  ;;  %v3183_v9 = vadd.f32 %v2303_v6, %v2302_v62 }
 0x273   : > { %v2121_v10 = vpop.f32.mrf.mxu1 }
 0x275   : > { %v2122_v11 = vpop.f32.mrf.mxu1 }
 0x276   : > { %v2123_v12 = vadd.f32 %v2122_v11, %v2121_v10 }
 0x277   : > { %v2124_v14 = vpop.f32.mrf.mxu1 }
 0x278   : > { %v884_v15 = vmax.f32 %v3144_v0, %v2123_v12 }
 0x279   : > { %v2125_v16 = vpop.f32.mrf.mxu1 }
 0x27a   : > { %v2126_v17 = vadd.f32 %v2125_v16, %v2124_v14 }
 0x27b   : > { %v2127_v19 = vpop.f32.mrf.mxu1 }
 0x27c   : > { %v885_v20 = vmax.f32 %v3156_v22, %v2126_v17 }
 0x27d   : > { %v2128_v23 = vpop.f32.mrf.mxu1 }
 0x27e   : > { %v2129_v18 = vadd.f32 %v2128_v23, %v2127_v19 }
 0x27f   : > { %v2130_v13 = vpop.f32.mrf.mxu1 }
 0x280   : > { %v886_v8 = vmax.f32 %v3158_v29, %v2129_v18 }
 0x281   : > { %v2131_v2 = vpop.f32.mrf.mxu1 }
 0x282   : > { %v2132_v60 = vadd.f32 %v2131_v2, %v2130_v13 }
 0x283   : > { %v2133_v61 = vpop.f32.mrf.mxu1 }
 0x284   : > { %v887_v33 = vmax.f32 %v3165_v37, %v2132_v60 }
 0x285   : > { %v2134_v28 = vpop.f32.mrf.mxu1 }
 0x286   : > { %v2135_v1 = vadd.f32 %v2134_v28, %v2133_v61 }
 0x287   : > { %v2136_v3 = vpop.f32.mrf.mxu1 }
 0x288   : > { %v888_v0 = vmax.f32 %v3169_v43, %v2135_v1 }
 0x289   : > { %v2137_v4 = vpop.f32.mrf.mxu1 }
 0x28a   : > { %v2138_v24 = vadd.f32 %v2137_v4, %v2136_v3 }
 0x28b   : > { %v2139_v25 = vpop.f32.mrf.mxu1 }
 0x28c   : > { %v889_v22 = vmax.f32 %v3173_v49, %v2138_v24 }
 0x28d   : > { %v2140_v26 = vpop.f32.mrf.mxu1 }
 0x28e   : > { %v2141_v27 = vadd.f32 %v2140_v26, %v2139_v25 }
 0x28f   : > { %v2142_v31 = vpop.f32.mrf.mxu1 }
 0x290   : > { %v890_v29 = vmax.f32 %v3177_v57, %v2141_v27 }
 0x291   : > { %v2143_v32 = vpop.f32.mrf.mxu1 }
 0x292   : > { %v2144_v34 = vadd.f32 %v2143_v32, %v2142_v31 }
 0x293   : > { %v2161_v35 = vpop.f32.mrf.mxu1 }
 0x294   : > { %v891_v36 = vmax.f32 %v3181_v7, %v2144_v34 }
 0x295   : > { %v2162_v37 = vpop.f32.mrf.mxu1 }
 0x296   : > { %v2163_v39 = vadd.f32 %v2162_v37, %v2161_v35 }
 0x297   : > { %v2164_v40 = vpop.f32.mrf.mxu1 }
 0x298   : > { %v3193_v41 = vmax.f32 %v884_v15, %v2163_v39  ;;  %v3205_v15 = vpop.f32.mrf.mxu0 }
 0x299   : > { %v2165_v42 = vpop.f32.mrf.mxu1 }
 0x29a   : > { %v2166_v43 = vadd.f32 %v2165_v42, %v2164_v40  ;;  %v3209_v23 = vpop.f32.mrf.mxu0 }
 0x29b   : > { %v2167_v45 = vpop.f32.mrf.mxu1 }
 0x29c   : > { %v3195_v46 = vmax.f32 %v885_v20, %v2166_v43  ;;  %v3217_v60 = vpop.f32.mrf.mxu0 }
 0x29d   : > { %v2168_v47 = vpop.f32.mrf.mxu1 }
 0x29e   : > { %v2169_v48 = vadd.f32 %v2168_v47, %v2167_v45  ;;  %v3223_v28 = vpop.f32.mrf.mxu0 }
 0x29f   : > { %v2170_v49 = vpop.f32.mrf.mxu1 }
 0x2a0   : > { %v3197_v52 = vmax.f32 %v886_v8, %v2169_v48 }
 0x2a1   : > { %v2171_v53 = vpop.f32.mrf.mxu1 }
 0x2a2   : > { %v2172_v54 = vadd.f32 %v2171_v53, %v2170_v49 }
 0x2a3   : > { %v2173_v56 = vpop.f32.mrf.mxu1 }
 0x2a4   : > { %v3199_v57 = vmax.f32 %v887_v33, %v2172_v54 }
 0x2a5   : > { %v2174_v59 = vpop.f32.mrf.mxu1 }
 0x2a6   : > { %v2175_v62 = vadd.f32 %v2174_v59, %v2173_v56 }
 0x2a7   : > { %v2176_v5 = vpop.f32.mrf.mxu1 }
 0x2a8   : > { %v3201_v6 = vmax.f32 %v888_v0, %v2175_v62  ;;  %v3225_v0 = vpop.f32.mrf.mxu0 }
 0x2a9   : > { %v2177_v7 = vpop.f32.mrf.mxu1 }
 0x2aa   : > { %v2178_v10 = vadd.f32 %v2177_v7, %v2176_v5  ;;  %v3228_v26 = vpop.f32.mrf.mxu0 }
 0x2ab   : > { %v2179_v11 = vpop.f32.mrf.mxu1 }
 0x2ac   : > { %v3203_v12 = vmax.f32 %v889_v22, %v2178_v10  ;;  %v3231_v34 = vpop.f32.mrf.mxu0 }
 0x2ad   : > { %v2180_v14 = vpop.f32.mrf.mxu1 }
 0x2ae   : > { %v2181_v16 = vadd.f32 %v2180_v14, %v2179_v11  ;;  %v3234_v40 = vpop.f32.mrf.mxu0 }
 0x2af   : > { %v2182_v17 = vpop.f32.mrf.mxu1 }
 0x2b0   : > { %v3207_v19 = vmax.f32 %v890_v29, %v2181_v16  ;;  %v3237_v48 = vpop.f32.mrf.mxu0 }
 0x2b1   : > { %v2183_v20 = vpop.f32.mrf.mxu1 }
 0x2b2   : > { %v2184_v18 = vadd.f32 %v2183_v20, %v2182_v17  ;;  %v3240_v56 = vpop.f32.mrf.mxu0 }
 0x2b3   : > { %v3211_v13 = vpop.f32.mrf.mxu1 }
 0x2b4   : > { %v3213_v8 = vmax.f32 %v891_v36, %v2184_v18 }
 0x2b5   : > { %v3215_v2 = vpop.f32.mrf.mxu1 }
 0x2b7   : > { %v3219_v61 = vpop.f32.mrf.mxu1 }
 0x2b9   : > { %v3221_v33 = vpop.f32.mrf.mxu1 }
 0x2bb   : > { %v2207_v1 = vpop.f32.mrf.mxu1 }
 0x2bd   : > { %v2208_v3 = vpop.f32.mrf.mxu1 }
 0x2be   : > { %v2209_v4 = vadd.f32 %v2208_v3, %v2207_v1 }
 0x2bf   : > { %v2210_v24 = vpop.f32.mrf.mxu1 }
 0x2c0   : > { %v1130_v25 = vmax.f32 %v3197_v52, %v2209_v4 }
 0x2c1   : > { %v2211_v22 = vpop.f32.mrf.mxu1 }
 0x2c2   : > { %v2212_v27 = vadd.f32 %v2211_v22, %v2210_v24 }
 0x2c3   : > { %v2213_v31 = vpop.f32.mrf.mxu1 }
 0x2c4   : > { %v1131_v29 = vmax.f32 %v3199_v57, %v2212_v27 }
 0x2c5   : > { %v2214_v32 = vpop.f32.mrf.mxu1 }
 0x2c6   : > { %v2215_v35 = vadd.f32 %v2214_v32, %v2213_v31 }
 0x2c7   : > { %v2216_v36 = vpop.f32.mrf.mxu1 }
 0x2c8   : > { %v1132_v37 = vmax.f32 %v3201_v6, %v2215_v35  ;;  %v3243_v6 = vpop.f32.mrf.mxu0 }
 0x2c9   : > { %v2217_v39 = vpop.f32.mrf.mxu1 }
 0x2ca   : > { %v2218_v42 = vadd.f32 %v2217_v39, %v2216_v36  ;;  %v3245_v11 = vpop.f32.mrf.mxu0 }
 0x2cb   : > { %v2219_v43 = vpop.f32.mrf.mxu1 }
 0x2cc   : > { %v1133_v45 = vmax.f32 %v3203_v12, %v2218_v42  ;;  %v3247_v16 = vpop.f32.mrf.mxu0 }
 0x2cd   : > { %v2220_v47 = vpop.f32.mrf.mxu1 }
 0x2ce   : > { %v2221_v49 = vadd.f32 %v2220_v47, %v2219_v43  ;;  %v3251_v1 = vpop.f32.mrf.mxu0 }
 0x2cf   : > { %v2222_v52 = vpop.f32.mrf.mxu1 }
 0x2d0   : > { %v1134_v53 = vmax.f32 %v3207_v19, %v2221_v49  ;;  %v3257_v27 = vpop.f32.mrf.mxu0 }
 0x2d1   : > { %v2223_v54 = vpop.f32.mrf.mxu1 }
 0x2d2   : > { %v2224_v57 = vadd.f32 %v2223_v54, %v2222_v52  ;;  %v3263_v39 = vpop.f32.mrf.mxu0 }
 0x2d3   : > { %v2241_v59 = vpop.f32.mrf.mxu1 }
 0x2d4   : > { %v1135_v62 = vmax.f32 %v3213_v8, %v2224_v57  ;;  %v2401_v54 = vpop.f32.mrf.mxu0 }
 0x2d5   : > { %v2242_v5 = vpop.f32.mrf.mxu1 }
 0x2d6   : > { %v2243_v57 = vadd.f32 %v2242_v5, %v2241_v59 }
 0x2d7   : > { %v2244_v7 = vpop.f32.mrf.mxu1 }
 0x2d9   : > { %v2245_v10 = vpop.f32.mrf.mxu1 }
 0x2db   : > { %v2247_v12 = vpop.f32.mrf.mxu1 }
 0x2dd   : > { %v2248_v14 = vpop.f32.mrf.mxu1 }
 0x2de   : > { %v2249_v17 = vadd.f32 %v2248_v14, %v2247_v12 }
 0x2df   : > { %v2250_v19 = vpop.f32.mrf.mxu1 }
 0x2e0   : > { %v3249_v20 = vmax.f32 %v1130_v25, %v2249_v17 }
 0x2e1   : > { %v2251_v18 = vpop.f32.mrf.mxu1 }
 0x2e2   : > { %v2252_v3 = vadd.f32 %v2251_v18, %v2250_v19  ;;  %v1374_v8 = vmax.f32 %v3249_v20, %v3160_v30  ;;  %v2206_v19 = vadd.f32 %v3221_v33, %v3219_v61  ;;  %v2286_v61 = vadd.f32 %v3154_v21, %v3149_v50 }
 0x2e3   : > { %v2253_v4 = vpop.f32.mrf.mxu1  ;;  %v2366_v50 = vadd.f32 %v3223_v28, %v3217_v60  ;;  %v2375_v30 = vadd.f32 %v3240_v56, %v3237_v48 }
 0x2e4   : > { %v3255_v24 = vmax.f32 %v1131_v29, %v2252_v3  ;;  %v2203_v29 = vadd.f32 %v3215_v2, %v3211_v13  ;;  %v2283_v13 = vadd.f32 %v3142_v55, %v3140_v63  ;;  %v2363_v63 = vadd.f32 %v3209_v23, %v3205_v15 }
 0x2e5   : > { %v2254_v22 = vpop.f32.mrf.mxu1 }
 0x2e6   : > { %v2255_v31 = vadd.f32 %v2254_v22, %v2253_v4  ;;  %v1375_v32 = vmax.f32 %v3255_v24, %v3167_v38  ;;  %v1128_v17 = vmax.f32 %v3193_v41, %v2203_v29  ;;  %v2246_v4 = vadd.f32 %v2245_v10, %v2244_v7 }
 0x2e7   : > { %v2256_v35 = vpop.f32.mrf.mxu1 }
 0x2e8   : > { %v3261_v25 = vmax.f32 %v1132_v37, %v2255_v31  ;;  %v1250_v3 = vmax.f32 %v1128_v17, %v2243_v57  ;;  %v1129_v31 = vmax.f32 %v3195_v46, %v2206_v19 }
 0x2e9   : > { %v2257_v36 = vpop.f32.mrf.mxu1 }
 0x2ea   : > { %v2258_v42 = vadd.f32 %v2257_v36, %v2256_v35  ;;  %v1376_v43 = vmax.f32 %v3261_v25, %v3171_v44  ;;  %v1372_v7 = vmax.f32 %v1250_v3, %v2283_v13 }
 0x2eb   : > { %v2259_v47 = vpop.f32.mrf.mxu1 }
 0x2ec   : > { %v3269_v49 = vmax.f32 %v1133_v45, %v2258_v42  ;;  %v2402_v45 = vpop.f32.mrf.mxu0 }
 0x2ed   : > { %v2260_v52 = vpop.f32.mrf.mxu1  ;;  %v2403_v46 = vadd.f32 %v2402_v45, %v2401_v54 }
 0x2ee   : > { %v2261_v12 = vadd.f32 %v2260_v52, %v2259_v47  ;;  %v1377_v37 = vmax.f32 %v3269_v49, %v3175_v51  ;;  %v2404_v33 = vpop.f32.mrf.mxu0 }
 0x2ef   : > { %v2262_v14 = vpop.f32.mrf.mxu1 }
 0x2f0   : > { %v3276_v18 = vmax.f32 %v1134_v53, %v2261_v12  ;;  %v1251_v53 = vmax.f32 %v1129_v31, %v2246_v4  ;;  %v2405_v47 = vpop.f32.mrf.mxu0 }
 0x2f1   : > { %v2263_v2 = vpop.f32.mrf.mxu1  ;;  %v2406_v12 = vadd.f32 %v2405_v47, %v2404_v33 }
 0x2f2   : > { %v2264_v59 = vadd.f32 %v2263_v2, %v2262_v14  ;;  %v1378_v5 = vmax.f32 %v3276_v18, %v3179_v58  ;;  %v1373_v21 = vmax.f32 %v1251_v53, %v2286_v61 }
 0x2f3   : > { %v2321_v22 = vpop.f32.mrf.mxu1 }
 0x2f4   : > { %v3283_v41 = vmax.f32 %v1135_v62, %v2264_v59 }
 0x2f5   : > { %v2322_v55 = vpop.f32.mrf.mxu1 }
 0x2f6   : > { %v2323_v10 = vadd.f32 %v2322_v55, %v2321_v22  ;;  %v1379_v35 = vmax.f32 %v3283_v41, %v3183_v9  ;;  %v2369_v55 = vadd.f32 %v3228_v26, %v3225_v0 }
 0x2f7   : > { %v2324_v36 = vpop.f32.mrf.mxu1 }
 0x2f8   : > { %v1494_v42 = vmax.f32 %v1372_v7, %v2323_v10  ;;  %v2372_v10 = vadd.f32 %v3234_v40, %v3231_v34 }
 0x2f9   : > { %v2325_v62 = vpop.f32.mrf.mxu1 }
 0x2fa   : > { %v2326_v29 = vadd.f32 %v2325_v62, %v2324_v36  ;;  %v1616_v15 = vmax.f32 %v1494_v42, %v2363_v63 }
 0x2fb   : > { %v2327_v23 = vpop.f32.mrf.mxu1 }
 0x2fc   : > { %v1495_v52 = vmax.f32 %v1373_v21, %v2326_v29  ;;  %v1738_v57 = vmax.f32 %v1616_v15, %v2403_v46 }
 0x2fd   : > { %v2328_v54 = vpop.f32.mrf.mxu1 }
 0x2fe   : > { %v2057_v14 = vpack.c.bf16 %v1738_v57, %v1738_v57  ;;  %v1617_v17 = vmax.f32 %v1495_v52, %v2366_v50  ;;  %v2329_v31 = vadd.f32 %v2328_v54, %v2327_v23  ;;  %v2381_v52 = vadd.f32 %v3251_v1, %v3247_v16 }
 0x2ff   : > { %v2330_v60 = vpop.f32.mrf.mxu1 }
 0x300   : > { %1779 = vst.msk [vmem:[%s3297_s8] sm:$0xf] %vm1778_vm3, %v2057_v14  ;;  %v1739_v28 = vmax.f32 %v1617_v17, %v2406_v12  ;;  %v1496_v33 = vmax.f32 %v1374_v8, %v2329_v31  ;;  %v2384_v14 = vadd.f32 %v3263_v39, %v3257_v27 }
 0x301   : > { %v2331_v19 = vpop.f32.mrf.mxu1 }
 0x302   : > { %v2058_v13 = vpack.c.bf16 %v1739_v28, %v1739_v28  ;;  %v2332_v53 = vadd.f32 %v2331_v19, %v2330_v60  ;;  %v1618_v62 = vmax.f32 %v1496_v33, %v2369_v55 }
 0x303   : > { %v2333_v2 = vpop.f32.mrf.mxu1 }
 0x304   : > { %1780 = vst.msk [vmem:[%s3297_s8 + $0x4] sm:$0xf] %vm1778_vm3, %v2058_v13  ;;  %v1497_v42 = vmax.f32 %v1375_v32, %v2332_v53  ;;  %v2378_v32 = vadd.f32 %v3245_v11, %v3243_v6 }
 0x305   : > { %v2334_v45 = vpop.f32.mrf.mxu1 }
 0x306   : > { %v2335_v46 = vadd.f32 %v2334_v45, %v2333_v2  ;;  %v1619_v8 = vmax.f32 %v1497_v42, %v2372_v10 }
 0x307   : > { %v2336_v3 = vpop.f32.mrf.mxu1 }
 0x308   : > { %v1498_v34 = vmax.f32 %v1376_v43, %v2335_v46 }
 0x309   : > { %v2337_v4 = vpop.f32.mrf.mxu1 }
 0x30a   : > { %v2338_v26 = vadd.f32 %v2337_v4, %v2336_v3  ;;  %v1620_v25 = vmax.f32 %v1498_v34, %v2375_v30 }
 0x30b   : > { %v2339_v59 = vpop.f32.mrf.mxu1 }
 0x30c   : > { %v1499_v48 = vmax.f32 %v1377_v37, %v2338_v26 }
 0x30d   : > { %v2340_v22 = vpop.f32.mrf.mxu1 }
 0x30e   : > { %v2341_v29 = vadd.f32 %v2340_v22, %v2339_v59  ;;  %v1621_v57 = vmax.f32 %v1499_v48, %v2378_v32 }
 0x30f   : > { %v2342_v61 = vpop.f32.mrf.mxu1 }
 0x310   : > { %v1500_v51 = vmax.f32 %v1378_v5, %v2341_v29 }
 0x311   : > { %v2343_v63 = vpop.f32.mrf.mxu1 }
 0x312   : > { %v2344_v11 = vadd.f32 %v2343_v63, %v2342_v61  ;;  %v1622_v58 = vmax.f32 %v1500_v51, %v2381_v52 }
 0x313   : > { %v2407_v7 = vpop.f32.mrf.mxu1 }
 0x314   : > { %v1501_v1 = vmax.f32 %v1379_v35, %v2344_v11 }
 0x315   : > { %v2408_v36 = vpop.f32.mrf.mxu1 }
 0x316   : > { %v2409_v47 = vadd.f32 %v2408_v36, %v2407_v7  ;;  %v1623_v13 = vmax.f32 %v1501_v1, %v2384_v14 }
 0x317   : > { %v2410_v50 = vpop.f32.mrf.mxu1 }
 0x318   : > { %v1740_v0 = vmax.f32 %v1618_v62, %v2409_v47 }
 0x319   : > { %v2411_v20 = vpop.f32.mrf.mxu1 }
 0x31a   : > { %v2059_v40 = vpack.c.bf16 %v1740_v0, %v1740_v0  ;;  %v2412_v21 = vadd.f32 %v2411_v20, %v2410_v50 }
 0x31b   : > { %v2413_v38 = vpop.f32.mrf.mxu1 }
 0x31c   : > { %1781 = vst.msk [vmem:[%s3297_s8 + $0x8] sm:$0xf] %vm1778_vm3, %v2059_v40  ;;  %v1741_v24 = vmax.f32 %v1619_v8, %v2412_v21 }
 0x31d   : > { %v2414_v56 = vpop.f32.mrf.mxu1 }
 0x31e   : > { %v2060_v44 = vpack.c.bf16 %v1741_v24, %v1741_v24  ;;  %v2415_v43 = vadd.f32 %v2414_v56, %v2413_v38 }
 0x31f   : > { %v2416_v15 = vpop.f32.mrf.mxu1 }
 0x320   : > { %1782 = vst.msk [vmem:[%s3297_s8 + $0xc] sm:$0xf] %vm1778_vm3, %v2060_v44  ;;  %v1742_v23 = vmax.f32 %v1620_v25, %v2415_v43 }
 0x321   : > { %v2417_v6 = vpop.f32.mrf.mxu1 }
 0x322   : > { %v2061_v49 = vpack.c.bf16 %v1742_v23, %v1742_v23  ;;  %v2418_v37 = vadd.f32 %v2417_v6, %v2416_v15 }
 0x323   : > { %v2419_v12 = vpop.f32.mrf.mxu1 }
 0x324   : > { %1783 = vst.msk [vmem:[%s3297_s8 + $0x10] sm:$0xf] %vm1778_vm3, %v2061_v49  ;;  %v1743_v54 = vmax.f32 %v1621_v57, %v2418_v37 }
 0x325   : > { %v2420_v16 = vpop.f32.mrf.mxu1 }
 0x326   : > { %v2062_v17 = vpack.c.bf16 %v1743_v54, %v1743_v54  ;;  %v2421_v18 = vadd.f32 %v2420_v16, %v2419_v12 }
 0x327   : > { %v2422_v5 = vpop.f32.mrf.mxu1 }
 0x328   : > { %1784 = vst.msk [vmem:[%s3297_s8 + $0x14] sm:$0xf] %vm1778_vm3, %v2062_v17  ;;  %v1744_v60 = vmax.f32 %v1622_v58, %v2421_v18 }
 0x329   : > { %v2423_v28 = vpop.f32.mrf.mxu1 }
 0x32a   : > { %v2063_v19 = vpack.c.bf16 %v1744_v60, %v1744_v60  ;;  %v2424_v2 = vadd.f32 %v2423_v28, %v2422_v5 }
 0x32c   : > { %1785 = vst.msk [vmem:[%s3297_s8 + $0x18] sm:$0xf] %vm1778_vm3, %v2063_v19  ;;  %v1745_v27 = vmax.f32 %v1623_v13, %v2424_v2 }
 0x32e   : > { %v2064_v39 = vpack.c.bf16 %v1745_v27, %v1745_v27 }
 0x330   : > { %1786 = vst.msk [vmem:[%s3297_s8 + $0x1c] sm:$0xf] %vm1778_vm3, %v2064_v39 }
 0x331 PF: > { %s13_s12 = sadd.s32 1, %s2623_s12  }
 0x332   : > { %p10_p4 = scmp.ge.s32.totalorder %s13_s12, 4  }
 0x334   :  { %12 = sbr.rel (!%p10_p4) target bundleno = 1 (0x1), region = 70 }

// kernel: resnet18v2_forward.11
= control target key start
LH: loop header
LB: loop body
LE: loop exit
PB: predicated region body
PF: predicated region fallthrough
CT: control target
= control target key end

     0   :  { %16 = vsyncpa [#allocation3], 0  ;;  %s4373_s0 = inlined_call_operand.vmem [shape: bf16[2,64,64], index: 0, kind: input, shape index: {}]   ;;  %s4374_s1 = inlined_call_operand.hbm [shape: f32[1,64], index: 1, kind: input, shape index: {}]   ;;  %s4375_s2 = inlined_call_operand.hbm [shape: f32[1,64], index: 2, kind: input, shape index: {}]   ;;  %s4376_s3 = inlined_call_operand.vmem [shape: bf16[64,16], index: 3, kind: input, shape index: {}]   ;;  %s4377_s4 = inlined_call_operand.hbm [shape: f32[1,16], index: 4, kind: input, shape index: {}]   ;;  %s4378_s5 = inlined_call_operand.vmem [shape: bf16[9,64,64], index: 5, kind: input, shape index: {}]   ;;  %s4379_s6 = inlined_call_operand.vmem [shape: bf16[9,16,16], index: 6, kind: input, shape index: {}]   ;;  %s4380_s7 = inlined_call_operand.hbm [shape: f32[1,16], index: 7, kind: input, shape index: {}]   ;;  %s4381_s8 = inlined_call_operand.vmem [shape: bf16[16,64], index: 8, kind: input, shape index: {}]   ;;  %s4382_s9 = inlined_call_operand.hbm [shape: f32[1,64], index: 9, kind: input, shape index: {}]   ;;  %s4383_s10 = inlined_call_operand.vmem [shape: bf16[64,64], index: 10, kind: input, shape index: {}]   ;;  %s4384_s11 = inlined_call_operand.vmem [shape: bf16[2,64,64], index: 11, kind: output, shape index: {}]  }
   0x1   :  { %17 = vsyncpa [#allocation5], 0 }
   0x2   :  { %18 = vsyncpa [#allocation8], 0  ;;  %s3858_s17 = smov 0  }
   0x3 LB: > { %s3793_s18 = smov [#allocation4]   ;;  %s3864_s20 = sadd.s32 4294967295, %s3791_s17   ;;  %s3791_s17 = sphi %s3858_s17, %s24_s17  }
   0x4   : > { %s315_s19 = sshll.u32 %s3793_s18, 4  ;;  %p2829_p0 = scmp.ge.s32.totalorder %s3791_s17, 1  ;;  %s316_s19 = int_to_ptr.vmem [resolvable:$true] %s315_s19 }
   0x5   : > { %p291_p1 = scmp.lt.s32.totalorder %s3791_s17, 3  ;;  %p3566_p2 = scmp.eq.s32.totalorder %s3864_s20, 0 }
   0x6   : > { %s3794_s22 = smov [#allocation7]   ;;  %s3795_s24 = smov [#allocation2]  }
   0x7   : > { %p3869_p3 = pnand %p2829_p0, %p291_p1  ;;  %s346_s23 = sshll.u32 %s3794_s22, 4  ;;  %s3875_s23 = int_to_ptr.vmem [resolvable:$true] %s346_s23 }
   0x8   : > { %s304_s25 = sshll.u32 %s3795_s24, 4  ;;  %s3796_s27 = smov [#allocation6]   ;;  %s3883_s25 = int_to_ptr.vmem [resolvable:$true] %s304_s25 }
   0x9   : > { %p3550_p4 = pneg %p3869_p3  ;;  %s329_s28 = sshll.u32 %s3796_s27, 4  ;;  %s3885_s28 = int_to_ptr.vmem [resolvable:$true] %s329_s28 }
   0xa   : > { %s3654_s30 = scalar_lea.vmem %s316_s19, 16  ;;  %s3661_s12 = scalar_lea.vmem %s316_s19, 32 }
   0xb   : > { %p3879_p5 = pnand %p3566_p2, %p3550_p4  ;;  %p3655_p7 = scmp.ne.s32.totalorder %s316_s19, %s3654_s30 }
   0xc   : > { %p3662_p10 = scmp.lt.s32.totalorder %s316_s19, %s316_s19  ;;  %p3663_p11 = scmp.lt.s32.totalorder %s3661_s12, %s3654_s30 }
   0xd   : > { %p3889_p6 = pneg %p3879_p5 }
   0xe   : > { %p3664_p12 = por %p3663_p11, %p3662_p10 }
   0xf   : > { %p3657_p8 = pnand %p3655_p7, %p3889_p6 }
  0x11   : > { %p3658_p9 = pneg %p3657_p8 }
  0x13   : > { %p3665_p13 = pnand %p3664_p12, %p3658_p9 }
  0x15   : > { %3668 = shalt.err (!%p3665_p13)
}
  0x16   : > { %3556 = dma.hbm_to_vmem [thread:$0]  (!%p3879_p5), %s4375_s2, 16, %s316_s19, [#allocation5]  }
  0x17   : > { %s3680_s15 = scalar_lea.vmem %s3875_s23, 16  ;;  %s3687_s16 = scalar_lea.vmem %s3875_s23, 32 }
  0x18   : > { %p3681_p0 = scmp.ne.s32.totalorder %s3875_s23, %s3680_s15  ;;  %p3688_p7 = scmp.lt.s32.totalorder %s3875_s23, %s3875_s23 }
  0x19   : > { %p3689_p8 = scmp.lt.s32.totalorder %s3687_s16, %s3680_s15 }
  0x1a   : > { %p3683_p1 = pnand %p3681_p0, %p3889_p6 }
  0x1b   : > { %p3690_p9 = por %p3689_p8, %p3688_p7 }
  0x1c   : > { %p3684_p4 = pneg %p3683_p1 }
  0x1e   : > { %p3691_p10 = pnand %p3690_p9, %p3684_p4 }
  0x20   : > { %3694 = shalt.err (!%p3691_p10)
}
  0x21   : > { %3562 = dma.hbm_to_vmem [thread:$0]  (!%p3879_p5), %s4380_s7, 16, %s3875_s23, [#allocation8]  }
  0x22   : > { %s3706_s19 = scalar_lea.vmem %s3883_s25, 16  ;;  %s3713_s24 = scalar_lea.vmem %s3883_s25, 32 }
  0x23   : > { %p3707_p11 = scmp.ne.s32.totalorder %s3883_s25, %s3706_s19  ;;  %p3714_p0 = scmp.lt.s32.totalorder %s3883_s25, %s3883_s25 }
  0x24   : > { %p3715_p1 = scmp.lt.s32.totalorder %s3713_s24, %s3706_s19 }
  0x25   : > { %p3709_p12 = pnand %p3707_p11, %p3889_p6 }
  0x26   : > { %p3716_p4 = por %p3715_p1, %p3714_p0 }
  0x27   : > { %p3710_p13 = pneg %p3709_p12 }
  0x29   : > { %p3717_p7 = pnand %p3716_p4, %p3710_p13 }
  0x2b   : > { %3720 = shalt.err (!%p3717_p7)
}
  0x2c   : > { %3553 = dma.hbm_to_vmem [thread:$0]  (!%p3879_p5), %s4374_s1, 16, %s3883_s25, [#allocation3]  }
  0x2d   : > { %s3732_s23 = scalar_lea.vmem %s3885_s28, 16  ;;  %s3739_s12 = scalar_lea.vmem %s3885_s28, 32 }
  0x2e   : > { %p3733_p8 = scmp.ne.s32.totalorder %s3885_s28, %s3732_s23  ;;  %p3740_p11 = scmp.lt.s32.totalorder %s3885_s28, %s3885_s28 }
  0x2f   : > { %p3741_p12 = scmp.lt.s32.totalorder %s3739_s12, %s3732_s23 }
  0x30   : > { %p3735_p9 = pnand %p3733_p8, %p3889_p6 }
  0x31   : > { %p3742_p13 = por %p3741_p12, %p3740_p11 }
  0x32   : > { %p3736_p10 = pneg %p3735_p9 }
  0x34   : > { %p3743_p0 = pnand %p3742_p13, %p3736_p10 }
  0x36   : > { %3746 = shalt.err (!%p3743_p0)
}
  0x37   : > { %3559 = dma.hbm_to_vmem [thread:$0]  (!%p3879_p5), %s4377_s4, 16, %s3885_s28, [#allocation5]  }
  0x38   : > { %s3797_s25 = smov [#allocation9]  }
  0x39   : > { %s360_s15 = sshll.u32 %s3797_s25, 4  ;;  %s361_s15 = int_to_ptr.vmem [resolvable:$true] %s360_s15 }
  0x3a   : > { %s3758_s16 = scalar_lea.vmem %s361_s15, 16  ;;  %s3765_s18 = scalar_lea.vmem %s361_s15, 32 }
  0x3b   : > { %p3759_p1 = scmp.ne.s32.totalorder %s361_s15, %s3758_s16  ;;  %p3766_p8 = scmp.lt.s32.totalorder %s361_s15, %s361_s15 }
  0x3c   : > { %p3767_p9 = scmp.lt.s32.totalorder %s3765_s18, %s3758_s16 }
  0x3d   : > { %p3761_p4 = pnand %p3759_p1, %p3889_p6 }
  0x3e   : > { %p3768_p10 = por %p3767_p9, %p3766_p8 }
  0x3f   : > { %p3762_p7 = pneg %p3761_p4 }
  0x41   : > { %p3769_p11 = pnand %p3768_p10, %p3762_p7 }
  0x43   : > { %3772 = shalt.err (!%p3769_p11)
}
  0x44   : > { %3565 = dma.hbm_to_vmem [thread:$0]  (!%p3879_p5), %s4382_s9, 16, %s361_s15, [#allocation8]  }
  0x45   : > { %384 = sbr.rel (%p3869_p3) target bundleno = 1269 (0x4f5), region = 64 }
  0x4a   : > { %3778 = dma.done.wait (%p3566_p2), [#allocation3], 16  }
  0x4b   : > { %3780 = vsyncadd (%p3566_p2), [#allocation3], 4294967280 }
  0x4c   : > { %3782 = dma.done.wait (%p3566_p2), [#allocation5], 32  }
  0x4d   : > { %3784 = vsyncadd (%p3566_p2), [#allocation5], 4294967264 }
  0x4e   : > { %3786 = dma.done.wait (%p3566_p2), [#allocation8], 32  }
  0x4f   : > { %3788 = vsyncadd (%p3566_p2), [#allocation8], 4294967264  ;;  %p440_p3 = scmp.lt.s32.totalorder %s3864_s20, 1  ;;  %v3589_v0 = vld [vmem:[%s4376_s3 + $0x18] sm:$0xff]   ;;  %v3590_v1 = vld [vmem:[%s4376_s3 + $0x10] sm:$0xff]   ;;  %vm548_vm0 = vcmask 523264  }
  0x50   : > { %3246 = vmatprep.subr.bf16.mxu0 %v3589_v0  ;;  %v3591_v2 = vld [vmem:[%s4376_s3 + $0x8] sm:$0xff]   ;;  %v2846_v4 = vld [vmem:[#allocation2] ss:$0 sm:$0xff]  ;;  %v2847_v5 = vld [vmem:[#allocation4] ss:$0 sm:$0xff]  ;;  %vm868_vm1 = vcmask 130048  }
  0x51   : > { %s4389_s20 = smov (!%p440_p3, %s3864_s20), 1  ;;  %3247 = vmatpush3.bf16.msra.mxu0 %v3589_v0  ;;  %v3592_v11 = vld [vmem:[%s4376_s3] sm:$0xff]   ;;  %vm2713_vm2 = vcmask 519168  }
  0x52   : > { %s3079_s21 = sshll.u32 %s4389_s20, 5  ;;  %3248 = vmatprep.subr.bf16.mxu0 %v3590_v1  ;;  %v3593_v46 = vld [vmem:[%s4378_s5] sm:$0xff]  }
  0x53   : > { %s444_s23 = scalar_lea.vmem %s4373_s0, %s3079_s21  ;;  %v3594_v47 = vld [vmem:[%s4378_s5 + $0x20] sm:$0xff]   ;;  %3270 = vmatprep.mubr.msk.bf16.mxu1 %vm548_vm0, %v3593_v46  ;;  %s4352_s28 = scalar_lea.vmem %s4384_s11, %s3079_s21 }
  0x54   : > { %v3090_v3 = vld [vmem:[%s444_s23] sm:$0xff]   ;;  %v3105_v8 = vld [vmem:[%s444_s23 + $0x8] sm:$0xff]   ;;  %v3106_v9 = vld [vmem:[%s444_s23 + $0x10] sm:$0xff]  }
  0x55   : > { %v3091_v6 = vunpack.c.l.bf16 %v3090_v3  ;;  %v3092_v7 = vunpack.c.h.bf16 %v3090_v3  ;;  %v3107_v10 = vld [vmem:[%s444_s23 + $0x18] sm:$0xff]   ;;  %v3095_v12 = vunpack.c.l.bf16 %v3105_v8  ;;  %v3096_v13 = vunpack.c.h.bf16 %v3105_v8  ;;  %3249 = vmatpush3.bf16.msra.mxu0 %v3590_v1  ;;  %v2848_v53 = vld [vmem:[#allocation6] ss:$0 sm:$0xff] }
  0x56   : > { %v3099_v14 = vunpack.c.l.bf16 %v3106_v9  ;;  %v3100_v15 = vunpack.c.h.bf16 %v3106_v9  ;;  %v3103_v18 = vunpack.c.l.bf16 %v3107_v10  ;;  %v3104_v19 = vunpack.c.h.bf16 %v3107_v10  ;;  %3250 = vmatprep.subr.bf16.mxu0 %v3591_v2 }
  0x57   : > { %v474_v16 = vmul.f32 %v3091_v6, %v2846_v4  ;;  %v475_v17 = vmul.f32 %v3092_v7, %v2846_v4  ;;  %v476_v20 = vmul.f32 %v3095_v12, %v2846_v4  ;;  %v477_v21 = vmul.f32 %v3096_v13, %v2846_v4  ;;  %v3595_v13 = vld [vmem:[%s4378_s5 + $0x8] sm:$0xff]  }
  0x58   : > { %v478_v22 = vmul.f32 %v3099_v14, %v2846_v4  ;;  %v479_v23 = vmul.f32 %v3100_v15, %v2846_v4  ;;  %v480_v26 = vmul.f32 %v3103_v18, %v2846_v4  ;;  %v481_v27 = vmul.f32 %v3104_v19, %v2846_v4  ;;  %v3596_v14 = vld [vmem:[%s4378_s5 + $0x28] sm:$0xff]   ;;  %v3597_v15 = vld [vmem:[%s4378_s5 + $0x10] sm:$0xff]   ;;  %v3600_v19 = vld [vmem:[%s4378_s5 + $0x38] sm:$0xff]  }
  0x59   : > { %v489_v24 = vadd.f32 %v2847_v5, %v474_v16  ;;  %v490_v25 = vadd.f32 %v2847_v5, %v475_v17  ;;  %v491_v28 = vadd.f32 %v2847_v5, %v476_v20  ;;  %v492_v29 = vadd.f32 %v2847_v5, %v477_v21  ;;  %3251 = vmatpush3.bf16.msra.mxu0 %v3591_v2  ;;  %v3598_v16 = vld [vmem:[%s4378_s5 + $0x18] sm:$0xff]   ;;  %v3599_v17 = vld [vmem:[%s4378_s5 + $0x30] sm:$0xff]   ;;  %v3601_v18 = vld [vmem:[%s4379_s6 + $0x8] sm:$0xff]  }
  0x5a   : > { %v493_v30 = vadd.f32 %v2847_v5, %v478_v22  ;;  %v494_v31 = vadd.f32 %v2847_v5, %v479_v23  ;;  %v495_v34 = vadd.f32 %v2847_v5, %v480_v26  ;;  %v496_v35 = vadd.f32 %v2847_v5, %v481_v27  ;;  %3252 = vmatprep.subr.bf16.mxu0 %v3592_v11  ;;  %v3602_v20 = vld [vmem:[%s4379_s6] sm:$0xff]  }
  0x5b   : > { %v497_v32 = vmax.f32 %v489_v24, 0.0  ;;  %v498_v33 = vmax.f32 %v490_v25, 0.0  ;;  %v499_v36 = vmax.f32 %v491_v28, 0.0  ;;  %v500_v37 = vmax.f32 %v492_v29, 0.0 }
  0x5c   : > { %v501_v38 = vmax.f32 %v493_v30, 0.0  ;;  %v502_v39 = vmax.f32 %v494_v31, 0.0  ;;  %v503_v41 = vmax.f32 %v495_v34, 0.0  ;;  %v504_v42 = vmax.f32 %v496_v35, 0.0 }
  0x5d   : > { %v3982_v40 = vpack.c.bf16 %v498_v33, %v497_v32  ;;  %v3984_v43 = vpack.c.bf16 %v500_v37, %v499_v36  ;;  %3253 = vmatpush3.bf16.msra.mxu0 %v3592_v11 }
  0x5e   : > { %v3988_v44 = vpack.c.bf16 %v502_v39, %v501_v38  ;;  %v3994_v45 = vpack.c.bf16 %v504_v42, %v503_v41 }
  0x5f   : > { %3254 = vmatprep.mubr.msk.bf16.mxu0 %vm548_vm0, %v3982_v40 }
  0x60   : > { %3255 = vmatmul.mubr.msk.bf16.vlgmr.msra.gmra.mxu0 %vm548_vm0, %v3984_v43 }
  0x61   : > { %3258 = vmatprep.mubr.msk.bf16.mxu0 %vm548_vm0, %v3988_v44 }
  0x68   : > { %3259 = vmatmul.mubr.msk.bf16.gmra.mxu0 %vm548_vm0, %v3994_v45 }
  0x69   : > { %3286 = vmatprep.mubr.msk.bf16.mxu0 %vm548_vm0, %v3594_v47 }
 0x120   : > { %v3256_v48 = vpop.f32.mrf.mxu0 }
 0x121   : > { %v604_v0 = vadd.f32 %v3256_v48, %v2848_v53  ;;  %v3603_v48 = vld [vmem:[%s4378_s5 + $0x40] sm:$0xff]  }
 0x122   : > { %v595_v49 = vpop.f32.mrf.mxu0 }
 0x123   : > { %v628_v7 = vmax.f32 %v604_v0, 0.0  ;;  %v596_v8 = vadd.f32 %v2848_v53, %v595_v49  ;;  %v3618_v0 = vld [vmem:[%s4378_s5 + $0xb8] sm:$0xff]  }
 0x124   : > { %v3257_v50 = vpop.f32.mrf.mxu0 }
 0x125   : > { %v607_v60 = vadd.f32 %v3257_v50, %v2848_v53  ;;  %v626_v11 = vmax.f32 %v596_v8, 0.0  ;;  %v3604_v50 = vld [vmem:[%s4378_s5 + $0x48] sm:$0xff]   ;;  %v3623_v8 = vld [vmem:[%s4378_s5 + $0xe0] sm:$0xff]  }
 0x126   : > { %v598_v51 = vpop.f32.mrf.mxu0 }
 0x127   : > { %v629_v4 = vmax.f32 %v607_v60, 0.0  ;;  %v599_v5 = vadd.f32 %v2848_v53, %v598_v51  ;;  %v3605_v51 = vld [vmem:[%s4378_s5 + $0x50] sm:$0xff]   ;;  %v3614_v60 = vld [vmem:[%s4378_s5 + $0x98] sm:$0xff]  }
 0x128   : > { %v3260_v52 = vpop.f32.mrf.mxu0 }
 0x129   : > { %v620_v55 = vadd.f32 %v3260_v52, %v2848_v53  ;;  %v4016_v9 = vpack.c.bf16 %v629_v4, %v628_v7  ;;  %v627_v10 = vmax.f32 %v599_v5, 0.0  ;;  %v3606_v52 = vld [vmem:[%s4378_s5 + $0x58] sm:$0xff]   ;;  %v3620_v4 = vld [vmem:[%s4378_s5 + $0xc8] sm:$0xff]   ;;  %v3621_v5 = vld [vmem:[%s4378_s5 + $0xd0] sm:$0xff]  }
 0x12a   : > { %v611_v54 = vpop.f32.mrf.mxu0  ;;  %v3622_v7 = vld [vmem:[%s4378_s5 + $0xd8] sm:$0xff]  }
 0x12b   : > { %v612_v57 = vadd.f32 %v2848_v53, %v611_v54  ;;  %v632_v61 = vmax.f32 %v620_v55, 0.0  ;;  %v4022_v12 = vpack.c.bf16 %v627_v10, %v626_v11  ;;  %v3608_v54 = vld [vmem:[%s4378_s5 + $0x68] sm:$0xff]   ;;  %v3609_v55 = vld [vmem:[%s4378_s5 + $0x70] sm:$0xff]   ;;  %v3632_v10 = vld [vmem:[%s4379_s6 + $0x18] sm:$0xff]  }
 0x12c   : > { %v3261_v56 = vpop.f32.mrf.mxu0  ;;  %v3624_v11 = vld [vmem:[%s4378_s5 + $0xe8] sm:$0xff]  }
 0x12d   : > { %v623_v58 = vadd.f32 %v3261_v56, %v2848_v53  ;;  %v630_v1 = vmax.f32 %v612_v57, 0.0  ;;  %v3610_v56 = vld [vmem:[%s4378_s5 + $0x78] sm:$0xff]   ;;  %v3611_v57 = vld [vmem:[%s4378_s5 + $0x80] sm:$0xff]  }
 0x12e   : > { %v614_v59 = vpop.f32.mrf.mxu0 }
 0x12f   : > { %v633_v62 = vmax.f32 %v623_v58, 0.0  ;;  %v615_v63 = vadd.f32 %v2848_v53, %v614_v59  ;;  %v3607_v53 = vld [vmem:[%s4378_s5 + $0x60] sm:$0xff]   ;;  %v3612_v58 = vld [vmem:[%s4378_s5 + $0x88] sm:$0xff]   ;;  %v3613_v59 = vld [vmem:[%s4378_s5 + $0x90] sm:$0xff]  }
 0x131   : > { %v4006_v2 = vpack.c.bf16 %v633_v62, %v632_v61  ;;  %v631_v3 = vmax.f32 %v615_v63, 0.0  ;;  %v3615_v61 = vld [vmem:[%s4378_s5 + $0xa0] sm:$0xff]   ;;  %v3616_v62 = vld [vmem:[%s4378_s5 + $0xa8] sm:$0xff]   ;;  %v3617_v63 = vld [vmem:[%s4378_s5 + $0xb0] sm:$0xff]  }
 0x133   : > { %v4008_v6 = vpack.c.bf16 %v631_v3, %v630_v1  ;;  %3262 = vmatprep.subr.bf16.mxu1 %v4006_v2  ;;  %3278 = vmatprep.subr.bf16.mxu0 %v4006_v2  ;;  %v3619_v1 = vld [vmem:[%s4378_s5 + $0xc0] sm:$0xff]   ;;  %v3631_v3 = vld [vmem:[%s4379_s6 + $0x10] sm:$0xff]  }
 0x134   : > { %3263 = vmatpush3.bf16.msra.mxu1 %v4006_v2  ;;  %3279 = vmatpush3.bf16.msra.mxu0 %v4006_v2 }
 0x135   : > { %3264 = vmatprep.subr.bf16.mxu1 %v4008_v6  ;;  %3280 = vmatprep.subr.bf16.mxu0 %v4008_v6 }
 0x138   : > { %3265 = vmatpush3.bf16.msra.mxu1 %v4008_v6  ;;  %3281 = vmatpush3.bf16.msra.mxu0 %v4008_v6 }
 0x139   : > { %3266 = vmatprep.subr.bf16.mxu1 %v4016_v9  ;;  %3282 = vmatprep.subr.bf16.mxu0 %v4016_v9 }
 0x13c   : > { %3267 = vmatpush3.bf16.msra.mxu1 %v4016_v9  ;;  %3283 = vmatpush3.bf16.msra.mxu0 %v4016_v9 }
 0x13d   : > { %3268 = vmatprep.subr.bf16.mxu1 %v4022_v12  ;;  %3284 = vmatprep.subr.bf16.mxu0 %v4022_v12 }
 0x140   : > { %3269 = vmatpush3.bf16.msra.mxu1 %v4022_v12  ;;  %3285 = vmatpush3.bf16.msra.mxu0 %v4022_v12 }
 0x141   : > { %3522 = vmatprep.subr.bf16.mxu1 %v4006_v2  ;;  %3304 = vmatprep.subr.bf16.mxu0 %v3602_v20 }
 0x143   : > { %3271 = vmatmul.mubr.msk.bf16.vlgmr.msra.gmra.mxu1 %vm548_vm0, %v3595_v13  ;;  %3287 = vmatmul.mubr.msk.bf16.vlgmr.msra.gmra.mxu0 %vm548_vm0, %v3596_v14  ;;  %v3625_v13 = vld [vmem:[%s4378_s5 + $0xf0] sm:$0xff]   ;;  %v3626_v14 = vld [vmem:[%s4378_s5 + $0xf8] sm:$0xff]  }
 0x144   : > { %3526 = vmatpush3.bf16.msra.mxu1 %v4006_v2  ;;  %3274 = vmatprep.mubr.msk.bf16.mxu1 %vm548_vm0, %v3597_v15  ;;  %v3627_v15 = vld [vmem:[%s4378_s5 + $0x100] sm:$0xff]  }
 0x145   : > { %3523 = vmatprep.subr.bf16.mxu1 %v4008_v6  ;;  %3305 = vmatpush3.bf16.msra.mxu0 %v3602_v20 }
 0x146   : > { %3330 = vmatprep.subr.bf16.mxu0 %v3631_v3 }
 0x148   : > { %3527 = vmatpush3.bf16.msra.mxu1 %v4008_v6 }
 0x149   : > { %3524 = vmatprep.subr.bf16.mxu1 %v4016_v9 }
 0x14b   : > { %3275 = vmatmul.mubr.msk.bf16.gmra.mxu1 %vm548_vm0, %v3598_v16 }
 0x14c   : > { %3528 = vmatpush3.bf16.msra.mxu1 %v4016_v9  ;;  %3290 = vmatprep.mubr.msk.bf16.mxu1 %vm548_vm0, %v3599_v17 }
 0x14d   : > { %3525 = vmatprep.subr.bf16.mxu1 %v4022_v12 }
 0x150   : > { %3529 = vmatpush3.bf16.msra.mxu1 %v4022_v12 }
 0x151   : > { %3294 = vmatprep.subr.bf16.mxu1 %v3601_v18 }
 0x153   : > { %3291 = vmatmul.mubr.msk.bf16.vlgmr.msra.gmra.mxu1 %vm548_vm0, %v3600_v19 }
 0x154   : > { %3295 = vmatpush3.bf16.msra.mxu1 %v3601_v18 }
 0x155   : > { %3314 = vmatprep.subr.bf16.mxu1 %v4006_v2 }
 0x203   : > { %v3272_v21 = vpop.f32.mrf.mxu1  ;;  %v3288_v22 = vpop.f32.mrf.mxu0 }
 0x205   : > { %v712_v23 = vpop.f32.mrf.mxu1  ;;  %v824_v24 = vpop.f32.mrf.mxu0 }
 0x207   : > { %v3273_v25 = vpop.f32.mrf.mxu1  ;;  %v3289_v26 = vpop.f32.mrf.mxu0 }
 0x208   : > { %v856_v27 = vpack.c.bf16 %v3289_v26, %v3288_v22  ;;  %v744_v32 = vpack.c.bf16 %v3273_v25, %v3272_v21 }
 0x209   : > { %v715_v28 = vpop.f32.mrf.mxu1  ;;  %v827_v29 = vpop.f32.mrf.mxu0 }
 0x20a   : > { %v743_v30 = vpack.c.bf16 %v715_v28, %v712_v23  ;;  %v855_v31 = vpack.c.bf16 %v827_v29, %v824_v24 }
 0x20b   : > { %v3276_v33 = vpop.f32.mrf.mxu1 }
 0x20c   : > { %3296 = vmatprep.mubr.msk.bf16.mxu1 %vm868_vm1, %v855_v31  ;;  %3306 = vmatprep.mubr.msk.bf16.mxu0 %vm868_vm1, %v743_v30 }
 0x20d   : > { %v728_v34 = vpop.f32.mrf.mxu1  ;;  %3297 = vmatmul.mubr.msk.bf16.vlgmr.msra.gmra.mxu1 %vm868_vm1, %v856_v27  ;;  %3307 = vmatmul.mubr.msk.bf16.vlgmr.msra.gmra.mxu0 %vm868_vm1, %v744_v32 }
 0x20e   : > { %3315 = vmatpush3.bf16.msra.mxu1 %v4006_v2  ;;  %3331 = vmatpush3.bf16.msra.mxu0 %v3631_v3 }
 0x20f   : > { %3316 = vmatprep.subr.bf16.mxu1 %v4008_v6  ;;  %v3277_v35 = vpop.f32.mrf.mxu1  ;;  %3356 = vmatprep.subr.bf16.mxu0 %v3632_v10 }
 0x210   : > { %v746_v38 = vpack.c.bf16 %v3277_v35, %v3276_v33 }
 0x211   : > { %v731_v36 = vpop.f32.mrf.mxu1 }
 0x212   : > { %v745_v37 = vpack.c.bf16 %v731_v36, %v728_v34  ;;  %3317 = vmatpush3.bf16.msra.mxu1 %v4008_v6 }
 0x213   : > { %3318 = vmatprep.subr.bf16.mxu1 %v4016_v9  ;;  %v3292_v39 = vpop.f32.mrf.mxu1 }
 0x214   : > { %3310 = vmatprep.mubr.msk.bf16.mxu0 %vm868_vm1, %v745_v37 }
 0x215   : > { %v840_v41 = vpop.f32.mrf.mxu1  ;;  %3311 = vmatmul.mubr.msk.bf16.gmra.mxu0 %vm868_vm1, %v746_v38 }
 0x216   : > { %3319 = vmatpush3.bf16.msra.mxu1 %v4016_v9 }
 0x217   : > { %3320 = vmatprep.subr.bf16.mxu1 %v4022_v12  ;;  %v3293_v42 = vpop.f32.mrf.mxu1 }
 0x218   : > { %v858_v49 = vpack.c.bf16 %v3293_v42, %v3292_v39 }
 0x219   : > { %v843_v46 = vpop.f32.mrf.mxu1 }
 0x21a   : > { %v857_v47 = vpack.c.bf16 %v843_v46, %v840_v41  ;;  %3321 = vmatpush3.bf16.msra.mxu1 %v4022_v12 }
 0x21b   : > { %3340 = vmatprep.subr.bf16.mxu1 %v4006_v2 }
 0x21c   : > { %3300 = vmatprep.mubr.msk.bf16.mxu1 %vm868_vm1, %v857_v47 }
 0x21d   : > { %3301 = vmatmul.mubr.msk.bf16.gmra.mxu1 %vm868_vm1, %v858_v49 }
 0x21e   : > { %3322 = vmatprep.mubr.msk.bf16.mxu1 %vm548_vm0, %v3603_v48  ;;  %v3633_v48 = vld [vmem:[%s4379_s6 + $0x20] sm:$0xff]  }
 0x225   : > { %3323 = vmatmul.mubr.msk.bf16.vlgmr.msra.gmra.mxu1 %vm548_vm0, %v3604_v50 }
 0x226   : > { %3341 = vmatpush3.bf16.msra.mxu1 %v4006_v2  ;;  %3326 = vmatprep.mubr.msk.bf16.mxu1 %vm548_vm0, %v3605_v51 }
 0x227   : > { %3342 = vmatprep.subr.bf16.mxu1 %v4008_v6 }
 0x22a   : > { %3343 = vmatpush3.bf16.msra.mxu1 %v4008_v6 }
 0x22b   : > { %3344 = vmatprep.subr.bf16.mxu1 %v4016_v9 }
 0x22d   : > { %3327 = vmatmul.mubr.msk.bf16.gmra.mxu1 %vm548_vm0, %v3606_v52 }
 0x22e   : > { %3345 = vmatpush3.bf16.msra.mxu1 %v4016_v9  ;;  %3348 = vmatprep.mubr.msk.bf16.mxu1 %vm548_vm0, %v3607_v53 }
 0x22f   : > { %3346 = vmatprep.subr.bf16.mxu1 %v4022_v12 }
 0x232   : > { %3347 = vmatpush3.bf16.msra.mxu1 %v4022_v12 }
 0x233   : > { %3366 = vmatprep.subr.bf16.mxu1 %v4006_v2 }
 0x235   : > { %3349 = vmatmul.mubr.msk.bf16.vlgmr.msra.gmra.mxu1 %vm548_vm0, %v3608_v54 }
 0x236   : > { %3367 = vmatpush3.bf16.msra.mxu1 %v4006_v2  ;;  %3352 = vmatprep.mubr.msk.bf16.mxu1 %vm548_vm0, %v3609_v55 }
 0x237   : > { %3368 = vmatprep.subr.bf16.mxu1 %v4008_v6 }
 0x23a   : > { %3369 = vmatpush3.bf16.msra.mxu1 %v4008_v6 }
 0x23b   : > { %3370 = vmatprep.subr.bf16.mxu1 %v4016_v9 }
 0x23d   : > { %3353 = vmatmul.mubr.msk.bf16.gmra.mxu1 %vm548_vm0, %v3610_v56 }
 0x23e   : > { %3371 = vmatpush3.bf16.msra.mxu1 %v4016_v9  ;;  %3374 = vmatprep.mubr.msk.bf16.mxu1 %vm548_vm0, %v3611_v57 }
 0x23f   : > { %3372 = vmatprep.subr.bf16.mxu1 %v4022_v12 }
 0x242   : > { %3373 = vmatpush3.bf16.msra.mxu1 %v4022_v12 }
 0x243   : > { %3392 = vmatprep.subr.bf16.mxu1 %v4006_v2 }
 0x245   : > { %3375 = vmatmul.mubr.msk.bf16.vlgmr.msra.gmra.mxu1 %vm548_vm0, %v3612_v58 }
 0x246   : > { %3393 = vmatpush3.bf16.msra.mxu1 %v4006_v2  ;;  %3378 = vmatprep.mubr.msk.bf16.mxu1 %vm548_vm0, %v3613_v59 }
 0x247   : > { %3394 = vmatprep.subr.bf16.mxu1 %v4008_v6 }
 0x24a   : > { %3395 = vmatpush3.bf16.msra.mxu1 %v4008_v6 }
 0x24b   : > { %3396 = vmatprep.subr.bf16.mxu1 %v4016_v9 }
 0x24d   : > { %3379 = vmatmul.mubr.msk.bf16.gmra.mxu1 %vm548_vm0, %v3614_v60 }
 0x24e   : > { %3397 = vmatpush3.bf16.msra.mxu1 %v4016_v9  ;;  %3400 = vmatprep.mubr.msk.bf16.mxu1 %vm548_vm0, %v3615_v61  ;;  %v3634_v61 = vld [vmem:[%s4379_s6 + $0x28] sm:$0xff]  }
 0x24f   : > { %3398 = vmatprep.subr.bf16.mxu1 %v4022_v12 }
 0x252   : > { %3399 = vmatpush3.bf16.msra.mxu1 %v4022_v12 }
 0x253   : > { %3418 = vmatprep.subr.bf16.mxu1 %v4006_v2 }
 0x255   : > { %3401 = vmatmul.mubr.msk.bf16.vlgmr.msra.gmra.mxu1 %vm548_vm0, %v3616_v62 }
 0x256   : > { %3419 = vmatpush3.bf16.msra.mxu1 %v4006_v2  ;;  %3404 = vmatprep.mubr.msk.bf16.mxu1 %vm548_vm0, %v3617_v63 }
 0x257   : > { %3420 = vmatprep.subr.bf16.mxu1 %v4008_v6 }
 0x25a   : > { %3421 = vmatpush3.bf16.msra.mxu1 %v4008_v6 }
 0x25b   : > { %3422 = vmatprep.subr.bf16.mxu1 %v4016_v9 }
 0x25d   : > { %3405 = vmatmul.mubr.msk.bf16.gmra.mxu1 %vm548_vm0, %v3618_v0 }
 0x25e   : > { %3423 = vmatpush3.bf16.msra.mxu1 %v4016_v9  ;;  %3426 = vmatprep.mubr.msk.bf16.mxu1 %vm548_vm0, %v3619_v1 }
 0x25f   : > { %3424 = vmatprep.subr.bf16.mxu1 %v4022_v12 }
 0x262   : > { %3425 = vmatpush3.bf16.msra.mxu1 %v4022_v12 }
 0x263   : > { %3444 = vmatprep.subr.bf16.mxu1 %v4006_v2 }
 0x265   : > { %3427 = vmatmul.mubr.msk.bf16.vlgmr.msra.gmra.mxu1 %vm548_vm0, %v3620_v4 }
 0x266   : > { %3445 = vmatpush3.bf16.msra.mxu1 %v4006_v2  ;;  %3430 = vmatprep.mubr.msk.bf16.mxu1 %vm548_vm0, %v3621_v5 }
 0x267   : > { %3446 = vmatprep.subr.bf16.mxu1 %v4008_v6 }
 0x26a   : > { %3447 = vmatpush3.bf16.msra.mxu1 %v4008_v6 }
 0x26b   : > { %3448 = vmatprep.subr.bf16.mxu1 %v4016_v9 }
 0x26d   : > { %3431 = vmatmul.mubr.msk.bf16.gmra.mxu1 %vm548_vm0, %v3622_v7 }
 0x26e   : > { %3449 = vmatpush3.bf16.msra.mxu1 %v4016_v9  ;;  %3452 = vmatprep.mubr.msk.bf16.mxu1 %vm548_vm0, %v3623_v8 }
 0x26f   : > { %3450 = vmatprep.subr.bf16.mxu1 %v4022_v12 }
 0x272   : > { %3451 = vmatpush3.bf16.msra.mxu1 %v4022_v12 }
 0x273   : > { %3470 = vmatprep.subr.bf16.mxu1 %v4006_v2 }
 0x275   : > { %3453 = vmatmul.mubr.msk.bf16.vlgmr.msra.gmra.mxu1 %vm548_vm0, %v3624_v11 }
 0x276   : > { %3471 = vmatpush3.bf16.msra.mxu1 %v4006_v2  ;;  %3456 = vmatprep.mubr.msk.bf16.mxu1 %vm548_vm0, %v3625_v13  ;;  %v3628_v2 = vld [vmem:[%s4378_s5 + $0x108] sm:$0xff]  }
 0x277   : > { %3472 = vmatprep.subr.bf16.mxu1 %v4008_v6 }
 0x27a   : > { %3473 = vmatpush3.bf16.msra.mxu1 %v4008_v6  ;;  %v3629_v6 = vld [vmem:[%s4378_s5 + $0x110] sm:$0xff]  }
 0x27b   : > { %3474 = vmatprep.subr.bf16.mxu1 %v4016_v9 }
 0x27d   : > { %3457 = vmatmul.mubr.msk.bf16.gmra.mxu1 %vm548_vm0, %v3626_v14  ;;  %v3635_v14 = vld [vmem:[%s4379_s6 + $0x30] sm:$0xff]  }
 0x27e   : > { %3475 = vmatpush3.bf16.msra.mxu1 %v4016_v9  ;;  %3478 = vmatprep.mubr.msk.bf16.mxu1 %vm548_vm0, %v3627_v15  ;;  %v3630_v9 = vld [vmem:[%s4378_s5 + $0x118] sm:$0xff]  }
 0x27f   : > { %3476 = vmatprep.subr.bf16.mxu1 %v4022_v12 }
 0x282   : > { %3477 = vmatpush3.bf16.msra.mxu1 %v4022_v12 }
 0x285   : > { %3479 = vmatmul.mubr.msk.bf16.vlgmr.msra.gmra.mxu1 %vm548_vm0, %v3628_v2 }
 0x286   : > { %3482 = vmatprep.mubr.msk.bf16.mxu1 %vm548_vm0, %v3629_v6 }
 0x28d   : > { %3483 = vmatmul.mubr.msk.bf16.gmra.mxu1 %vm548_vm0, %v3630_v9 }
 0x2cd   : > { %v3298_v16 = vpop.f32.mrf.mxu1  ;;  %v3308_v17 = vpop.f32.mrf.mxu0 }
 0x2ce   : > { %v4250_v18 = vadd.f32 %v3308_v17, %v3298_v16 }
 0x2cf   : > { %v915_v19 = vpop.f32.mrf.mxu1  ;;  %v998_v12 = vpop.f32.mrf.mxu0 }
 0x2d0   : > { %v4252_v20 = vadd.f32 %v998_v12, %v915_v19 }
 0x2d1   : > { %v3299_v21 = vpop.f32.mrf.mxu1  ;;  %v3309_v22 = vpop.f32.mrf.mxu0 }
 0x2d2   : > { %v4254_v23 = vadd.f32 %v3309_v22, %v3299_v21 }
 0x2d3   : > { %v918_v24 = vpop.f32.mrf.mxu1  ;;  %v1001_v25 = vpop.f32.mrf.mxu0 }
 0x2d4   : > { %v4256_v26 = vadd.f32 %v1001_v25, %v918_v24 }
 0x2d5   : > { %v3312_v27 = vpop.f32.mrf.mxu0 }
 0x2d7   : > { %v1014_v28 = vpop.f32.mrf.mxu0 }
 0x2d9   : > { %v3313_v33 = vpop.f32.mrf.mxu0 }
 0x2dd   : > { %v3302_v29 = vpop.f32.mrf.mxu1 }
 0x2de   : > { %v4258_v30 = vadd.f32 %v3312_v27, %v3302_v29  ;;  %v3636_v27 = vld [vmem:[%s4379_s6 + $0x38] sm:$0xff]  }
 0x2df   : > { %v931_v31 = vpop.f32.mrf.mxu1 }
 0x2e0   : > { %v4260_v32 = vadd.f32 %v1014_v28, %v931_v31 }
 0x2e1   : > { %v3303_v34 = vpop.f32.mrf.mxu1 }
 0x2e2   : > { %v4262_v35 = vadd.f32 %v3313_v33, %v3303_v34 }
 0x2e3   : > { %v4264_v36 = vpop.f32.mrf.mxu1 }
 0x2e5   : > { %v3324_v37 = vpop.f32.mrf.mxu1 }
 0x2e7   : > { %v1104_v38 = vpop.f32.mrf.mxu1 }
 0x2e9   : > { %v3325_v39 = vpop.f32.mrf.mxu1 }
 0x2ea   : > { %v1136_v46 = vpack.c.bf16 %v3325_v39, %v3324_v37 }
 0x2eb   : > { %v1107_v41 = vpop.f32.mrf.mxu1 }
 0x2ec   : > { %v1135_v42 = vpack.c.bf16 %v1107_v41, %v1104_v38 }
 0x2ed   : > { %v3328_v47 = vpop.f32.mrf.mxu1 }
 0x2ee   : > { %3332 = vmatprep.mubr.msk.bf16.mxu0 %vm868_vm1, %v1135_v42 }
 0x2ef   : > { %v1120_v49 = vpop.f32.mrf.mxu1  ;;  %3333 = vmatmul.mubr.msk.bf16.vlgmr.msra.gmra.mxu0 %vm868_vm1, %v1136_v46 }
 0x2f0   : > { %3357 = vmatpush3.bf16.msra.mxu0 %v3632_v10 }
 0x2f1   : > { %v3329_v50 = vpop.f32.mrf.mxu1  ;;  %3382 = vmatprep.subr.bf16.mxu0 %v3633_v48 }
 0x2f2   : > { %v1138_v53 = vpack.c.bf16 %v3329_v50, %v3328_v47 }
 0x2f3   : > { %v1123_v51 = vpop.f32.mrf.mxu1 }
 0x2f4   : > { %v1137_v52 = vpack.c.bf16 %v1123_v51, %v1120_v49 }
 0x2f5   : > { %v3350_v54 = vpop.f32.mrf.mxu1 }
 0x2f6   : > { %3336 = vmatprep.mubr.msk.bf16.mxu0 %vm868_vm1, %v1137_v52 }
 0x2f7   : > { %3337 = vmatmul.mubr.msk.bf16.gmra.mxu0 %vm868_vm1, %v1138_v53  ;;  %v1308_v55 = vpop.f32.mrf.mxu1 }
 0x2f9   : > { %v3351_v56 = vpop.f32.mrf.mxu1 }
 0x2fa   : > { %v1340_v59 = vpack.c.bf16 %v3351_v56, %v3350_v54 }
 0x2fb   : > { %v1311_v57 = vpop.f32.mrf.mxu1 }
 0x2fc   : > { %v1339_v58 = vpack.c.bf16 %v1311_v57, %v1308_v55 }
 0x2fd   : > { %v3354_v60 = vpop.f32.mrf.mxu1 }
 0x2fe   : > { %3358 = vmatprep.mubr.msk.bf16.mxu0 %vm868_vm1, %v1339_v58 }
 0x2ff   : > { %v1324_v62 = vpop.f32.mrf.mxu1  ;;  %3359 = vmatmul.mubr.msk.bf16.vlgmr.msra.gmra.mxu0 %vm868_vm1, %v1340_v59 }
 0x300   : > { %3383 = vmatpush3.bf16.msra.mxu0 %v3633_v48  ;;  %v3637_v48 = vld [vmem:[%s4379_s6 + $0x40] sm:$0xff]  }
 0x301   : > { %v3355_v63 = vpop.f32.mrf.mxu1  ;;  %3408 = vmatprep.subr.bf16.mxu0 %v3634_v61 }
 0x302   : > { %v1342_v3 = vpack.c.bf16 %v3355_v63, %v3354_v60 }
 0x303   : > { %v1327_v0 = vpop.f32.mrf.mxu1 }
 0x304   : > { %v1341_v1 = vpack.c.bf16 %v1327_v0, %v1324_v62 }
 0x305   : > { %v3376_v4 = vpop.f32.mrf.mxu1 }
 0x306   : > { %3362 = vmatprep.mubr.msk.bf16.mxu0 %vm868_vm1, %v1341_v1 }
 0x307   : > { %3363 = vmatmul.mubr.msk.bf16.gmra.mxu0 %vm868_vm1, %v1342_v3  ;;  %v1512_v5 = vpop.f32.mrf.mxu1 }
 0x309   : > { %v3377_v7 = vpop.f32.mrf.mxu1 }
 0x30a   : > { %v1544_v11 = vpack.c.bf16 %v3377_v7, %v3376_v4 }
 0x30b   : > { %v1515_v8 = vpop.f32.mrf.mxu1 }
 0x30c   : > { %v1543_v10 = vpack.c.bf16 %v1515_v8, %v1512_v5 }
 0x30d   : > { %v3380_v13 = vpop.f32.mrf.mxu1 }
 0x30e   : > { %3384 = vmatprep.mubr.msk.bf16.mxu0 %vm868_vm1, %v1543_v10 }
 0x30f   : > { %v1528_v15 = vpop.f32.mrf.mxu1  ;;  %3385 = vmatmul.mubr.msk.bf16.vlgmr.msra.gmra.mxu0 %vm868_vm1, %v1544_v11 }
 0x310   : > { %3409 = vmatpush3.bf16.msra.mxu0 %v3634_v61 }
 0x311   : > { %v3381_v2 = vpop.f32.mrf.mxu1  ;;  %3434 = vmatprep.subr.bf16.mxu0 %v3635_v14 }
 0x312   : > { %v1546_v16 = vpack.c.bf16 %v3381_v2, %v3380_v13 }
 0x313   : > { %v1531_v6 = vpop.f32.mrf.mxu1 }
 0x314   : > { %v1545_v9 = vpack.c.bf16 %v1531_v6, %v1528_v15 }
 0x315   : > { %v3402_v17 = vpop.f32.mrf.mxu1 }
 0x316   : > { %3388 = vmatprep.mubr.msk.bf16.mxu0 %vm868_vm1, %v1545_v9  ;;  %v3638_v9 = vld [vmem:[%s4383_s10 + $0x18] sm:$0xff]  }
 0x317   : > { %3389 = vmatmul.mubr.msk.bf16.gmra.mxu0 %vm868_vm1, %v1546_v16  ;;  %v1716_v19 = vpop.f32.mrf.mxu1  ;;  %v3640_v16 = vld [vmem:[%s4383_s10 + $0x10] sm:$0xff]  }
 0x319   : > { %v3403_v12 = vpop.f32.mrf.mxu1 }
 0x31a   : > { %v1748_v24 = vpack.c.bf16 %v3403_v12, %v3402_v17  ;;  %v3641_v17 = vld [vmem:[%s4383_s10 + $0x8] sm:$0xff]   ;;  %v1017_v12 = vpop.f32.mrf.mxu0 }
 0x31b   : > { %v1719_v21 = vpop.f32.mrf.mxu1 }
 0x31c   : > { %v1747_v22 = vpack.c.bf16 %v1719_v21, %v1716_v19  ;;  %v3642_v19 = vld [vmem:[%s4383_s10] sm:$0xff]  }
 0x31d   : > { %v3406_v25 = vpop.f32.mrf.mxu1 }
 0x31e   : > { %3410 = vmatprep.mubr.msk.bf16.mxu0 %vm868_vm1, %v1747_v22 }
 0x31f   : > { %v1732_v28 = vpop.f32.mrf.mxu1  ;;  %3411 = vmatmul.mubr.msk.bf16.vlgmr.msra.gmra.mxu0 %vm868_vm1, %v1748_v24 }
 0x320   : > { %3435 = vmatpush3.bf16.msra.mxu0 %v3635_v14 }
 0x321   : > { %v3407_v29 = vpop.f32.mrf.mxu1  ;;  %3460 = vmatprep.subr.bf16.mxu0 %v3636_v27 }
 0x322   : > { %v1750_v34 = vpack.c.bf16 %v3407_v29, %v3406_v25 }
 0x323   : > { %v1735_v31 = vpop.f32.mrf.mxu1 }
 0x324   : > { %v1749_v33 = vpack.c.bf16 %v1735_v31, %v1732_v28 }
 0x325   : > { %v3428_v37 = vpop.f32.mrf.mxu1 }
 0x326   : > { %3414 = vmatprep.mubr.msk.bf16.mxu0 %vm868_vm1, %v1749_v33 }
 0x327   : > { %3415 = vmatmul.mubr.msk.bf16.gmra.mxu0 %vm868_vm1, %v1750_v34  ;;  %v1920_v38 = vpop.f32.mrf.mxu1 }
 0x329   : > { %v3429_v39 = vpop.f32.mrf.mxu1 }
 0x32a   : > { %v1952_v46 = vpack.c.bf16 %v3429_v39, %v3428_v37  ;;  %v1018_v37 = vadd.f32 %v1017_v12, %v4264_v36 }
 0x32b   : > { %v1923_v41 = vpop.f32.mrf.mxu1 }
 0x32c   : > { %v1951_v42 = vpack.c.bf16 %v1923_v41, %v1920_v38 }
 0x32d   : > { %v3432_v47 = vpop.f32.mrf.mxu1 }
 0x32e   : > { %3436 = vmatprep.mubr.msk.bf16.mxu0 %vm868_vm1, %v1951_v42 }
 0x32f   : > { %v1936_v49 = vpop.f32.mrf.mxu1  ;;  %3437 = vmatmul.mubr.msk.bf16.vlgmr.msra.gmra.mxu0 %vm868_vm1, %v1952_v46 }
 0x330   : > { %3461 = vmatpush3.bf16.msra.mxu0 %v3636_v27 }
 0x331   : > { %v3433_v50 = vpop.f32.mrf.mxu1  ;;  %3486 = vmatprep.subr.bf16.mxu0 %v3637_v48 }
 0x332   : > { %v1954_v53 = vpack.c.bf16 %v3433_v50, %v3432_v47 }
 0x333   : > { %v1939_v51 = vpop.f32.mrf.mxu1 }
 0x334   : > { %v1953_v52 = vpack.c.bf16 %v1939_v51, %v1936_v49 }
 0x335   : > { %v3454_v54 = vpop.f32.mrf.mxu1 }
 0x336   : > { %3440 = vmatprep.mubr.msk.bf16.mxu0 %vm868_vm1, %v1953_v52 }
 0x337   : > { %3441 = vmatmul.mubr.msk.bf16.gmra.mxu0 %vm868_vm1, %v1954_v53  ;;  %v2124_v55 = vpop.f32.mrf.mxu1 }
 0x339   : > { %v3455_v56 = vpop.f32.mrf.mxu1 }
 0x33a   : > { %v2156_v59 = vpack.c.bf16 %v3455_v56, %v3454_v54 }
 0x33b   : > { %v2127_v57 = vpop.f32.mrf.mxu1 }
 0x33c   : > { %v2155_v58 = vpack.c.bf16 %v2127_v57, %v2124_v55 }
 0x33d   : > { %v3458_v60 = vpop.f32.mrf.mxu1 }
 0x33e   : > { %3462 = vmatprep.mubr.msk.bf16.mxu0 %vm868_vm1, %v2155_v58 }
 0x33f   : > { %v2140_v61 = vpop.f32.mrf.mxu1  ;;  %3463 = vmatmul.mubr.msk.bf16.vlgmr.msra.gmra.mxu0 %vm868_vm1, %v2156_v59 }
 0x340   : > { %3487 = vmatpush3.bf16.msra.mxu0 %v3637_v48 }
 0x341   : > { %v3459_v62 = vpop.f32.mrf.mxu1  ;;  %3506 = vmatprep.subr.bf16.mxu0 %v3638_v9 }
 0x342   : > { %v2158_v1 = vpack.c.bf16 %v3459_v62, %v3458_v60 }
 0x343   : > { %v2143_v63 = vpop.f32.mrf.mxu1 }
 0x344   : > { %v2157_v0 = vpack.c.bf16 %v2143_v63, %v2140_v61 }
 0x345   : > { %v3480_v3 = vpop.f32.mrf.mxu1 }
 0x346   : > { %3466 = vmatprep.mubr.msk.bf16.mxu0 %vm868_vm1, %v2157_v0 }
 0x347   : > { %3467 = vmatmul.mubr.msk.bf16.gmra.mxu0 %vm868_vm1, %v2158_v1  ;;  %v2328_v4 = vpop.f32.mrf.mxu1 }
 0x349   : > { %v3481_v5 = vpop.f32.mrf.mxu1 }
 0x34a   : > { %v2360_v10 = vpack.c.bf16 %v3481_v5, %v3480_v3 }
 0x34b   : > { %v2331_v7 = vpop.f32.mrf.mxu1 }
 0x34c   : > { %v2359_v8 = vpack.c.bf16 %v2331_v7, %v2328_v4 }
 0x34d   : > { %v3484_v11 = vpop.f32.mrf.mxu1 }
 0x34e   : > { %3488 = vmatprep.mubr.msk.bf16.mxu0 %vm868_vm1, %v2359_v8 }
 0x34f   : > { %v2344_v13 = vpop.f32.mrf.mxu1  ;;  %3489 = vmatmul.mubr.msk.bf16.vlgmr.msra.gmra.mxu0 %vm868_vm1, %v2360_v10 }
 0x350   : > { %3507 = vmatpush3.bf16.msra.mxu0 %v3638_v9 }
 0x351   : > { %v3485_v14 = vpop.f32.mrf.mxu1  ;;  %3508 = vmatprep.subr.bf16.mxu0 %v3640_v16 }
 0x352   : > { %v2362_v6 = vpack.c.bf16 %v3485_v14, %v3484_v11 }
 0x353   : > { %v2347_v15 = vpop.f32.mrf.mxu1 }
 0x354   : > { %v2361_v2 = vpack.c.bf16 %v2347_v15, %v2344_v13  ;;  %3509 = vmatpush3.bf16.msra.mxu0 %v3640_v16 }
 0x355   : > { %3510 = vmatprep.subr.bf16.mxu0 %v3641_v17 }
 0x356   : > { %3492 = vmatprep.mubr.msk.bf16.mxu0 %vm868_vm1, %v2361_v2 }
 0x357   : > { %3493 = vmatmul.mubr.msk.bf16.gmra.mxu0 %vm868_vm1, %v2362_v6 }
 0x358   : > { %3514 = vmatprep.mubr.msk.bf16.mxu0 %vm548_vm0, %v3982_v40  ;;  %v3639_v40 = vld [vmem:[%s4381_s8] sm:$0xff]   ;;  %3511 = vmatpush3.bf16.msra.mxu0 %v3641_v17 }
 0x359   : > { %3496 = vmatprep.subr.bf16.mxu1 %v3639_v40  ;;  %3512 = vmatprep.subr.bf16.mxu0 %v3642_v19 }
 0x35a   : > { %3497 = vmatpush3.bf16.msra.mxu1 %v3639_v40 }
 0x35c   : > { %3513 = vmatpush3.bf16.msra.mxu0 %v3642_v19 }
 0x35f   : > { %3515 = vmatmul.mubr.msk.bf16.vlgmr.msra.gmra.mxu0 %vm548_vm0, %v3984_v43 }
 0x360   : > { %3518 = vmatprep.mubr.msk.bf16.mxu0 %vm548_vm0, %v3988_v44 }
 0x367   : > { %3519 = vmatmul.mubr.msk.bf16.gmra.mxu0 %vm548_vm0, %v3994_v45 }
 0x3af   : > { %v3334_v21 = vpop.f32.mrf.mxu0 }
 0x3b0   : > { %v1227_v22 = vadd.f32 %v3334_v21, %v4250_v18 }
 0x3b1   : > { %v1194_v24 = vpop.f32.mrf.mxu0 }
 0x3b2   : > { %v1225_v25 = vadd.f32 %v1194_v24, %v4252_v20 }
 0x3b3   : > { %v3335_v27 = vpop.f32.mrf.mxu0 }
 0x3b4   : > { %v1228_v28 = vadd.f32 %v3335_v27, %v4254_v23 }
 0x3b5   : > { %v1197_v29 = vpop.f32.mrf.mxu0 }
 0x3b6   : > { %v1226_v31 = vadd.f32 %v1197_v29, %v4256_v26 }
 0x3b7   : > { %v3338_v43 = vpop.f32.mrf.mxu0 }
 0x3b8   : > { %v1231_v33 = vadd.f32 %v3338_v43, %v4258_v30 }
 0x3b9   : > { %v1210_v44 = vpop.f32.mrf.mxu0 }
 0x3ba   : > { %v1229_v34 = vadd.f32 %v1210_v44, %v4260_v32 }
 0x3bb   : > { %v3339_v45 = vpop.f32.mrf.mxu0 }
 0x3bc   : > { %v1232_v18 = vadd.f32 %v3339_v45, %v4262_v35 }
 0x3bd   : > { %v1213_v38 = vpop.f32.mrf.mxu0 }
 0x3be   : > { %v1230_v39 = vadd.f32 %v1213_v38, %v1018_v37 }
 0x3bf   : > { %v3360_v20 = vpop.f32.mrf.mxu0 }
 0x3c0   : > { %v1431_v41 = vadd.f32 %v3360_v20, %v1227_v22 }
 0x3c1   : > { %v1398_v42 = vpop.f32.mrf.mxu0 }
 0x3c2   : > { %v1429_v23 = vadd.f32 %v1398_v42, %v1225_v25 }
 0x3c3   : > { %v3361_v46 = vpop.f32.mrf.mxu0 }
 0x3c4   : > { %v1432_v47 = vadd.f32 %v3361_v46, %v1228_v28 }
 0x3c5   : > { %v1401_v26 = vpop.f32.mrf.mxu0 }
 0x3c6   : > { %v1430_v48 = vadd.f32 %v1401_v26, %v1226_v31 }
 0x3c7   : > { %v3364_v49 = vpop.f32.mrf.mxu0 }
 0x3c8   : > { %v1435_v30 = vadd.f32 %v3364_v49, %v1231_v33 }
 0x3c9   : > { %v1414_v50 = vpop.f32.mrf.mxu0 }
 0x3ca   : > { %v1433_v51 = vadd.f32 %v1414_v50, %v1229_v34 }
 0x3cb   : > { %v3365_v32 = vpop.f32.mrf.mxu0 }
 0x3cc   : > { %v1436_v52 = vadd.f32 %v3365_v32, %v1232_v18 }
 0x3cd   : > { %v1417_v53 = vpop.f32.mrf.mxu0 }
 0x3ce   : > { %v4340_v36 = vadd.f32 %v1417_v53, %v1230_v39 }
 0x3cf   : > { %v3386_v35 = vpop.f32.mrf.mxu0 }
 0x3d0   : > { %v1635_v19 = vadd.f32 %v3386_v35, %v1431_v41  ;;  %v3054_v41 = vld [vmem:[#allocation7] ss:$0 sm:$0xff] }
 0x3d1   : > { %v1602_v54 = vpop.f32.mrf.mxu0 }
 0x3d2   : > { %v1633_v21 = vadd.f32 %v1602_v54, %v1429_v23 }
 0x3d3   : > { %v3387_v55 = vpop.f32.mrf.mxu0 }
 0x3d4   : > { %v1636_v25 = vadd.f32 %v3387_v55, %v1432_v47 }
 0x3d5   : > { %v1605_v56 = vpop.f32.mrf.mxu0 }
 0x3d6   : > { %v1634_v31 = vadd.f32 %v1605_v56, %v1430_v48 }
 0x3d7   : > { %v3390_v57 = vpop.f32.mrf.mxu0 }
 0x3d8   : > { %v1639_v34 = vadd.f32 %v3390_v57, %v1435_v30 }
 0x3d9   : > { %v1618_v58 = vpop.f32.mrf.mxu0 }
 0x3da   : > { %v1637_v20 = vadd.f32 %v1618_v58, %v1433_v51 }
 0x3db   : > { %v3391_v59 = vpop.f32.mrf.mxu0 }
 0x3dc   : > { %v1640_v49 = vadd.f32 %v3391_v59, %v1436_v52 }
 0x3dd   : > { %v1621_v60 = vpop.f32.mrf.mxu0 }
 0x3de   : > { %v1638_v30 = vadd.f32 %v1621_v60, %v4340_v36 }
 0x3df   : > { %v3412_v61 = vpop.f32.mrf.mxu0 }
 0x3e0   : > { %v1839_v22 = vadd.f32 %v3412_v61, %v1635_v19 }
 0x3e1   : > { %v1806_v62 = vpop.f32.mrf.mxu0 }
 0x3e2   : > { %v1837_v27 = vadd.f32 %v1806_v62, %v1633_v21 }
 0x3e3   : > { %v3413_v63 = vpop.f32.mrf.mxu0 }
 0x3e4   : > { %v1840_v43 = vadd.f32 %v3413_v63, %v1636_v25 }
 0x3e5   : > { %v1809_v0 = vpop.f32.mrf.mxu0 }
 0x3e6   : > { %v1838_v37 = vadd.f32 %v1809_v0, %v1634_v31 }
 0x3e7   : > { %v3416_v1 = vpop.f32.mrf.mxu0 }
 0x3e8   : > { %v1843_v23 = vadd.f32 %v3416_v1, %v1639_v34 }
 0x3e9   : > { %v1822_v3 = vpop.f32.mrf.mxu0 }
 0x3ea   : > { %v1841_v50 = vadd.f32 %v1822_v3, %v1637_v20 }
 0x3eb   : > { %v3417_v4 = vpop.f32.mrf.mxu0 }
 0x3ec   : > { %v1844_v55 = vadd.f32 %v3417_v4, %v1640_v49 }
 0x3ed   : > { %v1825_v5 = vpop.f32.mrf.mxu0 }
 0x3ee   : > { %v1842_v63 = vadd.f32 %v1825_v5, %v1638_v30 }
 0x3ef   : > { %v3438_v7 = vpop.f32.mrf.mxu0 }
 0x3f0   : > { %v2043_v28 = vadd.f32 %v3438_v7, %v1839_v22 }
 0x3f1   : > { %v2010_v8 = vpop.f32.mrf.mxu0 }
 0x3f2   : > { %v2041_v33 = vadd.f32 %v2010_v8, %v1837_v27 }
 0x3f3   : > { %v3439_v10 = vpop.f32.mrf.mxu0 }
 0x3f4   : > { %v2044_v18 = vadd.f32 %v3439_v10, %v1840_v43 }
 0x3f5   : > { %v2013_v11 = vpop.f32.mrf.mxu0 }
 0x3f6   : > { %v2042_v46 = vadd.f32 %v2013_v11, %v1838_v37 }
 0x3f7   : > { %v3442_v13 = vpop.f32.mrf.mxu0 }
 0x3f8   : > { %v2047_v48 = vadd.f32 %v3442_v13, %v1843_v23 }
 0x3f9   : > { %v2026_v14 = vpop.f32.mrf.mxu0 }
 0x3fa   : > { %v2045_v56 = vadd.f32 %v2026_v14, %v1841_v50 }
 0x3fb   : > { %v3443_v15 = vpop.f32.mrf.mxu0 }
 0x3fc   : > { %v2048_v0 = vadd.f32 %v3443_v15, %v1844_v55 }
 0x3fd   : > { %v2029_v2 = vpop.f32.mrf.mxu0 }
 0x3fe   : > { %v2046_v10 = vadd.f32 %v2029_v2, %v1842_v63 }
 0x3ff   : > { %v3464_v6 = vpop.f32.mrf.mxu0 }
 0x400   : > { %v2247_v44 = vadd.f32 %v3464_v6, %v2043_v28 }
 0x401   : > { %v2214_v9 = vpop.f32.mrf.mxu0 }
 0x402   : > { %v2245_v38 = vadd.f32 %v2214_v9, %v2041_v33  ;;  %v3055_v33 = vld [vmem:[#allocation9] ss:$0 sm:$0xff] }
 0x403   : > { %v3465_v16 = vpop.f32.mrf.mxu0 }
 0x404   : > { %v2248_v26 = vadd.f32 %v3465_v16, %v2044_v18 }
 0x405   : > { %v2217_v17 = vpop.f32.mrf.mxu0 }
 0x406   : > { %v2246_v53 = vadd.f32 %v2217_v17, %v2042_v46 }
 0x407   : > { %v3468_v40 = vpop.f32.mrf.mxu0 }
 0x408   : > { %v2251_v61 = vadd.f32 %v3468_v40, %v2047_v48 }
 0x409   : > { %v2230_v12 = vpop.f32.mrf.mxu0 }
 0x40a   : > { %v2249_v1 = vadd.f32 %v2230_v12, %v2045_v56 }
 0x40b   : > { %v3469_v24 = vpop.f32.mrf.mxu0 }
 0x40c   : > { %v2252_v11 = vadd.f32 %v3469_v24, %v2048_v0 }
 0x40d   : > { %v2233_v29 = vpop.f32.mrf.mxu0 }
 0x40e   : > { %v2250_v9 = vadd.f32 %v2233_v29, %v2046_v10 }
 0x40f   : > { %v3490_v45 = vpop.f32.mrf.mxu0 }
 0x410   : > { %v2451_v39 = vadd.f32 %v3490_v45, %v2247_v44 }
 0x411   : > { %v2418_v42 = vpop.f32.mrf.mxu0 }
 0x412   : > { %v2449_v47 = vadd.f32 %v2418_v42, %v2245_v38  ;;  %v2466_v35 = vadd.f32 %v3054_v41, %v2451_v39 }
 0x413   : > { %v3491_v32 = vpop.f32.mrf.mxu0 }
 0x414   : > { %v2452_v54 = vadd.f32 %v3491_v32, %v2248_v26  ;;  %v2464_v51 = vadd.f32 %v3054_v41, %v2449_v47  ;;  %v2474_v52 = vmax.f32 %v2466_v35, 0.0 }
 0x415   : > { %v2421_v57 = vpop.f32.mrf.mxu0 }
 0x416   : > { %v2467_v58 = vadd.f32 %v3054_v41, %v2452_v54  ;;  %v2450_v62 = vadd.f32 %v2421_v57, %v2246_v53  ;;  %v2472_v6 = vmax.f32 %v2464_v51, 0.0 }
 0x417   : > { %v3494_v7 = vpop.f32.mrf.mxu0 }
 0x418   : > { %v2475_v59 = vmax.f32 %v2467_v58, 0.0  ;;  %v2465_v3 = vadd.f32 %v3054_v41, %v2450_v62  ;;  %v2455_v8 = vadd.f32 %v3494_v7, %v2251_v61 }
 0x419   : > { %v2434_v13 = vpop.f32.mrf.mxu0 }
 0x41a   : > { %v2481_v36 = vpack.c.bf16 %v2475_v59, %v2474_v52  ;;  %v2473_v60 = vmax.f32 %v2465_v3, 0.0  ;;  %v2453_v4 = vadd.f32 %v2434_v13, %v2249_v1  ;;  %v2470_v17 = vadd.f32 %v3054_v41, %v2455_v8 }
 0x41b   : > { %v3495_v14 = vpop.f32.mrf.mxu0 }
 0x41c   : > { %v2480_v16 = vpack.c.bf16 %v2473_v60, %v2472_v6  ;;  %v2456_v40 = vadd.f32 %v3495_v14, %v2252_v11  ;;  %v2468_v15 = vadd.f32 %v3054_v41, %v2453_v4  ;;  %v2478_v2 = vmax.f32 %v2470_v17, 0.0 }
 0x41d   : > { %v2437_v5 = vpop.f32.mrf.mxu0 }
 0x41e   : > { %v2471_v19 = vadd.f32 %v3054_v41, %v2456_v40  ;;  %v2454_v12 = vadd.f32 %v2437_v5, %v2250_v9  ;;  %3498 = vmatprep.mubr.msk.bf16.mxu1 %vm868_vm1, %v2480_v16  ;;  %v2476_v24 = vmax.f32 %v2468_v15, 0.0 }
 0x41f   : > { %3499 = vmatmul.mubr.msk.bf16.vlgmr.msra.gmra.mxu1 %vm868_vm1, %v2481_v36  ;;  %v3516_v29 = vpop.f32.mrf.mxu0 }
 0x420   : > { %v2479_v21 = vmax.f32 %v2471_v19, 0.0  ;;  %v2469_v22 = vadd.f32 %v3054_v41, %v2454_v12 }
 0x421   : > { %v2642_v31 = vpop.f32.mrf.mxu0 }
 0x422   : > { %v2483_v25 = vpack.c.bf16 %v2479_v21, %v2478_v2  ;;  %v2477_v27 = vmax.f32 %v2469_v22, 0.0 }
 0x423   : > { %v3517_v43 = vpop.f32.mrf.mxu0 }
 0x424   : > { %v2482_v28 = vpack.c.bf16 %v2477_v27, %v2476_v24 }
 0x425   : > { %v2645_v34 = vpop.f32.mrf.mxu0 }
 0x426   : > { %3502 = vmatprep.mubr.msk.bf16.mxu1 %vm868_vm1, %v2482_v28 }
 0x427   : > { %3503 = vmatmul.mubr.msk.bf16.gmra.mxu1 %vm868_vm1, %v2483_v25  ;;  %v3520_v20 = vpop.f32.mrf.mxu0 }
 0x429   : > { %v2658_v50 = vpop.f32.mrf.mxu0 }
 0x42b   : > { %v3521_v57 = vpop.f32.mrf.mxu0 }
 0x42d   : > { %v2661_v52 = vpop.f32.mrf.mxu0 }
 0x4df   : > { %v3500_v44 = vpop.f32.mrf.mxu1 }
 0x4e0   : > { %v2554_v45 = vadd.f32 %v3500_v44, %v3055_v33 }
 0x4e1   : > { %v2545_v37 = vpop.f32.mrf.mxu1 }
 0x4e2   : > { %v2675_v18 = vadd.f32 %v3516_v29, %v2554_v45  ;;  %v2546_v38 = vadd.f32 %v3055_v33, %v2545_v37 }
 0x4e3   : > { %v3501_v39 = vpop.f32.mrf.mxu1 }
 0x4e4   : > { %v3083_v41 = vpack.c.bf16 %v2675_v18, %v2675_v18  ;;  %v2673_v42 = vadd.f32 %v2642_v31, %v2546_v38  ;;  %v2557_v23 = vadd.f32 %v3501_v39, %v3055_v33 }
 0x4e5   : > { %v2548_v46 = vpop.f32.mrf.mxu1 }
 0x4e6   : > { %2716 = vst.msk [vmem:[%s4352_s28 + $0x8] sm:$0xf] %vm2713_vm2, %v3083_v41  ;;  %v3081_v26 = vpack.c.bf16 %v2673_v42, %v2673_v42  ;;  %v2676_v47 = vadd.f32 %v3517_v43, %v2557_v23  ;;  %v2549_v49 = vadd.f32 %v3055_v33, %v2548_v46 }
 0x4e7   : > { %v3504_v32 = vpop.f32.mrf.mxu1 }
 0x4e8   : > { %2714 = vst.msk [vmem:[%s4352_s28] sm:$0xf] %vm2713_vm2, %v3081_v26  ;;  %v3084_v48 = vpack.c.bf16 %v2676_v47, %v2676_v47  ;;  %v2674_v53 = vadd.f32 %v2645_v34, %v2549_v49  ;;  %v2570_v35 = vadd.f32 %v3504_v32, %v3055_v33 }
 0x4e9   : > { %v2561_v54 = vpop.f32.mrf.mxu1 }
 0x4ea   : > { %2717 = vst.msk [vmem:[%s4352_s28 + $0xc] sm:$0xf] %vm2713_vm2, %v3084_v48  ;;  %v3082_v30 = vpack.c.bf16 %v2674_v53, %v2674_v53  ;;  %v2679_v55 = vadd.f32 %v3520_v20, %v2570_v35  ;;  %v2562_v56 = vadd.f32 %v3055_v33, %v2561_v54 }
 0x4eb   : > { %v3505_v61 = vpop.f32.mrf.mxu1 }
 0x4ec   : > { %2715 = vst.msk [vmem:[%s4352_s28 + $0x4] sm:$0xf] %vm2713_vm2, %v3082_v30  ;;  %v3087_v51 = vpack.c.bf16 %v2679_v55, %v2679_v55  ;;  %v2677_v58 = vadd.f32 %v2658_v50, %v2562_v56  ;;  %v2573_v62 = vadd.f32 %v3505_v61, %v3055_v33 }
 0x4ed   : > { %v2564_v63 = vpop.f32.mrf.mxu1 }
 0x4ee   : > { %2720 = vst.msk [vmem:[%s4352_s28 + $0x18] sm:$0xf] %vm2713_vm2, %v3087_v51  ;;  %v3085_v0 = vpack.c.bf16 %v2677_v58, %v2677_v58  ;;  %v2680_v1 = vadd.f32 %v3521_v57, %v2573_v62  ;;  %v2565_v7 = vadd.f32 %v3055_v33, %v2564_v63 }
 0x4f0   : > { %2718 = vst.msk [vmem:[%s4352_s28 + $0x10] sm:$0xf] %vm2713_vm2, %v3085_v0  ;;  %v3088_v59 = vpack.c.bf16 %v2680_v1, %v2680_v1  ;;  %v2678_v3 = vadd.f32 %v2661_v52, %v2565_v7 }
 0x4f2   : > { %2721 = vst.msk [vmem:[%s4352_s28 + $0x1c] sm:$0xf] %vm2713_vm2, %v3088_v59  ;;  %v3086_v8 = vpack.c.bf16 %v2678_v3, %v2678_v3 }
 0x4f4   : > { %2719 = vst.msk [vmem:[%s4352_s28 + $0x14] sm:$0xf] %vm2713_vm2, %v3086_v8 }
 0x4f5 PF: > { %s24_s17 = sadd.s32 1, %s3791_s17  }
 0x4f6   : > { %p21_p2 = scmp.ge.s32.totalorder %s24_s17, 4  }
 0x4f8   :  { %23 = sbr.rel (!%p21_p2) target bundleno = 3 (0x3), region = 131 }
 0x4fd   :  { %2743 = vsyncpa [#allocation3], 1 }
 0x4fe   :  { %2745 = vsyncpa [#allocation3 + $0x1], 1 }
 0x4ff   :  { %2746 = vsyncpa [#allocation5], 1 }
 0x500   :  { %2747 = vsyncpa [#allocation8], 1 }

// kernel: resnet18v2_forward.12
= control target key start
LH: loop header
LB: loop body
LE: loop exit
PB: predicated region body
PF: predicated region fallthrough
CT: control target
= control target key end

     0   :  { %16 = vsyncpa [#allocation3], 0  ;;  %s2915_s0 = inlined_call_operand.vmem [shape: bf16[2,64,64], index: 0, kind: input, shape index: {}]   ;;  %s2916_s1 = inlined_call_operand.hbm [shape: f32[1,64], index: 1, kind: input, shape index: {}]   ;;  %s2917_s2 = inlined_call_operand.hbm [shape: f32[1,64], index: 2, kind: input, shape index: {}]   ;;  %s2918_s3 = inlined_call_operand.vmem [shape: bf16[64,16], index: 3, kind: input, shape index: {}]   ;;  %s2919_s4 = inlined_call_operand.hbm [shape: f32[1,16], index: 4, kind: input, shape index: {}]   ;;  %s2920_s5 = inlined_call_operand.vmem [shape: bf16[9,16,64], index: 5, kind: input, shape index: {}]   ;;  %s2921_s6 = inlined_call_operand.vmem [shape: bf16[9,16,16], index: 6, kind: input, shape index: {}]   ;;  %s2922_s7 = inlined_call_operand.hbm [shape: f32[1,16], index: 7, kind: input, shape index: {}]   ;;  %s2923_s8 = inlined_call_operand.vmem [shape: bf16[16,64], index: 8, kind: input, shape index: {}]   ;;  %s2924_s9 = inlined_call_operand.hbm [shape: f32[1,64], index: 9, kind: input, shape index: {}]   ;;  %s2925_s10 = inlined_call_operand.vmem [shape: bf16[16,64], index: 10, kind: input, shape index: {}]   ;;  %s2926_s11 = inlined_call_operand.vmem [shape: bf16[2,16,64], index: 11, kind: output, shape index: {}]  }
   0x1   :  { %17 = vsyncpa [#allocation5], 0 }
   0x2   :  { %18 = vsyncpa [#allocation8], 0  ;;  %s2552_s17 = smov 0  }
   0x3 LB: > { %s2485_s18 = smov [#allocation4]   ;;  %s2558_s20 = sadd.s32 4294967295, %s2483_s17   ;;  %s2483_s17 = sphi %s2552_s17, %s24_s17  }
   0x4   : > { %s315_s19 = sshll.u32 %s2485_s18, 4  ;;  %p1847_p0 = scmp.ge.s32.totalorder %s2483_s17, 1  ;;  %s316_s19 = int_to_ptr.vmem [resolvable:$true] %s315_s19 }
   0x5   : > { %p291_p1 = scmp.lt.s32.totalorder %s2483_s17, 3  ;;  %p2286_p2 = scmp.eq.s32.totalorder %s2558_s20, 0 }
   0x6   : > { %s2486_s22 = smov [#allocation7]   ;;  %s2487_s24 = smov [#allocation2]  }
   0x7   : > { %p2563_p3 = pnand %p1847_p0, %p291_p1  ;;  %s346_s23 = sshll.u32 %s2486_s22, 4  ;;  %s2569_s23 = int_to_ptr.vmem [resolvable:$true] %s346_s23 }
   0x8   : > { %s304_s25 = sshll.u32 %s2487_s24, 4  ;;  %s2488_s27 = smov [#allocation6]   ;;  %s2577_s25 = int_to_ptr.vmem [resolvable:$true] %s304_s25 }
   0x9   : > { %p2270_p4 = pneg %p2563_p3  ;;  %s329_s28 = sshll.u32 %s2488_s27, 4  ;;  %s2579_s28 = int_to_ptr.vmem [resolvable:$true] %s329_s28 }
   0xa   : > { %s2346_s30 = scalar_lea.vmem %s316_s19, 16  ;;  %s2353_s12 = scalar_lea.vmem %s316_s19, 32 }
   0xb   : > { %p2573_p5 = pnand %p2286_p2, %p2270_p4  ;;  %p2347_p7 = scmp.ne.s32.totalorder %s316_s19, %s2346_s30 }
   0xc   : > { %p2354_p10 = scmp.lt.s32.totalorder %s316_s19, %s316_s19  ;;  %p2355_p11 = scmp.lt.s32.totalorder %s2353_s12, %s2346_s30 }
   0xd   : > { %p2583_p6 = pneg %p2573_p5 }
   0xe   : > { %p2356_p12 = por %p2355_p11, %p2354_p10 }
   0xf   : > { %p2349_p8 = pnand %p2347_p7, %p2583_p6 }
  0x11   : > { %p2350_p9 = pneg %p2349_p8 }
  0x13   : > { %p2357_p13 = pnand %p2356_p12, %p2350_p9 }
  0x15   : > { %2360 = shalt.err (!%p2357_p13)
}
  0x16   : > { %2276 = dma.hbm_to_vmem [thread:$0]  (!%p2573_p5), %s2917_s2, 16, %s316_s19, [#allocation5]  }
  0x17   : > { %s2372_s15 = scalar_lea.vmem %s2569_s23, 16  ;;  %s2379_s16 = scalar_lea.vmem %s2569_s23, 32 }
  0x18   : > { %p2373_p0 = scmp.ne.s32.totalorder %s2569_s23, %s2372_s15  ;;  %p2380_p7 = scmp.lt.s32.totalorder %s2569_s23, %s2569_s23 }
  0x19   : > { %p2381_p8 = scmp.lt.s32.totalorder %s2379_s16, %s2372_s15 }
  0x1a   : > { %p2375_p1 = pnand %p2373_p0, %p2583_p6 }
  0x1b   : > { %p2382_p9 = por %p2381_p8, %p2380_p7 }
  0x1c   : > { %p2376_p4 = pneg %p2375_p1 }
  0x1e   : > { %p2383_p10 = pnand %p2382_p9, %p2376_p4 }
  0x20   : > { %2386 = shalt.err (!%p2383_p10)
}
  0x21   : > { %2282 = dma.hbm_to_vmem [thread:$0]  (!%p2573_p5), %s2922_s7, 16, %s2569_s23, [#allocation8]  }
  0x22   : > { %s2398_s19 = scalar_lea.vmem %s2577_s25, 16  ;;  %s2405_s24 = scalar_lea.vmem %s2577_s25, 32 }
  0x23   : > { %p2399_p11 = scmp.ne.s32.totalorder %s2577_s25, %s2398_s19  ;;  %p2406_p0 = scmp.lt.s32.totalorder %s2577_s25, %s2577_s25 }
  0x24   : > { %p2407_p1 = scmp.lt.s32.totalorder %s2405_s24, %s2398_s19 }
  0x25   : > { %p2401_p12 = pnand %p2399_p11, %p2583_p6 }
  0x26   : > { %p2408_p4 = por %p2407_p1, %p2406_p0 }
  0x27   : > { %p2402_p13 = pneg %p2401_p12 }
  0x29   : > { %p2409_p7 = pnand %p2408_p4, %p2402_p13 }
  0x2b   : > { %2412 = shalt.err (!%p2409_p7)
}
  0x2c   : > { %2273 = dma.hbm_to_vmem [thread:$0]  (!%p2573_p5), %s2916_s1, 16, %s2577_s25, [#allocation3]  }
  0x2d   : > { %s2424_s23 = scalar_lea.vmem %s2579_s28, 16  ;;  %s2431_s12 = scalar_lea.vmem %s2579_s28, 32 }
  0x2e   : > { %p2425_p8 = scmp.ne.s32.totalorder %s2579_s28, %s2424_s23  ;;  %p2432_p11 = scmp.lt.s32.totalorder %s2579_s28, %s2579_s28 }
  0x2f   : > { %p2433_p12 = scmp.lt.s32.totalorder %s2431_s12, %s2424_s23 }
  0x30   : > { %p2427_p9 = pnand %p2425_p8, %p2583_p6 }
  0x31   : > { %p2434_p13 = por %p2433_p12, %p2432_p11 }
  0x32   : > { %p2428_p10 = pneg %p2427_p9 }
  0x34   : > { %p2435_p0 = pnand %p2434_p13, %p2428_p10 }
  0x36   : > { %2438 = shalt.err (!%p2435_p0)
}
  0x37   : > { %2279 = dma.hbm_to_vmem [thread:$0]  (!%p2573_p5), %s2919_s4, 16, %s2579_s28, [#allocation5]  }
  0x38   : > { %s2489_s25 = smov [#allocation9]  }
  0x39   : > { %s360_s15 = sshll.u32 %s2489_s25, 4  ;;  %s361_s15 = int_to_ptr.vmem [resolvable:$true] %s360_s15 }
  0x3a   : > { %s2450_s16 = scalar_lea.vmem %s361_s15, 16  ;;  %s2457_s18 = scalar_lea.vmem %s361_s15, 32 }
  0x3b   : > { %p2451_p1 = scmp.ne.s32.totalorder %s361_s15, %s2450_s16  ;;  %p2458_p8 = scmp.lt.s32.totalorder %s361_s15, %s361_s15 }
  0x3c   : > { %p2459_p9 = scmp.lt.s32.totalorder %s2457_s18, %s2450_s16 }
  0x3d   : > { %p2453_p4 = pnand %p2451_p1, %p2583_p6 }
  0x3e   : > { %p2460_p10 = por %p2459_p9, %p2458_p8 }
  0x3f   : > { %p2454_p7 = pneg %p2453_p4 }
  0x41   : > { %p2461_p11 = pnand %p2460_p10, %p2454_p7 }
  0x43   : > { %2464 = shalt.err (!%p2461_p11)
}
  0x44   : > { %2285 = dma.hbm_to_vmem [thread:$0]  (!%p2573_p5), %s2924_s9, 16, %s361_s15, [#allocation8]  }
  0x45   : > { %384 = sbr.rel (%p2563_p3) target bundleno = 2029 (0x7ed), region = 64 }
  0x4a   : > { %2470 = dma.done.wait (%p2286_p2), [#allocation3], 16  }
  0x4b   : > { %2472 = vsyncadd (%p2286_p2), [#allocation3], 4294967280 }
  0x4c   : > { %2474 = dma.done.wait (%p2286_p2), [#allocation5], 32  }
  0x4d   : > { %2476 = vsyncadd (%p2286_p2), [#allocation5], 4294967264 }
  0x4e   : > { %2478 = dma.done.wait (%p2286_p2), [#allocation8], 32  }
  0x4f   : > { %2480 = vsyncadd (%p2286_p2), [#allocation8], 4294967264  ;;  %p440_p3 = scmp.lt.s32.totalorder %s2558_s20, 1  ;;  %v2311_v0 = vld [vmem:[%s2918_s3 + $0x18] sm:$0xff]   ;;  %v2312_v1 = vld [vmem:[%s2918_s3 + $0x10] sm:$0xff]   ;;  %vm548_vm0 = vcmask 523264  }
  0x50   : > { %2054 = vmatprep.subr.bf16.mxu0 %v2311_v0  ;;  %v2313_v2 = vld [vmem:[%s2918_s3 + $0x8] sm:$0xff]   ;;  %v1864_v4 = vld [vmem:[#allocation2] ss:$0 sm:$0xff]  ;;  %v1865_v5 = vld [vmem:[#allocation4] ss:$0 sm:$0xff]  ;;  %v2490_v46 = vmov 0.0  }
  0x51   : > { %s2931_s20 = smov (!%p440_p3, %s2558_s20), 1  ;;  %2055 = vmatpush3.bf16.msra.mxu0 %v2311_v0  ;;  %v2314_v11 = vld [vmem:[%s2918_s3] sm:$0xff]   ;;  %2070 = vmatprep.subr.bf16.mxu1 %v2490_v46  ;;  %vm2491_vm1 = vmmov 0   ;;  %vm754_vm2 = vcmask 130048   ;;  %vm1737_vm3 = vcmask 519168  }
  0x52   : > { %s1953_s21 = sshll.u32 %s2931_s20, 5  ;;  %2056 = vmatprep.subr.bf16.mxu0 %v2312_v1  ;;  %2078 = vmatprep.mubr.msk.bf16.mxu1 %vm2491_vm1, %v2490_v46  ;;  %v1866_v52 = vld [vmem:[#allocation6] ss:$0 sm:$0xff]  ;;  %s1954_s26 = sshll.u32 %s2931_s20, 3 }
  0x53   : > { %s444_s23 = scalar_lea.vmem %s2915_s0, %s1953_s21  ;;  %s449_s24 = scalar_lea.vmem %s2926_s11, %s1954_s26 }
  0x54   : > { %v1958_v3 = vld [vmem:[%s444_s23] sm:$0xff]   ;;  %v1973_v8 = vld [vmem:[%s444_s23 + $0x8] sm:$0xff]   ;;  %v1974_v9 = vld [vmem:[%s444_s23 + $0x10] sm:$0xff]  }
  0x55   : > { %v1959_v6 = vunpack.c.l.bf16 %v1958_v3  ;;  %v1960_v7 = vunpack.c.h.bf16 %v1958_v3  ;;  %v1975_v10 = vld [vmem:[%s444_s23 + $0x18] sm:$0xff]   ;;  %v1963_v12 = vunpack.c.l.bf16 %v1973_v8  ;;  %v1964_v13 = vunpack.c.h.bf16 %v1973_v8  ;;  %2057 = vmatpush3.bf16.msra.mxu0 %v2312_v1 }
  0x56   : > { %v1967_v14 = vunpack.c.l.bf16 %v1974_v9  ;;  %v1968_v15 = vunpack.c.h.bf16 %v1974_v9  ;;  %v1971_v18 = vunpack.c.l.bf16 %v1975_v10  ;;  %v1972_v19 = vunpack.c.h.bf16 %v1975_v10  ;;  %2058 = vmatprep.subr.bf16.mxu0 %v2313_v2 }
  0x57   : > { %v474_v16 = vmul.f32 %v1959_v6, %v1864_v4  ;;  %v475_v17 = vmul.f32 %v1960_v7, %v1864_v4  ;;  %v476_v20 = vmul.f32 %v1963_v12, %v1864_v4  ;;  %v477_v21 = vmul.f32 %v1964_v13, %v1864_v4  ;;  %v2315_v12 = vld [vmem:[%s2920_s5 + $0x8] sm:$0xff]   ;;  %v2316_v13 = vld [vmem:[%s2920_s5] sm:$0xff]  }
  0x58   : > { %v478_v22 = vmul.f32 %v1967_v14, %v1864_v4  ;;  %v479_v23 = vmul.f32 %v1968_v15, %v1864_v4  ;;  %v480_v26 = vmul.f32 %v1971_v18, %v1864_v4  ;;  %v481_v27 = vmul.f32 %v1972_v19, %v1864_v4  ;;  %v2317_v14 = vld [vmem:[%s2920_s5 + $0x10] sm:$0xff]   ;;  %v2318_v15 = vld [vmem:[%s2921_s6 + $0x8] sm:$0xff]  }
  0x59   : > { %v489_v24 = vadd.f32 %v1865_v5, %v474_v16  ;;  %v490_v25 = vadd.f32 %v1865_v5, %v475_v17  ;;  %v491_v28 = vadd.f32 %v1865_v5, %v476_v20  ;;  %v492_v29 = vadd.f32 %v1865_v5, %v477_v21  ;;  %2059 = vmatpush3.bf16.msra.mxu0 %v2313_v2  ;;  %v2322_v16 = vld [vmem:[%s2920_s5 + $0x20] sm:$0xff]  }
  0x5a   : > { %v493_v30 = vadd.f32 %v1865_v5, %v478_v22  ;;  %v494_v31 = vadd.f32 %v1865_v5, %v479_v23  ;;  %v495_v34 = vadd.f32 %v1865_v5, %v480_v26  ;;  %v496_v35 = vadd.f32 %v1865_v5, %v481_v27  ;;  %2060 = vmatprep.subr.bf16.mxu0 %v2314_v11  ;;  %v2319_v23 = vld [vmem:[%s2921_s6] sm:$0xff]   ;;  %v2320_v27 = vld [vmem:[%s2921_s6 + $0x10] sm:$0xff]  }
  0x5b   : > { %v497_v32 = vmax.f32 %v489_v24, 0.0  ;;  %v498_v33 = vmax.f32 %v490_v25, 0.0  ;;  %v499_v36 = vmax.f32 %v491_v28, 0.0  ;;  %v500_v37 = vmax.f32 %v492_v29, 0.0 }
  0x5c   : > { %v501_v38 = vmax.f32 %v493_v30, 0.0  ;;  %v502_v39 = vmax.f32 %v494_v31, 0.0  ;;  %v503_v41 = vmax.f32 %v495_v34, 0.0  ;;  %v504_v42 = vmax.f32 %v496_v35, 0.0  ;;  %v2321_v34 = vld [vmem:[%s2920_s5 + $0x18] sm:$0xff]  }
  0x5d   : > { %v2674_v40 = vpack.c.bf16 %v498_v33, %v497_v32  ;;  %v2676_v43 = vpack.c.bf16 %v500_v37, %v499_v36  ;;  %2061 = vmatpush3.bf16.msra.mxu0 %v2314_v11  ;;  %v2323_v35 = vld [vmem:[%s2921_s6 + $0x18] sm:$0xff]  }
  0x5e   : > { %v2680_v44 = vpack.c.bf16 %v502_v39, %v501_v38  ;;  %v2686_v45 = vpack.c.bf16 %v504_v42, %v503_v41  ;;  %2082 = vmatprep.subr.bf16.mxu0 %v2490_v46 }
  0x5f   : > { %2062 = vmatprep.mubr.msk.bf16.mxu0 %vm548_vm0, %v2674_v40 }
  0x60   : > { %2063 = vmatmul.mubr.msk.bf16.vlgmr.msra.gmra.mxu0 %vm548_vm0, %v2676_v43 }
  0x61   : > { %2066 = vmatprep.mubr.msk.bf16.mxu0 %vm548_vm0, %v2680_v44 }
  0x68   : > { %2067 = vmatmul.mubr.msk.bf16.gmra.mxu0 %vm548_vm0, %v2686_v45 }
  0x69   : > { %2090 = vmatprep.mubr.msk.bf16.mxu0 %vm2491_vm1, %v2490_v46 }
 0x120   : > { %v2064_v47 = vpop.f32.mrf.mxu0 }
 0x121   : > { %v604_v1 = vadd.f32 %v2064_v47, %v1866_v52 }
 0x122   : > { %v595_v48 = vpop.f32.mrf.mxu0 }
 0x123   : > { %v628_v6 = vmax.f32 %v604_v1, 0.0  ;;  %v596_v7 = vadd.f32 %v1866_v52, %v595_v48 }
 0x124   : > { %v2065_v49 = vpop.f32.mrf.mxu0 }
 0x125   : > { %v607_v62 = vadd.f32 %v2065_v49, %v1866_v52  ;;  %v626_v10 = vmax.f32 %v596_v7, 0.0  ;;  %v2326_v7 = vld [vmem:[%s2921_s6 + $0x28] sm:$0xff]  }
 0x126   : > { %v598_v50 = vpop.f32.mrf.mxu0 }
 0x127   : > { %v629_v3 = vmax.f32 %v607_v62, 0.0  ;;  %v599_v4 = vadd.f32 %v1866_v52, %v598_v50 }
 0x128   : > { %v2068_v51 = vpop.f32.mrf.mxu0 }
 0x129   : > { %v620_v54 = vadd.f32 %v2068_v51, %v1866_v52  ;;  %v2708_v8 = vpack.c.bf16 %v629_v3, %v628_v6  ;;  %v627_v9 = vmax.f32 %v599_v4, 0.0  ;;  %v2325_v6 = vld [vmem:[%s2920_s5 + $0x28] sm:$0xff]  }
 0x12a   : > { %v611_v53 = vpop.f32.mrf.mxu0 }
 0x12b   : > { %v632_v58 = vmax.f32 %v620_v54, 0.0  ;;  %v612_v59 = vadd.f32 %v1866_v52, %v611_v53  ;;  %v2714_v11 = vpack.c.bf16 %v627_v9, %v626_v10 }
 0x12c   : > { %v2069_v55 = vpop.f32.mrf.mxu0 }
 0x12d   : > { %v623_v56 = vadd.f32 %v2069_v55, %v1866_v52  ;;  %v630_v2 = vmax.f32 %v612_v59, 0.0 }
 0x12e   : > { %v614_v57 = vpop.f32.mrf.mxu0 }
 0x12f   : > { %v633_v60 = vmax.f32 %v623_v56, 0.0  ;;  %v615_v61 = vadd.f32 %v1866_v52, %v614_v57 }
 0x131   : > { %v2696_v63 = vpack.c.bf16 %v633_v60, %v632_v58  ;;  %v631_v0 = vmax.f32 %v615_v61, 0.0 }
 0x133   : > { %2071 = vmatpush3.bf16.msra.mxu1 %v2696_v63  ;;  %2083 = vmatpush3.bf16.msra.mxu0 %v2696_v63  ;;  %v2702_v5 = vpack.c.bf16 %v631_v0, %v630_v2  ;;  %v2324_v2 = vld [vmem:[%s2921_s6 + $0x20] sm:$0xff]  }
 0x134   : > { %2072 = vmatprep.subr.bf16.mxu1 %v2490_v46  ;;  %2084 = vmatprep.subr.bf16.mxu0 %v2490_v46 }
 0x137   : > { %2073 = vmatpush3.bf16.msra.mxu1 %v2702_v5  ;;  %2085 = vmatpush3.bf16.msra.mxu0 %v2702_v5 }
 0x138   : > { %2074 = vmatprep.subr.bf16.mxu1 %v2490_v46  ;;  %2086 = vmatprep.subr.bf16.mxu0 %v2490_v46 }
 0x13b   : > { %2075 = vmatpush3.bf16.msra.mxu1 %v2708_v8  ;;  %2087 = vmatpush3.bf16.msra.mxu0 %v2708_v8 }
 0x13c   : > { %2076 = vmatprep.subr.bf16.mxu1 %v2490_v46  ;;  %2088 = vmatprep.subr.bf16.mxu0 %v2490_v46 }
 0x13f   : > { %2077 = vmatpush3.bf16.msra.mxu1 %v2714_v11  ;;  %2089 = vmatpush3.bf16.msra.mxu0 %v2714_v11 }
 0x140   : > { %2106 = vmatprep.subr.bf16.mxu0 %v2490_v46  ;;  %2094 = vmatprep.subr.bf16.mxu1 %v2490_v46 }
 0x142   : > { %2091 = vmatmul.mubr.msk.bf16.vlgmr.msra.gmra.mxu0 %vm548_vm0, %v2315_v12  ;;  %2079 = vmatmul.mubr.msk.bf16.vlgmr.msra.gmra.mxu1 %vm548_vm0, %v2316_v13 }
 0x143   : > { %2107 = vmatpush3.bf16.msra.mxu0 %v2696_v63  ;;  %2114 = vmatprep.mubr.msk.bf16.mxu0 %vm2491_vm1, %v2490_v46 }
 0x144   : > { %2108 = vmatprep.subr.bf16.mxu0 %v2490_v46  ;;  %2096 = vmatprep.mubr.msk.bf16.mxu1 %vm2491_vm1, %v2490_v46 }
 0x145   : > { %2095 = vmatpush3.bf16.msra.mxu1 %v2318_v15 }
 0x146   : > { %2100 = vmatprep.subr.bf16.mxu1 %v2490_v46 }
 0x147   : > { %2109 = vmatpush3.bf16.msra.mxu0 %v2702_v5 }
 0x148   : > { %2110 = vmatprep.subr.bf16.mxu0 %v2490_v46 }
 0x14b   : > { %2111 = vmatpush3.bf16.msra.mxu0 %v2708_v8 }
 0x14c   : > { %2112 = vmatprep.subr.bf16.mxu0 %v2490_v46 }
 0x14f   : > { %2113 = vmatpush3.bf16.msra.mxu0 %v2714_v11 }
 0x150   : > { %2142 = vmatprep.subr.bf16.mxu0 %v2490_v46 }
 0x152   : > { %2115 = vmatmul.mubr.msk.bf16.vlgmr.msra.gmra.mxu0 %vm548_vm0, %v2317_v14 }
 0x153   : > { %2143 = vmatpush3.bf16.msra.mxu0 %v2696_v63  ;;  %2150 = vmatprep.mubr.msk.bf16.mxu0 %vm2491_vm1, %v2490_v46 }
 0x154   : > { %2144 = vmatprep.subr.bf16.mxu0 %v2490_v46 }
 0x157   : > { %2145 = vmatpush3.bf16.msra.mxu0 %v2702_v5 }
 0x158   : > { %2146 = vmatprep.subr.bf16.mxu0 %v2490_v46 }
 0x15b   : > { %2147 = vmatpush3.bf16.msra.mxu0 %v2708_v8 }
 0x15c   : > { %2148 = vmatprep.subr.bf16.mxu0 %v2490_v46 }
 0x15f   : > { %2149 = vmatpush3.bf16.msra.mxu0 %v2714_v11 }
 0x160   : > { %2172 = vmatprep.subr.bf16.mxu0 %v2490_v46 }
 0x162   : > { %2151 = vmatmul.mubr.msk.bf16.vlgmr.msra.gmra.mxu0 %vm548_vm0, %v2322_v16 }
 0x163   : > { %2174 = vmatprep.mubr.msk.bf16.mxu0 %vm2491_vm1, %v2490_v46  ;;  %2173 = vmatpush3.bf16.msra.mxu0 %v2326_v7 }
 0x164   : > { %2178 = vmatprep.subr.bf16.mxu0 %v2490_v46 }
 0x202   : > { %v737_v17 = vpop.f32.mrf.mxu0  ;;  %v682_v18 = vpop.f32.mrf.mxu1 }
 0x204   : > { %v2092_v19 = vpop.f32.mrf.mxu0  ;;  %v2080_v20 = vpop.f32.mrf.mxu1 }
 0x206   : > { %v740_v21 = vpop.f32.mrf.mxu0  ;;  %v685_v22 = vpop.f32.mrf.mxu1 }
 0x207   : > { %v744_v24 = vpack.c.bf16 %v740_v21, %v737_v17  ;;  %v689_v28 = vpack.c.bf16 %v685_v22, %v682_v18 }
 0x208   : > { %v2093_v25 = vpop.f32.mrf.mxu0  ;;  %v2081_v26 = vpop.f32.mrf.mxu1 }
 0x209   : > { %2097 = vmatmul.mubr.msk.bf16.vlgmr.msra.gmra.mxu1 %vm754_vm2, %v744_v24 }
 0x20a   : > { %2101 = vmatpush3.bf16.msra.mxu1 %v2319_v23  ;;  %2102 = vmatprep.mubr.msk.bf16.mxu1 %vm2491_vm1, %v2490_v46 }
 0x20b   : > { %2118 = vmatprep.subr.bf16.mxu1 %v2490_v46 }
 0x211   : > { %2103 = vmatmul.mubr.msk.bf16.vlgmr.msra.gmra.mxu1 %vm754_vm2, %v689_v28  ;;  %v2328_v28 = vld [vmem:[%s2921_s6 + $0x30] sm:$0xff]  }
 0x212   : > { %v894_v29 = vpop.f32.mrf.mxu0  ;;  %2119 = vmatpush3.bf16.msra.mxu1 %v2320_v27  ;;  %2120 = vmatprep.mubr.msk.bf16.mxu1 %vm2491_vm1, %v2490_v46  ;;  %v2327_v27 = vld [vmem:[%s2920_s5 + $0x30] sm:$0xff]  }
 0x213   : > { %2124 = vmatprep.subr.bf16.mxu1 %v2490_v46 }
 0x214   : > { %v2116_v30 = vpop.f32.mrf.mxu0 }
 0x216   : > { %v897_v31 = vpop.f32.mrf.mxu0 }
 0x217   : > { %v901_v32 = vpack.c.bf16 %v897_v31, %v894_v29 }
 0x218   : > { %v2117_v33 = vpop.f32.mrf.mxu0 }
 0x219   : > { %2121 = vmatmul.mubr.msk.bf16.vlgmr.msra.gmra.mxu1 %vm754_vm2, %v901_v32 }
 0x21a   : > { %2125 = vmatpush3.bf16.msra.mxu1 %v2696_v63  ;;  %2132 = vmatprep.mubr.msk.bf16.mxu1 %vm2491_vm1, %v2490_v46 }
 0x21b   : > { %2126 = vmatprep.subr.bf16.mxu1 %v2490_v46 }
 0x21e   : > { %2127 = vmatpush3.bf16.msra.mxu1 %v2702_v5 }
 0x21f   : > { %2128 = vmatprep.subr.bf16.mxu1 %v2490_v46 }
 0x222   : > { %2129 = vmatpush3.bf16.msra.mxu1 %v2708_v8  ;;  %v1110_v36 = vpop.f32.mrf.mxu0 }
 0x223   : > { %2130 = vmatprep.subr.bf16.mxu1 %v2490_v46 }
 0x224   : > { %v2152_v37 = vpop.f32.mrf.mxu0 }
 0x226   : > { %2131 = vmatpush3.bf16.msra.mxu1 %v2714_v11  ;;  %v1113_v38 = vpop.f32.mrf.mxu0 }
 0x227   : > { %2136 = vmatprep.subr.bf16.mxu1 %v2490_v46  ;;  %v1117_v39 = vpack.c.bf16 %v1113_v38, %v1110_v36 }
 0x228   : > { %v2153_v41 = vpop.f32.mrf.mxu0 }
 0x229   : > { %2133 = vmatmul.mubr.msk.bf16.vlgmr.msra.gmra.mxu1 %vm548_vm0, %v2321_v34  ;;  %v2329_v41 = vld [vmem:[%s2920_s5 + $0x38] sm:$0xff]  }
 0x22a   : > { %2138 = vmatprep.mubr.msk.bf16.mxu1 %vm2491_vm1, %v2490_v46  ;;  %2137 = vmatpush3.bf16.msra.mxu1 %v2323_v35 }
 0x22b   : > { %2154 = vmatprep.subr.bf16.mxu1 %v2490_v46 }
 0x2c9   : > { %v792_v42 = vpop.f32.mrf.mxu1 }
 0x2cb   : > { %v2098_v47 = vpop.f32.mrf.mxu1 }
 0x2cd   : > { %v795_v48 = vpop.f32.mrf.mxu1 }
 0x2cf   : > { %v2099_v49 = vpop.f32.mrf.mxu1 }
 0x2d1   : > { %v842_v50 = vpop.f32.mrf.mxu1 }
 0x2d2   : > { %v843_v51 = vadd.f32 %v842_v50, %v792_v42  ;;  %v2330_v42 = vld [vmem:[%s2921_s6 + $0x38] sm:$0xff]  }
 0x2d3   : > { %v2104_v52 = vpop.f32.mrf.mxu1 }
 0x2d5   : > { %v845_v53 = vpop.f32.mrf.mxu1 }
 0x2d6   : > { %v846_v54 = vadd.f32 %v845_v53, %v795_v48 }
 0x2d7   : > { %v2105_v55 = vpop.f32.mrf.mxu1 }
 0x2d9   : > { %v948_v56 = vpop.f32.mrf.mxu1 }
 0x2da   : > { %v955_v57 = vadd.f32 %v948_v56, %v843_v51 }
 0x2db   : > { %v2122_v58 = vpop.f32.mrf.mxu1 }
 0x2dc   : > { %v2331_v58 = vld [vmem:[%s2920_s5 + $0x40] sm:$0xff]  }
 0x2dd   : > { %v951_v59 = vpop.f32.mrf.mxu1 }
 0x2de   : > { %v956_v60 = vadd.f32 %v951_v59, %v846_v54 }
 0x2df   : > { %v2123_v61 = vpop.f32.mrf.mxu1 }
 0x2e9   : > { %v1002_v62 = vpop.f32.mrf.mxu1 }
 0x2eb   : > { %v2134_v0 = vpop.f32.mrf.mxu1 }
 0x2ed   : > { %v1005_v1 = vpop.f32.mrf.mxu1 }
 0x2ee   : > { %v1009_v3 = vpack.c.bf16 %v1005_v1, %v1002_v62  ;;  %v2333_v1 = vld [vmem:[%s2923_s8] sm:$0xff]  }
 0x2ef   : > { %v2135_v4 = vpop.f32.mrf.mxu1 }
 0x2f0   : > { %2139 = vmatmul.mubr.msk.bf16.vlgmr.msra.gmra.mxu1 %vm754_vm2, %v1009_v3  ;;  %v1943_v4 = vld [vmem:[#allocation7] ss:$0 sm:$0xff] }
 0x2f1   : > { %2155 = vmatpush3.bf16.msra.mxu1 %v2324_v2  ;;  %2156 = vmatprep.mubr.msk.bf16.mxu1 %vm2491_vm1, %v2490_v46 }
 0x2f2   : > { %2160 = vmatprep.subr.bf16.mxu1 %v2490_v46 }
 0x2f8   : > { %2157 = vmatmul.mubr.msk.bf16.vlgmr.msra.gmra.mxu1 %vm754_vm2, %v1117_v39 }
 0x2f9   : > { %2161 = vmatpush3.bf16.msra.mxu1 %v2696_v63  ;;  %2168 = vmatprep.mubr.msk.bf16.mxu1 %vm2491_vm1, %v2490_v46 }
 0x2fa   : > { %2162 = vmatprep.subr.bf16.mxu1 %v2490_v46 }
 0x2fd   : > { %2163 = vmatpush3.bf16.msra.mxu1 %v2702_v5 }
 0x2fe   : > { %2164 = vmatprep.subr.bf16.mxu1 %v2490_v46 }
 0x301   : > { %2165 = vmatpush3.bf16.msra.mxu1 %v2708_v8 }
 0x302   : > { %2166 = vmatprep.subr.bf16.mxu1 %v2490_v46 }
 0x305   : > { %2167 = vmatpush3.bf16.msra.mxu1 %v2714_v11 }
 0x306   : > { %2190 = vmatprep.subr.bf16.mxu1 %v2490_v46 }
 0x308   : > { %2169 = vmatmul.mubr.msk.bf16.vlgmr.msra.gmra.mxu1 %vm548_vm0, %v2325_v6 }
 0x309   : > { %2192 = vmatprep.mubr.msk.bf16.mxu1 %vm2491_vm1, %v2490_v46  ;;  %2191 = vmatpush3.bf16.msra.mxu1 %v2328_v28 }
 0x30a   : > { %2196 = vmatprep.subr.bf16.mxu1 %v2490_v46 }
 0x3b0   : > { %v1056_v9 = vpop.f32.mrf.mxu1 }
 0x3b1   : > { %v1063_v10 = vadd.f32 %v1056_v9, %v955_v57 }
 0x3b2   : > { %v2140_v12 = vpop.f32.mrf.mxu1 }
 0x3b4   : > { %v1059_v13 = vpop.f32.mrf.mxu1 }
 0x3b5   : > { %v1064_v14 = vadd.f32 %v1059_v13, %v956_v60 }
 0x3b6   : > { %v2141_v15 = vpop.f32.mrf.mxu1 }
 0x3b8   : > { %v1164_v16 = vpop.f32.mrf.mxu1 }
 0x3b9   : > { %v1171_v17 = vadd.f32 %v1164_v16, %v1063_v10 }
 0x3ba   : > { %v2158_v18 = vpop.f32.mrf.mxu1 }
 0x3bc   : > { %v1167_v19 = vpop.f32.mrf.mxu1 }
 0x3bd   : > { %v1172_v20 = vadd.f32 %v1167_v19, %v1064_v14 }
 0x3be   : > { %v2159_v21 = vpop.f32.mrf.mxu1 }
 0x3c8   : > { %v1218_v22 = vpop.f32.mrf.mxu1 }
 0x3ca   : > { %v2170_v23 = vpop.f32.mrf.mxu1 }
 0x3cc   : > { %v1221_v24 = vpop.f32.mrf.mxu1 }
 0x3cd   : > { %v1225_v25 = vpack.c.bf16 %v1221_v24, %v1218_v22 }
 0x3ce   : > { %v2171_v26 = vpop.f32.mrf.mxu1 }
 0x3cf   : > { %2175 = vmatmul.mubr.msk.bf16.vlgmr.msra.gmra.mxu0 %vm754_vm2, %v1225_v25 }
 0x3d0   : > { %2179 = vmatpush3.bf16.msra.mxu0 %v2696_v63  ;;  %2186 = vmatprep.mubr.msk.bf16.mxu0 %vm2491_vm1, %v2490_v46 }
 0x3d1   : > { %2180 = vmatprep.subr.bf16.mxu0 %v2490_v46 }
 0x3d4   : > { %2181 = vmatpush3.bf16.msra.mxu0 %v2702_v5 }
 0x3d5   : > { %2182 = vmatprep.subr.bf16.mxu0 %v2490_v46 }
 0x3d8   : > { %2183 = vmatpush3.bf16.msra.mxu0 %v2708_v8 }
 0x3d9   : > { %2184 = vmatprep.subr.bf16.mxu0 %v2490_v46 }
 0x3dc   : > { %2185 = vmatpush3.bf16.msra.mxu0 %v2714_v11 }
 0x3dd   : > { %2208 = vmatprep.subr.bf16.mxu0 %v2490_v46 }
 0x3df   : > { %2187 = vmatmul.mubr.msk.bf16.vlgmr.msra.gmra.mxu0 %vm548_vm0, %v2327_v27 }
 0x3e0   : > { %2210 = vmatprep.mubr.msk.bf16.mxu0 %vm2491_vm1, %v2490_v46  ;;  %2209 = vmatpush3.bf16.msra.mxu0 %v2330_v42 }
 0x3e1   : > { %2214 = vmatprep.subr.bf16.mxu0 %v2490_v46 }
 0x48f   : > { %v1272_v29 = vpop.f32.mrf.mxu0 }
 0x490   : > { %v1279_v30 = vadd.f32 %v1272_v29, %v1171_v17 }
 0x491   : > { %v2176_v31 = vpop.f32.mrf.mxu0 }
 0x493   : > { %v1275_v32 = vpop.f32.mrf.mxu0 }
 0x494   : > { %v1280_v33 = vadd.f32 %v1275_v32, %v1172_v20  ;;  %v1944_v20 = vld [vmem:[#allocation9] ss:$0 sm:$0xff] }
 0x495   : > { %v2177_v34 = vpop.f32.mrf.mxu0 }
 0x49f   : > { %v1326_v35 = vpop.f32.mrf.mxu0 }
 0x4a1   : > { %v2188_v36 = vpop.f32.mrf.mxu0 }
 0x4a3   : > { %v1329_v37 = vpop.f32.mrf.mxu0 }
 0x4a4   : > { %v1333_v38 = vpack.c.bf16 %v1329_v37, %v1326_v35 }
 0x4a5   : > { %v2189_v39 = vpop.f32.mrf.mxu0 }
 0x4a6   : > { %2193 = vmatmul.mubr.msk.bf16.vlgmr.msra.gmra.mxu1 %vm754_vm2, %v1333_v38 }
 0x4a7   : > { %2197 = vmatpush3.bf16.msra.mxu1 %v2696_v63  ;;  %2204 = vmatprep.mubr.msk.bf16.mxu1 %vm2491_vm1, %v2490_v46 }
 0x4a8   : > { %2198 = vmatprep.subr.bf16.mxu1 %v2490_v46 }
 0x4ab   : > { %2199 = vmatpush3.bf16.msra.mxu1 %v2702_v5 }
 0x4ac   : > { %2200 = vmatprep.subr.bf16.mxu1 %v2490_v46 }
 0x4af   : > { %2201 = vmatpush3.bf16.msra.mxu1 %v2708_v8 }
 0x4b0   : > { %2202 = vmatprep.subr.bf16.mxu1 %v2490_v46 }
 0x4b3   : > { %2203 = vmatpush3.bf16.msra.mxu1 %v2714_v11 }
 0x4b4   : > { %2226 = vmatprep.subr.bf16.mxu1 %v2490_v46 }
 0x4b6   : > { %2205 = vmatmul.mubr.msk.bf16.vlgmr.msra.gmra.mxu1 %vm548_vm0, %v2329_v41 }
 0x4b7   : > { %2228 = vmatprep.mubr.msk.bf16.mxu1 %vm2491_vm1, %v2490_v46 }
 0x566   : > { %v1380_v47 = vpop.f32.mrf.mxu1 }
 0x567   : > { %v1387_v48 = vadd.f32 %v1380_v47, %v1279_v30 }
 0x568   : > { %v2194_v49 = vpop.f32.mrf.mxu1 }
 0x56a   : > { %v1383_v50 = vpop.f32.mrf.mxu1 }
 0x56b   : > { %v1388_v51 = vadd.f32 %v1383_v50, %v1280_v33 }
 0x56c   : > { %v2195_v52 = vpop.f32.mrf.mxu1 }
 0x576   : > { %v1434_v53 = vpop.f32.mrf.mxu1 }
 0x578   : > { %v2206_v54 = vpop.f32.mrf.mxu1 }
 0x57a   : > { %v1437_v55 = vpop.f32.mrf.mxu1 }
 0x57b   : > { %v1441_v56 = vpack.c.bf16 %v1437_v55, %v1434_v53 }
 0x57c   : > { %v2207_v57 = vpop.f32.mrf.mxu1 }
 0x57d   : > { %2211 = vmatmul.mubr.msk.bf16.vlgmr.msra.gmra.mxu0 %vm754_vm2, %v1441_v56 }
 0x57e   : > { %2215 = vmatpush3.bf16.msra.mxu0 %v2696_v63  ;;  %2222 = vmatprep.mubr.msk.bf16.mxu0 %vm2491_vm1, %v2490_v46  ;;  %v2332_v63 = vld [vmem:[%s2921_s6 + $0x40] sm:$0xff]  }
 0x57f   : > { %2216 = vmatprep.subr.bf16.mxu0 %v2490_v46  ;;  %2227 = vmatpush3.bf16.msra.mxu1 %v2332_v63 }
 0x580   : > { %2232 = vmatprep.subr.bf16.mxu1 %v2490_v46 }
 0x582   : > { %2217 = vmatpush3.bf16.msra.mxu0 %v2702_v5 }
 0x583   : > { %2218 = vmatprep.subr.bf16.mxu0 %v2490_v46 }
 0x586   : > { %2219 = vmatpush3.bf16.msra.mxu0 %v2708_v8 }
 0x587   : > { %2220 = vmatprep.subr.bf16.mxu0 %v2490_v46 }
 0x58a   : > { %2221 = vmatpush3.bf16.msra.mxu0 %v2714_v11 }
 0x58b   : > { %2238 = vmatprep.subr.bf16.mxu0 %v2490_v46 }
 0x58d   : > { %2223 = vmatmul.mubr.msk.bf16.vlgmr.msra.gmra.mxu0 %vm548_vm0, %v2331_v58 }
 0x58e   : > { %2239 = vmatpush3.bf16.msra.mxu0 %v2686_v45  ;;  %2246 = vmatprep.mubr.msk.bf16.mxu0 %vm2491_vm1, %v2490_v46 }
 0x58f   : > { %2240 = vmatprep.subr.bf16.mxu0 %v2490_v46 }
 0x592   : > { %2241 = vmatpush3.bf16.msra.mxu0 %v2680_v44 }
 0x593   : > { %2242 = vmatprep.subr.bf16.mxu0 %v2490_v46 }
 0x596   : > { %2243 = vmatpush3.bf16.msra.mxu0 %v2676_v43 }
 0x597   : > { %2244 = vmatprep.subr.bf16.mxu0 %v2490_v46 }
 0x59a   : > { %2245 = vmatpush3.bf16.msra.mxu0 %v2674_v40  ;;  %v2334_v40 = vld [vmem:[%s2925_s10] sm:$0xff]  }
 0x59d   : > { %2247 = vmatmul.mubr.msk.bf16.vlgmr.msra.gmra.mxu0 %vm548_vm0, %v2334_v40 }
 0x63d   : > { %v1488_v45 = vpop.f32.mrf.mxu0 }
 0x63e   : > { %v1495_v5 = vadd.f32 %v1488_v45, %v1387_v48 }
 0x63f   : > { %v2212_v8 = vpop.f32.mrf.mxu0 }
 0x641   : > { %v1491_v11 = vpop.f32.mrf.mxu0 }
 0x642   : > { %v1496_v44 = vadd.f32 %v1491_v11, %v1388_v51 }
 0x643   : > { %v2213_v59 = vpop.f32.mrf.mxu0 }
 0x64d   : > { %v1542_v60 = vpop.f32.mrf.mxu0 }
 0x64f   : > { %v2224_v61 = vpop.f32.mrf.mxu0 }
 0x651   : > { %v1545_v43 = vpop.f32.mrf.mxu0 }
 0x652   : > { %v1549_v62 = vpack.c.bf16 %v1545_v43, %v1542_v60 }
 0x653   : > { %v2225_v0 = vpop.f32.mrf.mxu0 }
 0x654   : > { %2229 = vmatmul.mubr.msk.bf16.vlgmr.msra.gmra.mxu1 %vm754_vm2, %v1549_v62 }
 0x655   : > { %2234 = vmatprep.mubr.msk.bf16.mxu1 %vm2491_vm1, %v2490_v46  ;;  %2233 = vmatpush3.bf16.msra.mxu1 %v2333_v1 }
 0x65d   : > { %v1720_v16 = vpop.f32.mrf.mxu0 }
 0x65f   : > { %v2248_v17 = vpop.f32.mrf.mxu0 }
 0x661   : > { %v1723_v18 = vpop.f32.mrf.mxu0 }
 0x663   : > { %v2249_v19 = vpop.f32.mrf.mxu0 }
 0x714   : > { %v1596_v2 = vpop.f32.mrf.mxu1 }
 0x715   : > { %v1603_v3 = vadd.f32 %v1596_v2, %v1495_v5 }
 0x716   : > { %v2230_v6 = vpop.f32.mrf.mxu1 }
 0x717   : > { %v1612_v9 = vadd.f32 %v1943_v4, %v1603_v3 }
 0x718   : > { %v1599_v7 = vpop.f32.mrf.mxu1 }
 0x719   : > { %v1604_v10 = vadd.f32 %v1599_v7, %v1496_v44  ;;  %v1614_v13 = vmax.f32 %v1612_v9, 0.0 }
 0x71a   : > { %v2231_v46 = vpop.f32.mrf.mxu1 }
 0x71b   : > { %v1613_v12 = vadd.f32 %v1943_v4, %v1604_v10 }
 0x71d   : > { %v1615_v14 = vmax.f32 %v1613_v12, 0.0 }
 0x71f   : > { %v1616_v15 = vpack.c.bf16 %v1615_v14, %v1614_v13 }
 0x721   : > { %2235 = vmatmul.mubr.msk.bf16.vlgmr.msra.gmra.mxu1 %vm754_vm2, %v1616_v15 }
 0x7e1   : > { %v1669_v21 = vpop.f32.mrf.mxu1 }
 0x7e2   : > { %v1670_v22 = vadd.f32 %v1944_v20, %v1669_v21 }
 0x7e3   : > { %v2236_v23 = vpop.f32.mrf.mxu1 }
 0x7e4   : > { %v1727_v24 = vadd.f32 %v1720_v16, %v1670_v22 }
 0x7e5   : > { %v1672_v25 = vpop.f32.mrf.mxu1 }
 0x7e6   : > { %v1955_v26 = vpack.c.bf16 %v1727_v24, %v1727_v24  ;;  %v1673_v27 = vadd.f32 %v1944_v20, %v1672_v25 }
 0x7e7   : > { %v2237_v28 = vpop.f32.mrf.mxu1 }
 0x7e8   : > { %1738 = vst.msk [vmem:[%s449_s24] sm:$0xf] %vm1737_vm3, %v1955_v26  ;;  %v1728_v29 = vadd.f32 %v1723_v18, %v1673_v27 }
 0x7ea   : > { %v1956_v30 = vpack.c.bf16 %v1728_v29, %v1728_v29 }
 0x7ec   : > { %1739 = vst.msk [vmem:[%s449_s24 + $0x4] sm:$0xf] %vm1737_vm3, %v1956_v30 }
 0x7ed PF: > { %s24_s17 = sadd.s32 1, %s2483_s17  }
 0x7ee   : > { %p21_p2 = scmp.ge.s32.totalorder %s24_s17, 4  }
 0x7f0   :  { %23 = sbr.rel (!%p21_p2) target bundleno = 3 (0x3), region = 131 }
 0x7f5   :  { %1761 = vsyncpa [#allocation3], 1 }
 0x7f6   :  { %1763 = vsyncpa [#allocation3 + $0x1], 1 }
 0x7f7   :  { %1764 = vsyncpa [#allocation5], 1 }
 0x7f8   :  { %1765 = vsyncpa [#allocation8], 1 }

// kernel: resnet18v2_forward.14
= control target key start
LH: loop header
LB: loop body
LE: loop exit
PB: predicated region body
PF: predicated region fallthrough
CT: control target
= control target key end

     0   :  { %16 = vsyncpa [#allocation3], 0  ;;  %s2842_s0 = inlined_call_operand.vmem [shape: bf16[2,16,128], index: 0, kind: input, shape index: {}]   ;;  %s2843_s1 = inlined_call_operand.hbm [shape: f32[1,128], index: 1, kind: input, shape index: {}]   ;;  %s2844_s2 = inlined_call_operand.hbm [shape: f32[1,128], index: 2, kind: input, shape index: {}]   ;;  %s2845_s3 = inlined_call_operand.vmem [shape: bf16[128,32], index: 3, kind: input, shape index: {}]   ;;  %s2846_s4 = inlined_call_operand.hbm [shape: f32[1,32], index: 4, kind: input, shape index: {}]   ;;  %s2847_s5 = inlined_call_operand.vmem [shape: bf16[9,4,16], index: 5, kind: input, shape index: {}]   ;;  %s2848_s6 = inlined_call_operand.vmem [shape: bf16[9,32,32], index: 6, kind: input, shape index: {}]   ;;  %s2849_s7 = inlined_call_operand.hbm [shape: f32[1,32], index: 7, kind: input, shape index: {}]   ;;  %s2850_s8 = inlined_call_operand.vmem [shape: bf16[32,128], index: 8, kind: input, shape index: {}]   ;;  %s2851_s9 = inlined_call_operand.hbm [shape: f32[1,128], index: 9, kind: input, shape index: {}]   ;;  %s2852_s10 = inlined_call_operand.hbm [shape: bf16[4,16], index: 10, kind: input, shape index: {}]   ;;  %s2853_s11 = inlined_call_operand.vmem [shape: bf16[2,4,128], index: 11, kind: output, shape index: {}]  }
   0x1   :  { %17 = vsyncpa [#allocation5], 0 }
   0x2   :  { %18 = vsyncpa [#allocation8], 0 }
   0x3   :  { %19 = vsyncpa [#allocation11], 0  ;;  %s2485_s17 = smov 0  }
   0x4 LB: > { %s2417_s18 = smov [#allocation4]   ;;  %s2491_s20 = sadd.s32 4294967295, %s2415_s17   ;;  %s2415_s17 = sphi %s2485_s17, %s25_s17  }
   0x5   : > { %s316_s19 = sshll.u32 %s2417_s18, 4  ;;  %p1801_p0 = scmp.ge.s32.totalorder %s2415_s17, 1  ;;  %s317_s19 = int_to_ptr.vmem [resolvable:$true] %s316_s19 }
   0x6   : > { %p292_p1 = scmp.lt.s32.totalorder %s2415_s17, 3  ;;  %p2854_p2 = scmp.eq.s32.totalorder %s2491_s20, 0 }
   0x7   : > { %s2418_s22 = smov [#allocation7]   ;;  %s2419_s24 = smov [#allocation2]  }
   0x8   : > { %p2496_p3 = pnand %p1801_p0, %p292_p1  ;;  %s347_s23 = sshll.u32 %s2418_s22, 4  ;;  %s2502_s23 = int_to_ptr.vmem [resolvable:$true] %s347_s23 }
   0x9   : > { %s305_s25 = sshll.u32 %s2419_s24, 4  ;;  %s2420_s27 = smov [#allocation6]   ;;  %s2510_s25 = int_to_ptr.vmem [resolvable:$true] %s305_s25 }
   0xa   : > { %s2856_s21 = scalar_select %p2496_p3, 1, 0 }
   0xb   : > { %p2162_p4 = pneg %p2496_p3  ;;  %s330_s28 = sshll.u32 %s2420_s27, 4  ;;  %s2512_s28 = int_to_ptr.vmem [resolvable:$true] %s330_s28 }
   0xc   : > { %s2248_s30 = scalar_lea.vmem %s317_s19, 16  ;;  %s2255_s12 = scalar_lea.vmem %s317_s19, 32 }
   0xd   : > { %p2506_p5 = pnand %p2854_p2, %p2162_p4  ;;  %p2249_p7 = scmp.ne.s32.totalorder %s317_s19, %s2248_s30 }
   0xe   : > { %p2256_p10 = scmp.lt.s32.totalorder %s317_s19, %s317_s19  ;;  %p2257_p11 = scmp.lt.s32.totalorder %s2255_s12, %s2248_s30 }
   0xf   : > { %p2516_p6 = pneg %p2506_p5 }
  0x10   : > { %p2258_p12 = por %p2257_p11, %p2256_p10 }
  0x11   : > { %p2251_p8 = pnand %p2249_p7, %p2516_p6 }
  0x13   : > { %p2252_p9 = pneg %p2251_p8 }
  0x15   : > { %p2259_p13 = pnand %p2258_p12, %p2252_p9 }
  0x17   : > { %2262 = shalt.err (!%p2259_p13)
}
  0x18   : > { %2168 = dma.hbm_to_vmem [thread:$0]  (!%p2506_p5), %s2844_s2, 16, %s317_s19, [#allocation5]  }
  0x19   : > { %s2274_s15 = scalar_lea.vmem %s2502_s23, 16  ;;  %s2281_s16 = scalar_lea.vmem %s2502_s23, 32 }
  0x1a   : > { %p2275_p0 = scmp.ne.s32.totalorder %s2502_s23, %s2274_s15  ;;  %p2282_p7 = scmp.lt.s32.totalorder %s2502_s23, %s2502_s23 }
  0x1b   : > { %p2283_p8 = scmp.lt.s32.totalorder %s2281_s16, %s2274_s15 }
  0x1c   : > { %p2277_p1 = pnand %p2275_p0, %p2516_p6 }
  0x1d   : > { %p2284_p9 = por %p2283_p8, %p2282_p7 }
  0x1e   : > { %p2278_p4 = pneg %p2277_p1 }
  0x20   : > { %p2285_p10 = pnand %p2284_p9, %p2278_p4 }
  0x22   : > { %2288 = shalt.err (!%p2285_p10)
}
  0x23   : > { %2174 = dma.hbm_to_vmem [thread:$0]  (!%p2506_p5), %s2849_s7, 16, %s2502_s23, [#allocation8]  }
  0x24   : > { %s2300_s19 = scalar_lea.vmem %s2510_s25, 16  ;;  %s2307_s24 = scalar_lea.vmem %s2510_s25, 32 }
  0x25   : > { %p2301_p11 = scmp.ne.s32.totalorder %s2510_s25, %s2300_s19  ;;  %p2308_p0 = scmp.lt.s32.totalorder %s2510_s25, %s2510_s25 }
  0x26   : > { %p2309_p1 = scmp.lt.s32.totalorder %s2307_s24, %s2300_s19 }
  0x27   : > { %p2303_p12 = pnand %p2301_p11, %p2516_p6 }
  0x28   : > { %p2310_p4 = por %p2309_p1, %p2308_p0 }
  0x29   : > { %p2304_p13 = pneg %p2303_p12 }
  0x2b   : > { %p2311_p7 = pnand %p2310_p4, %p2304_p13 }
  0x2d   : > { %2314 = shalt.err (!%p2311_p7)
}
  0x2e   : > { %2165 = dma.hbm_to_vmem [thread:$0]  (!%p2506_p5), %s2843_s1, 16, %s2510_s25, [#allocation3]  }
  0x2f   : > { %s2326_s23 = scalar_lea.vmem %s2512_s28, 16  ;;  %s2333_s12 = scalar_lea.vmem %s2512_s28, 32 }
  0x30   : > { %p2327_p8 = scmp.ne.s32.totalorder %s2512_s28, %s2326_s23  ;;  %p2334_p11 = scmp.lt.s32.totalorder %s2512_s28, %s2512_s28 }
  0x31   : > { %p2335_p12 = scmp.lt.s32.totalorder %s2333_s12, %s2326_s23 }
  0x32   : > { %p2329_p9 = pnand %p2327_p8, %p2516_p6 }
  0x33   : > { %p2336_p13 = por %p2335_p12, %p2334_p11 }
  0x34   : > { %p2330_p10 = pneg %p2329_p9 }
  0x36   : > { %p2337_p0 = pnand %p2336_p13, %p2330_p10 }
  0x38   : > { %2340 = shalt.err (!%p2337_p0)
}
  0x39   : > { %2171 = dma.hbm_to_vmem [thread:$0]  (!%p2506_p5), %s2846_s4, 16, %s2512_s28, [#allocation5]  }
  0x3a   : > { %s2421_s25 = smov [#allocation9]   ;;  %s2422_s16 = smov [#allocation10]  }
  0x3b   : > { %s361_s15 = sshll.u32 %s2421_s25, 4  ;;  %s372_s18 = sshll.u32 %s2422_s16, 4  ;;  %s362_s15 = int_to_ptr.vmem [resolvable:$true] %s361_s15  ;;  %s373_s18 = int_to_ptr.vmem [resolvable:$true] %s372_s18 }
  0x3c   : > { %s2352_s22 = scalar_lea.vmem %s362_s15, 16  ;;  %s2359_s19 = scalar_lea.vmem %s362_s15, 32 }
  0x3d   : > { %p2353_p1 = scmp.ne.s32.totalorder %s362_s15, %s2352_s22  ;;  %p2360_p8 = scmp.lt.s32.totalorder %s362_s15, %s362_s15 }
  0x3e   : > { %p2361_p9 = scmp.lt.s32.totalorder %s2359_s19, %s2352_s22 }
  0x3f   : > { %p2355_p4 = pnand %p2353_p1, %p2516_p6 }
  0x40   : > { %p2362_p10 = por %p2361_p9, %p2360_p8 }
  0x41   : > { %p2356_p7 = pneg %p2355_p4 }
  0x43   : > { %p2363_p11 = pnand %p2362_p10, %p2356_p7 }
  0x45   : > { %2366 = shalt.err (!%p2363_p11)
}
  0x46   : > { %2177 = dma.hbm_to_vmem [thread:$0]  (!%p2506_p5), %s2851_s9, 16, %s362_s15, [#allocation8]  }
  0x47   : > { %s2378_s27 = scalar_lea.vmem %s373_s18, 32  ;;  %p2386_p1 = scmp.lt.s32.totalorder %s373_s18, %s373_s18 }
  0x48   : > { %p2379_p12 = scmp.ne.s32.totalorder %s373_s18, %s2378_s27  ;;  %p2387_p4 = scmp.lt.s32.totalorder %s2378_s27, %s2378_s27 }
  0x4a   : > { %p2381_p13 = pnand %p2379_p12, %p2516_p6  ;;  %p2388_p2 = por %p2387_p4, %p2386_p1 }
  0x4c   : > { %p2382_p0 = pneg %p2381_p13 }
  0x4e   : > { %p2389_p3 = pnand %p2388_p2, %p2382_p0 }
  0x50   : > { %2392 = shalt.err (!%p2389_p3)
}
  0x51   : > { %2180 = dma.hbm_to_vmem [thread:$0]  (!%p2506_p5), %s2852_s10, 32, %s373_s18, [#allocation11]  }
  0x52   : > { %p2859_p7 = scmp.ne.s32.totalorder %s2856_s21, 0 }
  0x53   : > { %p2860_p8 = scmp.eq.s32.totalorder (!%p2859_p7), %s2491_s20, 0 }
  0x54   : > { %393 = sbr.rel (%p2859_p7) target bundleno = 1203 (0x4b3), region = 64 }
  0x59   : > { %2398 = dma.done.wait (%p2860_p8), [#allocation3], 16   ;;  %p2861_p6 = pmov %p2860_p8 }
  0x5b   : > { %2400 = vsyncadd (%p2861_p6), [#allocation3], 4294967280  ;;  %p2862_p9 = pmov %p2861_p6 }
  0x5c   : > { %p2863_p2 = pmov %p2861_p6 }
  0x5d   : > { %2402 = dma.done.wait (%p2862_p9), [#allocation5], 32  }
  0x5e   : > { %2404 = vsyncadd (%p2863_p2), [#allocation5], 4294967264  ;;  %p2864_p3 = pmov %p2863_p2 }
  0x5f   : > { %p2865_p5 = pmov %p2863_p2 }
  0x60   : > { %2406 = dma.done.wait (%p2864_p3), [#allocation8], 32  }
  0x61   : > { %2408 = vsyncadd (%p2865_p5), [#allocation8], 4294967264  ;;  %p2866_p10 = pmov %p2863_p2 }
  0x62   : > { %p2867_p11 = pmov %p2863_p2 }
  0x63   : > { %2410 = dma.done.wait (%p2866_p10), [#allocation11], 32  }
  0x64   : > { %2412 = vsyncadd (%p2867_p11), [#allocation11], 4294967264  ;;  %v2423_v0 = vmov 0.0   ;;  %vm2424_vm0 = vmmov 0   ;;  %p452_p12 = scmp.lt.s32.totalorder %s2491_s20, 1  ;;  %v2209_v1 = vld [vmem:[%s2845_s3 + $0x38] sm:$0xff]  }
  0x65   : > { %1978 = vmatprep.subr.bf16.mxu0 %v2423_v0  ;;  %1994 = vmatprep.mubr.msk.bf16.mxu0 %vm2424_vm0, %v2423_v0  ;;  %v2210_v2 = vld [vmem:[%s2845_s3 + $0x30] sm:$0xff]   ;;  %v2211_v3 = vld [vmem:[%s2845_s3 + $0x28] sm:$0xff]   ;;  %v2212_v4 = vld [vmem:[%s2845_s3 + $0x20] sm:$0xff]   ;;  %vm603_vm1 = vcmask 130048   ;;  %vm715_vm2 = vcmask 261120  }
  0x66   : > { %1998 = vmatprep.subr.bf16.mxu1 %v2423_v0  ;;  %2000 = vmatprep.mubr.msk.bf16.mxu1 %vm2424_vm0, %v2423_v0  ;;  %s2869_s20 = smov (!%p452_p12, %s2491_s20), 1  ;;  %v2213_v6 = vld [vmem:[%s2845_s3 + $0x18] sm:$0xff]   ;;  %v1819_v7 = vld [vmem:[#allocation2] ss:$0 sm:$0xff]  ;;  %v2214_v10 = vld [vmem:[%s2845_s3 + $0x10] sm:$0xff]  }
  0x67   : > { %1979 = vmatpush3.bf16.msra.mxu0 %v2209_v1  ;;  %s1914_s13 = sshll.u32 %s2869_s20, 3  ;;  %v1820_v11 = vld [vmem:[#allocation4] ss:$0 sm:$0xff]  ;;  %v2215_v14 = vld [vmem:[%s2845_s3 + $0x8] sm:$0xff]   ;;  %v1821_v21 = vld [vmem:[#allocation6] ss:$0 sm:$0xff] }
  0x68   : > { %1980 = vmatprep.subr.bf16.mxu0 %v2423_v0  ;;  %s456_s18 = scalar_lea.vmem %s2842_s0, %s1914_s13  ;;  %v2216_v19 = vld [vmem:[%s2845_s3] sm:$0xff]   ;;  %v2217_v33 = vld [vmem:[%s2848_s6 + $0x18] sm:$0xff]   ;;  %v2218_v34 = vld [vmem:[%s2848_s6 + $0x10] sm:$0xff]   ;;  %s1818_s22 = sshll.u32 %s2869_s20, 1 }
  0x69   : > { %v1916_v5 = vld [vmem:[%s456_s18] sm:$0xff]   ;;  %v2219_v40 = vld [vmem:[%s2848_s6 + $0x8] sm:$0xff]   ;;  %v1897_v53 = vld [vmem:[%s2847_s5 + $0x10] sm:$0x3]  ;;  %s460_s28 = scalar_lea.vmem %s2853_s11, %s1818_s22 }
  0x6a   : > { %v1917_v8 = vunpack.c.l.bf16 %v1916_v5  ;;  %v1918_v9 = vunpack.c.h.bf16 %v1916_v5  ;;  %v602_v31 = vld [vmem:[%s2847_s5] sm:$0x3]  ;;  %v1831_v32 = vld [vmem:[%s2847_s5 + $0x2] sm:$0x3]  ;;  %v1843_v47 = vld [vmem:[%s2847_s5 + $0x4] sm:$0x3] }
  0x6b   : > { %1981 = vmatpush3.bf16.msra.mxu0 %v2210_v2  ;;  %v2220_v44 = vld [vmem:[%s2848_s6] sm:$0xff]   ;;  %v1861_v49 = vld [vmem:[%s2847_s5 + $0x8] sm:$0x3]  ;;  %v1870_v50 = vld [vmem:[%s2847_s5 + $0xa] sm:$0x3] }
  0x6c   : > { %1982 = vmatprep.subr.bf16.mxu0 %v2423_v0  ;;  %v473_v12 = vmul.f32 %v1917_v8, %v1819_v7  ;;  %v474_v13 = vmul.f32 %v1918_v9, %v1819_v7  ;;  %v1852_v48 = vld [vmem:[%s2847_s5 + $0x6] sm:$0x3]  ;;  %v1879_v51 = vld [vmem:[%s2847_s5 + $0xc] sm:$0x3]  ;;  %v1888_v52 = vld [vmem:[%s2847_s5 + $0xe] sm:$0x3] }
  0x6d   : > { %v2221_v54 = vld [vmem:[%s2848_s6 + $0x28] sm:$0xff]   ;;  %v2222_v55 = vld [vmem:[%s2848_s6 + $0x20] sm:$0xff]   ;;  %v2224_v7 = vld [vmem:[%s2848_s6 + $0x30] sm:$0xff]  }
  0x6e   : > { %v482_v15 = vadd.f32 %v1820_v11, %v473_v12  ;;  %v483_v16 = vadd.f32 %v1820_v11, %v474_v13 }
  0x6f   : > { %1983 = vmatpush3.bf16.msra.mxu0 %v2211_v3  ;;  %v2223_v3 = vld [vmem:[%s2848_s6 + $0x38] sm:$0xff]  }
  0x70   : > { %1984 = vmatprep.subr.bf16.mxu0 %v2423_v0  ;;  %v484_v17 = vmax.f32 %v482_v15, 0.0  ;;  %v485_v18 = vmax.f32 %v483_v16, 0.0 }
  0x72   : > { %v2643_v20 = vpack.c.bf16 %v485_v18, %v484_v17  ;;  %v2227_v17 = vld [vmem:[%s2848_s6 + $0x58] sm:$0xff]  }
  0x73   : > { %1985 = vmatpush3.bf16.msra.mxu0 %v2212_v4 }
  0x74   : > { %1986 = vmatprep.subr.bf16.mxu0 %v2423_v0 }
  0x77   : > { %1987 = vmatpush3.bf16.msra.mxu0 %v2213_v6 }
  0x78   : > { %1988 = vmatprep.subr.bf16.mxu0 %v2423_v0 }
  0x7b   : > { %1989 = vmatpush3.bf16.msra.mxu0 %v2214_v10  ;;  %v2225_v10 = vld [vmem:[%s2848_s6 + $0x48] sm:$0xff]  }
  0x7c   : > { %1990 = vmatprep.subr.bf16.mxu0 %v2423_v0 }
  0x7f   : > { %1991 = vmatpush3.bf16.msra.mxu0 %v2215_v14  ;;  %v2226_v14 = vld [vmem:[%s2848_s6 + $0x40] sm:$0xff]  }
  0x80   : > { %1992 = vmatprep.subr.bf16.mxu0 %v2423_v0 }
  0x83   : > { %1993 = vmatpush3.bf16.msra.mxu0 %v2216_v19 }
  0x84   : > { %2032 = vmatprep.subr.bf16.mxu0 %v2423_v0 }
  0x86   : > { %1995 = vmatmul.mubr.bf16.vlgmr.msra.gmra.mxu0 %v2643_v20 }
  0x87   : > { %2036 = vmatprep.mubr.msk.bf16.mxu0 %vm2424_vm0, %v2423_v0  ;;  %2033 = vmatpush3.bf16.msra.mxu0 %v2221_v54 }
  0x88   : > { %2034 = vmatprep.subr.bf16.mxu0 %v2423_v0 }
  0x8b   : > { %2035 = vmatpush3.bf16.msra.mxu0 %v2222_v55 }
  0x8c   : > { %2046 = vmatprep.subr.bf16.mxu0 %v2423_v0 }
 0x146   : > { %v592_v22 = vpop.f32.mrf.mxu0 }
 0x147   : > { %v593_v24 = vadd.f32 %v1821_v21, %v592_v22  ;;  %v2228_v22 = vld [vmem:[%s2848_s6 + $0x50] sm:$0xff]  }
 0x148   : > { %v1996_v23 = vpop.f32.mrf.mxu0 }
 0x149   : > { %v599_v28 = vmax.f32 %v593_v24, 0.0 }
 0x14a   : > { %v595_v25 = vpop.f32.mrf.mxu0 }
 0x14b   : > { %v596_v26 = vadd.f32 %v1821_v21, %v595_v25  ;;  %v2229_v25 = vld [vmem:[%s2848_s6 + $0x68] sm:$0xff]  }
 0x14c   : > { %v1997_v27 = vpop.f32.mrf.mxu0 }
 0x14d   : > { %v600_v29 = vmax.f32 %v596_v26, 0.0 }
 0x14f   : > { %v2649_v30 = vpack.c.bf16 %v600_v29, %v599_v28  ;;  %v2230_v29 = vld [vmem:[%s2848_s6 + $0x60] sm:$0xff]  }
 0x151   : > { %1999 = vmatpush3.bf16.msra.mxu1 %v2649_v30 }
 0x152   : > { %2004 = vmatprep.subr.bf16.mxu1 %v2423_v0 }
 0x154   : > { %2001 = vmatmul.mubr.msk.bf16.vlgmr.msra.gmra.mxu1 %vm603_vm1, %v602_v31 }
 0x155   : > { %2005 = vmatpush3.bf16.msra.mxu1 %v2649_v30  ;;  %2006 = vmatprep.mubr.msk.bf16.mxu1 %vm2424_vm0, %v2423_v0 }
 0x156   : > { %2010 = vmatprep.subr.bf16.mxu1 %v2423_v0 }
 0x15c   : > { %2007 = vmatmul.mubr.msk.bf16.vlgmr.msra.gmra.mxu1 %vm603_vm1, %v1831_v32  ;;  %v2231_v32 = vld [vmem:[%s2848_s6 + $0x78] sm:$0xff]  }
 0x15d   : > { %2014 = vmatprep.mubr.msk.bf16.mxu1 %vm2424_vm0, %v2423_v0  ;;  %2011 = vmatpush3.bf16.msra.mxu1 %v2217_v33 }
 0x15e   : > { %2012 = vmatprep.subr.bf16.mxu1 %v2423_v0 }
 0x161   : > { %2013 = vmatpush3.bf16.msra.mxu1 %v2218_v34 }
 0x162   : > { %2018 = vmatprep.subr.bf16.mxu1 %v2423_v0 }
 0x214   : > { %v641_v35 = vpop.f32.mrf.mxu1 }
 0x215   : > { %v647_v46 = vpack.c.bf16 %v641_v35, %v641_v35 }
 0x216   : > { %v2002_v36 = vpop.f32.mrf.mxu1 }
 0x217   : > { %v2232_v36 = vld [vmem:[%s2848_s6 + $0x70] sm:$0xff]  }
 0x218   : > { %v644_v37 = vpop.f32.mrf.mxu1 }
 0x21a   : > { %v2003_v38 = vpop.f32.mrf.mxu1 }
 0x21c   : > { %v691_v39 = vpop.f32.mrf.mxu1 }
 0x21d   : > { %v697_v41 = vpack.c.bf16 %v691_v39, %v691_v39  ;;  %v2233_v39 = vld [vmem:[%s2848_s6 + $0x88] sm:$0xff]  }
 0x21e   : > { %v2008_v42 = vpop.f32.mrf.mxu1 }
 0x21f   : > { %2015 = vmatmul.mubr.msk.bf16.vlgmr.msra.gmra.mxu1 %vm715_vm2, %v697_v41 }
 0x220   : > { %2019 = vmatpush3.bf16.msra.mxu1 %v2219_v40  ;;  %v694_v43 = vpop.f32.mrf.mxu1  ;;  %2022 = vmatprep.mubr.msk.bf16.mxu1 %vm2424_vm0, %v2423_v0 }
 0x221   : > { %2020 = vmatprep.subr.bf16.mxu1 %v2423_v0  ;;  %v2234_v43 = vld [vmem:[%s2848_s6 + $0x80] sm:$0xff]  }
 0x222   : > { %v2009_v45 = vpop.f32.mrf.mxu1 }
 0x224   : > { %2021 = vmatpush3.bf16.msra.mxu1 %v2220_v44 }
 0x225   : > { %2026 = vmatprep.subr.bf16.mxu1 %v2423_v0 }
 0x227   : > { %2023 = vmatmul.mubr.msk.bf16.vlgmr.msra.gmra.mxu1 %vm715_vm2, %v647_v46 }
 0x228   : > { %2027 = vmatpush3.bf16.msra.mxu1 %v2649_v30  ;;  %2028 = vmatprep.mubr.msk.bf16.mxu1 %vm2424_vm0, %v2423_v0 }
 0x229   : > { %2040 = vmatprep.subr.bf16.mxu1 %v2423_v0 }
 0x22f   : > { %2029 = vmatmul.mubr.msk.bf16.vlgmr.msra.gmra.mxu1 %vm603_vm1, %v1843_v47 }
 0x230   : > { %2041 = vmatpush3.bf16.msra.mxu1 %v2649_v30  ;;  %2042 = vmatprep.mubr.msk.bf16.mxu1 %vm2424_vm0, %v2423_v0 }
 0x231   : > { %2054 = vmatprep.subr.bf16.mxu1 %v2423_v0 }
 0x237   : > { %2043 = vmatmul.mubr.msk.bf16.vlgmr.msra.gmra.mxu1 %vm603_vm1, %v1852_v48 }
 0x238   : > { %2055 = vmatpush3.bf16.msra.mxu1 %v2649_v30  ;;  %2056 = vmatprep.mubr.msk.bf16.mxu1 %vm2424_vm0, %v2423_v0 }
 0x239   : > { %2068 = vmatprep.subr.bf16.mxu1 %v2423_v0 }
 0x23f   : > { %2057 = vmatmul.mubr.msk.bf16.vlgmr.msra.gmra.mxu1 %vm603_vm1, %v1861_v49 }
 0x240   : > { %2069 = vmatpush3.bf16.msra.mxu1 %v2649_v30  ;;  %2070 = vmatprep.mubr.msk.bf16.mxu1 %vm2424_vm0, %v2423_v0 }
 0x241   : > { %2082 = vmatprep.subr.bf16.mxu1 %v2423_v0 }
 0x247   : > { %2071 = vmatmul.mubr.msk.bf16.vlgmr.msra.gmra.mxu1 %vm603_vm1, %v1870_v50  ;;  %v2235_v50 = vld [vmem:[%s2850_s8 + $0x8] sm:$0xff]  }
 0x248   : > { %2083 = vmatpush3.bf16.msra.mxu1 %v2649_v30  ;;  %2084 = vmatprep.mubr.msk.bf16.mxu1 %vm2424_vm0, %v2423_v0 }
 0x249   : > { %2096 = vmatprep.subr.bf16.mxu1 %v2423_v0 }
 0x24f   : > { %2085 = vmatmul.mubr.msk.bf16.vlgmr.msra.gmra.mxu1 %vm603_vm1, %v1879_v51  ;;  %v1639_v51 = vld [vmem:[#allocation10] sm:$0x3] }
 0x250   : > { %2097 = vmatpush3.bf16.msra.mxu1 %v2649_v30  ;;  %2098 = vmatprep.mubr.msk.bf16.mxu1 %vm2424_vm0, %v2423_v0 }
 0x251   : > { %2110 = vmatprep.subr.bf16.mxu1 %v2423_v0 }
 0x257   : > { %2099 = vmatmul.mubr.msk.bf16.vlgmr.msra.gmra.mxu1 %vm603_vm1, %v1888_v52  ;;  %v2236_v52 = vld [vmem:[%s2850_s8] sm:$0xff]  }
 0x258   : > { %2111 = vmatpush3.bf16.msra.mxu1 %v2649_v30  ;;  %2112 = vmatprep.mubr.msk.bf16.mxu1 %vm2424_vm0, %v2423_v0 }
 0x259   : > { %2124 = vmatprep.subr.bf16.mxu1 %v2423_v0 }
 0x25f   : > { %2113 = vmatmul.mubr.msk.bf16.vlgmr.msra.gmra.mxu1 %vm603_vm1, %v1897_v53 }
 0x260   : > { %2128 = vmatprep.mubr.msk.bf16.mxu1 %vm2424_vm0, %v2423_v0  ;;  %2125 = vmatpush3.bf16.msra.mxu1 %v2235_v50 }
 0x261   : > { %2126 = vmatprep.subr.bf16.mxu1 %v2423_v0 }
 0x264   : > { %2127 = vmatpush3.bf16.msra.mxu1 %v2236_v52 }
 0x2df   : > { %v753_v56 = vpop.f32.mrf.mxu1 }
 0x2e1   : > { %v2016_v57 = vpop.f32.mrf.mxu1 }
 0x2e3   : > { %v756_v58 = vpop.f32.mrf.mxu1 }
 0x2e5   : > { %v2017_v59 = vpop.f32.mrf.mxu1 }
 0x2e7   : > { %v808_v60 = vpop.f32.mrf.mxu1 }
 0x2e8   : > { %v2753_v61 = vadd.f32 %v808_v60, %v753_v56 }
 0x2e9   : > { %v2024_v62 = vpop.f32.mrf.mxu1 }
 0x2eb   : > { %v811_v63 = vpop.f32.mrf.mxu1 }
 0x2ed   : > { %v2025_v1 = vpop.f32.mrf.mxu1 }
 0x2ef   : > { %v853_v2 = vpop.f32.mrf.mxu1 }
 0x2f0   : > { %v859_v4 = vpack.c.bf16 %v853_v2, %v853_v2 }
 0x2f1   : > { %v2030_v5 = vpop.f32.mrf.mxu1 }
 0x2f2   : > { %2037 = vmatmul.mubr.msk.bf16.vlgmr.msra.gmra.mxu0 %vm715_vm2, %v859_v4 }
 0x2f3   : > { %v856_v6 = vpop.f32.mrf.mxu1  ;;  %2047 = vmatpush3.bf16.msra.mxu0 %v2223_v3  ;;  %2050 = vmatprep.mubr.msk.bf16.mxu0 %vm2424_vm0, %v2423_v0 }
 0x2f4   : > { %2048 = vmatprep.subr.bf16.mxu0 %v2423_v0 }
 0x2f5   : > { %v2031_v8 = vpop.f32.mrf.mxu1 }
 0x2f7   : > { %v960_v9 = vpop.f32.mrf.mxu1  ;;  %2049 = vmatpush3.bf16.msra.mxu0 %v2224_v7 }
 0x2f8   : > { %v966_v11 = vpack.c.bf16 %v960_v9, %v960_v9  ;;  %2060 = vmatprep.subr.bf16.mxu0 %v2423_v0 }
 0x2f9   : > { %v2044_v12 = vpop.f32.mrf.mxu1 }
 0x2fa   : > { %2051 = vmatmul.mubr.msk.bf16.vlgmr.msra.gmra.mxu0 %vm715_vm2, %v966_v11 }
 0x2fb   : > { %v963_v13 = vpop.f32.mrf.mxu1  ;;  %2061 = vmatpush3.bf16.msra.mxu0 %v2225_v10  ;;  %2064 = vmatprep.mubr.msk.bf16.mxu0 %vm2424_vm0, %v2423_v0 }
 0x2fc   : > { %2062 = vmatprep.subr.bf16.mxu0 %v2423_v0 }
 0x2fd   : > { %v2045_v15 = vpop.f32.mrf.mxu1 }
 0x2ff   : > { %v1067_v16 = vpop.f32.mrf.mxu1  ;;  %2063 = vmatpush3.bf16.msra.mxu0 %v2226_v14 }
 0x300   : > { %v1073_v18 = vpack.c.bf16 %v1067_v16, %v1067_v16  ;;  %2074 = vmatprep.subr.bf16.mxu0 %v2423_v0 }
 0x301   : > { %v2058_v19 = vpop.f32.mrf.mxu1 }
 0x302   : > { %2065 = vmatmul.mubr.msk.bf16.vlgmr.msra.gmra.mxu0 %vm715_vm2, %v1073_v18 }
 0x303   : > { %v1070_v21 = vpop.f32.mrf.mxu1  ;;  %2075 = vmatpush3.bf16.msra.mxu0 %v2227_v17  ;;  %2078 = vmatprep.mubr.msk.bf16.mxu0 %vm2424_vm0, %v2423_v0 }
 0x304   : > { %2076 = vmatprep.subr.bf16.mxu0 %v2423_v0  ;;  %v1906_v21 = vld [vmem:[#allocation7] ss:$0 sm:$0xff] }
 0x305   : > { %v2059_v23 = vpop.f32.mrf.mxu1 }
 0x307   : > { %v1174_v24 = vpop.f32.mrf.mxu1  ;;  %2077 = vmatpush3.bf16.msra.mxu0 %v2228_v22 }
 0x308   : > { %v1180_v26 = vpack.c.bf16 %v1174_v24, %v1174_v24  ;;  %2088 = vmatprep.subr.bf16.mxu0 %v2423_v0 }
 0x309   : > { %v2072_v27 = vpop.f32.mrf.mxu1 }
 0x30a   : > { %2079 = vmatmul.mubr.msk.bf16.vlgmr.msra.gmra.mxu0 %vm715_vm2, %v1180_v26 }
 0x30b   : > { %v1177_v28 = vpop.f32.mrf.mxu1  ;;  %2089 = vmatpush3.bf16.msra.mxu0 %v2229_v25  ;;  %2092 = vmatprep.mubr.msk.bf16.mxu0 %vm2424_vm0, %v2423_v0 }
 0x30c   : > { %2090 = vmatprep.subr.bf16.mxu0 %v2423_v0 }
 0x30d   : > { %v2073_v30 = vpop.f32.mrf.mxu1 }
 0x30f   : > { %v1281_v31 = vpop.f32.mrf.mxu1  ;;  %2091 = vmatpush3.bf16.msra.mxu0 %v2230_v29 }
 0x310   : > { %v1287_v33 = vpack.c.bf16 %v1281_v31, %v1281_v31  ;;  %2102 = vmatprep.subr.bf16.mxu0 %v2423_v0 }
 0x311   : > { %v2086_v34 = vpop.f32.mrf.mxu1 }
 0x312   : > { %2093 = vmatmul.mubr.msk.bf16.vlgmr.msra.gmra.mxu0 %vm715_vm2, %v1287_v33 }
 0x313   : > { %v1284_v35 = vpop.f32.mrf.mxu1  ;;  %2103 = vmatpush3.bf16.msra.mxu0 %v2231_v32  ;;  %2106 = vmatprep.mubr.msk.bf16.mxu0 %vm2424_vm0, %v2423_v0  ;;  %v1907_v32 = vld [vmem:[#allocation9] ss:$0 sm:$0xff] }
 0x314   : > { %2104 = vmatprep.subr.bf16.mxu0 %v2423_v0 }
 0x315   : > { %v2087_v37 = vpop.f32.mrf.mxu1 }
 0x317   : > { %v1388_v38 = vpop.f32.mrf.mxu1  ;;  %2105 = vmatpush3.bf16.msra.mxu0 %v2232_v36 }
 0x318   : > { %v1394_v40 = vpack.c.bf16 %v1388_v38, %v1388_v38  ;;  %2116 = vmatprep.subr.bf16.mxu0 %v2423_v0 }
 0x319   : > { %v2100_v41 = vpop.f32.mrf.mxu1 }
 0x31a   : > { %2107 = vmatmul.mubr.msk.bf16.vlgmr.msra.gmra.mxu0 %vm715_vm2, %v1394_v40 }
 0x31b   : > { %v1391_v42 = vpop.f32.mrf.mxu1  ;;  %2117 = vmatpush3.bf16.msra.mxu0 %v2233_v39  ;;  %2120 = vmatprep.mubr.msk.bf16.mxu0 %vm2424_vm0, %v2423_v0 }
 0x31c   : > { %2118 = vmatprep.subr.bf16.mxu0 %v2423_v0 }
 0x31d   : > { %v2101_v44 = vpop.f32.mrf.mxu1 }
 0x31f   : > { %v1495_v45 = vpop.f32.mrf.mxu1  ;;  %2119 = vmatpush3.bf16.msra.mxu0 %v2234_v43 }
 0x320   : > { %v1501_v46 = vpack.c.bf16 %v1495_v45, %v1495_v45  ;;  %2132 = vmatprep.subr.bf16.mxu0 %v2423_v0 }
 0x321   : > { %v2114_v47 = vpop.f32.mrf.mxu1 }
 0x322   : > { %2121 = vmatmul.mubr.msk.bf16.vlgmr.msra.gmra.mxu0 %vm715_vm2, %v1501_v46 }
 0x323   : > { %v1498_v48 = vpop.f32.mrf.mxu1  ;;  %2133 = vmatpush3.bf16.msra.mxu0 %v2643_v20  ;;  %2134 = vmatprep.mubr.msk.bf16.mxu0 %vm2424_vm0, %v2423_v0 }
 0x325   : > { %v2115_v49 = vpop.f32.mrf.mxu1 }
 0x32a   : > { %2135 = vmatmul.mubr.msk.bf16.vlgmr.msra.gmra.mxu0 %vm603_vm1, %v1639_v51 }
 0x3b2   : > { %v914_v20 = vpop.f32.mrf.mxu0 }
 0x3b3   : > { %v920_v8 = vadd.f32 %v914_v20, %v2753_v61 }
 0x3b4   : > { %v2038_v53 = vpop.f32.mrf.mxu0 }
 0x3b6   : > { %v917_v54 = vpop.f32.mrf.mxu0 }
 0x3b8   : > { %v2039_v55 = vpop.f32.mrf.mxu0 }
 0x3ba   : > { %v1021_v56 = vpop.f32.mrf.mxu0 }
 0x3bb   : > { %v1027_v10 = vadd.f32 %v1021_v56, %v920_v8 }
 0x3bc   : > { %v2052_v57 = vpop.f32.mrf.mxu0 }
 0x3be   : > { %v1024_v58 = vpop.f32.mrf.mxu0 }
 0x3c0   : > { %v2053_v59 = vpop.f32.mrf.mxu0 }
 0x3c2   : > { %v1128_v60 = vpop.f32.mrf.mxu0 }
 0x3c3   : > { %v1134_v12 = vadd.f32 %v1128_v60, %v1027_v10 }
 0x3c4   : > { %v2066_v62 = vpop.f32.mrf.mxu0 }
 0x3c6   : > { %v1131_v63 = vpop.f32.mrf.mxu0 }
 0x3c8   : > { %v2067_v0 = vpop.f32.mrf.mxu0 }
 0x3ca   : > { %v1235_v1 = vpop.f32.mrf.mxu0 }
 0x3cb   : > { %v1241_v14 = vadd.f32 %v1235_v1, %v1134_v12 }
 0x3cc   : > { %v2080_v2 = vpop.f32.mrf.mxu0 }
 0x3ce   : > { %v1238_v3 = vpop.f32.mrf.mxu0 }
 0x3d0   : > { %v2081_v4 = vpop.f32.mrf.mxu0 }
 0x3d2   : > { %v1342_v5 = vpop.f32.mrf.mxu0 }
 0x3d3   : > { %v1348_v16 = vadd.f32 %v1342_v5, %v1241_v14 }
 0x3d4   : > { %v2094_v6 = vpop.f32.mrf.mxu0 }
 0x3d6   : > { %v1345_v7 = vpop.f32.mrf.mxu0 }
 0x3d8   : > { %v2095_v9 = vpop.f32.mrf.mxu0 }
 0x3da   : > { %v1449_v11 = vpop.f32.mrf.mxu0 }
 0x3db   : > { %v1455_v18 = vadd.f32 %v1449_v11, %v1348_v16 }
 0x3dc   : > { %v2108_v13 = vpop.f32.mrf.mxu0 }
 0x3de   : > { %v1452_v15 = vpop.f32.mrf.mxu0 }
 0x3e0   : > { %v2109_v17 = vpop.f32.mrf.mxu0 }
 0x3e2   : > { %v1556_v19 = vpop.f32.mrf.mxu0 }
 0x3e3   : > { %v1562_v22 = vadd.f32 %v1556_v19, %v1455_v18 }
 0x3e4   : > { %v2122_v23 = vpop.f32.mrf.mxu0 }
 0x3e5   : > { %v1570_v24 = vadd.f32 %v1906_v21, %v1562_v22 }
 0x3e6   : > { %v1559_v25 = vpop.f32.mrf.mxu0 }
 0x3e7   : > { %v1571_v26 = vmax.f32 %v1570_v24, 0.0 }
 0x3e8   : > { %v2123_v27 = vpop.f32.mrf.mxu0 }
 0x3e9   : > { %v1572_v61 = vpack.c.bf16 %v1571_v26, %v1571_v26 }
 0x3ea   : > { %v1677_v28 = vpop.f32.mrf.mxu0 }
 0x3eb   : > { %2129 = vmatmul.mubr.msk.bf16.vlgmr.msra.gmra.mxu1 %vm715_vm2, %v1572_v61 }
 0x3ec   : > { %v2136_v29 = vpop.f32.mrf.mxu0 }
 0x3ee   : > { %v1680_v30 = vpop.f32.mrf.mxu0 }
 0x3f0   : > { %v2137_v31 = vpop.f32.mrf.mxu0 }
 0x4ab   : > { %v1633_v33 = vpop.f32.mrf.mxu1 }
 0x4ac   : > { %v1634_v34 = vadd.f32 %v1907_v32, %v1633_v33 }
 0x4ad   : > { %v2130_v35 = vpop.f32.mrf.mxu1 }
 0x4ae   : > { %v1683_v36 = vadd.f32 %v1677_v28, %v1634_v34 }
 0x4af   : > { %v1636_v37 = vpop.f32.mrf.mxu1 }
 0x4b0   : > { %v1684_v38 = vpack.c.bf16 %v1683_v36, %v1683_v36 }
 0x4b1   : > { %v2131_v39 = vpop.f32.mrf.mxu1 }
 0x4b2   : > { %1685 = vst [vmem:[%s460_s28] sm:$0x3] %v1684_v38 }
 0x4b3 PF: > { %s25_s17 = sadd.s32 1, %s2415_s17  }
 0x4b4   : > { %p22_p13 = scmp.ge.s32.totalorder %s25_s17, 4  }
 0x4b6   :  { %24 = sbr.rel (!%p22_p13) target bundleno = 4 (0x4), region = 135 }
 0x4bb   :  { %1705 = vsyncpa [#allocation3], 1 }
 0x4bc   :  { %1707 = vsyncpa [#allocation3 + $0x1], 1 }
 0x4bd   :  { %1708 = vsyncpa [#allocation5], 1 }
 0x4be   :  { %1709 = vsyncpa [#allocation8], 1 }
 0x4bf   :  { %1710 = vsyncpa [#allocation11], 1 }

// kernel: resnet18v2_forward.15
= control target key start
LH: loop header
LB: loop body
LE: loop exit
PB: predicated region body
PF: predicated region fallthrough
CT: control target
= control target key end

     0   :  { %16 = vsyncpa [#allocation3], 0  ;;  %s3344_s0 = inlined_call_operand.vmem [shape: bf16[2,4,128], index: 0, kind: input, shape index: {}]   ;;  %s3345_s1 = inlined_call_operand.hbm [shape: f32[1,128], index: 1, kind: input, shape index: {}]   ;;  %s3346_s2 = inlined_call_operand.hbm [shape: f32[1,128], index: 2, kind: input, shape index: {}]   ;;  %s3347_s3 = inlined_call_operand.vmem [shape: bf16[128,64], index: 3, kind: input, shape index: {}]   ;;  %s3348_s4 = inlined_call_operand.hbm [shape: f32[1,64], index: 4, kind: input, shape index: {}]   ;;  %s3349_s5 = inlined_call_operand.vmem [shape: bf16[9,4,4], index: 5, kind: input, shape index: {}]   ;;  %s3350_s6 = inlined_call_operand.vmem [shape: bf16[9,64,64], index: 6, kind: input, shape index: {}]   ;;  %s3351_s7 = inlined_call_operand.hbm [shape: f32[1,64], index: 7, kind: input, shape index: {}]   ;;  %s3352_s8 = inlined_call_operand.vmem [shape: bf16[64,256], index: 8, kind: input, shape index: {}]   ;;  %s3353_s9 = inlined_call_operand.hbm [shape: f32[1,256], index: 9, kind: input, shape index: {}]   ;;  %s3354_s10 = inlined_call_operand.vmem [shape: bf16[128,256], index: 10, kind: input, shape index: {}]   ;;  %s3355_s11 = inlined_call_operand.vmem [shape: bf16[2,4,256], index: 11, kind: output, shape index: {}]  }
   0x1   :  { %17 = vsyncpa [#allocation5], 0 }
   0x2   :  { %18 = vsyncpa [#allocation8], 0  ;;  %s2862_s17 = smov 0  }
   0x3 LB: > { %s2794_s18 = smov [#allocation4]   ;;  %s2868_s20 = sadd.s32 4294967295, %s2792_s17   ;;  %s2792_s17 = sphi %s2862_s17, %s24_s17  }
   0x4   : > { %s315_s19 = sshll.u32 %s2794_s18, 4  ;;  %p2064_p0 = scmp.ge.s32.totalorder %s2792_s17, 1  ;;  %s316_s19 = int_to_ptr.vmem [resolvable:$true] %s315_s19 }
   0x5   : > { %p291_p1 = scmp.lt.s32.totalorder %s2792_s17, 3  ;;  %p2538_p2 = scmp.eq.s32.totalorder %s2868_s20, 0 }
   0x6   : > { %s2795_s22 = smov [#allocation7]   ;;  %s2796_s24 = smov [#allocation2]  }
   0x7   : > { %p2873_p3 = pnand %p2064_p0, %p291_p1  ;;  %s346_s23 = sshll.u32 %s2795_s22, 4  ;;  %s2879_s23 = int_to_ptr.vmem [resolvable:$true] %s346_s23 }
   0x8   : > { %s304_s25 = sshll.u32 %s2796_s24, 4  ;;  %s2797_s27 = smov [#allocation6]   ;;  %s2887_s25 = int_to_ptr.vmem [resolvable:$true] %s304_s25 }
   0x9   : > { %p2522_p4 = pneg %p2873_p3  ;;  %s329_s28 = sshll.u32 %s2797_s27, 4  ;;  %s2889_s28 = int_to_ptr.vmem [resolvable:$true] %s329_s28 }
   0xa   : > { %s2655_s30 = scalar_lea.vmem %s316_s19, 16  ;;  %s2662_s12 = scalar_lea.vmem %s316_s19, 32 }
   0xb   : > { %p2883_p5 = pnand %p2538_p2, %p2522_p4  ;;  %p2656_p7 = scmp.ne.s32.totalorder %s316_s19, %s2655_s30 }
   0xc   : > { %p2663_p10 = scmp.lt.s32.totalorder %s316_s19, %s316_s19  ;;  %p2664_p11 = scmp.lt.s32.totalorder %s2662_s12, %s2655_s30 }
   0xd   : > { %p2893_p6 = pneg %p2883_p5 }
   0xe   : > { %p2665_p12 = por %p2664_p11, %p2663_p10 }
   0xf   : > { %p2658_p8 = pnand %p2656_p7, %p2893_p6 }
  0x11   : > { %p2659_p9 = pneg %p2658_p8 }
  0x13   : > { %p2666_p13 = pnand %p2665_p12, %p2659_p9 }
  0x15   : > { %2669 = shalt.err (!%p2666_p13)
}
  0x16   : > { %2528 = dma.hbm_to_vmem [thread:$0]  (!%p2883_p5), %s3346_s2, 16, %s316_s19, [#allocation5]  }
  0x17   : > { %s2681_s15 = scalar_lea.vmem %s2879_s23, 16  ;;  %s2688_s16 = scalar_lea.vmem %s2879_s23, 32 }
  0x18   : > { %p2682_p0 = scmp.ne.s32.totalorder %s2879_s23, %s2681_s15  ;;  %p2689_p7 = scmp.lt.s32.totalorder %s2879_s23, %s2879_s23 }
  0x19   : > { %p2690_p8 = scmp.lt.s32.totalorder %s2688_s16, %s2681_s15 }
  0x1a   : > { %p2684_p1 = pnand %p2682_p0, %p2893_p6 }
  0x1b   : > { %p2691_p9 = por %p2690_p8, %p2689_p7 }
  0x1c   : > { %p2685_p4 = pneg %p2684_p1 }
  0x1e   : > { %p2692_p10 = pnand %p2691_p9, %p2685_p4 }
  0x20   : > { %2695 = shalt.err (!%p2692_p10)
}
  0x21   : > { %2534 = dma.hbm_to_vmem [thread:$0]  (!%p2883_p5), %s3351_s7, 16, %s2879_s23, [#allocation8]  }
  0x22   : > { %s2707_s19 = scalar_lea.vmem %s2887_s25, 16  ;;  %s2714_s24 = scalar_lea.vmem %s2887_s25, 32 }
  0x23   : > { %p2708_p11 = scmp.ne.s32.totalorder %s2887_s25, %s2707_s19  ;;  %p2715_p0 = scmp.lt.s32.totalorder %s2887_s25, %s2887_s25 }
  0x24   : > { %p2716_p1 = scmp.lt.s32.totalorder %s2714_s24, %s2707_s19 }
  0x25   : > { %p2710_p12 = pnand %p2708_p11, %p2893_p6 }
  0x26   : > { %p2717_p4 = por %p2716_p1, %p2715_p0 }
  0x27   : > { %p2711_p13 = pneg %p2710_p12 }
  0x29   : > { %p2718_p7 = pnand %p2717_p4, %p2711_p13 }
  0x2b   : > { %2721 = shalt.err (!%p2718_p7)
}
  0x2c   : > { %2525 = dma.hbm_to_vmem [thread:$0]  (!%p2883_p5), %s3345_s1, 16, %s2887_s25, [#allocation3]  }
  0x2d   : > { %s2733_s23 = scalar_lea.vmem %s2889_s28, 16  ;;  %s2740_s12 = scalar_lea.vmem %s2889_s28, 32 }
  0x2e   : > { %p2734_p8 = scmp.ne.s32.totalorder %s2889_s28, %s2733_s23  ;;  %p2741_p11 = scmp.lt.s32.totalorder %s2889_s28, %s2889_s28 }
  0x2f   : > { %p2742_p12 = scmp.lt.s32.totalorder %s2740_s12, %s2733_s23 }
  0x30   : > { %p2736_p9 = pnand %p2734_p8, %p2893_p6 }
  0x31   : > { %p2743_p13 = por %p2742_p12, %p2741_p11 }
  0x32   : > { %p2737_p10 = pneg %p2736_p9 }
  0x34   : > { %p2744_p0 = pnand %p2743_p13, %p2737_p10 }
  0x36   : > { %2747 = shalt.err (!%p2744_p0)
}
  0x37   : > { %2531 = dma.hbm_to_vmem [thread:$0]  (!%p2883_p5), %s3348_s4, 16, %s2889_s28, [#allocation5]  }
  0x38   : > { %s2798_s25 = smov [#allocation9]  }
  0x39   : > { %s360_s15 = sshll.u32 %s2798_s25, 4  ;;  %s361_s15 = int_to_ptr.vmem [resolvable:$true] %s360_s15 }
  0x3a   : > { %s2759_s16 = scalar_lea.vmem %s361_s15, 32  ;;  %p2767_p8 = scmp.lt.s32.totalorder %s361_s15, %s361_s15 }
  0x3b   : > { %p2760_p1 = scmp.ne.s32.totalorder %s361_s15, %s2759_s16  ;;  %p2768_p9 = scmp.lt.s32.totalorder %s2759_s16, %s2759_s16 }
  0x3d   : > { %p2762_p4 = pnand %p2760_p1, %p2893_p6  ;;  %p2769_p10 = por %p2768_p9, %p2767_p8 }
  0x3f   : > { %p2763_p7 = pneg %p2762_p4 }
  0x41   : > { %p2770_p11 = pnand %p2769_p10, %p2763_p7 }
  0x43   : > { %2773 = shalt.err (!%p2770_p11)
}
  0x44   : > { %2537 = dma.hbm_to_vmem [thread:$0]  (!%p2883_p5), %s3353_s9, 32, %s361_s15, [#allocation8]  }
  0x45   : > { %383 = sbr.rel (%p2873_p3) target bundleno = 1565 (0x61d), region = 64 }
  0x4a   : > { %2779 = dma.done.wait (%p2538_p2), [#allocation3], 16  }
  0x4b   : > { %2781 = vsyncadd (%p2538_p2), [#allocation3], 4294967280 }
  0x4c   : > { %2783 = dma.done.wait (%p2538_p2), [#allocation5], 32  }
  0x4d   : > { %2785 = vsyncadd (%p2538_p2), [#allocation5], 4294967264 }
  0x4e   : > { %2787 = dma.done.wait (%p2538_p2), [#allocation8], 48  }
  0x4f   : > { %2789 = vsyncadd (%p2538_p2), [#allocation8], 4294967248  ;;  %v2799_v0 = vmov 0.0   ;;  %vm2800_vm0 = vmmov 0   ;;  %p438_p3 = scmp.lt.s32.totalorder %s2868_s20, 1  ;;  %v2564_v1 = vld [vmem:[%s3347_s3 + $0x38] sm:$0xff]  }
  0x50   : > { %2320 = vmatprep.subr.bf16.mxu0 %v2799_v0  ;;  %2336 = vmatprep.mubr.msk.bf16.mxu0 %vm2800_vm0, %v2799_v0  ;;  %v2565_v2 = vld [vmem:[%s3347_s3 + $0x30] sm:$0xff]   ;;  %v2566_v3 = vld [vmem:[%s3347_s3 + $0x28] sm:$0xff]   ;;  %v2567_v4 = vld [vmem:[%s3347_s3 + $0x20] sm:$0xff]   ;;  %vm586_vm1 = vcmask 1041408   ;;  %vm582_vm2 = vcmask 31744   ;;  %vm718_vm3 = vcmask 523264  }
  0x51   : > { %2340 = vmatprep.subr.bf16.mxu1 %v2799_v0  ;;  %2342 = vmatprep.mubr.msk.bf16.mxu1 %vm2800_vm0, %v2799_v0  ;;  %s3360_s20 = smov (!%p438_p3, %s2868_s20), 1  ;;  %v2080_v6 = vld [vmem:[#allocation2] ss:$0 sm:$0xff]  ;;  %v2081_v8 = vld [vmem:[#allocation4] ss:$0 sm:$0xff]  ;;  %v2568_v10 = vld [vmem:[%s3347_s3 + $0x18] sm:$0xff]  }
  0x52   : > { %2321 = vmatpush3.bf16.msra.mxu0 %v2564_v1  ;;  %s2077_s19 = sshll.u32 %s3360_s20, 1  ;;  %v2569_v13 = vld [vmem:[%s3347_s3 + $0x10] sm:$0xff]   ;;  %v2570_v14 = vld [vmem:[%s3347_s3 + $0x8] sm:$0xff]   ;;  %v2571_v15 = vld [vmem:[%s3347_s3] sm:$0xff]   ;;  %s2247_s24 = sshll.u32 %s3360_s20, 2 }
  0x53   : > { %2322 = vmatprep.subr.bf16.mxu0 %v2799_v0  ;;  %s441_s30 = scalar_lea.vmem %s3344_s0, %s2077_s19  ;;  %v2082_v17 = vld [vmem:[#allocation6] ss:$0 sm:$0xff]  ;;  %v581_v26 = vld [vmem:[%s3349_s5] sm:$0x3]  ;;  %v2092_v28 = vld [vmem:[%s3349_s5 + $0x2] sm:$0x3]  ;;  %s446_s23 = scalar_lea.vmem %s3355_s11, %s2247_s24 }
  0x54   : > { %v448_v5 = vld [vmem:[%s441_s30] sm:$0x3]  ;;  %v2112_v27 = vld [vmem:[%s3349_s5 + $0x4] sm:$0x3]  ;;  %v2142_v29 = vld [vmem:[%s3349_s5 + $0x8] sm:$0x3] }
  0x55   : > { %v449_v7 = vunpack.c.l.bf16 %v448_v5  ;;  %v2572_v30 = vld [vmem:[%s3350_s6 + $0x38] sm:$0xff]   ;;  %v2574_v32 = vld [vmem:[%s3350_s6 + $0x30] sm:$0xff]   ;;  %v2576_v34 = vld [vmem:[%s3350_s6 + $0x28] sm:$0xff]  }
  0x56   : > { %2323 = vmatpush3.bf16.msra.mxu0 %v2565_v2  ;;  %v2573_v31 = vld [vmem:[%s3350_s6 + $0x98] sm:$0xff]   ;;  %v2575_v33 = vld [vmem:[%s3350_s6 + $0x90] sm:$0xff]   ;;  %v2577_v35 = vld [vmem:[%s3350_s6 + $0x88] sm:$0xff]  }
  0x57   : > { %2324 = vmatprep.subr.bf16.mxu0 %v2799_v0  ;;  %v457_v9 = vmul.f32 %v2080_v6, %v449_v7  ;;  %v2578_v36 = vld [vmem:[%s3350_s6 + $0x20] sm:$0xff]   ;;  %v2580_v48 = vld [vmem:[%s3350_s6 + $0x18] sm:$0xff]   ;;  %v2581_v54 = vld [vmem:[%s3350_s6 + $0x10] sm:$0xff]  }
  0x58   : > { %v2579_v37 = vld [vmem:[%s3350_s6 + $0x80] sm:$0xff]   ;;  %v2582_v58 = vld [vmem:[%s3350_s6 + $0x8] sm:$0xff]   ;;  %v2588_v60 = vld [vmem:[%s3350_s6 + $0xd8] sm:$0xff]  }
  0x59   : > { %v465_v11 = vadd.f32 %v2081_v8, %v457_v9  ;;  %v2172_v59 = vld [vmem:[%s3349_s5 + $0xc] sm:$0x3]  ;;  %v2583_v61 = vld [vmem:[%s3350_s6] sm:$0xff]   ;;  %v2589_v62 = vld [vmem:[%s3350_s6 + $0xd0] sm:$0xff]  }
  0x5a   : > { %2325 = vmatpush3.bf16.msra.mxu0 %v2566_v3  ;;  %v2584_v63 = vld [vmem:[%s3350_s6 + $0x58] sm:$0xff]   ;;  %v2585_v2 = vld [vmem:[%s3350_s6 + $0x50] sm:$0xff]   ;;  %v2586_v3 = vld [vmem:[%s3350_s6 + $0x48] sm:$0xff]  }
  0x5b   : > { %2326 = vmatprep.subr.bf16.mxu0 %v2799_v0  ;;  %v466_v12 = vmax.f32 %v465_v11, 0.0  ;;  %v2127_v6 = vld [vmem:[%s3349_s5 + $0x6] sm:$0x3]  ;;  %v2590_v7 = vld [vmem:[%s3350_s6 + $0xc8] sm:$0xff]   ;;  %v2592_v9 = vld [vmem:[%s3350_s6 + $0x78] sm:$0xff]  }
  0x5c   : > { %v2591_v8 = vld [vmem:[%s3350_s6 + $0xc0] sm:$0xff]   ;;  %v2594_v11 = vld [vmem:[%s3350_s6 + $0x68] sm:$0xff]  }
  0x5d   : > { %v3009_v16 = vpack.c.bf16 %v466_v12, %v466_v12  ;;  %v2595_v12 = vld [vmem:[%s3350_s6 + $0x60] sm:$0xff]  }
  0x5e   : > { %2327 = vmatpush3.bf16.msra.mxu0 %v2567_v4  ;;  %v2587_v4 = vld [vmem:[%s3350_s6 + $0x40] sm:$0xff]  }
  0x5f   : > { %2328 = vmatprep.subr.bf16.mxu0 %v2799_v0 }
  0x62   : > { %2329 = vmatpush3.bf16.msra.mxu0 %v2568_v10  ;;  %v2593_v10 = vld [vmem:[%s3350_s6 + $0x70] sm:$0xff]  }
  0x63   : > { %2330 = vmatprep.subr.bf16.mxu0 %v2799_v0 }
  0x66   : > { %2331 = vmatpush3.bf16.msra.mxu0 %v2569_v13 }
  0x67   : > { %2332 = vmatprep.subr.bf16.mxu0 %v2799_v0 }
  0x6a   : > { %2333 = vmatpush3.bf16.msra.mxu0 %v2570_v14 }
  0x6b   : > { %2334 = vmatprep.subr.bf16.mxu0 %v2799_v0 }
  0x6e   : > { %2335 = vmatpush3.bf16.msra.mxu0 %v2571_v15 }
  0x6f   : > { %2376 = vmatprep.subr.bf16.mxu0 %v2799_v0 }
  0x71   : > { %2337 = vmatmul.mubr.bf16.vlgmr.msra.gmra.mxu0 %v3009_v16 }
  0x72   : > { %2378 = vmatprep.mubr.msk.bf16.mxu0 %vm2800_vm0, %v2799_v0 }
 0x131   : > { %v573_v18 = vpop.f32.mrf.mxu0 }
 0x132   : > { %v574_v19 = vadd.f32 %v2082_v17, %v573_v18 }
 0x133   : > { %v2338_v20 = vpop.f32.mrf.mxu0 }
 0x134   : > { %v579_v21 = vmax.f32 %v574_v19, 0.0 }
 0x135   : > { %v576_v22 = vpop.f32.mrf.mxu0 }
 0x136   : > { %v580_v23 = vpack.c.bf16 %v579_v21, %v579_v21 }
 0x137   : > { %v2339_v24 = vpop.f32.mrf.mxu0 }
 0x138   : > { %v3015_v25 = vsel %vm586_vm1, %v580_v23, 0 }
 0x139   : > { %2341 = vmatpush3.bf16.msra.mxu1 %v3015_v25  ;;  %2377 = vmatpush3.bf16.msra.mxu0 %v3015_v25 }
 0x13a   : > { %2346 = vmatprep.subr.bf16.mxu1 %v2799_v0  ;;  %2412 = vmatprep.subr.bf16.mxu0 %v2799_v0 }
 0x13c   : > { %2343 = vmatmul.mubr.msk.bf16.vlgmr.msra.gmra.mxu1 %vm582_vm2, %v581_v26  ;;  %2379 = vmatmul.mubr.msk.bf16.vlgmr.msra.gmra.mxu0 %vm582_vm2, %v2112_v27 }
 0x13d   : > { %2347 = vmatpush3.bf16.msra.mxu1 %v3015_v25  ;;  %2413 = vmatpush3.bf16.msra.mxu0 %v3015_v25 }
 0x13e   : > { %2348 = vmatprep.mubr.msk.bf16.mxu1 %vm2800_vm0, %v2799_v0  ;;  %2414 = vmatprep.mubr.msk.bf16.mxu0 %vm2800_vm0, %v2799_v0 }
 0x13f   : > { %2352 = vmatprep.subr.bf16.mxu1 %v2799_v0  ;;  %2418 = vmatprep.subr.bf16.mxu0 %v2799_v0 }
 0x144   : > { %2349 = vmatmul.mubr.msk.bf16.vlgmr.msra.gmra.mxu1 %vm582_vm2, %v2092_v28  ;;  %2415 = vmatmul.mubr.msk.bf16.vlgmr.msra.gmra.mxu0 %vm582_vm2, %v2142_v29 }
 0x145   : > { %2353 = vmatpush3.bf16.msra.mxu1 %v2572_v30  ;;  %2419 = vmatpush3.bf16.msra.mxu0 %v2573_v31 }
 0x146   : > { %2354 = vmatprep.subr.bf16.mxu1 %v2799_v0  ;;  %2420 = vmatprep.subr.bf16.mxu0 %v2799_v0 }
 0x147   : > { %2360 = vmatprep.mubr.msk.bf16.mxu1 %vm2800_vm0, %v2799_v0  ;;  %2426 = vmatprep.mubr.msk.bf16.mxu0 %vm2800_vm0, %v2799_v0 }
 0x149   : > { %2355 = vmatpush3.bf16.msra.mxu1 %v2574_v32  ;;  %2421 = vmatpush3.bf16.msra.mxu0 %v2575_v33 }
 0x14a   : > { %2356 = vmatprep.subr.bf16.mxu1 %v2799_v0  ;;  %2422 = vmatprep.subr.bf16.mxu0 %v2799_v0 }
 0x14d   : > { %2357 = vmatpush3.bf16.msra.mxu1 %v2576_v34  ;;  %2423 = vmatpush3.bf16.msra.mxu0 %v2577_v35 }
 0x14e   : > { %2358 = vmatprep.subr.bf16.mxu1 %v2799_v0  ;;  %2424 = vmatprep.subr.bf16.mxu0 %v2799_v0 }
 0x151   : > { %2359 = vmatpush3.bf16.msra.mxu1 %v2578_v36  ;;  %2425 = vmatpush3.bf16.msra.mxu0 %v2579_v37 }
 0x152   : > { %2364 = vmatprep.subr.bf16.mxu1 %v2799_v0  ;;  %2448 = vmatprep.subr.bf16.mxu0 %v2799_v0 }
 0x1fc   : > { %v624_v38 = vpop.f32.mrf.mxu1  ;;  %v868_v39 = vpop.f32.mrf.mxu0 }
 0x1fd   : > { %v630_v1 = vpack.c.bf16 %v624_v38, %v624_v38  ;;  %v874_v5 = vpack.c.bf16 %v868_v39, %v868_v39 }
 0x1fe   : > { %v2344_v40 = vpop.f32.mrf.mxu1  ;;  %v2380_v41 = vpop.f32.mrf.mxu0 }
 0x200   : > { %v627_v42 = vpop.f32.mrf.mxu1  ;;  %v871_v43 = vpop.f32.mrf.mxu0 }
 0x201   : > { %v2157_v43 = vld [vmem:[%s3349_s5 + $0xa] sm:$0x3] }
 0x202   : > { %v2345_v44 = vpop.f32.mrf.mxu1  ;;  %v2381_v45 = vpop.f32.mrf.mxu0 }
 0x203   : > { %v2596_v44 = vld [vmem:[%s3350_s6 + $0xb8] sm:$0xff]   ;;  %v2597_v45 = vld [vmem:[%s3350_s6 + $0xb0] sm:$0xff]  }
 0x204   : > { %v678_v46 = vpop.f32.mrf.mxu1  ;;  %v1114_v47 = vpop.f32.mrf.mxu0 }
 0x205   : > { %v684_v49 = vpack.c.bf16 %v678_v46, %v678_v46  ;;  %v1120_v50 = vpack.c.bf16 %v1114_v47, %v1114_v47  ;;  %v2598_v46 = vld [vmem:[%s3350_s6 + $0xa8] sm:$0xff]   ;;  %v2599_v47 = vld [vmem:[%s3350_s6 + $0xa0] sm:$0xff]  }
 0x206   : > { %v2350_v51 = vpop.f32.mrf.mxu1  ;;  %v2416_v52 = vpop.f32.mrf.mxu0 }
 0x207   : > { %2361 = vmatmul.mubr.msk.bf16.vlgmr.msra.gmra.mxu1 %vm718_vm3, %v684_v49  ;;  %2427 = vmatmul.mubr.msk.bf16.vlgmr.msra.gmra.mxu0 %vm718_vm3, %v1120_v50  ;;  %v2600_v49 = vld [vmem:[%s3350_s6 + $0x118] sm:$0xff]   ;;  %v2602_v50 = vld [vmem:[%s3350_s6 + $0x110] sm:$0xff]  }
 0x208   : > { %2365 = vmatpush3.bf16.msra.mxu1 %v2580_v48  ;;  %2449 = vmatpush3.bf16.msra.mxu0 %v3015_v25  ;;  %v681_v53 = vpop.f32.mrf.mxu1  ;;  %v1117_v55 = vpop.f32.mrf.mxu0  ;;  %v2202_v48 = vld [vmem:[%s3349_s5 + $0x10] sm:$0x3] }
 0x209   : > { %2366 = vmatprep.subr.bf16.mxu1 %v2799_v0  ;;  %2450 = vmatprep.mubr.msk.bf16.mxu0 %vm2800_vm0, %v2799_v0 }
 0x20a   : > { %v2351_v56 = vpop.f32.mrf.mxu1  ;;  %2372 = vmatprep.mubr.msk.bf16.mxu1 %vm2800_vm0, %v2799_v0  ;;  %2454 = vmatprep.subr.bf16.mxu0 %v2799_v0  ;;  %v2417_v57 = vpop.f32.mrf.mxu0 }
 0x20c   : > { %2367 = vmatpush3.bf16.msra.mxu1 %v2581_v54 }
 0x20d   : > { %2368 = vmatprep.subr.bf16.mxu1 %v2799_v0 }
 0x20f   : > { %2451 = vmatmul.mubr.msk.bf16.vlgmr.msra.gmra.mxu0 %vm582_vm2, %v2172_v59 }
 0x210   : > { %2369 = vmatpush3.bf16.msra.mxu1 %v2582_v58  ;;  %2455 = vmatpush3.bf16.msra.mxu0 %v2588_v60 }
 0x211   : > { %2370 = vmatprep.subr.bf16.mxu1 %v2799_v0  ;;  %2456 = vmatprep.subr.bf16.mxu0 %v2799_v0 }
 0x212   : > { %2462 = vmatprep.mubr.msk.bf16.mxu0 %vm2800_vm0, %v2799_v0 }
 0x214   : > { %2371 = vmatpush3.bf16.msra.mxu1 %v2583_v61  ;;  %2457 = vmatpush3.bf16.msra.mxu0 %v2589_v62 }
 0x215   : > { %2382 = vmatprep.subr.bf16.mxu1 %v2799_v0  ;;  %2458 = vmatprep.subr.bf16.mxu0 %v2799_v0 }
 0x217   : > { %2373 = vmatmul.mubr.msk.bf16.vlgmr.msra.gmra.mxu1 %vm718_vm3, %v630_v1 }
 0x218   : > { %2383 = vmatpush3.bf16.msra.mxu1 %v2584_v63  ;;  %2390 = vmatprep.mubr.msk.bf16.mxu1 %vm2800_vm0, %v2799_v0 }
 0x219   : > { %2384 = vmatprep.subr.bf16.mxu1 %v2799_v0  ;;  %2459 = vmatpush3.bf16.msra.mxu0 %v2590_v7 }
 0x21a   : > { %2460 = vmatprep.subr.bf16.mxu0 %v2799_v0 }
 0x21c   : > { %2385 = vmatpush3.bf16.msra.mxu1 %v2585_v2  ;;  %v2187_v2 = vld [vmem:[%s3349_s5 + $0xe] sm:$0x3] }
 0x21d   : > { %2386 = vmatprep.subr.bf16.mxu1 %v2799_v0  ;;  %2461 = vmatpush3.bf16.msra.mxu0 %v2591_v8 }
 0x21e   : > { %2484 = vmatprep.subr.bf16.mxu0 %v2799_v0 }
 0x220   : > { %2387 = vmatpush3.bf16.msra.mxu1 %v2586_v3  ;;  %v2601_v3 = vld [vmem:[%s3350_s6 + $0xf8] sm:$0xff]  }
 0x221   : > { %2388 = vmatprep.subr.bf16.mxu1 %v2799_v0 }
 0x224   : > { %2389 = vmatpush3.bf16.msra.mxu1 %v2587_v4  ;;  %v2604_v4 = vld [vmem:[%s3350_s6 + $0x108] sm:$0xff]  }
 0x225   : > { %2394 = vmatprep.subr.bf16.mxu1 %v2799_v0 }
 0x227   : > { %2391 = vmatmul.mubr.msk.bf16.vlgmr.msra.gmra.mxu1 %vm718_vm3, %v874_v5  ;;  %v2605_v5 = vld [vmem:[%s3350_s6 + $0xe8] sm:$0xff]  }
 0x228   : > { %2395 = vmatpush3.bf16.msra.mxu1 %v3015_v25  ;;  %2396 = vmatprep.mubr.msk.bf16.mxu1 %vm2800_vm0, %v2799_v0 }
 0x229   : > { %2400 = vmatprep.subr.bf16.mxu1 %v2799_v0 }
 0x22f   : > { %2397 = vmatmul.mubr.msk.bf16.vlgmr.msra.gmra.mxu1 %vm582_vm2, %v2127_v6  ;;  %v2606_v6 = vld [vmem:[%s3350_s6 + $0x100] sm:$0xff]  }
 0x230   : > { %2408 = vmatprep.mubr.msk.bf16.mxu1 %vm2800_vm0, %v2799_v0  ;;  %2401 = vmatpush3.bf16.msra.mxu1 %v2592_v9 }
 0x231   : > { %2402 = vmatprep.subr.bf16.mxu1 %v2799_v0 }
 0x234   : > { %2403 = vmatpush3.bf16.msra.mxu1 %v2593_v10  ;;  %v2607_v10 = vld [vmem:[%s3350_s6 + $0xe0] sm:$0xff]  }
 0x235   : > { %2404 = vmatprep.subr.bf16.mxu1 %v2799_v0 }
 0x238   : > { %2405 = vmatpush3.bf16.msra.mxu1 %v2594_v11 }
 0x239   : > { %2406 = vmatprep.subr.bf16.mxu1 %v2799_v0 }
 0x23c   : > { %2407 = vmatpush3.bf16.msra.mxu1 %v2595_v12 }
 0x23d   : > { %2430 = vmatprep.subr.bf16.mxu1 %v2799_v0 }
 0x2c7   : > { %v756_v13 = vpop.f32.mrf.mxu1  ;;  %v3173_v14 = vpop.f32.mrf.mxu0 }
 0x2c9   : > { %v2362_v15 = vpop.f32.mrf.mxu1  ;;  %v2428_v17 = vpop.f32.mrf.mxu0 }
 0x2ca   : > { %v2610_v15 = vld [vmem:[%s3354_s10 + $0x74] ss:$8 sps:$4 sm:$0xff]   ;;  %v2611_v17 = vld [vmem:[%s3354_s10 + $0x60] ss:$8 sps:$4 sm:$0xff]  }
 0x2cb   : > { %v759_v18 = vpop.f32.mrf.mxu1  ;;  %v1194_v19 = vpop.f32.mrf.mxu0 }
 0x2cc   : > { %v2625_v18 = vld [vmem:[%s3352_s8 + $0x34] ss:$8 sps:$4 sm:$0xff]  }
 0x2cd   : > { %v2363_v20 = vpop.f32.mrf.mxu1  ;;  %v2429_v21 = vpop.f32.mrf.mxu0  ;;  %v2616_v19 = vld [vmem:[%s3354_s10 + $0x54] ss:$8 sps:$4 sm:$0xff]  }
 0x2ce   : > { %v2614_v20 = vld [vmem:[%s3354_s10 + $0x50] ss:$8 sps:$4 sm:$0xff]   ;;  %v2619_v21 = vld [vmem:[%s3354_s10 + $0x44] ss:$8 sps:$4 sm:$0xff]  }
 0x2cf   : > { %v1360_v22 = vpop.f32.mrf.mxu0 }
 0x2d0   : > { %v1366_v23 = vpack.c.bf16 %v1360_v22, %v1360_v22  ;;  %v2617_v22 = vld [vmem:[%s3354_s10 + $0x40] ss:$8 sps:$4 sm:$0xff]  }
 0x2d1   : > { %v2452_v24 = vpop.f32.mrf.mxu0 }
 0x2d2   : > { %2463 = vmatmul.mubr.msk.bf16.vlgmr.msra.gmra.mxu0 %vm718_vm3, %v1366_v23  ;;  %v2622_v23 = vld [vmem:[%s3354_s10 + $0x34] ss:$8 sps:$4 sm:$0xff]   ;;  %v2620_v24 = vld [vmem:[%s3354_s10 + $0x30] ss:$8 sps:$4 sm:$0xff]  }
 0x2d3   : > { %2485 = vmatpush3.bf16.msra.mxu0 %v3015_v25  ;;  %v1363_v26 = vpop.f32.mrf.mxu0  ;;  %2486 = vmatprep.mubr.msk.bf16.mxu0 %vm2800_vm0, %v2799_v0 }
 0x2d4   : > { %2490 = vmatprep.subr.bf16.mxu0 %v2799_v0  ;;  %v2628_v26 = vld [vmem:[%s3354_s10 + $0x24] ss:$8 sps:$4 sm:$0xff]  }
 0x2d5   : > { %v2453_v27 = vpop.f32.mrf.mxu0 }
 0x2d6   : > { %v2626_v27 = vld [vmem:[%s3354_s10 + $0x20] ss:$8 sps:$4 sm:$0xff]  }
 0x2d7   : > { %v823_v28 = vpop.f32.mrf.mxu1 }
 0x2d8   : > { %v824_v29 = vadd.f32 %v823_v28, %v756_v13  ;;  %v2608_v13 = vld [vmem:[%s3354_s10 + $0x70] ss:$8 sps:$4 sm:$0xff]  }
 0x2d9   : > { %v2374_v30 = vpop.f32.mrf.mxu1 }
 0x2da   : > { %2487 = vmatmul.mubr.msk.bf16.vlgmr.msra.gmra.mxu0 %vm582_vm2, %v2202_v48 }
 0x2db   : > { %v826_v31 = vpop.f32.mrf.mxu1  ;;  %2498 = vmatprep.mubr.msk.bf16.mxu0 %vm2800_vm0, %v2799_v0  ;;  %2491 = vmatpush3.bf16.msra.mxu0 %v2600_v49  ;;  %v2635_v49 = vld [vmem:[%s3352_s8 + $0x10] ss:$8 sps:$4 sm:$0xff]  }
 0x2dc   : > { %2492 = vmatprep.subr.bf16.mxu0 %v2799_v0 }
 0x2dd   : > { %v2375_v32 = vpop.f32.mrf.mxu1 }
 0x2df   : > { %2493 = vmatpush3.bf16.msra.mxu0 %v2602_v50  ;;  %v2638_v50 = vld [vmem:[%s3354_s10] ss:$8 sps:$4 sm:$0xff]  }
 0x2e0   : > { %2494 = vmatprep.subr.bf16.mxu0 %v2799_v0 }
 0x2e3   : > { %2495 = vmatpush3.bf16.msra.mxu0 %v2604_v4 }
 0x2e4   : > { %2496 = vmatprep.subr.bf16.mxu0 %v2799_v0 }
 0x2e7   : > { %v945_v33 = vpop.f32.mrf.mxu1  ;;  %2497 = vmatpush3.bf16.msra.mxu0 %v2606_v6 }
 0x2e8   : > { %v951_v34 = vadd.f32 %v945_v33, %v824_v29  ;;  %1900 = vmatprep.subr.bf16.mxu0 %v2610_v15 }
 0x2e9   : > { %v2392_v35 = vpop.f32.mrf.mxu1 }
 0x2ea   : > { %v2623_v35 = vld [vmem:[%s3352_s8 + $0x30] ss:$8 sps:$4 sm:$0xff]  }
 0x2eb   : > { %v948_v36 = vpop.f32.mrf.mxu1 }
 0x2ed   : > { %v2393_v37 = vpop.f32.mrf.mxu1 }
 0x2ee   : > { %v2631_v37 = vld [vmem:[%s3352_s8 + $0x24] ss:$8 sps:$4 sm:$0xff]  }
 0x2ef   : > { %v991_v38 = vpop.f32.mrf.mxu1 }
 0x2f0   : > { %v997_v39 = vpack.c.bf16 %v991_v38, %v991_v38 }
 0x2f1   : > { %v2398_v40 = vpop.f32.mrf.mxu1 }
 0x2f2   : > { %2409 = vmatmul.mubr.msk.bf16.vlgmr.msra.gmra.mxu1 %vm718_vm3, %v997_v39 }
 0x2f3   : > { %2431 = vmatpush3.bf16.msra.mxu1 %v3015_v25  ;;  %v994_v41 = vpop.f32.mrf.mxu1  ;;  %2432 = vmatprep.mubr.msk.bf16.mxu1 %vm2800_vm0, %v2799_v0 }
 0x2f4   : > { %2436 = vmatprep.subr.bf16.mxu1 %v2799_v0 }
 0x2f5   : > { %v2399_v42 = vpop.f32.mrf.mxu1 }
 0x2f6   : > { %v2634_v42 = vld [vmem:[%s3354_s10 + $0x14] ss:$8 sps:$4 sm:$0xff]  }
 0x2fa   : > { %2433 = vmatmul.mubr.msk.bf16.vlgmr.msra.gmra.mxu1 %vm582_vm2, %v2157_v43 }
 0x2fb   : > { %2437 = vmatpush3.bf16.msra.mxu1 %v2596_v44  ;;  %2444 = vmatprep.mubr.msk.bf16.mxu1 %vm2800_vm0, %v2799_v0  ;;  %v2632_v44 = vld [vmem:[%s3354_s10 + $0x10] ss:$8 sps:$4 sm:$0xff]  }
 0x2fc   : > { %2438 = vmatprep.subr.bf16.mxu1 %v2799_v0 }
 0x2ff   : > { %2439 = vmatpush3.bf16.msra.mxu1 %v2597_v45 }
 0x300   : > { %2440 = vmatprep.subr.bf16.mxu1 %v2799_v0 }
 0x303   : > { %2441 = vmatpush3.bf16.msra.mxu1 %v2598_v46  ;;  %v2637_v46 = vld [vmem:[%s3352_s8 + $0x14] ss:$8 sps:$4 sm:$0xff]  }
 0x304   : > { %2442 = vmatprep.subr.bf16.mxu1 %v2799_v0 }
 0x307   : > { %2443 = vmatpush3.bf16.msra.mxu1 %v2599_v47  ;;  %v2640_v47 = vld [vmem:[%s3354_s10 + $0x4] ss:$8 sps:$4 sm:$0xff]  }
 0x308   : > { %2466 = vmatprep.subr.bf16.mxu1 %v2799_v0 }
 0x392   : > { %v3221_v51 = vpop.f32.mrf.mxu0 }
 0x394   : > { %v2464_v52 = vpop.f32.mrf.mxu0 }
 0x395   : > { %v2643_v52 = vld [vmem:[%s3352_s8 + $0x4] ss:$8 sps:$4 sm:$0xff]  }
 0x396   : > { %v1440_v53 = vpop.f32.mrf.mxu0 }
 0x397   : > { %v2641_v53 = vld [vmem:[%s3352_s8] ss:$8 sps:$4 sm:$0xff]  }
 0x398   : > { %v2465_v54 = vpop.f32.mrf.mxu0 }
 0x399   : > { %v2801_v54 = vmov 0  }
 0x39a   : > { %v1606_v7 = vpop.f32.mrf.mxu0 }
 0x39b   : > { %v1612_v8 = vpack.c.bf16 %v1606_v7, %v1606_v7  ;;  %v1708_v7 = vld [vmem:[#allocation9] sm:$0x3] }
 0x39c   : > { %v2488_v9 = vpop.f32.mrf.mxu0 }
 0x39d   : > { %2499 = vmatmul.mubr.msk.bf16.vlgmr.msra.gmra.mxu0 %vm718_vm3, %v1612_v8 }
 0x39e   : > { %v1609_v11 = vpop.f32.mrf.mxu0  ;;  %1901 = vmatpush1.bf16.msra.mxu0 %v2608_v13  ;;  %1932 = vmatprep.mubr.bf16.mxu0 %v2801_v54 }
 0x3a0   : > { %v2489_v12 = vpop.f32.mrf.mxu0 }
 0x3b2   : > { %v1068_v55 = vpop.f32.mrf.mxu1 }
 0x3b3   : > { %v3223_v56 = vadd.f32 %v1068_v55, %v951_v34 }
 0x3b4   : > { %v2410_v57 = vpop.f32.mrf.mxu1 }
 0x3b5   : > { %v1197_v28 = vadd.f32 %v3173_v14, %v3223_v56  ;;  %v2629_v14 = vld [vmem:[%s3352_s8 + $0x20] ss:$8 sps:$4 sm:$0xff]  }
 0x3b6   : > { %v1071_v58 = vpop.f32.mrf.mxu1 }
 0x3b7   : > { %v2217_v58 = vld [vmem:[#allocation7] ss:$0 sm:$0xff] }
 0x3b8   : > { %v2411_v59 = vpop.f32.mrf.mxu1 }
 0x3ba   : > { %v1237_v60 = vpop.f32.mrf.mxu1 }
 0x3bb   : > { %v1243_v61 = vpack.c.bf16 %v1237_v60, %v1237_v60 }
 0x3bc   : > { %v2434_v62 = vpop.f32.mrf.mxu1 }
 0x3bd   : > { %2445 = vmatmul.mubr.msk.bf16.vlgmr.msra.gmra.mxu1 %vm718_vm3, %v1243_v61 }
 0x3be   : > { %2467 = vmatpush3.bf16.msra.mxu1 %v3015_v25  ;;  %v1240_v63 = vpop.f32.mrf.mxu1  ;;  %2468 = vmatprep.mubr.msk.bf16.mxu1 %vm2800_vm0, %v2799_v0  ;;  %v2603_v25 = vld [vmem:[%s3350_s6 + $0xf0] sm:$0xff]  }
 0x3bf   : > { %2472 = vmatprep.subr.bf16.mxu1 %v2799_v0 }
 0x3c0   : > { %v2435_v1 = vpop.f32.mrf.mxu1 }
 0x3c5   : > { %2469 = vmatmul.mubr.msk.bf16.vlgmr.msra.gmra.mxu1 %vm582_vm2, %v2187_v2 }
 0x3c6   : > { %2473 = vmatpush3.bf16.msra.mxu1 %v2601_v3  ;;  %2480 = vmatprep.mubr.msk.bf16.mxu1 %vm2800_vm0, %v2799_v0 }
 0x3c7   : > { %2474 = vmatprep.subr.bf16.mxu1 %v2799_v0 }
 0x3ca   : > { %2475 = vmatpush3.bf16.msra.mxu1 %v2603_v25 }
 0x3cb   : > { %2476 = vmatprep.subr.bf16.mxu1 %v2799_v0 }
 0x3ce   : > { %2477 = vmatpush3.bf16.msra.mxu1 %v2605_v5  ;;  %v1710_v5 = vlaneseq }
 0x3cf   : > { %2478 = vmatprep.subr.bf16.mxu1 %v2799_v0  ;;  %v2613_v0 = vld [vmem:[%s3354_s10 + $0x64] ss:$8 sps:$4 sm:$0xff]  }
 0x3d0   : > { %1902 = vmatprep.subr.bf16.mxu0 %v2613_v0  ;;  %v1711_v6 = vshrl.u32 %v1710_v5, 7 }
 0x3d1   : > { %1903 = vmatpush1.bf16.msra.mxu0 %v2611_v17 }
 0x3d2   : > { %2479 = vmatpush3.bf16.msra.mxu1 %v2607_v10  ;;  %1904 = vmatprep.subr.bf16.mxu0 %v2616_v19  ;;  %v1716_v8 = vsub.s32 1, %v1711_v6 }
 0x3d3   : > { %1771 = vmatprep.subr.bf16.mxu1 %v2625_v18 }
 0x3d4   : > { %v1717_v10 = vrot.slane %v1708_v7, %v1716_v8 }
 0x3d5   : > { %1905 = vmatpush1.bf16.msra.mxu0 %v2614_v20 }
 0x3d6   : > { %1906 = vmatprep.subr.bf16.mxu0 %v2619_v21 }
 0x3d9   : > { %1907 = vmatpush1.bf16.msra.mxu0 %v2617_v22 }
 0x3da   : > { %1908 = vmatprep.subr.bf16.mxu0 %v2622_v23 }
 0x3dd   : > { %1909 = vmatpush1.bf16.msra.mxu0 %v2620_v24 }
 0x3de   : > { %1910 = vmatprep.subr.bf16.mxu0 %v2628_v26 }
 0x3e1   : > { %1911 = vmatpush1.bf16.msra.mxu0 %v2626_v27 }
 0x3e2   : > { %1912 = vmatprep.subr.bf16.mxu0 %v2634_v42 }
 0x3e5   : > { %1913 = vmatpush1.bf16.msra.mxu0 %v2632_v44 }
 0x3e6   : > { %1914 = vmatprep.subr.bf16.mxu0 %v2640_v47 }
 0x3e9   : > { %1915 = vmatpush1.bf16.msra.mxu0 %v2638_v50 }
 0x3ec   : > { %1933 = vmatmul.mubr.bf16.vlgmr.msra.gmra.mxu0 %v3009_v16 }
 0x45d   : > { %v1683_v41 = vpop.f32.mrf.mxu0 }
 0x45f   : > { %v2500_v43 = vpop.f32.mrf.mxu0 }
 0x461   : > { %v1686_v45 = vpop.f32.mrf.mxu0 }
 0x463   : > { %v2501_v48 = vpop.f32.mrf.mxu0 }
 0x47d   : > { %v1314_v29 = vpop.f32.mrf.mxu1 }
 0x47e   : > { %v1320_v30 = vadd.f32 %v1314_v29, %v1197_v28 }
 0x47f   : > { %v2446_v31 = vpop.f32.mrf.mxu1 }
 0x480   : > { %v1443_v55 = vadd.f32 %v3221_v51, %v1320_v30  ;;  %v1712_v51 = vsub.s32 0, %v1711_v6 }
 0x481   : > { %v1317_v32 = vpop.f32.mrf.mxu1 }
 0x482   : > { %v1713_v9 = vrot.slane %v1708_v7, %v1712_v51 }
 0x483   : > { %v2447_v33 = vpop.f32.mrf.mxu1 }
 0x485   : > { %v1483_v34 = vpop.f32.mrf.mxu1 }
 0x486   : > { %v1489_v36 = vpack.c.bf16 %v1483_v34, %v1483_v34 }
 0x487   : > { %v2470_v38 = vpop.f32.mrf.mxu1 }
 0x488   : > { %2481 = vmatmul.mubr.msk.bf16.vlgmr.msra.gmra.mxu1 %vm718_vm3, %v1489_v36 }
 0x489   : > { %v1486_v39 = vpop.f32.mrf.mxu1  ;;  %1772 = vmatpush1.bf16.msra.mxu1 %v2623_v35  ;;  %1795 = vmatprep.mubr.bf16.mxu1 %v2801_v54 }
 0x48a   : > { %1773 = vmatprep.subr.bf16.mxu1 %v2631_v37 }
 0x48b   : > { %v2471_v40 = vpop.f32.mrf.mxu1 }
 0x48d   : > { %1774 = vmatpush1.bf16.msra.mxu1 %v2629_v14 }
 0x48e   : > { %1775 = vmatprep.subr.bf16.mxu1 %v2637_v46 }
 0x491   : > { %1776 = vmatpush1.bf16.msra.mxu1 %v2635_v49 }
 0x492   : > { %1777 = vmatprep.subr.bf16.mxu1 %v2643_v52 }
 0x495   : > { %1778 = vmatpush1.bf16.msra.mxu1 %v2641_v53 }
 0x4ac   : > { %v1934_v3 = vpop.f32.mrf.mxu0 }
 0x4ae   : > { %v1936_v25 = vpop.f32.mrf.mxu0 }
 0x4b0   : > { %v1938_v4 = vpop.f32.mrf.mxu0 }
 0x4b2   : > { %v1939_v16 = vpop.f32.mrf.mxu0 }
 0x548   : > { %v1560_v56 = vpop.f32.mrf.mxu1 }
 0x549   : > { %v1566_v57 = vadd.f32 %v1560_v56, %v1443_v55 }
 0x54a   : > { %v2482_v59 = vpop.f32.mrf.mxu1 }
 0x54b   : > { %v1689_v60 = vadd.f32 %v1683_v41, %v1566_v57 }
 0x54c   : > { %v1563_v61 = vpop.f32.mrf.mxu1 }
 0x54d   : > { %v1697_v62 = vadd.f32 %v2217_v58, %v1689_v60 }
 0x54e   : > { %v2483_v63 = vpop.f32.mrf.mxu1 }
 0x54f   : > { %v1698_v1 = vmax.f32 %v1697_v62, 0.0 }
 0x551   : > { %v1699_v2 = vpack.c.bf16 %v1698_v1, %v1698_v1 }
 0x553   : > { %2226 = vmatmul.mubr.msk.bf16.vlgmr.msra.gmra.mxu1 %vm718_vm3, %v1699_v2 }
 0x613   : > { %v1797_v11 = vpop.f32.mrf.mxu1 }
 0x614   : > { %v1798_v12 = vadd.f32 %v1797_v11, %v1713_v9 }
 0x615   : > { %v1799_v13 = vpop.f32.mrf.mxu1 }
 0x616   : > { %v1800_v15 = vadd.f32 %v1799_v13, %v1717_v10  ;;  %v1941_v17 = vadd.f32 %v1934_v3, %v1798_v12 }
 0x617   : > { %v1801_v0 = vpop.f32.mrf.mxu1 }
 0x618   : > { %v1942_v18 = vadd.f32 %v1936_v25, %v1800_v15 }
 0x619   : > { %v1802_v19 = vpop.f32.mrf.mxu1 }
 0x61a   : > { %v2243_v20 = vpack.c.bf16 %v1942_v18, %v1941_v17 }
 0x61c   : > { %2244 = vst.sshfl [vmem:[%s446_s23] sm:$0x33 pattern:$0x76325410] %v2243_v20 }
 0x61d PF: > { %s24_s17 = sadd.s32 1, %s2792_s17  }
 0x61e   : > { %p21_p2 = scmp.ge.s32.totalorder %s24_s17, 4  }
 0x620   :  { %23 = sbr.rel (!%p21_p2) target bundleno = 3 (0x3), region = 131 }
 0x625   :  { %1978 = vsyncpa [#allocation3], 1 }
 0x626   :  { %1980 = vsyncpa [#allocation3 + $0x1], 1 }
 0x627   :  { %1981 = vsyncpa [#allocation5], 1 }
 0x628   :  { %1982 = vsyncpa [#allocation8], 1 }

// kernel: resnet18v2_forward.13
= control target key start
LH: loop header
LB: loop body
LE: loop exit
PB: predicated region body
PF: predicated region fallthrough
CT: control target
= control target key end

     0   :  { %16 = vsyncpa [#allocation3], 0  ;;  %s2902_s0 = inlined_call_operand.vmem [shape: bf16[2,16,64], index: 0, kind: input, shape index: {}]   ;;  %s2903_s1 = inlined_call_operand.hbm [shape: f32[1,64], index: 1, kind: input, shape index: {}]   ;;  %s2904_s2 = inlined_call_operand.hbm [shape: f32[1,64], index: 2, kind: input, shape index: {}]   ;;  %s2905_s3 = inlined_call_operand.vmem [shape: bf16[64,32], index: 3, kind: input, shape index: {}]   ;;  %s2906_s4 = inlined_call_operand.hbm [shape: f32[1,32], index: 4, kind: input, shape index: {}]   ;;  %s2907_s5 = inlined_call_operand.vmem [shape: bf16[9,16,16], index: 5, kind: input, shape index: {}]   ;;  %s2908_s6 = inlined_call_operand.vmem [shape: bf16[9,32,32], index: 6, kind: input, shape index: {}]   ;;  %s2909_s7 = inlined_call_operand.hbm [shape: f32[1,32], index: 7, kind: input, shape index: {}]   ;;  %s2910_s8 = inlined_call_operand.vmem [shape: bf16[32,128], index: 8, kind: input, shape index: {}]   ;;  %s2911_s9 = inlined_call_operand.hbm [shape: f32[1,128], index: 9, kind: input, shape index: {}]   ;;  %s2912_s10 = inlined_call_operand.vmem [shape: bf16[64,128], index: 10, kind: input, shape index: {}]   ;;  %s2913_s11 = inlined_call_operand.vmem [shape: bf16[2,16,128], index: 11, kind: output, shape index: {}]  }
   0x1   :  { %17 = vsyncpa [#allocation5], 0 }
   0x2   :  { %18 = vsyncpa [#allocation8], 0  ;;  %s2550_s17 = smov 0  }
   0x3 LB: > { %s2483_s18 = smov [#allocation4]   ;;  %s2556_s20 = sadd.s32 4294967295, %s2481_s17   ;;  %s2481_s17 = sphi %s2550_s17, %s24_s17  }
   0x4   : > { %s315_s19 = sshll.u32 %s2483_s18, 4  ;;  %p1874_p0 = scmp.ge.s32.totalorder %s2481_s17, 1  ;;  %s316_s19 = int_to_ptr.vmem [resolvable:$true] %s315_s19 }
   0x5   : > { %p291_p1 = scmp.lt.s32.totalorder %s2481_s17, 3  ;;  %p2271_p2 = scmp.eq.s32.totalorder %s2556_s20, 0 }
   0x6   : > { %s2484_s22 = smov [#allocation7]   ;;  %s2485_s24 = smov [#allocation2]  }
   0x7   : > { %p2561_p3 = pnand %p1874_p0, %p291_p1  ;;  %s346_s23 = sshll.u32 %s2484_s22, 4  ;;  %s2567_s23 = int_to_ptr.vmem [resolvable:$true] %s346_s23 }
   0x8   : > { %s304_s25 = sshll.u32 %s2485_s24, 4  ;;  %s2486_s27 = smov [#allocation6]   ;;  %s2575_s25 = int_to_ptr.vmem [resolvable:$true] %s304_s25 }
   0x9   : > { %p2255_p4 = pneg %p2561_p3  ;;  %s329_s28 = sshll.u32 %s2486_s27, 4  ;;  %s2577_s28 = int_to_ptr.vmem [resolvable:$true] %s329_s28 }
   0xa   : > { %s2344_s30 = scalar_lea.vmem %s316_s19, 16  ;;  %s2351_s12 = scalar_lea.vmem %s316_s19, 32 }
   0xb   : > { %p2571_p5 = pnand %p2271_p2, %p2255_p4  ;;  %p2345_p7 = scmp.ne.s32.totalorder %s316_s19, %s2344_s30 }
   0xc   : > { %p2352_p10 = scmp.lt.s32.totalorder %s316_s19, %s316_s19  ;;  %p2353_p11 = scmp.lt.s32.totalorder %s2351_s12, %s2344_s30 }
   0xd   : > { %p2581_p6 = pneg %p2571_p5 }
   0xe   : > { %p2354_p12 = por %p2353_p11, %p2352_p10 }
   0xf   : > { %p2347_p8 = pnand %p2345_p7, %p2581_p6 }
  0x11   : > { %p2348_p9 = pneg %p2347_p8 }
  0x13   : > { %p2355_p13 = pnand %p2354_p12, %p2348_p9 }
  0x15   : > { %2358 = shalt.err (!%p2355_p13)
}
  0x16   : > { %2261 = dma.hbm_to_vmem [thread:$0]  (!%p2571_p5), %s2904_s2, 16, %s316_s19, [#allocation5]  }
  0x17   : > { %s2370_s15 = scalar_lea.vmem %s2567_s23, 16  ;;  %s2377_s16 = scalar_lea.vmem %s2567_s23, 32 }
  0x18   : > { %p2371_p0 = scmp.ne.s32.totalorder %s2567_s23, %s2370_s15  ;;  %p2378_p7 = scmp.lt.s32.totalorder %s2567_s23, %s2567_s23 }
  0x19   : > { %p2379_p8 = scmp.lt.s32.totalorder %s2377_s16, %s2370_s15 }
  0x1a   : > { %p2373_p1 = pnand %p2371_p0, %p2581_p6 }
  0x1b   : > { %p2380_p9 = por %p2379_p8, %p2378_p7 }
  0x1c   : > { %p2374_p4 = pneg %p2373_p1 }
  0x1e   : > { %p2381_p10 = pnand %p2380_p9, %p2374_p4 }
  0x20   : > { %2384 = shalt.err (!%p2381_p10)
}
  0x21   : > { %2267 = dma.hbm_to_vmem [thread:$0]  (!%p2571_p5), %s2909_s7, 16, %s2567_s23, [#allocation8]  }
  0x22   : > { %s2396_s19 = scalar_lea.vmem %s2575_s25, 16  ;;  %s2403_s24 = scalar_lea.vmem %s2575_s25, 32 }
  0x23   : > { %p2397_p11 = scmp.ne.s32.totalorder %s2575_s25, %s2396_s19  ;;  %p2404_p0 = scmp.lt.s32.totalorder %s2575_s25, %s2575_s25 }
  0x24   : > { %p2405_p1 = scmp.lt.s32.totalorder %s2403_s24, %s2396_s19 }
  0x25   : > { %p2399_p12 = pnand %p2397_p11, %p2581_p6 }
  0x26   : > { %p2406_p4 = por %p2405_p1, %p2404_p0 }
  0x27   : > { %p2400_p13 = pneg %p2399_p12 }
  0x29   : > { %p2407_p7 = pnand %p2406_p4, %p2400_p13 }
  0x2b   : > { %2410 = shalt.err (!%p2407_p7)
}
  0x2c   : > { %2258 = dma.hbm_to_vmem [thread:$0]  (!%p2571_p5), %s2903_s1, 16, %s2575_s25, [#allocation3]  }
  0x2d   : > { %s2422_s23 = scalar_lea.vmem %s2577_s28, 16  ;;  %s2429_s12 = scalar_lea.vmem %s2577_s28, 32 }
  0x2e   : > { %p2423_p8 = scmp.ne.s32.totalorder %s2577_s28, %s2422_s23  ;;  %p2430_p11 = scmp.lt.s32.totalorder %s2577_s28, %s2577_s28 }
  0x2f   : > { %p2431_p12 = scmp.lt.s32.totalorder %s2429_s12, %s2422_s23 }
  0x30   : > { %p2425_p9 = pnand %p2423_p8, %p2581_p6 }
  0x31   : > { %p2432_p13 = por %p2431_p12, %p2430_p11 }
  0x32   : > { %p2426_p10 = pneg %p2425_p9 }
  0x34   : > { %p2433_p0 = pnand %p2432_p13, %p2426_p10 }
  0x36   : > { %2436 = shalt.err (!%p2433_p0)
}
  0x37   : > { %2264 = dma.hbm_to_vmem [thread:$0]  (!%p2571_p5), %s2906_s4, 16, %s2577_s28, [#allocation5]  }
  0x38   : > { %s2487_s25 = smov [#allocation9]  }
  0x39   : > { %s360_s15 = sshll.u32 %s2487_s25, 4  ;;  %s361_s15 = int_to_ptr.vmem [resolvable:$true] %s360_s15 }
  0x3a   : > { %s2448_s16 = scalar_lea.vmem %s361_s15, 16  ;;  %s2455_s18 = scalar_lea.vmem %s361_s15, 32 }
  0x3b   : > { %p2449_p1 = scmp.ne.s32.totalorder %s361_s15, %s2448_s16  ;;  %p2456_p8 = scmp.lt.s32.totalorder %s361_s15, %s361_s15 }
  0x3c   : > { %p2457_p9 = scmp.lt.s32.totalorder %s2455_s18, %s2448_s16 }
  0x3d   : > { %p2451_p4 = pnand %p2449_p1, %p2581_p6 }
  0x3e   : > { %p2458_p10 = por %p2457_p9, %p2456_p8 }
  0x3f   : > { %p2452_p7 = pneg %p2451_p4 }
  0x41   : > { %p2459_p11 = pnand %p2458_p10, %p2452_p7 }
  0x43   : > { %2462 = shalt.err (!%p2459_p11)
}
  0x44   : > { %2270 = dma.hbm_to_vmem [thread:$0]  (!%p2571_p5), %s2911_s9, 16, %s361_s15, [#allocation8]  }
  0x45   : > { %384 = sbr.rel (%p2561_p3) target bundleno = 1182 (0x49e), region = 64 }
  0x4a   : > { %2468 = dma.done.wait (%p2271_p2), [#allocation3], 16  }
  0x4b   : > { %2470 = vsyncadd (%p2271_p2), [#allocation3], 4294967280 }
  0x4c   : > { %2472 = dma.done.wait (%p2271_p2), [#allocation5], 32  }
  0x4d   : > { %2474 = vsyncadd (%p2271_p2), [#allocation5], 4294967264 }
  0x4e   : > { %2476 = dma.done.wait (%p2271_p2), [#allocation8], 32  }
  0x4f   : > { %2478 = vsyncadd (%p2271_p2), [#allocation8], 4294967264  ;;  %p440_p3 = scmp.lt.s32.totalorder %s2556_s20, 1  ;;  %v2488_v0 = vmov 0.0   ;;  %vm2489_vm0 = vmmov 0   ;;  %v2296_v1 = vld [vmem:[%s2905_s3 + $0x18] sm:$0xff]  }
  0x50   : > { %2077 = vmatprep.subr.bf16.mxu0 %v2488_v0  ;;  %2085 = vmatprep.mubr.msk.bf16.mxu0 %vm2489_vm0, %v2488_v0  ;;  %v2297_v2 = vld [vmem:[%s2905_s3 + $0x10] sm:$0xff]   ;;  %v2298_v3 = vld [vmem:[%s2905_s3 + $0x8] sm:$0xff]   ;;  %v1891_v5 = vld [vmem:[#allocation2] ss:$0 sm:$0xff]  ;;  %vm515_vm1 = vcmask 523264   ;;  %vm570_vm2 = vcmask 130048  }
  0x51   : > { %s2918_s20 = smov (!%p440_p3, %s2556_s20), 1  ;;  %2089 = vmatprep.subr.bf16.mxu1 %v2488_v0  ;;  %2091 = vmatprep.mubr.msk.bf16.mxu1 %vm2489_vm0, %v2488_v0  ;;  %v1892_v8 = vld [vmem:[#allocation4] ss:$0 sm:$0xff]  ;;  %v1893_v17 = vld [vmem:[#allocation6] ss:$0 sm:$0xff]  ;;  %v2301_v28 = vld [vmem:[%s2907_s5 + $0x8] sm:$0xff]  }
  0x52   : > { %s2006_s21 = sshll.u32 %s2918_s20, 3  ;;  %2078 = vmatpush3.bf16.msra.mxu0 %v2296_v1  ;;  %v2299_v11 = vld [vmem:[%s2905_s3] sm:$0xff]   ;;  %v2302_v29 = vld [vmem:[%s2908_s6 + $0x18] sm:$0xff]   ;;  %v2303_v30 = vld [vmem:[%s2908_s6 + $0x10] sm:$0xff]   ;;  %vm690_vm3 = vcmask 261120  }
  0x53   : > { %s444_s27 = scalar_lea.vmem %s2902_s0, %s2006_s21  ;;  %2079 = vmatprep.subr.bf16.mxu0 %v2488_v0  ;;  %v2300_v27 = vld [vmem:[%s2907_s5] sm:$0xff]   ;;  %v2304_v38 = vld [vmem:[%s2908_s6 + $0x8] sm:$0xff]   ;;  %v2306_v43 = vld [vmem:[%s2907_s5 + $0x10] sm:$0xff]   ;;  %s449_s19 = scalar_lea.vmem %s2913_s11, %s2006_s21 }
  0x54   : > { %v2011_v4 = vld [vmem:[%s444_s27] sm:$0xff]   ;;  %v2307_v44 = vld [vmem:[%s2907_s5 + $0x18] sm:$0xff]   ;;  %v2309_v46 = vld [vmem:[%s2907_s5 + $0x28] sm:$0xff]  }
  0x55   : > { %v2012_v6 = vunpack.c.l.bf16 %v2011_v4  ;;  %v2013_v7 = vunpack.c.h.bf16 %v2011_v4  ;;  %v2305_v41 = vld [vmem:[%s2908_s6] sm:$0xff]   ;;  %v2310_v47 = vld [vmem:[%s2907_s5 + $0x30] sm:$0xff]   ;;  %v2311_v48 = vld [vmem:[%s2907_s5 + $0x38] sm:$0xff]  }
  0x56   : > { %2080 = vmatpush3.bf16.msra.mxu0 %v2297_v2  ;;  %v2308_v45 = vld [vmem:[%s2907_s5 + $0x20] sm:$0xff]   ;;  %v2313_v50 = vld [vmem:[%s2908_s6 + $0x28] sm:$0xff]   ;;  %v2315_v2 = vld [vmem:[%s2908_s6 + $0x38] sm:$0xff]  }
  0x57   : > { %2081 = vmatprep.subr.bf16.mxu0 %v2488_v0  ;;  %v462_v9 = vmul.f32 %v2012_v6, %v1891_v5  ;;  %v463_v10 = vmul.f32 %v2013_v7, %v1891_v5  ;;  %v2312_v49 = vld [vmem:[%s2907_s5 + $0x40] sm:$0xff]   ;;  %v2316_v6 = vld [vmem:[%s2908_s6 + $0x30] sm:$0xff]  }
  0x58   : > { %v2314_v51 = vld [vmem:[%s2908_s6 + $0x20] sm:$0xff]  }
  0x59   : > { %v471_v12 = vadd.f32 %v1892_v8, %v462_v9  ;;  %v472_v13 = vadd.f32 %v1892_v8, %v463_v10  ;;  %v2317_v9 = vld [vmem:[%s2908_s6 + $0x48] sm:$0xff]  }
  0x5a   : > { %2082 = vmatpush3.bf16.msra.mxu0 %v2298_v3 }
  0x5b   : > { %2083 = vmatprep.subr.bf16.mxu0 %v2488_v0  ;;  %v473_v14 = vmax.f32 %v471_v12, 0.0  ;;  %v474_v15 = vmax.f32 %v472_v13, 0.0  ;;  %v2318_v13 = vld [vmem:[%s2908_s6 + $0x40] sm:$0xff]  }
  0x5d   : > { %v2683_v16 = vpack.c.bf16 %v474_v15, %v473_v14 }
  0x5e   : > { %2084 = vmatpush3.bf16.msra.mxu0 %v2299_v11 }
  0x5f   : > { %2123 = vmatprep.subr.bf16.mxu0 %v2488_v0 }
  0x61   : > { %2086 = vmatmul.mubr.msk.bf16.vlgmr.msra.gmra.mxu0 %vm515_vm1, %v2683_v16 }
  0x62   : > { %2127 = vmatprep.mubr.msk.bf16.mxu0 %vm2489_vm0, %v2488_v0  ;;  %2124 = vmatpush3.bf16.msra.mxu0 %v2313_v50  ;;  %v2330_v50 = vld [vmem:[%s2910_s8 + $0x8] sm:$0xff]  }
  0x63   : > { %2125 = vmatprep.subr.bf16.mxu0 %v2488_v0 }
  0x66   : > { %2126 = vmatpush3.bf16.msra.mxu0 %v2314_v51  ;;  %v2331_v51 = vld [vmem:[%s2912_s10] sm:$0xff]  }
  0x67   : > { %2137 = vmatprep.subr.bf16.mxu0 %v2488_v0 }
 0x121   : > { %v553_v18 = vpop.f32.mrf.mxu0 }
 0x122   : > { %v554_v20 = vadd.f32 %v1893_v17, %v553_v18 }
 0x123   : > { %v2087_v19 = vpop.f32.mrf.mxu0 }
 0x124   : > { %v560_v24 = vmax.f32 %v554_v20, 0.0 }
 0x125   : > { %v556_v21 = vpop.f32.mrf.mxu0 }
 0x126   : > { %v557_v22 = vadd.f32 %v1893_v17, %v556_v21  ;;  %v2319_v17 = vld [vmem:[%s2908_s6 + $0x58] sm:$0xff]   ;;  %v2320_v21 = vld [vmem:[%s2908_s6 + $0x50] sm:$0xff]  }
 0x127   : > { %v2088_v23 = vpop.f32.mrf.mxu0 }
 0x128   : > { %v561_v25 = vmax.f32 %v557_v22, 0.0 }
 0x12a   : > { %v2690_v26 = vpack.c.bf16 %v561_v25, %v560_v24  ;;  %v2321_v24 = vld [vmem:[%s2908_s6 + $0x68] sm:$0xff]  }
 0x12c   : > { %2090 = vmatpush3.bf16.msra.mxu1 %v2690_v26 }
 0x12d   : > { %2095 = vmatprep.subr.bf16.mxu1 %v2488_v0 }
 0x12f   : > { %2092 = vmatmul.mubr.msk.bf16.vlgmr.msra.gmra.mxu1 %vm570_vm2, %v2300_v27 }
 0x130   : > { %2096 = vmatpush3.bf16.msra.mxu1 %v2690_v26  ;;  %2097 = vmatprep.mubr.msk.bf16.mxu1 %vm2489_vm0, %v2488_v0 }
 0x131   : > { %2101 = vmatprep.subr.bf16.mxu1 %v2488_v0 }
 0x137   : > { %2098 = vmatmul.mubr.msk.bf16.vlgmr.msra.gmra.mxu1 %vm570_vm2, %v2301_v28  ;;  %v2322_v28 = vld [vmem:[%s2908_s6 + $0x60] sm:$0xff]  }
 0x138   : > { %2105 = vmatprep.mubr.msk.bf16.mxu1 %vm2489_vm0, %v2488_v0  ;;  %2102 = vmatpush3.bf16.msra.mxu1 %v2302_v29 }
 0x139   : > { %2103 = vmatprep.subr.bf16.mxu1 %v2488_v0 }
 0x13c   : > { %2104 = vmatpush3.bf16.msra.mxu1 %v2303_v30 }
 0x13d   : > { %2109 = vmatprep.subr.bf16.mxu1 %v2488_v0 }
 0x1ef   : > { %v608_v31 = vpop.f32.mrf.mxu1 }
 0x1f1   : > { %v2093_v32 = vpop.f32.mrf.mxu1 }
 0x1f3   : > { %v611_v33 = vpop.f32.mrf.mxu1 }
 0x1f4   : > { %v615_v42 = vpack.c.bf16 %v611_v33, %v608_v31  ;;  %v2323_v31 = vld [vmem:[%s2908_s6 + $0x78] sm:$0xff]  }
 0x1f5   : > { %v2094_v34 = vpop.f32.mrf.mxu1 }
 0x1f7   : > { %v665_v35 = vpop.f32.mrf.mxu1 }
 0x1f9   : > { %v2099_v36 = vpop.f32.mrf.mxu1 }
 0x1fb   : > { %v668_v37 = vpop.f32.mrf.mxu1 }
 0x1fc   : > { %v672_v39 = vpack.c.bf16 %v668_v37, %v665_v35  ;;  %v2324_v35 = vld [vmem:[%s2908_s6 + $0x70] sm:$0xff]  }
 0x1fd   : > { %v2100_v40 = vpop.f32.mrf.mxu1 }
 0x1fe   : > { %2106 = vmatmul.mubr.msk.bf16.vlgmr.msra.gmra.mxu1 %vm690_vm3, %v672_v39 }
 0x1ff   : > { %2110 = vmatpush3.bf16.msra.mxu1 %v2304_v38  ;;  %2113 = vmatprep.mubr.msk.bf16.mxu1 %vm2489_vm0, %v2488_v0  ;;  %v2325_v38 = vld [vmem:[%s2908_s6 + $0x88] sm:$0xff]  }
 0x200   : > { %2111 = vmatprep.subr.bf16.mxu1 %v2488_v0 }
 0x203   : > { %2112 = vmatpush3.bf16.msra.mxu1 %v2305_v41 }
 0x204   : > { %2117 = vmatprep.subr.bf16.mxu1 %v2488_v0 }
 0x206   : > { %2114 = vmatmul.mubr.msk.bf16.vlgmr.msra.gmra.mxu1 %vm690_vm3, %v615_v42  ;;  %v2326_v42 = vld [vmem:[%s2908_s6 + $0x80] sm:$0xff]  }
 0x207   : > { %2118 = vmatpush3.bf16.msra.mxu1 %v2690_v26  ;;  %2119 = vmatprep.mubr.msk.bf16.mxu1 %vm2489_vm0, %v2488_v0 }
 0x208   : > { %2131 = vmatprep.subr.bf16.mxu1 %v2488_v0 }
 0x20e   : > { %2120 = vmatmul.mubr.msk.bf16.vlgmr.msra.gmra.mxu1 %vm570_vm2, %v2306_v43 }
 0x20f   : > { %2132 = vmatpush3.bf16.msra.mxu1 %v2690_v26  ;;  %2133 = vmatprep.mubr.msk.bf16.mxu1 %vm2489_vm0, %v2488_v0 }
 0x210   : > { %2145 = vmatprep.subr.bf16.mxu1 %v2488_v0 }
 0x216   : > { %2134 = vmatmul.mubr.msk.bf16.vlgmr.msra.gmra.mxu1 %vm570_vm2, %v2307_v44 }
 0x217   : > { %2146 = vmatpush3.bf16.msra.mxu1 %v2690_v26  ;;  %2147 = vmatprep.mubr.msk.bf16.mxu1 %vm2489_vm0, %v2488_v0 }
 0x218   : > { %2159 = vmatprep.subr.bf16.mxu1 %v2488_v0 }
 0x21e   : > { %2148 = vmatmul.mubr.msk.bf16.vlgmr.msra.gmra.mxu1 %vm570_vm2, %v2308_v45 }
 0x21f   : > { %2160 = vmatpush3.bf16.msra.mxu1 %v2690_v26  ;;  %2161 = vmatprep.mubr.msk.bf16.mxu1 %vm2489_vm0, %v2488_v0 }
 0x220   : > { %2173 = vmatprep.subr.bf16.mxu1 %v2488_v0 }
 0x226   : > { %2162 = vmatmul.mubr.msk.bf16.vlgmr.msra.gmra.mxu1 %vm570_vm2, %v2309_v46 }
 0x227   : > { %2174 = vmatpush3.bf16.msra.mxu1 %v2690_v26  ;;  %2175 = vmatprep.mubr.msk.bf16.mxu1 %vm2489_vm0, %v2488_v0 }
 0x228   : > { %2187 = vmatprep.subr.bf16.mxu1 %v2488_v0 }
 0x22e   : > { %2176 = vmatmul.mubr.msk.bf16.vlgmr.msra.gmra.mxu1 %vm570_vm2, %v2310_v47  ;;  %v2327_v47 = vld [vmem:[%s2912_s10 + $0x18] sm:$0xff]  }
 0x22f   : > { %2188 = vmatpush3.bf16.msra.mxu1 %v2690_v26  ;;  %2189 = vmatprep.mubr.msk.bf16.mxu1 %vm2489_vm0, %v2488_v0 }
 0x230   : > { %2201 = vmatprep.subr.bf16.mxu1 %v2488_v0 }
 0x236   : > { %2190 = vmatmul.mubr.msk.bf16.vlgmr.msra.gmra.mxu1 %vm570_vm2, %v2311_v48  ;;  %v2328_v48 = vld [vmem:[%s2912_s10 + $0x10] sm:$0xff]  }
 0x237   : > { %2202 = vmatpush3.bf16.msra.mxu1 %v2690_v26  ;;  %2203 = vmatprep.mubr.msk.bf16.mxu1 %vm2489_vm0, %v2488_v0 }
 0x238   : > { %2215 = vmatprep.subr.bf16.mxu1 %v2488_v0 }
 0x23e   : > { %2204 = vmatmul.mubr.msk.bf16.vlgmr.msra.gmra.mxu1 %vm570_vm2, %v2312_v49  ;;  %v2329_v49 = vld [vmem:[%s2912_s10 + $0x8] sm:$0xff]  }
 0x23f   : > { %2219 = vmatprep.mubr.msk.bf16.mxu1 %vm2489_vm0, %v2488_v0  ;;  %2216 = vmatpush3.bf16.msra.mxu1 %v2330_v50 }
 0x240   : > { %2217 = vmatprep.subr.bf16.mxu1 %v2488_v0 }
 0x2be   : > { %v728_v52 = vpop.f32.mrf.mxu1 }
 0x2c0   : > { %v2107_v53 = vpop.f32.mrf.mxu1 }
 0x2c2   : > { %v731_v54 = vpop.f32.mrf.mxu1 }
 0x2c4   : > { %v2108_v55 = vpop.f32.mrf.mxu1 }
 0x2c6   : > { %v784_v56 = vpop.f32.mrf.mxu1 }
 0x2c7   : > { %v2794_v57 = vadd.f32 %v784_v56, %v728_v52  ;;  %v2332_v52 = vld [vmem:[%s2910_s8] sm:$0xff]  }
 0x2c8   : > { %v2115_v58 = vpop.f32.mrf.mxu1  ;;  %2218 = vmatpush3.bf16.msra.mxu1 %v2332_v52 }
 0x2ca   : > { %v787_v59 = vpop.f32.mrf.mxu1 }
 0x2cb   : > { %v2796_v60 = vadd.f32 %v787_v59, %v731_v54 }
 0x2cc   : > { %v2116_v61 = vpop.f32.mrf.mxu1 }
 0x2ce   : > { %v836_v62 = vpop.f32.mrf.mxu1 }
 0x2d0   : > { %v2121_v63 = vpop.f32.mrf.mxu1 }
 0x2d2   : > { %v839_v1 = vpop.f32.mrf.mxu1 }
 0x2d3   : > { %v843_v3 = vpack.c.bf16 %v839_v1, %v836_v62 }
 0x2d4   : > { %v2122_v4 = vpop.f32.mrf.mxu1 }
 0x2d5   : > { %2128 = vmatmul.mubr.msk.bf16.vlgmr.msra.gmra.mxu0 %vm690_vm3, %v843_v3 }
 0x2d6   : > { %v952_v5 = vpop.f32.mrf.mxu1  ;;  %2138 = vmatpush3.bf16.msra.mxu0 %v2315_v2  ;;  %2141 = vmatprep.mubr.msk.bf16.mxu0 %vm2489_vm0, %v2488_v0 }
 0x2d7   : > { %2139 = vmatprep.subr.bf16.mxu0 %v2488_v0 }
 0x2d8   : > { %v2135_v7 = vpop.f32.mrf.mxu1 }
 0x2da   : > { %v955_v8 = vpop.f32.mrf.mxu1  ;;  %2140 = vmatpush3.bf16.msra.mxu0 %v2316_v6 }
 0x2db   : > { %v959_v10 = vpack.c.bf16 %v955_v8, %v952_v5  ;;  %2151 = vmatprep.subr.bf16.mxu0 %v2488_v0 }
 0x2dc   : > { %v2136_v11 = vpop.f32.mrf.mxu1 }
 0x2dd   : > { %2142 = vmatmul.mubr.msk.bf16.vlgmr.msra.gmra.mxu0 %vm690_vm3, %v959_v10 }
 0x2de   : > { %v1068_v12 = vpop.f32.mrf.mxu1  ;;  %2152 = vmatpush3.bf16.msra.mxu0 %v2317_v9  ;;  %2155 = vmatprep.mubr.msk.bf16.mxu0 %vm2489_vm0, %v2488_v0 }
 0x2df   : > { %2153 = vmatprep.subr.bf16.mxu0 %v2488_v0 }
 0x2e0   : > { %v2149_v14 = vpop.f32.mrf.mxu1 }
 0x2e2   : > { %v1071_v15 = vpop.f32.mrf.mxu1  ;;  %2154 = vmatpush3.bf16.msra.mxu0 %v2318_v13 }
 0x2e3   : > { %v1075_v18 = vpack.c.bf16 %v1071_v15, %v1068_v12  ;;  %2165 = vmatprep.subr.bf16.mxu0 %v2488_v0 }
 0x2e4   : > { %v2150_v19 = vpop.f32.mrf.mxu1 }
 0x2e5   : > { %2156 = vmatmul.mubr.msk.bf16.vlgmr.msra.gmra.mxu0 %vm690_vm3, %v1075_v18 }
 0x2e6   : > { %v1184_v20 = vpop.f32.mrf.mxu1  ;;  %2166 = vmatpush3.bf16.msra.mxu0 %v2319_v17  ;;  %2169 = vmatprep.mubr.msk.bf16.mxu0 %vm2489_vm0, %v2488_v0 }
 0x2e7   : > { %2167 = vmatprep.subr.bf16.mxu0 %v2488_v0 }
 0x2e8   : > { %v2163_v22 = vpop.f32.mrf.mxu1 }
 0x2ea   : > { %v1187_v23 = vpop.f32.mrf.mxu1  ;;  %2168 = vmatpush3.bf16.msra.mxu0 %v2320_v21 }
 0x2eb   : > { %v1191_v25 = vpack.c.bf16 %v1187_v23, %v1184_v20  ;;  %2179 = vmatprep.subr.bf16.mxu0 %v2488_v0 }
 0x2ec   : > { %v2164_v26 = vpop.f32.mrf.mxu1 }
 0x2ed   : > { %2170 = vmatmul.mubr.msk.bf16.vlgmr.msra.gmra.mxu0 %vm690_vm3, %v1191_v25 }
 0x2ee   : > { %v1300_v27 = vpop.f32.mrf.mxu1  ;;  %2180 = vmatpush3.bf16.msra.mxu0 %v2321_v24  ;;  %2183 = vmatprep.mubr.msk.bf16.mxu0 %vm2489_vm0, %v2488_v0 }
 0x2ef   : > { %2181 = vmatprep.subr.bf16.mxu0 %v2488_v0 }
 0x2f0   : > { %v2177_v29 = vpop.f32.mrf.mxu1 }
 0x2f2   : > { %v1303_v30 = vpop.f32.mrf.mxu1  ;;  %2182 = vmatpush3.bf16.msra.mxu0 %v2322_v28  ;;  %v1992_v28 = vld [vmem:[#allocation7] ss:$0 sm:$0xff] }
 0x2f3   : > { %v1307_v32 = vpack.c.bf16 %v1303_v30, %v1300_v27  ;;  %2193 = vmatprep.subr.bf16.mxu0 %v2488_v0 }
 0x2f4   : > { %v2178_v33 = vpop.f32.mrf.mxu1 }
 0x2f5   : > { %2184 = vmatmul.mubr.msk.bf16.vlgmr.msra.gmra.mxu0 %vm690_vm3, %v1307_v32 }
 0x2f6   : > { %v1416_v34 = vpop.f32.mrf.mxu1  ;;  %2194 = vmatpush3.bf16.msra.mxu0 %v2323_v31  ;;  %2197 = vmatprep.mubr.msk.bf16.mxu0 %vm2489_vm0, %v2488_v0 }
 0x2f7   : > { %2195 = vmatprep.subr.bf16.mxu0 %v2488_v0 }
 0x2f8   : > { %v2191_v36 = vpop.f32.mrf.mxu1 }
 0x2fa   : > { %v1419_v37 = vpop.f32.mrf.mxu1  ;;  %2196 = vmatpush3.bf16.msra.mxu0 %v2324_v35 }
 0x2fb   : > { %v1423_v39 = vpack.c.bf16 %v1419_v37, %v1416_v34  ;;  %2207 = vmatprep.subr.bf16.mxu0 %v2488_v0 }
 0x2fc   : > { %v2192_v40 = vpop.f32.mrf.mxu1 }
 0x2fd   : > { %2198 = vmatmul.mubr.msk.bf16.vlgmr.msra.gmra.mxu0 %vm690_vm3, %v1423_v39 }
 0x2fe   : > { %v1532_v41 = vpop.f32.mrf.mxu1  ;;  %2208 = vmatpush3.bf16.msra.mxu0 %v2325_v38  ;;  %2211 = vmatprep.mubr.msk.bf16.mxu0 %vm2489_vm0, %v2488_v0 }
 0x2ff   : > { %2209 = vmatprep.subr.bf16.mxu0 %v2488_v0 }
 0x300   : > { %v2205_v43 = vpop.f32.mrf.mxu1 }
 0x302   : > { %v1535_v44 = vpop.f32.mrf.mxu1  ;;  %2210 = vmatpush3.bf16.msra.mxu0 %v2326_v42 }
 0x303   : > { %v1539_v45 = vpack.c.bf16 %v1535_v44, %v1532_v41  ;;  %2223 = vmatprep.subr.bf16.mxu0 %v2488_v0  ;;  %v1993_v41 = vld [vmem:[#allocation9] ss:$0 sm:$0xff] }
 0x304   : > { %v2206_v46 = vpop.f32.mrf.mxu1 }
 0x305   : > { %2212 = vmatmul.mubr.msk.bf16.vlgmr.msra.gmra.mxu0 %vm690_vm3, %v1539_v45 }
 0x306   : > { %2231 = vmatprep.mubr.msk.bf16.mxu0 %vm2489_vm0, %v2488_v0  ;;  %2224 = vmatpush3.bf16.msra.mxu0 %v2327_v47 }
 0x307   : > { %2225 = vmatprep.subr.bf16.mxu0 %v2488_v0 }
 0x30a   : > { %2226 = vmatpush3.bf16.msra.mxu0 %v2328_v48 }
 0x30b   : > { %2227 = vmatprep.subr.bf16.mxu0 %v2488_v0 }
 0x30e   : > { %2228 = vmatpush3.bf16.msra.mxu0 %v2329_v49 }
 0x30f   : > { %2229 = vmatprep.subr.bf16.mxu0 %v2488_v0 }
 0x312   : > { %2230 = vmatpush3.bf16.msra.mxu0 %v2331_v51 }
 0x315   : > { %2232 = vmatmul.mubr.msk.bf16.vlgmr.msra.gmra.mxu0 %vm515_vm1, %v2683_v16 }
 0x395   : > { %v898_v53 = vpop.f32.mrf.mxu0 }
 0x396   : > { %v905_v9 = vadd.f32 %v898_v53, %v2794_v57 }
 0x397   : > { %v2129_v54 = vpop.f32.mrf.mxu0 }
 0x399   : > { %v901_v55 = vpop.f32.mrf.mxu0 }
 0x39a   : > { %v906_v13 = vadd.f32 %v901_v55, %v2796_v60 }
 0x39b   : > { %v2130_v56 = vpop.f32.mrf.mxu0 }
 0x39d   : > { %v1014_v58 = vpop.f32.mrf.mxu0 }
 0x39e   : > { %v1021_v11 = vadd.f32 %v1014_v58, %v905_v9 }
 0x39f   : > { %v2143_v59 = vpop.f32.mrf.mxu0 }
 0x3a1   : > { %v1017_v61 = vpop.f32.mrf.mxu0 }
 0x3a2   : > { %v1022_v17 = vadd.f32 %v1017_v61, %v906_v13 }
 0x3a3   : > { %v2144_v62 = vpop.f32.mrf.mxu0 }
 0x3a5   : > { %v1130_v63 = vpop.f32.mrf.mxu0 }
 0x3a6   : > { %v1137_v14 = vadd.f32 %v1130_v63, %v1021_v11 }
 0x3a7   : > { %v2157_v1 = vpop.f32.mrf.mxu0 }
 0x3a9   : > { %v1133_v2 = vpop.f32.mrf.mxu0 }
 0x3aa   : > { %v1138_v20 = vadd.f32 %v1133_v2, %v1022_v17 }
 0x3ab   : > { %v2158_v0 = vpop.f32.mrf.mxu0 }
 0x3ad   : > { %v1246_v3 = vpop.f32.mrf.mxu0 }
 0x3ae   : > { %v1253_v18 = vadd.f32 %v1246_v3, %v1137_v14 }
 0x3af   : > { %v2171_v4 = vpop.f32.mrf.mxu0 }
 0x3b1   : > { %v1249_v5 = vpop.f32.mrf.mxu0 }
 0x3b2   : > { %v1254_v23 = vadd.f32 %v1249_v5, %v1138_v20 }
 0x3b3   : > { %v2172_v6 = vpop.f32.mrf.mxu0 }
 0x3b5   : > { %v1362_v7 = vpop.f32.mrf.mxu0 }
 0x3b6   : > { %v1369_v21 = vadd.f32 %v1362_v7, %v1253_v18 }
 0x3b7   : > { %v2185_v8 = vpop.f32.mrf.mxu0 }
 0x3b9   : > { %v1365_v16 = vpop.f32.mrf.mxu0 }
 0x3ba   : > { %v1370_v26 = vadd.f32 %v1365_v16, %v1254_v23 }
 0x3bb   : > { %v2186_v10 = vpop.f32.mrf.mxu0 }
 0x3bd   : > { %v1478_v12 = vpop.f32.mrf.mxu0 }
 0x3be   : > { %v1485_v24 = vadd.f32 %v1478_v12, %v1369_v21 }
 0x3bf   : > { %v2199_v15 = vpop.f32.mrf.mxu0 }
 0x3c1   : > { %v1481_v19 = vpop.f32.mrf.mxu0 }
 0x3c2   : > { %v1486_v29 = vadd.f32 %v1481_v19, %v1370_v26 }
 0x3c3   : > { %v2200_v22 = vpop.f32.mrf.mxu0 }
 0x3c5   : > { %v1594_v25 = vpop.f32.mrf.mxu0 }
 0x3c6   : > { %v1601_v27 = vadd.f32 %v1594_v25, %v1485_v24 }
 0x3c7   : > { %v2213_v57 = vpop.f32.mrf.mxu0 }
 0x3c8   : > { %v1610_v31 = vadd.f32 %v1992_v28, %v1601_v27 }
 0x3c9   : > { %v1597_v30 = vpop.f32.mrf.mxu0 }
 0x3ca   : > { %v1602_v32 = vadd.f32 %v1597_v30, %v1486_v29  ;;  %v1612_v34 = vmax.f32 %v1610_v31, 0.0 }
 0x3cb   : > { %v2214_v60 = vpop.f32.mrf.mxu0 }
 0x3cc   : > { %v1611_v33 = vadd.f32 %v1992_v28, %v1602_v32 }
 0x3ce   : > { %v1613_v35 = vmax.f32 %v1611_v33, 0.0 }
 0x3d0   : > { %v1614_v36 = vpack.c.bf16 %v1613_v35, %v1612_v34 }
 0x3d2   : > { %2220 = vmatmul.mubr.msk.bf16.vlgmr.msra.gmra.mxu1 %vm690_vm3, %v1614_v36 }
 0x3d5   : > { %v1748_v37 = vpop.f32.mrf.mxu0 }
 0x3d7   : > { %v2233_v38 = vpop.f32.mrf.mxu0 }
 0x3d9   : > { %v1751_v39 = vpop.f32.mrf.mxu0 }
 0x3db   : > { %v2234_v40 = vpop.f32.mrf.mxu0 }
 0x492   : > { %v1675_v42 = vpop.f32.mrf.mxu1 }
 0x493   : > { %v1676_v44 = vadd.f32 %v1993_v41, %v1675_v42 }
 0x494   : > { %v2221_v43 = vpop.f32.mrf.mxu1 }
 0x495   : > { %v1755_v48 = vadd.f32 %v1748_v37, %v1676_v44 }
 0x496   : > { %v1678_v45 = vpop.f32.mrf.mxu1 }
 0x497   : > { %v1679_v46 = vadd.f32 %v1993_v41, %v1678_v45 }
 0x498   : > { %v2222_v47 = vpop.f32.mrf.mxu1 }
 0x499   : > { %v1756_v49 = vadd.f32 %v1751_v39, %v1679_v46 }
 0x49b   : > { %v2017_v50 = vpack.c.bf16 %v1756_v49, %v1755_v48 }
 0x49d   : > { %2018 = vst [vmem:[%s449_s19] sm:$0xff] %v2017_v50  }
 0x49e PF: > { %s24_s17 = sadd.s32 1, %s2481_s17  }
 0x49f   : > { %p21_p2 = scmp.ge.s32.totalorder %s24_s17, 4  }
 0x4a1   :  { %23 = sbr.rel (!%p21_p2) target bundleno = 3 (0x3), region = 131 }
 0x4a6   :  { %1788 = vsyncpa [#allocation3], 1 }
 0x4a7   :  { %1790 = vsyncpa [#allocation3 + $0x1], 1 }
 0x4a8   :  { %1791 = vsyncpa [#allocation5], 1 }
 0x4a9   :  { %1792 = vsyncpa [#allocation8], 1 }

// kernel: resnet18v2_forward.16
= control target key start
LH: loop header
LB: loop body
LE: loop exit
PB: predicated region body
PF: predicated region fallthrough
CT: control target
= control target key end

     0   :  { %16 = vsyncpa [#allocation3], 0  ;;  %s2400_s0 = inlined_call_operand.vmem [shape: bf16[2,4,256], index: 0, kind: input, shape index: {}]   ;;  %s2401_s1 = inlined_call_operand.hbm [shape: f32[1,256], index: 1, kind: input, shape index: {}]   ;;  %s2402_s2 = inlined_call_operand.hbm [shape: f32[1,256], index: 2, kind: input, shape index: {}]   ;;  %s2403_s3 = inlined_call_operand.vmem [shape: bf16[256,64], index: 3, kind: input, shape index: {}]   ;;  %s2404_s4 = inlined_call_operand.hbm [shape: f32[1,64], index: 4, kind: input, shape index: {}]   ;;  %s2405_s5 = inlined_call_operand.vmem [shape: bf16[4,1,4], index: 5, kind: input, shape index: {}]   ;;  %s2406_s6 = inlined_call_operand.vmem [shape: bf16[4,64,64], index: 6, kind: input, shape index: {}]   ;;  %s2407_s7 = inlined_call_operand.hbm [shape: f32[1,64], index: 7, kind: input, shape index: {}]   ;;  %s2408_s8 = inlined_call_operand.vmem [shape: bf16[64,256], index: 8, kind: input, shape index: {}]   ;;  %s2409_s9 = inlined_call_operand.hbm [shape: f32[1,256], index: 9, kind: input, shape index: {}]   ;;  %s2410_s10 = inlined_call_operand.hbm [shape: bf16[1,4], index: 10, kind: input, shape index: {}]   ;;  %s2411_s11 = inlined_call_operand.vmem [shape: bf16[2,1,256], index: 11, kind: output, shape index: {}]  }
   0x1   :  { %17 = vsyncpa [#allocation5], 0 }
   0x2   :  { %18 = vsyncpa [#allocation8], 0 }
   0x3   :  { %19 = vsyncpa [#allocation11], 0  ;;  %s2063_s17 = smov 0  }
   0x4 LB: > { %s1993_s18 = smov [#allocation4]   ;;  %s2069_s20 = sadd.s32 4294967295, %s1991_s17   ;;  %s1991_s17 = sphi %s2063_s17, %s25_s17  }
   0x5   : > { %s316_s19 = sshll.u32 %s1993_s18, 4  ;;  %p1473_p0 = scmp.ge.s32.totalorder %s1991_s17, 1  ;;  %s317_s19 = int_to_ptr.vmem [resolvable:$true] %s316_s19 }
   0x6   : > { %p292_p1 = scmp.lt.s32.totalorder %s1991_s17, 3  ;;  %p2412_p2 = scmp.eq.s32.totalorder %s2069_s20, 0 }
   0x7   : > { %s1994_s22 = smov [#allocation7]   ;;  %s1995_s24 = smov [#allocation2]  }
   0x8   : > { %p2074_p3 = pnand %p1473_p0, %p292_p1  ;;  %s347_s23 = sshll.u32 %s1994_s22, 4  ;;  %s2080_s23 = int_to_ptr.vmem [resolvable:$true] %s347_s23 }
   0x9   : > { %s305_s25 = sshll.u32 %s1995_s24, 4  ;;  %s1996_s27 = smov [#allocation6]   ;;  %s2088_s25 = int_to_ptr.vmem [resolvable:$true] %s305_s25 }
   0xa   : > { %p1720_p4 = pneg %p2074_p3  ;;  %s330_s28 = sshll.u32 %s1996_s27, 4  ;;  %s2090_s28 = int_to_ptr.vmem [resolvable:$true] %s330_s28 }
   0xb   : > { %s1824_s30 = scalar_lea.vmem %s317_s19, 32  ;;  %p1832_p10 = scmp.lt.s32.totalorder %s317_s19, %s317_s19 }
   0xc   : > { %p2084_p5 = pnand %p2412_p2, %p1720_p4  ;;  %p1825_p7 = scmp.ne.s32.totalorder %s317_s19, %s1824_s30 }
   0xd   : > { %p1833_p11 = scmp.lt.s32.totalorder %s1824_s30, %s1824_s30 }
   0xe   : > { %p2094_p6 = pneg %p2084_p5 }
   0xf   : > { %p1834_p12 = por %p1833_p11, %p1832_p10 }
  0x10   : > { %p1827_p8 = pnand %p1825_p7, %p2094_p6 }
  0x12   : > { %p1828_p9 = pneg %p1827_p8 }
  0x14   : > { %p1835_p13 = pnand %p1834_p12, %p1828_p9 }
  0x16   : > { %1838 = shalt.err (!%p1835_p13)
}
  0x17   : > { %1726 = dma.hbm_to_vmem [thread:$0]  (!%p2084_p5), %s2402_s2, 32, %s317_s19, [#allocation5]  }
  0x18   : > { %s1850_s14 = scalar_lea.vmem %s2080_s23, 16  ;;  %s1857_s15 = scalar_lea.vmem %s2080_s23, 32 }
  0x19   : > { %p1851_p0 = scmp.ne.s32.totalorder %s2080_s23, %s1850_s14  ;;  %p1858_p7 = scmp.lt.s32.totalorder %s2080_s23, %s2080_s23 }
  0x1a   : > { %p1859_p8 = scmp.lt.s32.totalorder %s1857_s15, %s1850_s14 }
  0x1b   : > { %p1853_p1 = pnand %p1851_p0, %p2094_p6 }
  0x1c   : > { %p1860_p9 = por %p1859_p8, %p1858_p7 }
  0x1d   : > { %p1854_p4 = pneg %p1853_p1 }
  0x1f   : > { %p1861_p10 = pnand %p1860_p9, %p1854_p4 }
  0x21   : > { %1864 = shalt.err (!%p1861_p10)
}
  0x22   : > { %1732 = dma.hbm_to_vmem [thread:$0]  (!%p2084_p5), %s2407_s7, 16, %s2080_s23, [#allocation8]  }
  0x23   : > { %s1876_s19 = scalar_lea.vmem %s2088_s25, 32  ;;  %p1884_p0 = scmp.lt.s32.totalorder %s2088_s25, %s2088_s25 }
  0x24   : > { %p1877_p11 = scmp.ne.s32.totalorder %s2088_s25, %s1876_s19  ;;  %p1885_p1 = scmp.lt.s32.totalorder %s1876_s19, %s1876_s19 }
  0x26   : > { %p1879_p12 = pnand %p1877_p11, %p2094_p6  ;;  %p1886_p4 = por %p1885_p1, %p1884_p0 }
  0x28   : > { %p1880_p13 = pneg %p1879_p12 }
  0x2a   : > { %p1887_p7 = pnand %p1886_p4, %p1880_p13 }
  0x2c   : > { %1890 = shalt.err (!%p1887_p7)
}
  0x2d   : > { %1723 = dma.hbm_to_vmem [thread:$0]  (!%p2084_p5), %s2401_s1, 32, %s2088_s25, [#allocation3]  }
  0x2e   : > { %s1902_s23 = scalar_lea.vmem %s2090_s28, 16  ;;  %s1909_s27 = scalar_lea.vmem %s2090_s28, 32 }
  0x2f   : > { %p1903_p8 = scmp.ne.s32.totalorder %s2090_s28, %s1902_s23  ;;  %p1910_p11 = scmp.lt.s32.totalorder %s2090_s28, %s2090_s28 }
  0x30   : > { %p1911_p12 = scmp.lt.s32.totalorder %s1909_s27, %s1902_s23 }
  0x31   : > { %p1905_p9 = pnand %p1903_p8, %p2094_p6 }
  0x32   : > { %p1912_p13 = por %p1911_p12, %p1910_p11 }
  0x33   : > { %p1906_p10 = pneg %p1905_p9 }
  0x35   : > { %p1913_p0 = pnand %p1912_p13, %p1906_p10 }
  0x37   : > { %1916 = shalt.err (!%p1913_p0)
}
  0x38   : > { %1729 = dma.hbm_to_vmem [thread:$0]  (!%p2084_p5), %s2404_s4, 16, %s2090_s28, [#allocation5]  }
  0x39   : > { %s1997_s25 = smov [#allocation9]   ;;  %s1998_s14 = smov [#allocation10]  }
  0x3a   : > { %s361_s13 = sshll.u32 %s1997_s25, 4  ;;  %s372_s15 = sshll.u32 %s1998_s14, 4  ;;  %s362_s13 = int_to_ptr.vmem [resolvable:$true] %s361_s13  ;;  %s373_s15 = int_to_ptr.vmem [resolvable:$true] %s372_s15 }
  0x3b   : > { %s1928_s16 = scalar_lea.vmem %s362_s13, 32  ;;  %p1936_p8 = scmp.lt.s32.totalorder %s362_s13, %s362_s13 }
  0x3c   : > { %p1929_p1 = scmp.ne.s32.totalorder %s362_s13, %s1928_s16  ;;  %p1937_p9 = scmp.lt.s32.totalorder %s1928_s16, %s1928_s16 }
  0x3e   : > { %p1931_p4 = pnand %p1929_p1, %p2094_p6  ;;  %p1938_p10 = por %p1937_p9, %p1936_p8 }
  0x40   : > { %p1932_p7 = pneg %p1931_p4 }
  0x42   : > { %p1939_p11 = pnand %p1938_p10, %p1932_p7 }
  0x44   : > { %1942 = shalt.err (!%p1939_p11)
}
  0x45   : > { %1735 = dma.hbm_to_vmem [thread:$0]  (!%p2084_p5), %s2409_s9, 32, %s362_s13, [#allocation8]  }
  0x46   : > { %s1954_s28 = scalar_lea.vmem %s373_s15, 16  ;;  %s1961_s22 = scalar_lea.vmem %s373_s15, 32 }
  0x47   : > { %p1955_p12 = scmp.ne.s32.totalorder %s373_s15, %s1954_s28  ;;  %p1962_p1 = scmp.lt.s32.totalorder %s373_s15, %s373_s15 }
  0x48   : > { %p1963_p4 = scmp.lt.s32.totalorder %s1961_s22, %s1954_s28 }
  0x49   : > { %p1957_p13 = pnand %p1955_p12, %p2094_p6 }
  0x4a   : > { %p1964_p2 = por %p1963_p4, %p1962_p1 }
  0x4b   : > { %p1958_p0 = pneg %p1957_p13 }
  0x4d   : > { %p1965_p8 = pnand %p1964_p2, %p1958_p0 }
  0x4f   : > { %1968 = shalt.err (!%p1965_p8)
}
  0x50   : > { %1738 = dma.hbm_to_vmem [thread:$0]  (!%p2084_p5), %s2410_s10, 16, %s373_s15, [#allocation11]  }
  0x51   : > { %393 = sbr.rel (%p2074_p3) target bundleno = 1167 (0x48f), region = 64  ;;  %p2416_p7 = scmp.eq.s32.totalorder (!%p2074_p3), %s2069_s20, 0 }
  0x56   : > { %1974 = dma.done.wait (%p2416_p7), [#allocation3], 32   ;;  %p2417_p6 = pmov %p2416_p7 }
  0x58   : > { %1976 = vsyncadd (%p2417_p6), [#allocation3], 4294967264  ;;  %p2418_p9 = pmov %p2417_p6 }
  0x59   : > { %p2419_p2 = pmov %p2417_p6 }
  0x5a   : > { %1978 = dma.done.wait (%p2418_p9), [#allocation5], 48  }
  0x5b   : > { %1980 = vsyncadd (%p2419_p2), [#allocation5], 4294967248  ;;  %p2420_p10 = pmov %p2419_p2 }
  0x5c   : > { %p2421_p5 = pmov %p2419_p2 }
  0x5d   : > { %1982 = dma.done.wait (%p2420_p10), [#allocation8], 48  }
  0x5e   : > { %1984 = vsyncadd (%p2421_p5), [#allocation8], 4294967248  ;;  %p2422_p3 = pmov %p2419_p2 }
  0x5f   : > { %p2423_p11 = pmov %p2419_p2 }
  0x60   : > { %1986 = dma.done.wait (%p2422_p3), [#allocation11], 16  }
  0x61   : > { %1988 = vsyncadd (%p2423_p11), [#allocation11], 4294967280  ;;  %v1769_v0 = vld [vmem:[%s2403_s3 + $0x78] sm:$0xff]   ;;  %v1771_v2 = vld [vmem:[%s2403_s3 + $0x70] sm:$0xff]   ;;  %p452_p12 = scmp.lt.s32.totalorder %s2069_s20, 1  ;;  %v466_v5 = vlaneseq  ;;  %v1999_v36 = vmov 0.0  }
  0x62   : > { %v1770_v1 = vld [vmem:[%s2403_s3 + $0x38] sm:$0xff]   ;;  %1574 = vmatprep.subr.bf16.mxu0 %v1769_v0  ;;  %v1772_v3 = vld [vmem:[%s2403_s3 + $0x30] sm:$0xff]   ;;  %v1773_v4 = vld [vmem:[%s2403_s3 + $0x68] sm:$0xff]   ;;  %1624 = vmatprep.subr.bf16.mxu1 %v1999_v36  ;;  %vm2000_vm0 = vmmov 0   ;;  %vm678_vm1 = vcmask 1041408   ;;  %vm674_vm2 = vcmask 31744  }
  0x63   : > { %1575 = vmatpush3.bf16.msra.mxu0 %v1770_v1  ;;  %s2425_s20 = smov (!%p452_p12, %s2069_s20), 1  ;;  %v1774_v6 = vld [vmem:[%s2403_s3 + $0x28] sm:$0xff]   ;;  %v1775_v7 = vld [vmem:[%s2403_s3 + $0x60] sm:$0xff]   ;;  %v2200_v8 = vshrl.u32 %v466_v5, 7  ;;  %v1777_v10 = vld [vmem:[%s2403_s3 + $0x58] sm:$0xff]   ;;  %1626 = vmatprep.mubr.msk.bf16.mxu1 %vm2000_vm0, %v1999_v36  ;;  %vm810_vm3 = vcmask 523264  }
  0x64   : > { %1576 = vmatprep.subr.bf16.mxu0 %v1771_v2  ;;  %s1573_s22 = sshll.u32 %s2425_s20, 2  ;;  %v1776_v9 = vld [vmem:[%s2403_s3 + $0x20] sm:$0xff]   ;;  %v1778_v13 = vld [vmem:[%s2403_s3 + $0x18] sm:$0xff]   ;;  %v1779_v14 = vld [vmem:[%s2403_s3 + $0x50] sm:$0xff]   ;;  %vm1348_vm4 = vcmask 1040384   ;;  %s1490_s13 = sshll.u32 %s2425_s20, 1 }
  0x65   : > { %s456_s30 = scalar_lea.vmem %s2400_s0, %s1573_s22  ;;  %v2213_v11 = vsub.s32 0, %v2200_v8  ;;  %v2216_v12 = vsub.s32 1, %v2200_v8  ;;  %v464_v16 = vld [vmem:[#allocation2] sm:$0x3]  ;;  %v477_v17 = vld [vmem:[#allocation4] sm:$0x3]  ;;  %s460_s16 = scalar_lea.vmem %s2411_s11, %s1490_s13 }
  0x66   : > { %v462_v15 = vld [vmem:[%s456_s30] sm:$0xf]  ;;  %v1780_v18 = vld [vmem:[%s2403_s3 + $0x10] sm:$0xff]   ;;  %v1781_v23 = vld [vmem:[%s2403_s3 + $0x48] sm:$0xff]   ;;  %vm1349_vm5 = vsmask.f32 256 }
  0x67   : > { %1577 = vmatpush3.bf16.msra.mxu0 %v1772_v3  ;;  %v463_v19 = vunpack.c.l.bf16 %v462_v15  ;;  %v469_v20 = vrot.slane %v464_v16, %v2213_v11  ;;  %v473_v21 = vrot.slane %v464_v16, %v2216_v12  ;;  %v482_v22 = vrot.slane %v477_v17, %v2213_v11  ;;  %v1782_v27 = vld [vmem:[%s2403_s3 + $0x8] sm:$0xff]   ;;  %v1783_v29 = vld [vmem:[%s2403_s3 + $0x40] sm:$0xff]   ;;  %v1785_v50 = vld [vmem:[%s2406_s6 + $0x38] sm:$0xff]  }
  0x68   : > { %1578 = vmatprep.subr.bf16.mxu0 %v1773_v4  ;;  %v486_v24 = vrot.slane %v477_v17, %v2216_v12  ;;  %v1784_v31 = vld [vmem:[%s2403_s3] sm:$0xff]   ;;  %v1786_v51 = vld [vmem:[%s2406_s6 + $0x30] sm:$0xff]   ;;  %v1787_v52 = vld [vmem:[%s2406_s6 + $0x28] sm:$0xff]   ;;  %vm1351_vm6 = vcmask 1041409   ;;  %vm1352_vm7 = vsmask.f32 1280 }
  0x69   : > { %v474_v25 = vcombine.low %v469_v20, %v473_v21  ;;  %v1491_v38 = vld [vmem:[#allocation6] ss:$0 sm:$0xff]  ;;  %v673_v47 = vld [vmem:[%s2405_s5] sm:$0x1]  ;;  %v1529_v48 = vld [vmem:[%s2405_s5 + $0x2] sm:$0x1] }
  0x6a   : > { %v487_v26 = vcombine.low %v482_v22, %v486_v24  ;;  %v1509_v49 = vld [vmem:[%s2405_s5 + $0x1] sm:$0x1]  ;;  %v1790_v54 = vld [vmem:[%s2406_s6 + $0x58] sm:$0xff]   ;;  %v1792_v55 = vld [vmem:[%s2406_s6 + $0x50] sm:$0xff]  }
  0x6b   : > { %1579 = vmatpush3.bf16.msra.mxu0 %v1774_v6  ;;  %v476_v28 = vmul.f32 %v474_v25, %v463_v19  ;;  %v1788_v53 = vld [vmem:[%s2406_s6 + $0x20] sm:$0xff]   ;;  %v1794_v56 = vld [vmem:[%s2406_s6 + $0x48] sm:$0xff]   ;;  %v1789_v4 = vld [vmem:[%s2406_s6 + $0x18] sm:$0xff]  }
  0x6c   : > { %1580 = vmatprep.subr.bf16.mxu0 %v1775_v7  ;;  %v1796_v57 = vld [vmem:[%s2406_s6 + $0x40] sm:$0xff]   ;;  %v1797_v17 = vld [vmem:[%s2406_s6 + $0x78] sm:$0xff]   ;;  %v1799_v19 = vld [vmem:[%s2406_s6 + $0x68] sm:$0xff]  }
  0x6d   : > { %v489_v30 = vadd.f32 %v487_v26, %v476_v28  ;;  %v1544_v16 = vld [vmem:[%s2405_s5 + $0x3] sm:$0x1]  ;;  %v1801_v21 = vld [vmem:[%s2408_s8 + $0x30] ss:$8 sps:$4 sm:$0xff]   ;;  %v1803_v22 = vld [vmem:[%s2408_s8 + $0x34] ss:$8 sps:$4 sm:$0xff]  }
  0x6e   : > { %v1800_v20 = vld [vmem:[%s2406_s6 + $0x60] sm:$0xff]   ;;  %vm1350_vm8 = vmand %vm1348_vm4, %vm1349_vm5 }
  0x6f   : > { %1581 = vmatpush3.bf16.msra.mxu0 %v1776_v9  ;;  %v490_v32 = vmax.f32 %v489_v30, 0.0  ;;  %v1791_v9 = vld [vmem:[%s2406_s6 + $0x10] sm:$0xff]   ;;  %v1804_v24 = vld [vmem:[%s2408_s8 + $0x20] ss:$8 sps:$4 sm:$0xff]   ;;  %vm1353_vm9 = vmand %vm1351_vm6, %vm1352_vm7 }
  0x70   : > { %1582 = vmatprep.subr.bf16.mxu0 %v1777_v10  ;;  %vm1354_vm10 = vmor %vm1353_vm9, %vm1350_vm8 }
  0x71   : > { %v492_v33 = vcombine.high %v490_v32, %v490_v32  ;;  %v2245_v35 = vpack.c.bf16 %v490_v32, %v490_v32 }
  0x73   : > { %1583 = vmatpush3.bf16.msra.mxu0 %v1778_v13  ;;  %v2243_v34 = vpack.c.bf16 %v492_v33, %v492_v33  ;;  %v1793_v13 = vld [vmem:[%s2406_s6 + $0x8] sm:$0xff]  }
  0x74   : > { %1584 = vmatprep.subr.bf16.mxu0 %v1779_v14  ;;  %v1795_v14 = vld [vmem:[%s2406_s6] sm:$0xff]  }
  0x75   : > { %663 = vmatprep.mubr.bf16.mxu0 %v2243_v34 }
  0x77   : > { %1585 = vmatpush3.bf16.msra.mxu0 %v1780_v18  ;;  %v1798_v18 = vld [vmem:[%s2406_s6 + $0x70] sm:$0xff]  }
  0x78   : > { %1586 = vmatprep.subr.bf16.mxu0 %v1781_v23  ;;  %v1806_v23 = vld [vmem:[%s2408_s8 + $0x24] ss:$8 sps:$4 sm:$0xff]  }
  0x7b   : > { %1587 = vmatpush3.bf16.msra.mxu0 %v1782_v27 }
  0x7c   : > { %1588 = vmatprep.subr.bf16.mxu0 %v1783_v29 }
  0x7f   : > { %1589 = vmatpush3.bf16.msra.mxu0 %v1784_v31 }
  0x80   : > { %1660 = vmatprep.subr.bf16.mxu0 %v1999_v36 }
  0x82   : > { %664 = vmatmul.mubr.bf16.vlgmr.msra.gmra.mxu0 %v2245_v35 }
  0x83   : > { %1662 = vmatprep.mubr.msk.bf16.mxu0 %vm2000_vm0, %v1999_v36 }
 0x142   : > { %v1590_v37 = vpop.f32.mrf.mxu0 }
 0x144   : > { %v1591_v39 = vpop.f32.mrf.mxu0 }
 0x145   : > { %v1592_v40 = vadd.f32 %v1591_v39, %v1590_v37 }
 0x146   : > { %v1593_v41 = vpop.f32.mrf.mxu0 }
 0x147   : > { %v666_v42 = vadd.f32 %v1592_v40, %v1491_v38 }
 0x148   : > { %v1594_v43 = vpop.f32.mrf.mxu0 }
 0x149   : > { %v671_v44 = vmax.f32 %v666_v42, 0.0 }
 0x14b   : > { %v672_v45 = vpack.c.bf16 %v671_v44, %v671_v44 }
 0x14d   : > { %v2256_v46 = vsel %vm678_vm1, %v672_v45, 0  ;;  %v1809_v45 = vld [vmem:[%s2408_s8 + $0x14] ss:$8 sps:$4 sm:$0xff]  }
 0x14e   : > { %1625 = vmatpush3.bf16.msra.mxu1 %v2256_v46  ;;  %1661 = vmatpush3.bf16.msra.mxu0 %v2256_v46 }
 0x14f   : > { %1630 = vmatprep.subr.bf16.mxu1 %v1999_v36  ;;  %1666 = vmatprep.subr.bf16.mxu0 %v1999_v36 }
 0x151   : > { %1627 = vmatmul.mubr.msk.bf16.vlgmr.msra.gmra.mxu1 %vm674_vm2, %v673_v47  ;;  %1663 = vmatmul.mubr.msk.bf16.vlgmr.msra.gmra.mxu0 %vm674_vm2, %v1529_v48  ;;  %v1280_v47 = vsel %vm678_vm1, %v2245_v35, 0  ;;  %v1812_v48 = vld [vmem:[%s2408_s8 + $0x4] ss:$8 sps:$4 sm:$0xff]  }
 0x152   : > { %1631 = vmatpush3.bf16.msra.mxu1 %v2256_v46  ;;  %1632 = vmatprep.mubr.msk.bf16.mxu1 %vm2000_vm0, %v1999_v36  ;;  %v1167_v35 = vld [vmem:[#allocation7] sm:$0x1] }
 0x153   : > { %1636 = vmatprep.subr.bf16.mxu1 %v1999_v36  ;;  %1674 = vmatprep.mubr.msk.bf16.mxu0 %vm2000_vm0, %v1999_v36 }
 0x154   : > { %1667 = vmatpush3.bf16.msra.mxu0 %v1790_v54 }
 0x155   : > { %1668 = vmatprep.subr.bf16.mxu0 %v1999_v36 }
 0x158   : > { %1669 = vmatpush3.bf16.msra.mxu0 %v1792_v55 }
 0x159   : > { %1633 = vmatmul.mubr.msk.bf16.vlgmr.msra.gmra.mxu1 %vm674_vm2, %v1509_v49  ;;  %1670 = vmatprep.subr.bf16.mxu0 %v1999_v36  ;;  %v1810_v49 = vld [vmem:[%s2408_s8] ss:$8 sps:$4 sm:$0xff]  }
 0x15a   : > { %1637 = vmatpush3.bf16.msra.mxu1 %v1785_v50  ;;  %1644 = vmatprep.mubr.msk.bf16.mxu1 %vm2000_vm0, %v1999_v36  ;;  %v2001_v50 = vmov 0  }
 0x15b   : > { %1638 = vmatprep.subr.bf16.mxu1 %v1999_v36 }
 0x15c   : > { %1671 = vmatpush3.bf16.msra.mxu0 %v1794_v56 }
 0x15d   : > { %1672 = vmatprep.subr.bf16.mxu0 %v1999_v36 }
 0x15e   : > { %1639 = vmatpush3.bf16.msra.mxu1 %v1786_v51  ;;  %v1275_v51 = vld [vmem:[#allocation10] sm:$0x1] }
 0x15f   : > { %1640 = vmatprep.subr.bf16.mxu1 %v1999_v36 }
 0x160   : > { %1673 = vmatpush3.bf16.msra.mxu0 %v1796_v57 }
 0x161   : > { %1242 = vmatprep.subr.bf16.mxu0 %v1803_v22 }
 0x162   : > { %1641 = vmatpush3.bf16.msra.mxu1 %v1787_v52 }
 0x163   : > { %1642 = vmatprep.subr.bf16.mxu1 %v1999_v36 }
 0x166   : > { %1643 = vmatpush3.bf16.msra.mxu1 %v1788_v53 }
 0x167   : > { %1648 = vmatprep.subr.bf16.mxu1 %v1999_v36 }
 0x211   : > { %v716_v58 = vpop.f32.mrf.mxu1  ;;  %v960_v59 = vpop.f32.mrf.mxu0 }
 0x212   : > { %v966_v60 = vpack.c.bf16 %v960_v59, %v960_v59  ;;  %v722_v15 = vpack.c.bf16 %v716_v58, %v716_v58 }
 0x213   : > { %v1628_v61 = vpop.f32.mrf.mxu1  ;;  %v1664_v62 = vpop.f32.mrf.mxu0 }
 0x214   : > { %1675 = vmatmul.mubr.msk.bf16.vlgmr.msra.gmra.mxu0 %vm810_vm3, %v966_v60 }
 0x215   : > { %v719_v63 = vpop.f32.mrf.mxu1  ;;  %v963_v0 = vpop.f32.mrf.mxu0  ;;  %1243 = vmatpush1.bf16.msra.mxu0 %v1801_v21  ;;  %1266 = vmatprep.mubr.bf16.mxu0 %v2001_v50 }
 0x216   : > { %1244 = vmatprep.subr.bf16.mxu0 %v1806_v23  ;;  %v1179_v0 = vld [vmem:[#allocation9] sm:$0x3] }
 0x217   : > { %v1629_v1 = vpop.f32.mrf.mxu1  ;;  %v1665_v2 = vpop.f32.mrf.mxu0 }
 0x218   : > { %v1224_v1 = vrot.slane %v1179_v0, %v2213_v11  ;;  %v2002_v2 = vmov 1966171168  }
 0x219   : > { %v770_v3 = vpop.f32.mrf.mxu1  ;;  %1245 = vmatpush1.bf16.msra.mxu0 %v1804_v24 }
 0x21a   : > { %v776_v5 = vpack.c.bf16 %v770_v3, %v770_v3  ;;  %1246 = vmatprep.subr.bf16.mxu0 %v1809_v45  ;;  %v1334_v3 = vunpack.c.l.s4 %v2002_v2 }
 0x21b   : > { %v1634_v6 = vpop.f32.mrf.mxu1 }
 0x21c   : > { %1645 = vmatmul.mubr.msk.bf16.vlgmr.msra.gmra.mxu1 %vm810_vm3, %v776_v5 }
 0x21d   : > { %1649 = vmatpush3.bf16.msra.mxu1 %v1789_v4  ;;  %v773_v7 = vpop.f32.mrf.mxu1  ;;  %1656 = vmatprep.mubr.msk.bf16.mxu1 %vm2000_vm0, %v1999_v36  ;;  %v1228_v4 = vrot.slane %v1179_v0, %v2216_v12 }
 0x21e   : > { %1650 = vmatprep.subr.bf16.mxu1 %v1999_v36  ;;  %v1335_v7 = vunpack.c.0.s8 %v1334_v3 }
 0x21f   : > { %v1635_v10 = vpop.f32.mrf.mxu1 }
 0x221   : > { %1651 = vmatpush3.bf16.msra.mxu1 %v1791_v9 }
 0x222   : > { %1652 = vmatprep.subr.bf16.mxu1 %v1999_v36 }
 0x225   : > { %1653 = vmatpush3.bf16.msra.mxu1 %v1793_v13 }
 0x226   : > { %1654 = vmatprep.subr.bf16.mxu1 %v1999_v36 }
 0x229   : > { %1655 = vmatpush3.bf16.msra.mxu1 %v1795_v14 }
 0x22a   : > { %1678 = vmatprep.subr.bf16.mxu1 %v1999_v36 }
 0x22c   : > { %1657 = vmatmul.mubr.msk.bf16.vlgmr.msra.gmra.mxu1 %vm810_vm3, %v722_v15 }
 0x22d   : > { %1679 = vmatpush3.bf16.msra.mxu1 %v2256_v46  ;;  %1680 = vmatprep.mubr.msk.bf16.mxu1 %vm2000_vm0, %v1999_v36  ;;  %v1807_v46 = vld [vmem:[%s2408_s8 + $0x10] ss:$8 sps:$4 sm:$0xff]  }
 0x22e   : > { %1684 = vmatprep.subr.bf16.mxu1 %v1999_v36  ;;  %1247 = vmatpush1.bf16.msra.mxu0 %v1807_v46 }
 0x22f   : > { %1248 = vmatprep.subr.bf16.mxu0 %v1812_v48 }
 0x232   : > { %1249 = vmatpush1.bf16.msra.mxu0 %v1810_v49 }
 0x234   : > { %1681 = vmatmul.mubr.msk.bf16.vlgmr.msra.gmra.mxu1 %vm674_vm2, %v1544_v16  ;;  %v1338_v16 = vsub.s32 %v1335_v7, %v2200_v8 }
 0x235   : > { %1692 = vmatprep.mubr.msk.bf16.mxu1 %vm2000_vm0, %v1999_v36  ;;  %1685 = vmatpush3.bf16.msra.mxu1 %v1797_v17 }
 0x236   : > { %1686 = vmatprep.subr.bf16.mxu1 %v1999_v36 }
 0x239   : > { %1687 = vmatpush3.bf16.msra.mxu1 %v1798_v18  ;;  %v1355_v18 = vld [vmem:[%s460_s16] sm:$0x3] }
 0x23a   : > { %1688 = vmatprep.subr.bf16.mxu1 %v1999_v36 }
 0x23d   : > { %1689 = vmatpush3.bf16.msra.mxu1 %v1799_v19 }
 0x23e   : > { %1690 = vmatprep.subr.bf16.mxu1 %v1999_v36 }
 0x241   : > { %1691 = vmatpush3.bf16.msra.mxu1 %v1800_v20 }
 0x242   : > { %1568 = vmatprep.subr.msk.bf16.mxu1 %vm678_vm1, %v2243_v34 }
 0x2d4   : > { %v1037_v25 = vpop.f32.mrf.mxu0 }
 0x2d6   : > { %v1676_v26 = vpop.f32.mrf.mxu0 }
 0x2d8   : > { %v1040_v27 = vpop.f32.mrf.mxu0 }
 0x2da   : > { %v1677_v28 = vpop.f32.mrf.mxu0 }
 0x2dc   : > { %v848_v29 = vpop.f32.mrf.mxu1 }
 0x2de   : > { %v1646_v30 = vpop.f32.mrf.mxu1 }
 0x2e0   : > { %v851_v31 = vpop.f32.mrf.mxu1 }
 0x2e2   : > { %v1647_v32 = vpop.f32.mrf.mxu1 }
 0x2ec   : > { %v915_v33 = vpop.f32.mrf.mxu1 }
 0x2ed   : > { %v916_v34 = vadd.f32 %v915_v33, %v848_v29 }
 0x2ee   : > { %v1658_v36 = vpop.f32.mrf.mxu1 }
 0x2ef   : > { %v1043_v37 = vadd.f32 %v1037_v25, %v916_v34 }
 0x2f0   : > { %v918_v38 = vpop.f32.mrf.mxu1 }
 0x2f2   : > { %v1659_v39 = vpop.f32.mrf.mxu1 }
 0x2f4   : > { %v1083_v40 = vpop.f32.mrf.mxu1 }
 0x2f5   : > { %v1089_v41 = vpack.c.bf16 %v1083_v40, %v1083_v40 }
 0x2f6   : > { %v1682_v42 = vpop.f32.mrf.mxu1 }
 0x2f7   : > { %1693 = vmatmul.mubr.msk.bf16.vlgmr.msra.gmra.mxu1 %vm810_vm3, %v1089_v41 }
 0x2f8   : > { %v1086_v43 = vpop.f32.mrf.mxu1  ;;  %1300 = vmatpush1.bf16.msra.mxu1 %v1280_v47  ;;  %1317 = vmatprep.mubr.bf16.mxu1 %v2001_v50 }
 0x2fa   : > { %v1683_v44 = vpop.f32.mrf.mxu1 }
 0x2ff   : > { %1569 = vmatmul.mubr.msk.bf16.vlgmr.msra.gmra.mxu1 %vm674_vm2, %v1275_v51 }
 0x3b7   : > { %v1160_v52 = vpop.f32.mrf.mxu1 }
 0x3b8   : > { %v1166_v53 = vadd.f32 %v1160_v52, %v1043_v37 }
 0x3b9   : > { %v1694_v54 = vpop.f32.mrf.mxu1 }
 0x3ba   : > { %v1168_v55 = vadd.f32 %v1167_v35, %v1166_v53 }
 0x3bb   : > { %v1163_v56 = vpop.f32.mrf.mxu1 }
 0x3bc   : > { %v1169_v57 = vmax.f32 %v1168_v55, 0.0 }
 0x3bd   : > { %v1695_v58 = vpop.f32.mrf.mxu1 }
 0x3be   : > { %v1170_v59 = vpack.c.bf16 %v1169_v57, %v1169_v57 }
 0x3bf   : > { %v1319_v60 = vpop.f32.mrf.mxu1 }
 0x3c0   : > { %1567 = vmatmul.mubr.msk.bf16.vlgmr.msra.gmra.mxu0 %vm810_vm3, %v1170_v59 }
 0x3c1   : > { %v1321_v61 = vpop.f32.mrf.mxu1 }
 0x3c3   : > { %v1323_v62 = vpop.f32.mrf.mxu1 }
 0x3c5   : > { %v1324_v63 = vpop.f32.mrf.mxu1 }
 0x480   : > { %v1268_v5 = vpop.f32.mrf.mxu0 }
 0x481   : > { %v1269_v6 = vadd.f32 %v1268_v5, %v1224_v1 }
 0x482   : > { %v1270_v9 = vpop.f32.mrf.mxu0 }
 0x483   : > { %v1271_v10 = vadd.f32 %v1270_v9, %v1228_v4  ;;  %v1326_v14 = vadd.f32 %v1319_v60, %v1269_v6 }
 0x484   : > { %v1272_v13 = vpop.f32.mrf.mxu0 }
 0x485   : > { %v1327_v15 = vadd.f32 %v1321_v61, %v1271_v10 }
 0x486   : > { %v1273_v11 = vpop.f32.mrf.mxu0 }
 0x487   : > { %v1570_v12 = vpack.c.bf16 %v1327_v15, %v1326_v14 }
 0x489   : > { %v1339_v17 = vrot.slane %v1570_v12, %v1338_v16 }
 0x48b   : > { %v1346_v19 = vrot.slane %v1339_v17, %v1338_v16 }
 0x48d   : > { %v1356_v20 = vsel %vm1354_vm10, %v1346_v19, %v1355_v18 }
 0x48e   : > { %1357 = vst [vmem:[%s460_s16] sm:$0x3] %v1356_v20 }
 0x48f PF: > { %s25_s17 = sadd.s32 1, %s1991_s17  }
 0x490   : > { %p22_p13 = scmp.ge.s32.totalorder %s25_s17, 4  }
 0x492   :  { %24 = sbr.rel (!%p22_p13) target bundleno = 4 (0x4), region = 125 }
 0x497   :  { %1377 = vsyncpa [#allocation3], 1 }
 0x498   :  { %1379 = vsyncpa [#allocation3 + $0x1], 1 }
 0x499   :  { %1380 = vsyncpa [#allocation5], 1 }
 0x49a   :  { %1381 = vsyncpa [#allocation8], 1 }
 0x49b   :  { %1382 = vsyncpa [#allocation11], 1 }

// kernel: resnet18v2_forward.17
= control target key start
LH: loop header
LB: loop body
LE: loop exit
PB: predicated region body
PF: predicated region fallthrough
CT: control target
= control target key end

     0   :  { %18 = vsyncpa [#allocation4], 0  ;;  %s2780_s0 = inlined_call_operand.vmem [shape: bf16[2,1,256], index: 0, kind: input, shape index: {}]   ;;  %s2781_s1 = inlined_call_operand.hbm [shape: f32[1,256], index: 1, kind: input, shape index: {}]   ;;  %s2782_s2 = inlined_call_operand.hbm [shape: f32[1,256], index: 2, kind: input, shape index: {}]   ;;  %s2783_s3 = inlined_call_operand.vmem [shape: bf16[256,128], index: 3, kind: input, shape index: {}]   ;;  %s2784_s4 = inlined_call_operand.hbm [shape: f32[1,128], index: 4, kind: input, shape index: {}]   ;;  %s2785_s5 = inlined_call_operand.<no memory space> [shape: bf16[1,1,1], index: 5, kind: input, shape index: {}]   ;;  %s2786_s6 = inlined_call_operand.vmem [shape: bf16[1,128,128], index: 6, kind: input, shape index: {}]   ;;  %s2787_s7 = inlined_call_operand.hbm [shape: f32[1,128], index: 7, kind: input, shape index: {}]   ;;  %s2788_s8 = inlined_call_operand.vmem [shape: bf16[128,512], index: 8, kind: input, shape index: {}]   ;;  %s2789_s9 = inlined_call_operand.vmem [shape: f32[1,512], index: 9, kind: input, shape index: {}]   ;;  %s2790_s10 = inlined_call_operand.vmem [shape: bf16[256,512], index: 10, kind: input, shape index: {}]   ;;  %s2791_s11 = inlined_call_operand.vmem [shape: bf16[2,1,512], index: 11, kind: output, shape index: {}]  }
   0x1   :  { %19 = vsyncpa [#allocation6], 0 }
   0x2   :  { %20 = vsyncpa [#allocation9], 0  ;;  %s2268_s5 = smov 0  }
   0x3 LB: > { %s2274_s17 = sadd.s32 4294967295, %s2197_s5   ;;  %p1665_p0 = scmp.ge.s32.totalorder %s2197_s5, 1  ;;  %s2197_s5 = sphi %s2268_s5, %s26_s5  }
   0x4   : > { %p293_p1 = scmp.lt.s32.totalorder %s2197_s5, 3  ;;  %p2792_p2 = scmp.eq.s32.totalorder %s2274_s17, 0 }
   0x5   : > { %s2199_s18 = smov [#allocation5]   ;;  %s2200_s21 = smov [#allocation3]  }
   0x6   : > { %s317_s19 = sshll.u32 %s2199_s18, 4  ;;  %p2279_p3 = pnand %p1665_p0, %p293_p1  ;;  %s318_s19 = int_to_ptr.vmem [resolvable:$true] %s317_s19 }
   0x7   : > { %s306_s22 = sshll.u32 %s2200_s21, 4  ;;  %s2201_s23 = smov [#allocation7]   ;;  %s307_s22 = int_to_ptr.vmem [resolvable:$true] %s306_s22 }
   0x8   : > { %s2794_s20 = scalar_select %p2279_p3, 1, 0 }
   0x9   : > { %p1869_p4 = pneg %p2279_p3  ;;  %s331_s24 = sshll.u32 %s2201_s23, 4  ;;  %s2291_s24 = int_to_ptr.vmem [resolvable:$true] %s331_s24 }
   0xa   : > { %s2202_s26 = smov [#allocation8]   ;;  %s2086_s28 = scalar_lea.vmem %s318_s19, 32 }
   0xb   : > { %p2287_p5 = pnand %p2792_p2, %p1869_p4  ;;  %s348_s27 = sshll.u32 %s2202_s26, 4  ;;  %s2293_s27 = int_to_ptr.vmem [resolvable:$true] %s348_s27 }
   0xc   : > { %p2087_p7 = scmp.ne.s32.totalorder %s318_s19, %s2086_s28  ;;  %p2094_p10 = scmp.lt.s32.totalorder %s318_s19, %s318_s19 }
   0xd   : > { %p2077_p6 = pneg %p2287_p5  ;;  %p2095_p11 = scmp.lt.s32.totalorder %s2086_s28, %s2086_s28 }
   0xf   : > { %p2089_p8 = pnand %p2087_p7, %p2077_p6  ;;  %p2096_p12 = por %p2095_p11, %p2094_p10 }
  0x11   : > { %p2090_p9 = pneg %p2089_p8 }
  0x13   : > { %p2097_p13 = pnand %p2096_p12, %p2090_p9 }
  0x15   : > { %2100 = shalt.err (!%p2097_p13)
}
  0x16   : > { %1875 = dma.hbm_to_vmem [thread:$0]  (!%p2287_p5), %s2782_s2, 32, %s318_s19, [#allocation6]  }
  0x17   : > { %s2112_s12 = scalar_lea.vmem %s307_s22, 32  ;;  %p2120_p7 = scmp.lt.s32.totalorder %s307_s22, %s307_s22 }
  0x18   : > { %p2113_p0 = scmp.ne.s32.totalorder %s307_s22, %s2112_s12  ;;  %p2121_p8 = scmp.lt.s32.totalorder %s2112_s12, %s2112_s12 }
  0x1a   : > { %p2115_p1 = pnand %p2113_p0, %p2077_p6  ;;  %p2122_p2 = por %p2121_p8, %p2120_p7 }
  0x1c   : > { %p2116_p4 = pneg %p2115_p1 }
  0x1e   : > { %p2123_p3 = pnand %p2122_p2, %p2116_p4 }
  0x20   : > { %2126 = shalt.err (!%p2123_p3)
}
  0x21   : > { %1872 = dma.hbm_to_vmem [thread:$0]  (!%p2287_p5), %s2781_s1, 32, %s307_s22, [#allocation4]  }
  0x22   : > { %s2138_s15 = scalar_lea.vmem %s2291_s24, 16  ;;  %s2145_s16 = scalar_lea.vmem %s2291_s24, 32 }
  0x23   : > { %p2139_p9 = scmp.ne.s32.totalorder %s2291_s24, %s2138_s15  ;;  %p2146_p2 = scmp.lt.s32.totalorder %s2291_s24, %s2291_s24 }
  0x24   : > { %p2147_p3 = scmp.lt.s32.totalorder %s2145_s16, %s2138_s15 }
  0x25   : > { %p2141_p10 = pnand %p2139_p9, %p2077_p6 }
  0x26   : > { %p2148_p12 = por %p2147_p3, %p2146_p2 }
  0x27   : > { %p2142_p11 = pneg %p2141_p10 }
  0x29   : > { %p2149_p13 = pnand %p2148_p12, %p2142_p11 }
  0x2b   : > { %2152 = shalt.err (!%p2149_p13)
}
  0x2c   : > { %1878 = dma.hbm_to_vmem [thread:$0]  (!%p2287_p5), %s2784_s4, 16, %s2291_s24, [#allocation6]  }
  0x2d   : > { %s2164_s21 = scalar_lea.vmem %s2293_s27, 16  ;;  %s2171_s22 = scalar_lea.vmem %s2293_s27, 32 }
  0x2e   : > { %p2165_p0 = scmp.ne.s32.totalorder %s2293_s27, %s2164_s21  ;;  %p2172_p7 = scmp.lt.s32.totalorder %s2293_s27, %s2293_s27 }
  0x2f   : > { %p2173_p8 = scmp.lt.s32.totalorder %s2171_s22, %s2164_s21 }
  0x30   : > { %p2167_p1 = pnand %p2165_p0, %p2077_p6 }
  0x31   : > { %p2174_p9 = por %p2173_p8, %p2172_p7 }
  0x32   : > { %p2168_p4 = pneg %p2167_p1 }
  0x34   : > { %p2175_p10 = pnand %p2174_p9, %p2168_p4 }
  0x36   : > { %2178 = shalt.err (!%p2175_p10)
}
  0x37   : > { %1881 = dma.hbm_to_vmem [thread:$0]  (!%p2287_p5), %s2787_s7, 16, %s2293_s27, [#allocation9]  }
  0x38   : > { %p2796_p11 = scmp.ne.s32.totalorder %s2794_s20, 0 }
  0x39   : > { %p2797_p6 = scmp.eq.s32.totalorder (!%p2796_p11), %s2274_s17, 0 }
  0x3a   : > { %377 = sbr.rel (%p2796_p11) target bundleno = 777 (0x309), region = 64 }
  0x3f   : > { %2184 = dma.done.wait (%p2797_p6), [#allocation4], 32   ;;  %p2798_p2 = pmov %p2797_p6 }
  0x41   : > { %2186 = vsyncadd (%p2798_p2), [#allocation4], 4294967264  ;;  %p2799_p3 = pmov %p2798_p2 }
  0x42   : > { %p2800_p12 = pmov %p2798_p2 }
  0x43   : > { %2188 = dma.done.wait (%p2799_p3), [#allocation6], 48  }
  0x44   : > { %2190 = vsyncadd (%p2800_p12), [#allocation6], 4294967248  ;;  %p2801_p13 = pmov %p2798_p2 }
  0x45   : > { %p2802_p5 = pmov %p2798_p2 }
  0x46   : > { %2192 = dma.done.wait (%p2801_p13), [#allocation9], 16  }
  0x47   : > { %2194 = vsyncadd (%p2802_p5), [#allocation9], 4294967280  ;;  %v2203_v0 = vmov 0.0   ;;  %v1907_v1 = vld [vmem:[%s2783_s3 + $0x78] sm:$0xff]   ;;  %v1909_v3 = vld [vmem:[%s2783_s3 + $0x70] sm:$0xff]   ;;  %p427_p0 = scmp.lt.s32.totalorder %s2274_s17, 1  ;;  %v443_v8 = vlaneseq }
  0x48   : > { %1833 = vmatprep.subr.bf16.mxu1 %v2203_v0  ;;  %v1908_v2 = vld [vmem:[%s2783_s3 + $0x38] sm:$0xff]   ;;  %1802 = vmatprep.subr.bf16.mxu0 %v1907_v1  ;;  %v1910_v4 = vld [vmem:[%s2783_s3 + $0x30] sm:$0xff]   ;;  %v1911_v5 = vld [vmem:[%s2783_s3 + $0x68] sm:$0xff]   ;;  %v2204_v6 = vmov 857870592   ;;  %vm2205_vm0 = vmmov 0  }
  0x49   : > { %1803 = vmatpush3.bf16.msra.mxu0 %v1908_v2  ;;  %v441_v7 = vunpack.c.l.s4 %v2204_v6  ;;  %s2808_s17 = smov (!%p427_p0, %s2274_s17), 1  ;;  %v1912_v9 = vld [vmem:[%s2783_s3 + $0x28] sm:$0xff]   ;;  %v1913_v10 = vld [vmem:[%s2783_s3 + $0x60] sm:$0xff]   ;;  %v2381_v12 = vshrl.u32 %v443_v8, 7  ;;  %v1915_v14 = vld [vmem:[%s2783_s3 + $0x58] sm:$0xff]   ;;  %1849 = vmatprep.mubr.msk.bf16.mxu1 %vm2205_vm0, %v2203_v0  ;;  %vm1551_vm1 = vcmask 1040384  }
  0x4a   : > { %1804 = vmatprep.subr.bf16.mxu0 %v1909_v3  ;;  %s1676_s21 = sshll.u32 %s2808_s17, 1  ;;  %v1914_v13 = vld [vmem:[%s2783_s3 + $0x20] sm:$0xff]   ;;  %v1916_v16 = vld [vmem:[%s2783_s3 + $0x18] sm:$0xff]   ;;  %v1917_v17 = vld [vmem:[%s2783_s3 + $0x50] sm:$0xff]   ;;  %vm1552_vm2 = vsmask.f32 256 }
  0x4b   : > { %v442_v11 = vunpack.c.0.s8 %v441_v7  ;;  %s430_s27 = scalar_lea.vmem %s2780_s0, %s1676_s21  ;;  %v438_v19 = vld [vmem:[#allocation3] sm:$0x3]  ;;  %v449_v20 = vld [vmem:[#allocation5] sm:$0x3]  ;;  %v1923_v24 = vld [vmem:[%s2786_s6 + $0x38] sm:$0xff]   ;;  %v468_v29 = vsub.s32 2, %v2381_v12 }
  0x4c   : > { %v436_v18 = vld [vmem:[%s430_s27] sm:$0x3]  ;;  %v1918_v25 = vld [vmem:[%s2783_s3 + $0x10] sm:$0xff]   ;;  %1834 = vmatpush3.bf16.msra.mxu1 %v1923_v24  ;;  %v1919_v28 = vld [vmem:[%s2783_s3 + $0x48] sm:$0xff]   ;;  %v464_v32 = vsub.s32 0, %v2381_v12  ;;  %vm1554_vm3 = vcmask 1041409  }
  0x4d   : > { %1805 = vmatpush3.bf16.msra.mxu0 %v1910_v4  ;;  %v445_v15 = vsub.s32 %v442_v11, %v2381_v12  ;;  %v437_v21 = vunpack.c.l.bf16 %v436_v18  ;;  %v1924_v27 = vld [vmem:[%s2786_s6 + $0x30] sm:$0xff]   ;;  %1835 = vmatprep.subr.bf16.mxu1 %v2203_v0  ;;  %v1920_v30 = vld [vmem:[%s2783_s3 + $0x8] sm:$0xff]   ;;  %v1921_v34 = vld [vmem:[%s2783_s3 + $0x40] sm:$0xff]   ;;  %vm1555_vm4 = vsmask.f32 1280  ;;  %vm1558_vm7 = vcmask 1042434  }
  0x4e   : > { %1806 = vmatprep.subr.bf16.mxu0 %v1911_v5  ;;  %v1925_v33 = vld [vmem:[%s2786_s6 + $0x28] sm:$0xff]   ;;  %v1922_v36 = vld [vmem:[%s2783_s3] sm:$0xff]   ;;  %v1927_v41 = vld [vmem:[%s2786_s6 + $0x18] sm:$0xff]   ;;  %vm1559_vm8 = vsmask.f32 2304  ;;  %s1677_s18 = sshll.u32 %s2808_s17, 2 }
  0x4f   : > { %v446_v22 = vrot.slane %v438_v19, %v445_v15  ;;  %v457_v23 = vrot.slane %v449_v20, %v445_v15  ;;  %v1926_v38 = vld [vmem:[%s2786_s6 + $0x20] sm:$0xff]   ;;  %v1928_v43 = vld [vmem:[%s2786_s6 + $0x10] sm:$0xff]   ;;  %v1929_v44 = vld [vmem:[%s2786_s6 + $0x8] sm:$0xff]   ;;  %vm1562_vm11 = vcmask 1043459   ;;  %vm1563_vm12 = vsmask.f32 3328  ;;  %s434_s22 = scalar_lea.vmem %s2791_s11, %s1677_s18 }
  0x50   : > { %1836 = vmatpush3.bf16.msra.mxu1 %v1924_v27  ;;  %v1930_v45 = vld [vmem:[%s2786_s6] sm:$0xff]   ;;  %v1936_v48 = vld [vmem:[%s2788_s8 + $0xec] ss:$16 sps:$4 sm:$0xff]   ;;  %v1934_v5 = vld [vmem:[%s2788_s8 + $0xe8] ss:$16 sps:$4 sm:$0xff]  }
  0x51   : > { %1807 = vmatpush3.bf16.msra.mxu0 %v1912_v9  ;;  %v448_v26 = vmul.f32 %v446_v22, %v437_v21  ;;  %1837 = vmatprep.subr.bf16.mxu1 %v2203_v0  ;;  %v1931_v46 = vld [vmem:[%s2788_s8 + $0xe0] ss:$16 sps:$4 sm:$0xff]   ;;  %v1933_v47 = vld [vmem:[%s2788_s8 + $0xe4] ss:$16 sps:$4 sm:$0xff]   ;;  %v1942_v7 = vld [vmem:[%s2788_s8 + $0xcc] ss:$16 sps:$4 sm:$0xff]  }
  0x52   : > { %1808 = vmatprep.subr.bf16.mxu0 %v1913_v10  ;;  %v1939_v49 = vld [vmem:[%s2788_s8 + $0xc4] ss:$16 sps:$4 sm:$0xff]   ;;  %v1937_v50 = vld [vmem:[%s2788_s8 + $0xc0] ss:$16 sps:$4 sm:$0xff]   ;;  %v1940_v8 = vld [vmem:[%s2788_s8 + $0xc8] ss:$16 sps:$4 sm:$0xff]  }
  0x53   : > { %v459_v31 = vadd.f32 %v457_v23, %v448_v26  ;;  %v1945_v51 = vld [vmem:[%s2788_s8 + $0xa4] ss:$16 sps:$4 sm:$0xff]   ;;  %v1943_v52 = vld [vmem:[%s2788_s8 + $0xa0] ss:$16 sps:$4 sm:$0xff]   ;;  %v1948_v9 = vld [vmem:[%s2788_s8 + $0xac] ss:$16 sps:$4 sm:$0xff]  }
  0x54   : > { %1838 = vmatpush3.bf16.msra.mxu1 %v1925_v33  ;;  %v1951_v53 = vld [vmem:[%s2788_s8 + $0x84] ss:$16 sps:$4 sm:$0xff]   ;;  %v1949_v54 = vld [vmem:[%s2788_s8 + $0x80] ss:$16 sps:$4 sm:$0xff]   ;;  %v1946_v10 = vld [vmem:[%s2788_s8 + $0xa8] ss:$16 sps:$4 sm:$0xff]  }
  0x55   : > { %1809 = vmatpush3.bf16.msra.mxu0 %v1914_v13  ;;  %v460_v35 = vmax.f32 %v459_v31, 0.0  ;;  %1839 = vmatprep.subr.bf16.mxu1 %v2203_v0  ;;  %v1957_v55 = vld [vmem:[%s2788_s8 + $0x64] ss:$16 sps:$4 sm:$0xff]   ;;  %v1955_v56 = vld [vmem:[%s2788_s8 + $0x60] ss:$16 sps:$4 sm:$0xff]   ;;  %v2206_v26 = vmov 0   ;;  %vm2760_vm5 = vmand %vm1551_vm1, %vm1552_vm2 }
  0x56   : > { %1810 = vmatprep.subr.bf16.mxu0 %v1915_v14  ;;  %v1963_v57 = vld [vmem:[%s2788_s8 + $0x44] ss:$16 sps:$4 sm:$0xff]   ;;  %v1961_v58 = vld [vmem:[%s2788_s8 + $0x40] ss:$16 sps:$4 sm:$0xff]   ;;  %v1954_v11 = vld [vmem:[%s2788_s8 + $0x8c] ss:$16 sps:$4 sm:$0xff]  }
  0x57   : > { %v469_v37 = vrot.slane %v460_v35, %v468_v29  ;;  %v465_v39 = vrot.slane %v460_v35, %v464_v32  ;;  %v1969_v59 = vld [vmem:[%s2788_s8 + $0x24] ss:$16 sps:$4 sm:$0xff]   ;;  %v1967_v60 = vld [vmem:[%s2788_s8 + $0x20] ss:$16 sps:$4 sm:$0xff]   ;;  %v1952_v13 = vld [vmem:[%s2788_s8 + $0x88] ss:$16 sps:$4 sm:$0xff]  }
  0x58   : > { %1840 = vmatpush3.bf16.msra.mxu1 %v1926_v38  ;;  %v506_v62 = vld [vmem:[#allocation7] sm:$0x1]  ;;  %v1960_v14 = vld [vmem:[%s2788_s8 + $0x6c] ss:$16 sps:$4 sm:$0xff]   ;;  %v1958_v15 = vld [vmem:[%s2788_s8 + $0x68] ss:$16 sps:$4 sm:$0xff]  }
  0x59   : > { %1811 = vmatpush3.bf16.msra.mxu0 %v1916_v16  ;;  %v2435_v40 = vpack.c.bf16 %v469_v37, %v469_v37  ;;  %v2442_v42 = vpack.c.bf16 %v465_v39, %v465_v39  ;;  %1841 = vmatprep.subr.bf16.mxu1 %v2203_v0  ;;  %v1966_v16 = vld [vmem:[%s2788_s8 + $0x4c] ss:$16 sps:$4 sm:$0xff]   ;;  %v1970_v19 = vld [vmem:[%s2788_s8 + $0x28] ss:$16 sps:$4 sm:$0xff]   ;;  %v1975_v20 = vld [vmem:[%s2788_s8 + $0x4] ss:$16 sps:$4 sm:$0xff]  }
  0x5a   : > { %1812 = vmatprep.subr.bf16.mxu0 %v1917_v17  ;;  %v1964_v17 = vld [vmem:[%s2788_s8 + $0x48] ss:$16 sps:$4 sm:$0xff]   ;;  %v1972_v18 = vld [vmem:[%s2788_s8 + $0x2c] ss:$16 sps:$4 sm:$0xff]   ;;  %v1973_v22 = vld [vmem:[%s2788_s8] ss:$16 sps:$4 sm:$0xff]  }
  0x5b   : > { %635 = vmatprep.mubr.bf16.mxu0 %v2435_v40  ;;  %v1978_v21 = vld [vmem:[%s2788_s8 + $0xc] ss:$16 sps:$4 sm:$0xff]   ;;  %v1976_v23 = vld [vmem:[%s2788_s8 + $0x8] ss:$16 sps:$4 sm:$0xff]   ;;  %v1981_v24 = vld [vmem:[%s2790_s10 + $0xe4] ss:$16 sps:$4 sm:$0xff]  }
  0x5c   : > { %1842 = vmatpush3.bf16.msra.mxu1 %v1927_v41  ;;  %v661_v27 = vld [vmem:[#allocation8] sm:$0x1]  ;;  %v1979_v35 = vld [vmem:[%s2790_s10 + $0xe0] ss:$16 sps:$4 sm:$0xff]   ;;  %v1990_v39 = vld [vmem:[%s2790_s10 + $0xcc] ss:$16 sps:$4 sm:$0xff]  }
  0x5d   : > { %1813 = vmatpush3.bf16.msra.mxu0 %v1918_v25  ;;  %1843 = vmatprep.subr.bf16.mxu1 %v2203_v0  ;;  %v1984_v25 = vld [vmem:[%s2790_s10 + $0xec] ss:$16 sps:$4 sm:$0xff]   ;;  %v1987_v38 = vld [vmem:[%s2790_s10 + $0xc4] ss:$16 sps:$4 sm:$0xff]   ;;  %vm2764_vm6 = vmand %vm1554_vm3, %vm1555_vm4 }
  0x5e   : > { %1814 = vmatprep.subr.bf16.mxu0 %v1919_v28  ;;  %vm1557_vm9 = vmor %vm2764_vm6, %vm2760_vm5 }
  0x5f   : > { %vm1560_vm10 = vmand %vm1558_vm7, %vm1559_vm8 }
  0x60   : > { %1844 = vmatpush3.bf16.msra.mxu1 %v1928_v43  ;;  %v1985_v43 = vld [vmem:[%s2790_s10 + $0xc0] ss:$16 sps:$4 sm:$0xff]   ;;  %vm1561_vm13 = vmor %vm1560_vm10, %vm1557_vm9 }
  0x61   : > { %1815 = vmatpush3.bf16.msra.mxu0 %v1920_v30  ;;  %1845 = vmatprep.subr.bf16.mxu1 %v2203_v0  ;;  %vm1564_vm14 = vmand %vm1562_vm11, %vm1563_vm12 }
  0x62   : > { %1816 = vmatprep.subr.bf16.mxu0 %v1921_v34  ;;  %vm1565_vm15 = vmor %vm1564_vm14, %vm1561_vm13 }
  0x64   : > { %1846 = vmatpush3.bf16.msra.mxu1 %v1929_v44  ;;  %v1988_v44 = vld [vmem:[%s2790_s10 + $0xc8] ss:$16 sps:$4 sm:$0xff]  }
  0x65   : > { %1817 = vmatpush3.bf16.msra.mxu0 %v1922_v36  ;;  %1847 = vmatprep.subr.bf16.mxu1 %v2203_v0  ;;  %v1982_v36 = vld [vmem:[%s2790_s10 + $0xe8] ss:$16 sps:$4 sm:$0xff]  }
  0x66   : > { %966 = vmatprep.subr.bf16.mxu0 %v1933_v47  ;;  %v1991_v47 = vld [vmem:[%s2790_s10 + $0xa0] ss:$16 sps:$4 sm:$0xff]  }
  0x68   : > { %636 = vmatmul.mubr.bf16.vlgmr.msra.gmra.mxu0 %v2442_v42  ;;  %1848 = vmatpush3.bf16.msra.mxu1 %v1930_v45  ;;  %v1993_v45 = vld [vmem:[%s2790_s10 + $0xa4] ss:$16 sps:$4 sm:$0xff]  }
  0x69   : > { %1007 = vmatprep.subr.bf16.mxu1 %v1936_v48  ;;  %967 = vmatpush1.bf16.msra.mxu0 %v1931_v46  ;;  %v1996_v46 = vld [vmem:[%s2790_s10 + $0xac] ss:$16 sps:$4 sm:$0xff]   ;;  %v1994_v48 = vld [vmem:[%s2790_s10 + $0xa8] ss:$16 sps:$4 sm:$0xff]  }
  0x6a   : > { %968 = vmatprep.subr.bf16.mxu0 %v1939_v49  ;;  %998 = vmatprep.mubr.bf16.mxu0 %v2206_v26  ;;  %v1999_v49 = vld [vmem:[%s2790_s10 + $0x84] ss:$16 sps:$4 sm:$0xff]  }
  0x6d   : > { %969 = vmatpush1.bf16.msra.mxu0 %v1937_v50  ;;  %v1997_v50 = vld [vmem:[%s2790_s10 + $0x80] ss:$16 sps:$4 sm:$0xff]  }
  0x6e   : > { %970 = vmatprep.subr.bf16.mxu0 %v1945_v51  ;;  %v2000_v51 = vld [vmem:[%s2790_s10 + $0x88] ss:$16 sps:$4 sm:$0xff]  }
  0x71   : > { %971 = vmatpush1.bf16.msra.mxu0 %v1943_v52  ;;  %v2005_v52 = vld [vmem:[%s2790_s10 + $0x64] ss:$16 sps:$4 sm:$0xff]  }
  0x72   : > { %972 = vmatprep.subr.bf16.mxu0 %v1951_v53  ;;  %v2008_v53 = vld [vmem:[%s2790_s10 + $0x6c] ss:$16 sps:$4 sm:$0xff]  }
  0x75   : > { %973 = vmatpush1.bf16.msra.mxu0 %v1949_v54  ;;  %v2003_v54 = vld [vmem:[%s2790_s10 + $0x60] ss:$16 sps:$4 sm:$0xff]  }
  0x76   : > { %974 = vmatprep.subr.bf16.mxu0 %v1957_v55  ;;  %v2006_v55 = vld [vmem:[%s2790_s10 + $0x68] ss:$16 sps:$4 sm:$0xff]  }
  0x79   : > { %975 = vmatpush1.bf16.msra.mxu0 %v1955_v56  ;;  %v2011_v56 = vld [vmem:[%s2790_s10 + $0x44] ss:$16 sps:$4 sm:$0xff]  }
  0x7a   : > { %976 = vmatprep.subr.bf16.mxu0 %v1963_v57  ;;  %v2014_v57 = vld [vmem:[%s2790_s10 + $0x4c] ss:$16 sps:$4 sm:$0xff]  }
  0x7d   : > { %977 = vmatpush1.bf16.msra.mxu0 %v1961_v58  ;;  %v2009_v58 = vld [vmem:[%s2790_s10 + $0x40] ss:$16 sps:$4 sm:$0xff]  }
  0x7e   : > { %978 = vmatprep.subr.bf16.mxu0 %v1969_v59  ;;  %v2012_v59 = vld [vmem:[%s2790_s10 + $0x48] ss:$16 sps:$4 sm:$0xff]  }
  0x81   : > { %979 = vmatpush1.bf16.msra.mxu0 %v1967_v60  ;;  %v2017_v60 = vld [vmem:[%s2790_s10 + $0x24] ss:$16 sps:$4 sm:$0xff]  }
  0x82   : > { %980 = vmatprep.subr.bf16.mxu0 %v1975_v20  ;;  %v2048_v20 = vld [vmem:[%s2790_s10 + $0x188] ss:$16 sps:$4 sm:$0xff]  }
  0x85   : > { %981 = vmatpush1.bf16.msra.mxu0 %v1973_v22  ;;  %v2056_v22 = vld [vmem:[%s2790_s10 + $0x16c] ss:$16 sps:$4 sm:$0xff]  }
  0x86   : > { %1432 = vmatprep.subr.bf16.mxu0 %v1981_v24  ;;  %v2054_v24 = vld [vmem:[%s2790_s10 + $0x168] ss:$16 sps:$4 sm:$0xff]  }
 0x128   : > { %v1818_v61 = vpop.f32.mrf.mxu0 }
 0x12a   : > { %v1819_v63 = vpop.f32.mrf.mxu0 }
 0x12b   : > { %v1820_v0 = vadd.f32 %v1819_v63, %v1818_v61  ;;  %v2020_v61 = vld [vmem:[%s2790_s10 + $0x2c] ss:$16 sps:$4 sm:$0xff]   ;;  %v2018_v63 = vld [vmem:[%s2790_s10 + $0x28] ss:$16 sps:$4 sm:$0xff]  }
 0x12c   : > { %v1821_v1 = vpop.f32.mrf.mxu0 }
 0x12d   : > { %v638_v2 = vadd.f32 %v1820_v0, %v506_v62  ;;  %v2015_v62 = vld [vmem:[%s2790_s10 + $0x20] ss:$16 sps:$4 sm:$0xff]   ;;  %v2023_v0 = vld [vmem:[%s2790_s10 + $0x4] ss:$16 sps:$4 sm:$0xff]   ;;  %v2026_v1 = vld [vmem:[%s2790_s10 + $0xc] ss:$16 sps:$4 sm:$0xff]  }
 0x12e   : > { %v1822_v3 = vpop.f32.mrf.mxu0 }
 0x12f   : > { %v643_v4 = vmax.f32 %v638_v2, 0.0  ;;  %v2021_v2 = vld [vmem:[%s2790_s10] ss:$16 sps:$4 sm:$0xff]   ;;  %v2024_v3 = vld [vmem:[%s2790_s10 + $0x8] ss:$16 sps:$4 sm:$0xff]  }
 0x131   : > { %v644_v6 = vpack.c.bf16 %v643_v4, %v643_v4  ;;  %v2029_v4 = vld [vmem:[%s2790_s10 + $0x1e4] ss:$16 sps:$4 sm:$0xff]  }
 0x133   : > { %1850 = vmatmul.mubr.bf16.vlgmr.msra.gmra.mxu1 %v644_v6  ;;  %v2027_v6 = vld [vmem:[%s2790_s10 + $0x1e0] ss:$16 sps:$4 sm:$0xff]  }
 0x134   : > { %1008 = vmatpush1.bf16.msra.mxu1 %v1934_v5  ;;  %1039 = vmatprep.mubr.bf16.mxu1 %v2206_v26  ;;  %v2032_v5 = vld [vmem:[%s2790_s10 + $0x1ec] ss:$16 sps:$4 sm:$0xff]  }
 0x135   : > { %1009 = vmatprep.subr.bf16.mxu1 %v1942_v7  ;;  %v2030_v7 = vld [vmem:[%s2790_s10 + $0x1e8] ss:$16 sps:$4 sm:$0xff]   ;;  %v2062_v26 = vld [vmem:[%s2790_s10 + $0x14c] ss:$16 sps:$4 sm:$0xff]  }
 0x138   : > { %1010 = vmatpush1.bf16.msra.mxu1 %v1940_v8  ;;  %v2035_v8 = vld [vmem:[%s2790_s10 + $0x1c4] ss:$16 sps:$4 sm:$0xff]  }
 0x139   : > { %1011 = vmatprep.subr.bf16.mxu1 %v1948_v9  ;;  %v2038_v9 = vld [vmem:[%s2790_s10 + $0x1cc] ss:$16 sps:$4 sm:$0xff]  }
 0x13c   : > { %1012 = vmatpush1.bf16.msra.mxu1 %v1946_v10  ;;  %v2033_v10 = vld [vmem:[%s2790_s10 + $0x1c0] ss:$16 sps:$4 sm:$0xff]  }
 0x13d   : > { %1013 = vmatprep.subr.bf16.mxu1 %v1954_v11  ;;  %v2036_v11 = vld [vmem:[%s2790_s10 + $0x1c8] ss:$16 sps:$4 sm:$0xff]  }
 0x140   : > { %1014 = vmatpush1.bf16.msra.mxu1 %v1952_v13  ;;  %v2041_v13 = vld [vmem:[%s2790_s10 + $0x1a4] ss:$16 sps:$4 sm:$0xff]  }
 0x141   : > { %1015 = vmatprep.subr.bf16.mxu1 %v1960_v14  ;;  %v2044_v14 = vld [vmem:[%s2790_s10 + $0x1ac] ss:$16 sps:$4 sm:$0xff]  }
 0x144   : > { %1016 = vmatpush1.bf16.msra.mxu1 %v1958_v15  ;;  %v2039_v15 = vld [vmem:[%s2790_s10 + $0x1a0] ss:$16 sps:$4 sm:$0xff]  }
 0x145   : > { %1017 = vmatprep.subr.bf16.mxu1 %v1966_v16  ;;  %v2042_v16 = vld [vmem:[%s2790_s10 + $0x1a8] ss:$16 sps:$4 sm:$0xff]  }
 0x148   : > { %1018 = vmatpush1.bf16.msra.mxu1 %v1964_v17  ;;  %v2047_v17 = vld [vmem:[%s2790_s10 + $0x184] ss:$16 sps:$4 sm:$0xff]  }
 0x149   : > { %1019 = vmatprep.subr.bf16.mxu1 %v1972_v18  ;;  %v2050_v18 = vld [vmem:[%s2790_s10 + $0x18c] ss:$16 sps:$4 sm:$0xff]  }
 0x14c   : > { %1020 = vmatpush1.bf16.msra.mxu1 %v1970_v19  ;;  %v2045_v19 = vld [vmem:[%s2790_s10 + $0x180] ss:$16 sps:$4 sm:$0xff]  }
 0x14d   : > { %1021 = vmatprep.subr.bf16.mxu1 %v1978_v21  ;;  %v2053_v21 = vld [vmem:[%s2790_s10 + $0x164] ss:$16 sps:$4 sm:$0xff]  }
 0x150   : > { %1022 = vmatpush1.bf16.msra.mxu1 %v1976_v23  ;;  %v2051_v23 = vld [vmem:[%s2790_s10 + $0x160] ss:$16 sps:$4 sm:$0xff]  }
 0x151   : > { %1473 = vmatprep.subr.bf16.mxu1 %v1984_v25  ;;  %v2059_v25 = vld [vmem:[%s2790_s10 + $0x144] ss:$16 sps:$4 sm:$0xff]  }
 0x1f3   : > { %v744_v28 = vpop.f32.mrf.mxu1 }
 0x1f4   : > { %v745_v30 = vadd.f32 %v744_v28, %v661_v27  ;;  %v2057_v27 = vld [vmem:[%s2790_s10 + $0x140] ss:$16 sps:$4 sm:$0xff]   ;;  %v2060_v28 = vld [vmem:[%s2790_s10 + $0x148] ss:$16 sps:$4 sm:$0xff]  }
 0x1f5   : > { %v1851_v31 = vpop.f32.mrf.mxu1 }
 0x1f6   : > { %v750_v33 = vmax.f32 %v745_v30, 0.0  ;;  %v2065_v30 = vld [vmem:[%s2790_s10 + $0x124] ss:$16 sps:$4 sm:$0xff]   ;;  %v2068_v31 = vld [vmem:[%s2790_s10 + $0x12c] ss:$16 sps:$4 sm:$0xff]  }
 0x1f7   : > { %v747_v34 = vpop.f32.mrf.mxu1 }
 0x1f8   : > { %v751_v37 = vpack.c.bf16 %v750_v33, %v750_v33  ;;  %v2063_v33 = vld [vmem:[%s2790_s10 + $0x120] ss:$16 sps:$4 sm:$0xff]   ;;  %v2066_v34 = vld [vmem:[%s2790_s10 + $0x128] ss:$16 sps:$4 sm:$0xff]  }
 0x1f9   : > { %v1852_v41 = vpop.f32.mrf.mxu1 }
 0x1fa   : > { %999 = vmatmul.mubr.bf16.vlgmr.msra.gmra.mxu0 %v751_v37  ;;  %1040 = vmatmul.mubr.bf16.vlgmr.msra.gmra.mxu1 %v751_v37  ;;  %v2069_v37 = vld [vmem:[%s2790_s10 + $0x100] ss:$16 sps:$4 sm:$0xff]  }
 0x1fb   : > { %1433 = vmatpush1.bf16.msra.mxu0 %v1979_v35  ;;  %1474 = vmatpush1.bf16.msra.mxu1 %v1982_v36  ;;  %v2071_v35 = vld [vmem:[%s2790_s10 + $0x104] ss:$16 sps:$4 sm:$0xff]   ;;  %v2074_v36 = vld [vmem:[%s2790_s10 + $0x10c] ss:$16 sps:$4 sm:$0xff]  }
 0x1fc   : > { %1434 = vmatprep.subr.bf16.mxu0 %v1987_v38  ;;  %1475 = vmatprep.subr.bf16.mxu1 %v1990_v39  ;;  %v2072_v38 = vld [vmem:[%s2790_s10 + $0x108] ss:$16 sps:$4 sm:$0xff]  }
 0x1fd   : > { %1464 = vmatprep.mubr.bf16.mxu0 %v2435_v40  ;;  %1505 = vmatprep.mubr.bf16.mxu1 %v2435_v40  ;;  %v2002_v40 = vld [vmem:[%s2790_s10 + $0x8c] ss:$16 sps:$4 sm:$0xff]  }
 0x1ff   : > { %1435 = vmatpush1.bf16.msra.mxu0 %v1985_v43  ;;  %1476 = vmatpush1.bf16.msra.mxu1 %v1988_v44 }
 0x200   : > { %1436 = vmatprep.subr.bf16.mxu0 %v1993_v45  ;;  %1477 = vmatprep.subr.bf16.mxu1 %v1996_v46 }
 0x203   : > { %1437 = vmatpush1.bf16.msra.mxu0 %v1991_v47  ;;  %1478 = vmatpush1.bf16.msra.mxu1 %v1994_v48 }
 0x204   : > { %1438 = vmatprep.subr.bf16.mxu0 %v1999_v49  ;;  %1479 = vmatprep.subr.bf16.mxu1 %v2002_v40  ;;  %v952_v49 = vsub.s32 1, %v2381_v12  ;;  %v960_v40 = vsub.s32 3, %v2381_v12 }
 0x207   : > { %1439 = vmatpush1.bf16.msra.mxu0 %v1997_v50  ;;  %1480 = vmatpush1.bf16.msra.mxu1 %v2000_v51  ;;  %v784_v50 = vld [vmem:[%s2789_s9] sm:$0xf]  ;;  %v2207_v51 = vmov 1966171168  }
 0x208   : > { %1440 = vmatprep.subr.bf16.mxu0 %v2005_v52  ;;  %1481 = vmatprep.subr.bf16.mxu1 %v2008_v53  ;;  %v1529_v52 = vunpack.c.l.s4 %v2207_v51  ;;  %v957_v53 = vrot.slane %v784_v50, %v468_v29 }
 0x20b   : > { %1441 = vmatpush1.bf16.msra.mxu0 %v2003_v54  ;;  %1482 = vmatpush1.bf16.msra.mxu1 %v2006_v55  ;;  %v953_v54 = vrot.slane %v784_v50, %v952_v49  ;;  %v961_v55 = vrot.slane %v784_v50, %v960_v40 }
 0x20c   : > { %1442 = vmatprep.subr.bf16.mxu0 %v2011_v56  ;;  %1483 = vmatprep.subr.bf16.mxu1 %v2014_v57  ;;  %v1530_v56 = vunpack.c.0.s8 %v1529_v52 }
 0x20f   : > { %1443 = vmatpush1.bf16.msra.mxu0 %v2009_v58  ;;  %1484 = vmatpush1.bf16.msra.mxu1 %v2012_v59 }
 0x210   : > { %1444 = vmatprep.subr.bf16.mxu0 %v2017_v60  ;;  %1485 = vmatprep.subr.bf16.mxu1 %v2020_v61 }
 0x213   : > { %1445 = vmatpush1.bf16.msra.mxu0 %v2015_v62  ;;  %1486 = vmatpush1.bf16.msra.mxu1 %v2018_v63 }
 0x214   : > { %1446 = vmatprep.subr.bf16.mxu0 %v2023_v0  ;;  %1487 = vmatprep.subr.bf16.mxu1 %v2026_v1  ;;  %v1533_v0 = vsub.s32 %v1530_v56, %v2381_v12 }
 0x217   : > { %1447 = vmatpush1.bf16.msra.mxu0 %v2021_v2  ;;  %1488 = vmatpush1.bf16.msra.mxu1 %v2024_v3 }
 0x218   : > { %1448 = vmatprep.subr.bf16.mxu0 %v2029_v4  ;;  %1489 = vmatprep.subr.bf16.mxu1 %v2032_v5 }
 0x21b   : > { %1449 = vmatpush2.bf16.msra.mxu0 %v2027_v6  ;;  %1490 = vmatpush2.bf16.msra.mxu1 %v2030_v7 }
 0x21c   : > { %1450 = vmatprep.subr.bf16.mxu0 %v2035_v8  ;;  %1491 = vmatprep.subr.bf16.mxu1 %v2038_v9 }
 0x21f   : > { %1451 = vmatpush2.bf16.msra.mxu0 %v2033_v10  ;;  %1492 = vmatpush2.bf16.msra.mxu1 %v2036_v11 }
 0x220   : > { %1452 = vmatprep.subr.bf16.mxu0 %v2041_v13  ;;  %1493 = vmatprep.subr.bf16.mxu1 %v2044_v14 }
 0x223   : > { %1453 = vmatpush2.bf16.msra.mxu0 %v2039_v15  ;;  %1494 = vmatpush2.bf16.msra.mxu1 %v2042_v16  ;;  %v1566_v15 = vld [vmem:[%s434_s22] sm:$0xf] }
 0x224   : > { %1454 = vmatprep.subr.bf16.mxu0 %v2047_v17  ;;  %1495 = vmatprep.subr.bf16.mxu1 %v2050_v18 }
 0x227   : > { %1455 = vmatpush2.bf16.msra.mxu0 %v2045_v19  ;;  %1496 = vmatpush2.bf16.msra.mxu1 %v2048_v20 }
 0x228   : > { %1456 = vmatprep.subr.bf16.mxu0 %v2053_v21  ;;  %1497 = vmatprep.subr.bf16.mxu1 %v2056_v22 }
 0x22b   : > { %1457 = vmatpush2.bf16.msra.mxu0 %v2051_v23  ;;  %1498 = vmatpush2.bf16.msra.mxu1 %v2054_v24 }
 0x22c   : > { %1458 = vmatprep.subr.bf16.mxu0 %v2059_v25  ;;  %1499 = vmatprep.subr.bf16.mxu1 %v2062_v26 }
 0x22f   : > { %1459 = vmatpush2.bf16.msra.mxu0 %v2057_v27  ;;  %1500 = vmatpush2.bf16.msra.mxu1 %v2060_v28 }
 0x230   : > { %1460 = vmatprep.subr.bf16.mxu0 %v2065_v30  ;;  %1501 = vmatprep.subr.bf16.mxu1 %v2068_v31 }
 0x233   : > { %1461 = vmatpush2.bf16.msra.mxu0 %v2063_v33  ;;  %1502 = vmatpush2.bf16.msra.mxu1 %v2066_v34 }
 0x234   : > { %1462 = vmatprep.subr.bf16.mxu0 %v2071_v35  ;;  %1503 = vmatprep.subr.bf16.mxu1 %v2074_v36 }
 0x237   : > { %1463 = vmatpush2.bf16.msra.mxu0 %v2069_v37  ;;  %1504 = vmatpush2.bf16.msra.mxu1 %v2072_v38 }
 0x23a   : > { %1465 = vmatmul.mubr.bf16.vlgmr.msra.gmra.mxu0 %v2442_v42  ;;  %1506 = vmatmul.mubr.bf16.vlgmr.msra.gmra.mxu1 %v2442_v42  ;;  %v949_v42 = vrot.slane %v784_v50, %v464_v32 }
 0x2ba   : > { %v1000_v39 = vpop.f32.mrf.mxu0  ;;  %v1041_v41 = vpop.f32.mrf.mxu1 }
 0x2bb   : > { %v1001_v32 = vadd.f32 %v1000_v39, %v949_v42  ;;  %v1042_v61 = vadd.f32 %v1041_v41, %v957_v53 }
 0x2bc   : > { %v1002_v43 = vpop.f32.mrf.mxu0  ;;  %v1043_v44 = vpop.f32.mrf.mxu1 }
 0x2bd   : > { %v1003_v62 = vadd.f32 %v1002_v43, %v953_v54  ;;  %v1044_v29 = vadd.f32 %v1043_v44, %v961_v55 }
 0x2be   : > { %v1004_v45 = vpop.f32.mrf.mxu0  ;;  %v1045_v46 = vpop.f32.mrf.mxu1 }
 0x2c0   : > { %v1005_v47 = vpop.f32.mrf.mxu0  ;;  %v1046_v48 = vpop.f32.mrf.mxu1 }
 0x2fa   : > { %v1466_v59 = vpop.f32.mrf.mxu0  ;;  %v1507_v60 = vpop.f32.mrf.mxu1 }
 0x2fb   : > { %v1514_v2 = vadd.f32 %v1466_v59, %v1001_v32  ;;  %v1516_v3 = vadd.f32 %v1507_v60, %v1042_v61 }
 0x2fc   : > { %v1468_v63 = vpop.f32.mrf.mxu0  ;;  %v1509_v1 = vpop.f32.mrf.mxu1 }
 0x2fd   : > { %v1515_v4 = vadd.f32 %v1468_v63, %v1003_v62  ;;  %v1517_v5 = vadd.f32 %v1509_v1, %v1044_v29 }
 0x2fe   : > { %v1470_v6 = vpop.f32.mrf.mxu0  ;;  %v1511_v7 = vpop.f32.mrf.mxu1 }
 0x2ff   : > { %v1798_v8 = vpack.c.bf16 %v1515_v4, %v1514_v2  ;;  %v1799_v9 = vpack.c.bf16 %v1517_v5, %v1516_v3 }
 0x300   : > { %v1471_v12 = vpop.f32.mrf.mxu0  ;;  %v1512_v10 = vpop.f32.mrf.mxu1 }
 0x301   : > { %v1534_v11 = vrot.slane %v1798_v8, %v1533_v0  ;;  %v1541_v13 = vrot.slane %v1799_v9, %v1533_v0 }
 0x303   : > { %v1542_v14 = vcombine.low %v1534_v11, %v1541_v13 }
 0x305   : > { %v1549_v16 = vrot.slane %v1542_v14, %v1533_v0 }
 0x307   : > { %v1567_v17 = vsel %vm1565_vm15, %v1549_v16, %v1566_v15 }
 0x308   : > { %1568 = vst [vmem:[%s434_s22] sm:$0xf] %v1567_v17 }
 0x309 PF: > { %s26_s5 = sadd.s32 1, %s2197_s5  }
 0x30a   : > { %p23_p1 = scmp.ge.s32.totalorder %s26_s5, 4  }
 0x30c   :  { %25 = sbr.rel (!%p23_p1) target bundleno = 3 (0x3), region = 111 }
 0x311   :  { %1588 = vsyncpa [#allocation4], 1 }
 0x312   :  { %1590 = vsyncpa [#allocation4 + $0x1], 1 }
 0x313   :  { %1591 = vsyncpa [#allocation6], 1 }
 0x314   :  { %1592 = vsyncpa [#allocation9], 1 }

// kernel: resnet18v2_forward.18
= control target key start
LH: loop header
LB: loop body
LE: loop exit
PB: predicated region body
PF: predicated region fallthrough
CT: control target
= control target key end

     0   :  { %s1617_s17 = smov 0   ;;  %s1926_s0 = inlined_call_operand.vmem [shape: bf16[2,1,512], index: 0, kind: input, shape index: {}]   ;;  %s1927_s1 = inlined_call_operand.vmem [shape: f32[1,512], index: 1, kind: input, shape index: {}]   ;;  %s1928_s2 = inlined_call_operand.vmem [shape: f32[1,512], index: 2, kind: input, shape index: {}]   ;;  %s1929_s3 = inlined_call_operand.vmem [shape: bf16[512,128], index: 3, kind: input, shape index: {}]   ;;  %s1930_s4 = inlined_call_operand.vmem [shape: f32[1,128], index: 4, kind: input, shape index: {}]   ;;  %s1931_s5 = inlined_call_operand.<no memory space> [shape: bf16[1,1,1], index: 5, kind: input, shape index: {}]   ;;  %s1932_s6 = inlined_call_operand.vmem [shape: bf16[1,128,128], index: 6, kind: input, shape index: {}]   ;;  %s1933_s7 = inlined_call_operand.vmem [shape: f32[1,128], index: 7, kind: input, shape index: {}]   ;;  %s1934_s8 = inlined_call_operand.vmem [shape: bf16[128,512], index: 8, kind: input, shape index: {}]   ;;  %s1935_s9 = inlined_call_operand.vmem [shape: f32[1,512], index: 9, kind: input, shape index: {}]   ;;  %s1936_s11 = inlined_call_operand.vmem [shape: bf16[2,1,512], index: 11, kind: output, shape index: {}]   ;;  %s1937_s10 = inlined_call_operand.<no memory space> [shape: bf16[1,1], index: 10, kind: input, shape index: {}]  }
   0x1 LB: > { %s1287_s5 = sadd.s32 4294967295, %s1550_s17   ;;  %p1291_p0 = scmp.ge.s32.totalorder %s1550_s17, 1  ;;  %s1550_s17 = sphi %s1617_s17, %s25_s17  }
   0x2   : > { %p340_p1 = scmp.lt.s32.totalorder %s1550_s17, 3 }
   0x4   : > { %p341_p2 = pnand %p1291_p0, %p340_p1 }
   0x5   : > { %p378_p3 = scmp.lt.s32.totalorder (!%p341_p2), %s1287_s5, 1 }
   0x6   : > { %344 = sbr.rel (%p341_p2) target bundleno = 658 (0x292), region = 64 }
   0xb   : > { %v1456_v0 = vld [vmem:[%s1929_s3 + $0x78] sm:$0xff]   ;;  %v1460_v4 = vld [vmem:[%s1929_s3 + $0x70] sm:$0xff]   ;;  %v1464_v8 = vld [vmem:[%s1929_s3 + $0x68] sm:$0xff]   ;;  %s1943_s5 = smov (!%p378_p3, %s1287_s5), 1  ;;  %v394_v30 = vlaneseq  ;;  %v1552_v33 = vmov 857870592  }
   0xc   : > { %v1457_v1 = vld [vmem:[%s1929_s3 + $0xf8] sm:$0xff]   ;;  %1370 = vmatprep.subr.bf16.mxu0 %v1456_v0  ;;  %v1461_v5 = vld [vmem:[%s1929_s3 + $0xf0] sm:$0xff]   ;;  %v1465_v9 = vld [vmem:[%s1929_s3 + $0xe8] sm:$0xff]   ;;  %s1292_s19 = sshll.u32 %s1943_s5, 2  ;;  %v392_v34 = vunpack.c.l.s4 %v1552_v33  ;;  %v1553_v36 = vmov 0.0   ;;  %vm1554_vm0 = vmmov 0  }
   0xd   : > { %v1458_v2 = vld [vmem:[%s1929_s3 + $0x38] sm:$0xff]   ;;  %1392 = vmatprep.subr.bf16.mxu1 %v1457_v1  ;;  %v1462_v6 = vld [vmem:[%s1929_s3 + $0x30] sm:$0xff]   ;;  %v1466_v10 = vld [vmem:[%s1929_s3 + $0x28] sm:$0xff]   ;;  %s381_s27 = scalar_lea.vmem %s1926_s0, %s1292_s19  ;;  %v1733_v35 = vshrl.u32 %v394_v30, 7  ;;  %vm1216_vm1 = vcmask 1040384   ;;  %vm1219_vm3 = vcmask 1041409   ;;  %s385_s30 = scalar_lea.vmem %s1936_s11, %s1292_s19 }
   0xe   : > { %v1459_v3 = vld [vmem:[%s1929_s3 + $0xb8] sm:$0xff]   ;;  %1371 = vmatpush3.bf16.msra.mxu0 %v1458_v2  ;;  %v1463_v7 = vld [vmem:[%s1929_s3 + $0xb0] sm:$0xff]   ;;  %v1467_v11 = vld [vmem:[%s1929_s3 + $0xa8] sm:$0xff]   ;;  %v393_v39 = vunpack.c.0.s8 %v392_v34  ;;  %vm1217_vm2 = vsmask.f32 256  ;;  %vm1223_vm7 = vcmask 1042434  }
   0xf   : > { %1393 = vmatpush3.bf16.msra.mxu1 %v1459_v3  ;;  %1372 = vmatprep.subr.bf16.mxu0 %v1460_v4  ;;  %v1468_v12 = vld [vmem:[%s1929_s3 + $0x60] sm:$0xff]   ;;  %v1472_v16 = vld [vmem:[%s1929_s3 + $0x58] sm:$0xff]   ;;  %v1476_v20 = vld [vmem:[%s1929_s3 + $0x50] sm:$0xff]   ;;  %v419_v46 = vsub.s32 2, %v1733_v35  ;;  %v427_v48 = vsub.s32 6, %v1733_v35  ;;  %v415_v49 = vsub.s32 0, %v1733_v35 }
  0x10   : > { %1394 = vmatprep.subr.bf16.mxu1 %v1461_v5  ;;  %v1469_v13 = vld [vmem:[%s1929_s3 + $0xe0] sm:$0xff]   ;;  %v1473_v17 = vld [vmem:[%s1929_s3 + $0xd8] sm:$0xff]   ;;  %v1477_v21 = vld [vmem:[%s1929_s3 + $0xd0] sm:$0xff]   ;;  %v396_v42 = vsub.s32 %v393_v39, %v1733_v35  ;;  %v423_v50 = vsub.s32 4, %v1733_v35  ;;  %vm1220_vm4 = vsmask.f32 1280 }
  0x11   : > { %v1470_v14 = vld [vmem:[%s1929_s3 + $0x20] sm:$0xff]   ;;  %v1474_v18 = vld [vmem:[%s1929_s3 + $0x18] sm:$0xff]   ;;  %v1478_v22 = vld [vmem:[%s1929_s3 + $0x10] sm:$0xff]   ;;  %vm1224_vm8 = vsmask.f32 2304  ;;  %vm1227_vm11 = vcmask 1043459  }
  0x12   : > { %1373 = vmatpush3.bf16.msra.mxu0 %v1462_v6  ;;  %v1471_v15 = vld [vmem:[%s1929_s3 + $0xa0] sm:$0xff]   ;;  %v1475_v19 = vld [vmem:[%s1929_s3 + $0x98] sm:$0xff]   ;;  %v1479_v23 = vld [vmem:[%s1929_s3 + $0x90] sm:$0xff]   ;;  %vm1228_vm12 = vsmask.f32 3328 }
  0x13   : > { %1395 = vmatpush3.bf16.msra.mxu1 %v1463_v7  ;;  %1374 = vmatprep.subr.bf16.mxu0 %v1464_v8  ;;  %v1480_v24 = vld [vmem:[%s1929_s3 + $0x48] sm:$0xff]   ;;  %v1484_v28 = vld [vmem:[%s1929_s3 + $0x40] sm:$0xff]   ;;  %v1488_v56 = vld [vmem:[%s1932_s6 + $0x38] sm:$0xff]  }
  0x14   : > { %1396 = vmatprep.subr.bf16.mxu1 %v1465_v9  ;;  %v1481_v25 = vld [vmem:[%s1929_s3 + $0xc8] sm:$0xff]   ;;  %v1485_v29 = vld [vmem:[%s1929_s3 + $0xc0] sm:$0xff]   ;;  %v1489_v61 = vld [vmem:[%s1932_s6 + $0x30] sm:$0xff]  }
  0x15   : > { %v1482_v26 = vld [vmem:[%s1929_s3 + $0x8] sm:$0xff]   ;;  %v1486_v31 = vld [vmem:[%s1929_s3] sm:$0xff]   ;;  %v1492_v0 = vld [vmem:[%s1932_s6 + $0x18] sm:$0xff]  }
  0x16   : > { %1375 = vmatpush3.bf16.msra.mxu0 %v1466_v10  ;;  %v1483_v27 = vld [vmem:[%s1929_s3 + $0x88] sm:$0xff]   ;;  %v1487_v32 = vld [vmem:[%s1929_s3 + $0x80] sm:$0xff]   ;;  %v1493_v1 = vld [vmem:[%s1932_s6 + $0x10] sm:$0xff]  }
  0x17   : > { %1397 = vmatpush3.bf16.msra.mxu1 %v1467_v11  ;;  %1376 = vmatprep.subr.bf16.mxu0 %v1468_v12  ;;  %v387_v37 = vld [vmem:[%s381_s27] sm:$0xf]  ;;  %v1490_v62 = vld [vmem:[%s1932_s6 + $0x28] sm:$0xff]   ;;  %v1498_v5 = vld [vmem:[%s1934_s8 + $0xe4] ss:$16 sps:$4 sm:$0xff]  }
  0x18   : > { %1398 = vmatprep.subr.bf16.mxu1 %v1469_v13  ;;  %v389_v38 = vld [vmem:[%s1927_s1] sm:$0xf]  ;;  %v388_v41 = vunpack.c.l.bf16 %v387_v37  ;;  %v1494_v2 = vld [vmem:[%s1932_s6 + $0x8] sm:$0xff]   ;;  %v1504_v7 = vld [vmem:[%s1934_s8 + $0xc4] ss:$16 sps:$4 sm:$0xff]  }
  0x19   : > { %v400_v40 = vld [vmem:[%s1928_s2] sm:$0xf]  ;;  %v397_v43 = vrot.slane %v389_v38, %v396_v42  ;;  %v1501_v6 = vld [vmem:[%s1934_s8 + $0xec] ss:$16 sps:$4 sm:$0xff]   ;;  %v1510_v9 = vld [vmem:[%s1934_s8 + $0xa4] ss:$16 sps:$4 sm:$0xff]  }
  0x1a   : > { %1377 = vmatpush3.bf16.msra.mxu0 %v1470_v14  ;;  %v408_v44 = vrot.slane %v400_v40, %v396_v42  ;;  %v1491_v63 = vld [vmem:[%s1932_s6 + $0x20] sm:$0xff]   ;;  %v1499_v33 = vld [vmem:[%s1934_s8 + $0xe8] ss:$16 sps:$4 sm:$0xff]   ;;  %v1513_v38 = vld [vmem:[%s1934_s8 + $0xac] ss:$16 sps:$4 sm:$0xff]  }
  0x1b   : > { %1399 = vmatpush3.bf16.msra.mxu1 %v1471_v15  ;;  %1378 = vmatprep.subr.bf16.mxu0 %v1472_v16  ;;  %v399_v45 = vmul.f32 %v397_v43, %v388_v41  ;;  %v1495_v3 = vld [vmem:[%s1932_s6] sm:$0xff]   ;;  %v1505_v37 = vld [vmem:[%s1934_s8 + $0xc8] ss:$16 sps:$4 sm:$0xff]   ;;  %v1519_v40 = vld [vmem:[%s1934_s8 + $0x8c] ss:$16 sps:$4 sm:$0xff]  }
  0x1c   : > { %1400 = vmatprep.subr.bf16.mxu1 %v1473_v17  ;;  %v1496_v4 = vld [vmem:[%s1934_s8 + $0xe0] ss:$16 sps:$4 sm:$0xff]   ;;  %v1516_v11 = vld [vmem:[%s1934_s8 + $0x84] ss:$16 sps:$4 sm:$0xff]   ;;  %v1511_v39 = vld [vmem:[%s1934_s8 + $0xa8] ss:$16 sps:$4 sm:$0xff]  }
  0x1d   : > { %v410_v47 = vadd.f32 %v408_v44, %v399_v45  ;;  %v1502_v8 = vld [vmem:[%s1934_s8 + $0xc0] ss:$16 sps:$4 sm:$0xff]   ;;  %v1522_v13 = vld [vmem:[%s1934_s8 + $0x64] ss:$16 sps:$4 sm:$0xff]   ;;  %v1517_v41 = vld [vmem:[%s1934_s8 + $0x88] ss:$16 sps:$4 sm:$0xff]  }
  0x1e   : > { %1379 = vmatpush3.bf16.msra.mxu0 %v1474_v18  ;;  %v1508_v10 = vld [vmem:[%s1934_s8 + $0xa0] ss:$16 sps:$4 sm:$0xff]   ;;  %v1528_v15 = vld [vmem:[%s1934_s8 + $0x44] ss:$16 sps:$4 sm:$0xff]   ;;  %v1525_v42 = vld [vmem:[%s1934_s8 + $0x6c] ss:$16 sps:$4 sm:$0xff]  }
  0x1f   : > { %1401 = vmatpush3.bf16.msra.mxu1 %v1475_v19  ;;  %1380 = vmatprep.subr.bf16.mxu0 %v1476_v20  ;;  %v411_v51 = vmax.f32 %v410_v47, 0.0  ;;  %v1514_v12 = vld [vmem:[%s1934_s8 + $0x80] ss:$16 sps:$4 sm:$0xff]   ;;  %v1534_v17 = vld [vmem:[%s1934_s8 + $0x24] ss:$16 sps:$4 sm:$0xff]   ;;  %vm1901_vm5 = vmand %vm1216_vm1, %vm1217_vm2 }
  0x20   : > { %1402 = vmatprep.subr.bf16.mxu1 %v1477_v21  ;;  %v1520_v14 = vld [vmem:[%s1934_s8 + $0x60] ss:$16 sps:$4 sm:$0xff]   ;;  %v1523_v43 = vld [vmem:[%s1934_s8 + $0x68] ss:$16 sps:$4 sm:$0xff]   ;;  %v1531_v44 = vld [vmem:[%s1934_s8 + $0x4c] ss:$16 sps:$4 sm:$0xff]  }
  0x21   : > { %v1748_v52 = vrot.slane %v411_v51, %v419_v46  ;;  %v1750_v53 = vrot.slane %v411_v51, %v427_v48  ;;  %v1754_v54 = vrot.slane %v411_v51, %v415_v49  ;;  %v1756_v55 = vrot.slane %v411_v51, %v423_v50  ;;  %v1526_v16 = vld [vmem:[%s1934_s8 + $0x40] ss:$16 sps:$4 sm:$0xff]   ;;  %v1529_v45 = vld [vmem:[%s1934_s8 + $0x48] ss:$16 sps:$4 sm:$0xff]   ;;  %v1537_v47 = vld [vmem:[%s1934_s8 + $0x2c] ss:$16 sps:$4 sm:$0xff]  }
  0x22   : > { %1381 = vmatpush3.bf16.msra.mxu0 %v1478_v22  ;;  %v1532_v18 = vld [vmem:[%s1934_s8 + $0x20] ss:$16 sps:$4 sm:$0xff]   ;;  %v1535_v48 = vld [vmem:[%s1934_s8 + $0x28] ss:$16 sps:$4 sm:$0xff]   ;;  %v1540_v50 = vld [vmem:[%s1934_s8 + $0x4] ss:$16 sps:$4 sm:$0xff]  }
  0x23   : > { %1403 = vmatpush3.bf16.msra.mxu1 %v1479_v23  ;;  %1382 = vmatprep.subr.bf16.mxu0 %v1480_v24  ;;  %v434_v57 = vpack.c.bf16 %v1748_v52, %v1748_v52  ;;  %v436_v58 = vpack.c.bf16 %v1750_v53, %v1750_v53  ;;  %v433_v59 = vpack.c.bf16 %v1754_v54, %v1754_v54  ;;  %v501_v21 = vld [vmem:[%s1930_s4] sm:$0x1]  ;;  %v1543_v51 = vld [vmem:[%s1934_s8 + $0xc] ss:$16 sps:$4 sm:$0xff]   ;;  %vm1905_vm6 = vmand %vm1219_vm3, %vm1220_vm4 }
  0x24   : > { %1404 = vmatprep.subr.bf16.mxu1 %v1481_v25  ;;  %v435_v60 = vpack.c.bf16 %v1756_v55, %v1756_v55  ;;  %vm1222_vm9 = vmor %vm1905_vm6, %vm1901_vm5 }
  0x25   : > { %726 = vmatprep.mubr.bf16.mxu0 %v434_v57  ;;  %766 = vmatprep.mubr.bf16.mxu1 %v436_v58  ;;  %v1541_v57 = vld [vmem:[%s1934_s8 + $0x8] ss:$16 sps:$4 sm:$0xff]   ;;  %v1555_v58 = vmov 0   ;;  %vm1225_vm10 = vmand %vm1223_vm7, %vm1224_vm8 }
  0x26   : > { %1383 = vmatpush3.bf16.msra.mxu0 %v1482_v26  ;;  %vm1226_vm13 = vmor %vm1225_vm10, %vm1222_vm9 }
  0x27   : > { %1405 = vmatpush3.bf16.msra.mxu1 %v1483_v27  ;;  %1384 = vmatprep.subr.bf16.mxu0 %v1484_v28  ;;  %vm1229_vm14 = vmand %vm1227_vm11, %vm1228_vm12 }
  0x28   : > { %1406 = vmatprep.subr.bf16.mxu1 %v1485_v29  ;;  %vm1230_vm15 = vmor %vm1229_vm14, %vm1226_vm13 }
  0x2a   : > { %1385 = vmatpush3.bf16.msra.mxu0 %v1486_v31 }
  0x2b   : > { %1407 = vmatpush3.bf16.msra.mxu1 %v1487_v32  ;;  %1423 = vmatprep.subr.bf16.mxu0 %v1553_v36 }
  0x2c   : > { %1097 = vmatprep.subr.bf16.mxu1 %v1498_v5  ;;  %v1091_v5 = vsub.s32 3, %v1733_v35 }
  0x2d   : > { %727 = vmatmul.mubr.bf16.vlgmr.msra.gmra.mxu0 %v433_v59  ;;  %v792_v59 = vld [vmem:[%s1933_s7] sm:$0x1] }
  0x2e   : > { %767 = vmatmul.mubr.bf16.vlgmr.msra.gmra.mxu1 %v435_v60  ;;  %1424 = vmatpush3.bf16.msra.mxu0 %v1488_v56  ;;  %v1538_v56 = vld [vmem:[%s1934_s8] ss:$16 sps:$4 sm:$0xff]  }
  0x2f   : > { %1425 = vmatprep.subr.bf16.mxu0 %v1553_v36  ;;  %1439 = vmatprep.mubr.msk.bf16.mxu0 %vm1554_vm0, %v1553_v36 }
  0x30   : > { %1098 = vmatpush1.bf16.msra.mxu1 %v1496_v4  ;;  %1129 = vmatprep.mubr.bf16.mxu1 %v1555_v58  ;;  %v1083_v4 = vsub.s32 1, %v1733_v35 }
  0x31   : > { %1099 = vmatprep.subr.bf16.mxu1 %v1504_v7 }
  0x32   : > { %1426 = vmatpush3.bf16.msra.mxu0 %v1489_v61 }
  0x33   : > { %1427 = vmatprep.subr.bf16.mxu0 %v1553_v36 }
  0x34   : > { %1100 = vmatpush1.bf16.msra.mxu1 %v1502_v8 }
  0x35   : > { %1101 = vmatprep.subr.bf16.mxu1 %v1510_v9 }
  0x36   : > { %1428 = vmatpush3.bf16.msra.mxu0 %v1490_v62 }
  0x37   : > { %1429 = vmatprep.subr.bf16.mxu0 %v1553_v36 }
  0x38   : > { %1102 = vmatpush1.bf16.msra.mxu1 %v1508_v10 }
  0x39   : > { %1103 = vmatprep.subr.bf16.mxu1 %v1516_v11 }
  0x3a   : > { %1430 = vmatpush3.bf16.msra.mxu0 %v1491_v63 }
  0x3b   : > { %1431 = vmatprep.subr.bf16.mxu0 %v1553_v36 }
  0x3c   : > { %1104 = vmatpush1.bf16.msra.mxu1 %v1514_v12 }
  0x3d   : > { %1105 = vmatprep.subr.bf16.mxu1 %v1522_v13 }
  0x3e   : > { %1432 = vmatpush3.bf16.msra.mxu0 %v1492_v0 }
  0x3f   : > { %1433 = vmatprep.subr.bf16.mxu0 %v1553_v36 }
  0x40   : > { %1106 = vmatpush1.bf16.msra.mxu1 %v1520_v14 }
  0x41   : > { %1107 = vmatprep.subr.bf16.mxu1 %v1528_v15 }
  0x42   : > { %1434 = vmatpush3.bf16.msra.mxu0 %v1493_v1 }
  0x43   : > { %1435 = vmatprep.subr.bf16.mxu0 %v1553_v36 }
  0x44   : > { %1108 = vmatpush1.bf16.msra.mxu1 %v1526_v16 }
  0x45   : > { %1109 = vmatprep.subr.bf16.mxu1 %v1534_v17 }
  0x46   : > { %1436 = vmatpush3.bf16.msra.mxu0 %v1494_v2 }
  0x47   : > { %1437 = vmatprep.subr.bf16.mxu0 %v1553_v36  ;;  %v1507_v36 = vld [vmem:[%s1934_s8 + $0xcc] ss:$16 sps:$4 sm:$0xff]  }
  0x48   : > { %1110 = vmatpush1.bf16.msra.mxu1 %v1532_v18 }
  0x49   : > { %1111 = vmatprep.subr.bf16.mxu1 %v1540_v50 }
  0x4a   : > { %1438 = vmatpush3.bf16.msra.mxu0 %v1495_v3  ;;  %v915_v3 = vld [vmem:[%s1935_s9] sm:$0xf] }
  0x4b   : > { %1138 = vmatprep.subr.bf16.mxu0 %v1501_v6  ;;  %v1556_v6 = vmov 1966171168   ;;  %v1080_v8 = vrot.slane %v915_v3, %v415_v49  ;;  %v1088_v9 = vrot.slane %v915_v3, %v419_v46  ;;  %v1084_v10 = vrot.slane %v915_v3, %v1083_v4 }
  0x4c   : > { %1112 = vmatpush1.bf16.msra.mxu1 %v1538_v56  ;;  %v1194_v7 = vunpack.c.l.s4 %v1556_v6  ;;  %v1092_v11 = vrot.slane %v915_v3, %v1091_v5 }
  0x4e   : > { %v1195_v14 = vunpack.c.0.s8 %v1194_v7 }
  0xed   : > { %v1386_v19 = vpop.f32.mrf.mxu0 }
  0xee   : > { %v1408_v20 = vpop.f32.mrf.mxu1 }
  0xef   : > { %v1387_v22 = vpop.f32.mrf.mxu0 }
  0xf0   : > { %v1409_v23 = vpop.f32.mrf.mxu1  ;;  %v1388_v24 = vadd.f32 %v1387_v22, %v1386_v19 }
  0xf1   : > { %v1389_v25 = vpop.f32.mrf.mxu0  ;;  %v1410_v28 = vadd.f32 %v1409_v23, %v1408_v20 }
  0xf2   : > { %v1411_v26 = vpop.f32.mrf.mxu1  ;;  %v729_v27 = vadd.f32 %v1388_v24, %v501_v21  ;;  %v1198_v21 = vsub.s32 %v1195_v14, %v1733_v35 }
  0xf3   : > { %v1390_v29 = vpop.f32.mrf.mxu0 }
  0xf4   : > { %v1412_v30 = vpop.f32.mrf.mxu1  ;;  %v769_v31 = vadd.f32 %v1410_v28, %v729_v27 }
  0xf6   : > { %v774_v32 = vmax.f32 %v769_v31, 0.0 }
  0xf8   : > { %v775_v34 = vpack.c.bf16 %v774_v32, %v774_v32 }
  0xfa   : > { %1440 = vmatmul.mubr.bf16.vlgmr.msra.gmra.mxu0 %v775_v34 }
  0xfb   : > { %1139 = vmatpush1.bf16.msra.mxu0 %v1499_v33  ;;  %1170 = vmatprep.mubr.bf16.mxu0 %v1555_v58 }
  0xfc   : > { %1140 = vmatprep.subr.bf16.mxu0 %v1507_v36 }
  0xff   : > { %1141 = vmatpush1.bf16.msra.mxu0 %v1505_v37 }
 0x100   : > { %1142 = vmatprep.subr.bf16.mxu0 %v1513_v38 }
 0x103   : > { %1143 = vmatpush1.bf16.msra.mxu0 %v1511_v39 }
 0x104   : > { %1144 = vmatprep.subr.bf16.mxu0 %v1519_v40 }
 0x107   : > { %1145 = vmatpush1.bf16.msra.mxu0 %v1517_v41 }
 0x108   : > { %1146 = vmatprep.subr.bf16.mxu0 %v1525_v42 }
 0x10b   : > { %1147 = vmatpush1.bf16.msra.mxu0 %v1523_v43 }
 0x10c   : > { %1148 = vmatprep.subr.bf16.mxu0 %v1531_v44 }
 0x10f   : > { %1149 = vmatpush1.bf16.msra.mxu0 %v1529_v45 }
 0x110   : > { %1150 = vmatprep.subr.bf16.mxu0 %v1537_v47 }
 0x113   : > { %1151 = vmatpush1.bf16.msra.mxu0 %v1535_v48 }
 0x114   : > { %1152 = vmatprep.subr.bf16.mxu0 %v1543_v51 }
 0x117   : > { %1153 = vmatpush1.bf16.msra.mxu0 %v1541_v57 }
 0x1ba   : > { %v875_v60 = vpop.f32.mrf.mxu0 }
 0x1bb   : > { %v876_v61 = vadd.f32 %v875_v60, %v792_v59 }
 0x1bc   : > { %v1441_v62 = vpop.f32.mrf.mxu0 }
 0x1bd   : > { %v881_v63 = vmax.f32 %v876_v61, 0.0 }
 0x1be   : > { %v878_v0 = vpop.f32.mrf.mxu0 }
 0x1bf   : > { %v882_v1 = vpack.c.bf16 %v881_v63, %v881_v63 }
 0x1c0   : > { %v1442_v2 = vpop.f32.mrf.mxu0 }
 0x1c1   : > { %1130 = vmatmul.mubr.bf16.vlgmr.msra.gmra.mxu1 %v882_v1  ;;  %1171 = vmatmul.mubr.bf16.vlgmr.msra.gmra.mxu0 %v882_v1 }
 0x281   : > { %v1131_v12 = vpop.f32.mrf.mxu1  ;;  %v1172_v13 = vpop.f32.mrf.mxu0 }
 0x282   : > { %v1132_v16 = vadd.f32 %v1131_v12, %v1080_v8  ;;  %v1173_v17 = vadd.f32 %v1172_v13, %v1088_v9 }
 0x283   : > { %v1133_v46 = vpop.f32.mrf.mxu1  ;;  %v1174_v18 = vpop.f32.mrf.mxu0 }
 0x284   : > { %v1134_v19 = vadd.f32 %v1133_v46, %v1084_v10  ;;  %v1175_v20 = vadd.f32 %v1174_v18, %v1092_v11  ;;  %v1179_v24 = vadd.f32 %v1132_v16, %v1754_v54  ;;  %v1181_v25 = vadd.f32 %v1173_v17, %v1756_v55 }
 0x285   : > { %v1135_v22 = vpop.f32.mrf.mxu1  ;;  %v1176_v23 = vpop.f32.mrf.mxu0 }
 0x286   : > { %v1180_v26 = vadd.f32 %v1134_v19, %v1748_v52  ;;  %v1182_v27 = vadd.f32 %v1175_v20, %v1750_v53  ;;  %v1231_v52 = vld [vmem:[%s385_s30] sm:$0xf] }
 0x287   : > { %v1136_v35 = vpop.f32.mrf.mxu1  ;;  %v1177_v28 = vpop.f32.mrf.mxu0 }
 0x288   : > { %v1366_v29 = vpack.c.bf16 %v1180_v26, %v1179_v24  ;;  %v1367_v30 = vpack.c.bf16 %v1182_v27, %v1181_v25 }
 0x28a   : > { %v1199_v54 = vrot.slane %v1366_v29, %v1198_v21  ;;  %v1206_v31 = vrot.slane %v1367_v30, %v1198_v21 }
 0x28c   : > { %v1207_v55 = vcombine.low %v1199_v54, %v1206_v31 }
 0x28e   : > { %v1214_v53 = vrot.slane %v1207_v55, %v1198_v21 }
 0x290   : > { %v1232_v32 = vsel %vm1230_vm15, %v1214_v53, %v1231_v52 }
 0x291   : > { %1233 = vst [vmem:[%s385_s30] sm:$0xf] %v1232_v32 }
 0x292 PF: > { %s25_s17 = sadd.s32 1, %s1550_s17  }
 0x293   : > { %p22_p4 = scmp.ge.s32.totalorder %s25_s17, 4  }
 0x295   :  { %24 = sbr.rel (!%p22_p4) target bundleno = 1 (0x1), region = 94 }

// kernel: resnet18v2_forward.19
= control target key start
LH: loop header
LB: loop body
LE: loop exit
PB: predicated region body
PF: predicated region fallthrough
CT: control target
= control target key end

     0   :  { %v26_v20 = vlaneseq  ;;  %s759_s0 = inlined_call_operand.vmem [shape: bf16[2,512], index: 0, kind: input, shape index: {}]   ;;  %s760_s1 = inlined_call_operand.vmem [shape: f32[1,512], index: 1, kind: input, shape index: {}]   ;;  %s761_s2 = inlined_call_operand.vmem [shape: f32[1,512], index: 2, kind: input, shape index: {}]   ;;  %s762_s3 = inlined_call_operand.vmem [shape: bf16[512,128], index: 3, kind: input, shape index: {}]   ;;  %s763_s4 = inlined_call_operand.vmem [shape: f32[1,128], index: 4, kind: input, shape index: {}]   ;;  %s764_s5 = inlined_call_operand.hbm [shape: f32[2,128], index: 5, kind: output, shape index: {}]  }
   0x1   :  { %v562_v0 = vld [vmem:[%s762_s3 + $0x78] sm:$0xff]   ;;  %v566_v4 = vld [vmem:[%s762_s3 + $0x70] sm:$0xff]   ;;  %v570_v8 = vld [vmem:[%s762_s3 + $0x68] sm:$0xff]  }
   0x2   :  { %v563_v1 = vld [vmem:[%s762_s3 + $0xf8] sm:$0xff]   ;;  %516 = vmatprep.subr.bf16.mxu0 %v562_v0  ;;  %v567_v5 = vld [vmem:[%s762_s3 + $0xf0] sm:$0xff]   ;;  %v571_v9 = vld [vmem:[%s762_s3 + $0xe8] sm:$0xff]   ;;  %v27_v25 = vshrl.u32 %v26_v20, 7 }
   0x3   :  { %v564_v2 = vld [vmem:[%s762_s3 + $0x38] sm:$0xff]   ;;  %538 = vmatprep.subr.bf16.mxu1 %v563_v1  ;;  %v568_v6 = vld [vmem:[%s762_s3 + $0x30] sm:$0xff]   ;;  %v572_v10 = vld [vmem:[%s762_s3 + $0x28] sm:$0xff]  }
   0x4   :  { %v565_v3 = vld [vmem:[%s762_s3 + $0xb8] sm:$0xff]   ;;  %517 = vmatpush3.bf16.msra.mxu0 %v564_v2  ;;  %v569_v7 = vld [vmem:[%s762_s3 + $0xb0] sm:$0xff]   ;;  %v573_v11 = vld [vmem:[%s762_s3 + $0xa8] sm:$0xff]   ;;  %v28_v30 = vsub.s32 0, %v27_v25  ;;  %v32_v32 = vsub.s32 1, %v27_v25  ;;  %v36_v34 = vsub.s32 2, %v27_v25 }
   0x5   :  { %539 = vmatpush3.bf16.msra.mxu1 %v565_v3  ;;  %518 = vmatprep.subr.bf16.mxu0 %v566_v4  ;;  %v574_v12 = vld [vmem:[%s762_s3 + $0x60] sm:$0xff]   ;;  %v578_v16 = vld [vmem:[%s762_s3 + $0x58] sm:$0xff]   ;;  %v582_v21 = vld [vmem:[%s762_s3 + $0x50] sm:$0xff]   ;;  %v40_v36 = vsub.s32 3, %v27_v25 }
   0x6   :  { %540 = vmatprep.subr.bf16.mxu1 %v567_v5  ;;  %v575_v13 = vld [vmem:[%s762_s3 + $0xe0] sm:$0xff]   ;;  %v579_v17 = vld [vmem:[%s762_s3 + $0xd8] sm:$0xff]   ;;  %v583_v22 = vld [vmem:[%s762_s3 + $0xd0] sm:$0xff]  }
   0x7   :  { %v576_v14 = vld [vmem:[%s762_s3 + $0x20] sm:$0xff]   ;;  %v580_v18 = vld [vmem:[%s762_s3 + $0x18] sm:$0xff]   ;;  %v584_v23 = vld [vmem:[%s762_s3 + $0x10] sm:$0xff]  }
   0x8   :  { %519 = vmatpush3.bf16.msra.mxu0 %v568_v6  ;;  %v577_v15 = vld [vmem:[%s762_s3 + $0xa0] sm:$0xff]   ;;  %v581_v19 = vld [vmem:[%s762_s3 + $0x98] sm:$0xff]   ;;  %v585_v24 = vld [vmem:[%s762_s3 + $0x90] sm:$0xff]  }
   0x9   :  { %541 = vmatpush3.bf16.msra.mxu1 %v569_v7  ;;  %520 = vmatprep.subr.bf16.mxu0 %v570_v8  ;;  %v586_v26 = vld [vmem:[%s762_s3 + $0x48] sm:$0xff]   ;;  %v590_v31 = vld [vmem:[%s762_s3 + $0x40] sm:$0xff]  }
   0xa   :  { %542 = vmatprep.subr.bf16.mxu1 %v571_v9  ;;  %v587_v27 = vld [vmem:[%s762_s3 + $0xc8] sm:$0xff]   ;;  %v591_v33 = vld [vmem:[%s762_s3 + $0xc0] sm:$0xff]  }
   0xb   :  { %v588_v28 = vld [vmem:[%s762_s3 + $0x8] sm:$0xff]   ;;  %v592_v35 = vld [vmem:[%s762_s3] sm:$0xff]  }
   0xc   :  { %521 = vmatpush3.bf16.msra.mxu0 %v572_v10  ;;  %v589_v29 = vld [vmem:[%s762_s3 + $0x88] sm:$0xff]   ;;  %v593_v37 = vld [vmem:[%s762_s3 + $0x80] sm:$0xff]  }
   0xd   :  { %543 = vmatpush3.bf16.msra.mxu1 %v573_v11  ;;  %522 = vmatprep.subr.bf16.mxu0 %v574_v12  ;;  %v24_v38 = vld [vmem:[%s760_s1] sm:$0xf] }
   0xe   :  { %544 = vmatprep.subr.bf16.mxu1 %v575_v13  ;;  %v29_v39 = vrot.slane %v24_v38, %v28_v30  ;;  %v33_v40 = vrot.slane %v24_v38, %v32_v32  ;;  %v37_v41 = vrot.slane %v24_v38, %v36_v34  ;;  %v61_v42 = vld [vmem:[%s761_s2] sm:$0xf] }
  0x10   :  { %523 = vmatpush3.bf16.msra.mxu0 %v576_v14 }
  0x11   :  { %545 = vmatpush3.bf16.msra.mxu1 %v577_v15  ;;  %524 = vmatprep.subr.bf16.mxu0 %v578_v16 }
  0x12   :  { %546 = vmatprep.subr.bf16.mxu1 %v579_v17 }
  0x14   :  { %525 = vmatpush3.bf16.msra.mxu0 %v580_v18 }
  0x15   :  { %547 = vmatpush3.bf16.msra.mxu1 %v581_v19  ;;  %526 = vmatprep.subr.bf16.mxu0 %v582_v21 }
  0x16   :  { %548 = vmatprep.subr.bf16.mxu1 %v583_v22 }
  0x18   :  { %527 = vmatpush3.bf16.msra.mxu0 %v584_v23 }
  0x19   :  { %549 = vmatpush3.bf16.msra.mxu1 %v585_v24  ;;  %528 = vmatprep.subr.bf16.mxu0 %v586_v26 }
  0x1a   :  { %550 = vmatprep.subr.bf16.mxu1 %v587_v27 }
  0x1c   :  { %529 = vmatpush3.bf16.msra.mxu0 %v588_v28 }
  0x1d   :  { %551 = vmatpush3.bf16.msra.mxu1 %v589_v29  ;;  %530 = vmatprep.subr.bf16.mxu0 %v590_v31 }
  0x1e   :  { %552 = vmatprep.subr.bf16.mxu1 %v591_v33 }
  0x20   :  { %531 = vmatpush3.bf16.msra.mxu0 %v592_v35 }
  0x21   :  { %553 = vmatpush3.bf16.msra.mxu1 %v593_v37 }
  0x22   :  { %10 = vsyncpa [#allocation3], 0  ;;  %v41_v43 = vrot.slane %v24_v38, %v40_v36  ;;  %v616_v44 = vmov 1983009808   ;;  %v66_v46 = vrot.slane %v61_v42, %v28_v30  ;;  %v70_v47 = vrot.slane %v61_v42, %v32_v32  ;;  %v22_v50 = vld [vmem:[%s759_s0] sm:$0xf] }
  0x23   :  { %v45_v45 = vunpack.c.l.s4 %v616_v44  ;;  %v74_v48 = vrot.slane %v61_v42, %v36_v34  ;;  %v78_v49 = vrot.slane %v61_v42, %v40_v36  ;;  %v42_v51 = vcombine.low %v29_v39, %v33_v40  ;;  %v483_v14 = vld [vmem:[%s763_s4] ss:$0 sm:$0xff]  ;;  %s617_s2 = smov [#allocation2]  }
  0x24   :  { %v43_v52 = vcombine.low %v37_v41, %v41_v43  ;;  %v79_v54 = vcombine.low %v66_v46, %v70_v47  ;;  %v23_v57 = vunpack.c.l.bf16 %v22_v50  ;;  %s475_s12 = sshll.u32 %s617_s2, 4  ;;  %s476_s12 = int_to_ptr.vmem [resolvable:$true] %s475_s12 }
  0x25   :  { %v46_v53 = vunpack.c.0.s8 %v45_v45  ;;  %v80_v55 = vcombine.low %v74_v48, %v78_v49  ;;  %s594_s13 = scalar_lea.vmem %s476_s12, 32  ;;  %p599_p1 = scmp.lt.s32.totalorder %s476_s12, %s476_s12 }
  0x26   :  { %p595_p0 = scmp.ne.s32.totalorder %s476_s12, %s594_s13  ;;  %p600_p2 = scmp.lt.s32.totalorder %s594_s13, %s594_s13 }
  0x27   :  { %v49_v56 = vsub.s32 %v46_v53, %v27_v25 }
  0x28   :  { %p601_p3 = por %p600_p2, %p599_p1 }
  0x29   :  { %v50_v58 = vrot.slane %v42_v51, %v49_v56  ;;  %v57_v59 = vrot.slane %v43_v52, %v49_v56  ;;  %v87_v60 = vrot.slane %v79_v54, %v49_v56  ;;  %v94_v61 = vrot.slane %v80_v55, %v49_v56 }
  0x2a   :  { %p602_p4 = pnand %p601_p3, %p595_p0 }
  0x2b   :  { %v58_v62 = vcombine.low %v50_v58, %v57_v59  ;;  %v95_v63 = vcombine.low %v87_v60, %v94_v61 }
  0x2d   :  { %v60_v0 = vmul.f32 %v58_v62, %v23_v57 }
  0x2f   :  { %v97_v1 = vadd.f32 %v95_v63, %v60_v0 }
  0x31   :  { %v98_v2 = vmax.f32 %v97_v1, 0.0 }
  0x33   :  { %v107_v3 = vrot.slane %v98_v2, %v49_v56  ;;  %v100_v4 = vcombine.high %v98_v2, %v98_v2 }
  0x35   :  { %v115_v5 = vcombine.high %v107_v3, %v107_v3  ;;  %v114_v6 = vrot.slane %v100_v4, %v49_v56  ;;  %v121_v7 = vpack.c.bf16 %v107_v3, %v107_v3 }
  0x37   :  { %v122_v8 = vpack.c.bf16 %v115_v5, %v115_v5  ;;  %v116_v9 = vcombine.high %v114_v6, %v114_v6  ;;  %v123_v10 = vpack.c.bf16 %v114_v6, %v114_v6 }
  0x39   :  { %420 = vmatprep.mubr.bf16.mxu0 %v122_v8  ;;  %v124_v11 = vpack.c.bf16 %v116_v9, %v116_v9 }
  0x3a   :  { %421 = vmatmul.mubr.bf16.vlgmr.msra.gmra.mxu0 %v121_v7 }
  0x3b   :  { %460 = vmatprep.mubr.bf16.mxu1 %v124_v11 }
  0x3c   :  { %461 = vmatmul.mubr.bf16.vlgmr.msra.gmra.mxu1 %v123_v10 }
  0xfa   :  { %v532_v12 = vpop.f32.mrf.mxu0 }
  0xfc   :  { %v554_v13 = vpop.f32.mrf.mxu1  ;;  %v533_v15 = vpop.f32.mrf.mxu0 }
  0xfd   :  { %v534_v16 = vadd.f32 %v533_v15, %v532_v12 }
  0xfe   :  { %v555_v17 = vpop.f32.mrf.mxu1  ;;  %v535_v18 = vpop.f32.mrf.mxu0 }
  0xff   :  { %v423_v19 = vadd.f32 %v534_v16, %v483_v14  ;;  %v556_v20 = vadd.f32 %v555_v17, %v554_v13 }
 0x100   :  { %v557_v21 = vpop.f32.mrf.mxu1  ;;  %v536_v22 = vpop.f32.mrf.mxu0 }
 0x101   :  { %v463_v23 = vadd.f32 %v556_v20, %v423_v19 }
 0x102   :  { %v558_v24 = vpop.f32.mrf.mxu1 }
 0x103   :  { %468 = vst [vmem:[#allocation2] sm:$0x3] %v463_v23 }
 0x104   :  { %605 = shalt.err (!%p602_p4)
}
 0x105   :  { %478 = dma.vmem_to_hbm [thread:$0]  %s476_s12, 32, %s764_s5, [#allocation3]  }
 0x106   :  { %614 = dma.done.wait [#allocation3], 32  }
 0x107   :  { %615 = vsyncadd [#allocation3], 4294967264 }
 0x108   :  { %482 = vsyncpa [#allocation3], 1 }

</bundles_post_ra>
